<compile_context>
chip_gen: v6e
topology: v6e:2x2x1
jax: 0.10.0
libtpu: 0.0.40
codegen_flags: <defaults>
</compile_context>

<pallas_src>
import functools

import jax
import jax.numpy as jnp
from jax.experimental import pallas as pl
from jax.experimental.pallas import tpu as pltpu


def dknn_kernel(q_ref, xt_ref, out_ref, *, k, tau, tkk, use_bf16_matmul):
    f32 = jnp.float32
    q = q_ref[...].astype(f32)      # (TM, D)  query tile
    xt = xt_ref[...].astype(f32)    # (D, N)   neighbors, pre-transposed, resident
    tm = q.shape[0]
    n = xt.shape[1]

    # ---- scores s = -||q - x||^2 via matmul identity (MXU) -------------------
    q_sq = jnp.sum(q * q, axis=1, keepdims=True)          # (TM, 1)
    x_sq = jnp.sum(xt * xt, axis=0, keepdims=True)        # (1, N)
    if use_bf16_matmul:
        # v6e/v7x fast path: bf16 MXU inputs, f32 accumulation (looser accuracy).
        cross = jnp.dot(q.astype(jnp.bfloat16), xt.astype(jnp.bfloat16),
                        preferred_element_type=f32)        # (TM, N)
    else:
        cross = jnp.dot(q, xt, preferred_element_type=f32,
                        precision=jax.lax.Precision.HIGHEST)  # (TM, N)
    s = 2.0 * cross - q_sq - x_sq                           # = -l2, (TM, N)

    # ---- rowsum[b, j] = sum_kk |s[b,j] - s[b,kk]|, chunked over kk -----------
    # Chunking keeps the live intermediate at (TM, N, TKK) instead of (TM, N, N).
    # n_chunks is static -> this unrolls exactly like fori_loop(..., unroll=True).
    n_chunks = n // tkk
    rowsum = jnp.zeros((tm, n), f32)
    for c in range(n_chunks):
        s_chunk = s[:, c * tkk:(c + 1) * tkk]               # (TM, TKK) static slice
        rowsum = rowsum + jnp.sum(
            jnp.abs(s[:, :, None] - s_chunk[:, None, :]), axis=2)

    inv_tau = 1.0 / tau
    rowsum_t = rowsum * inv_tau                             # fold 1/tau once

    # ---- only the first k rows of the NeuralSort soft permutation -----------
    acc = jnp.zeros((tm, n), f32)
    for i in range(k):                                      # k is small & static
        scale_i = (n + 1.0 - 2.0 * (i + 1.0)) * inv_tau     # python constant
        logits = scale_i * s - rowsum_t                     # (TM, N)
        m = jnp.max(logits, axis=-1, keepdims=True)
        e = jnp.exp(logits - m)
        # Per-row reciprocal (TM divides) + broadcast multiply instead of a
        # full-width divide.  (On HW, pl.reciprocal(denom, approx=True) would
        # move this onto the EUP slot at ~1e-3 relative error.)
        inv_denom = 1.0 / jnp.sum(e, axis=-1, keepdims=True)
        acc = acc + e * inv_denom
    out_ref[...] = acc.astype(out_ref.dtype)


def dknn_forward(query, neighbors, *, k, tau=1.0, tm=8, tkk=128,
                 use_bf16_matmul=False):
    """query: (M, D), neighbors: (N, D) -> (M, N) soft top-k membership."""
    M, D = query.shape
    N, D2 = neighbors.shape
    assert D == D2
    assert 1 <= k <= N

    # Lane-dense output / full-width lane reductions want N % 128 == 0.
    # TODO(synk): pad + mask the neighbor axis (rowsum, softmax, matmul) for N
    # that is not a multiple of 128; for now fall back to a single full chunk.
    if N % 128 == 0:
        tkk = min(tkk, N)
        if N % tkk != 0:
            tkk = 128
    else:
        tkk = N

    # Query tile (sublane-aligned); pad M so TM divides it. Padded query rows
    # are fully independent garbage rows and are sliced off below.
    tm = max(8, min(int(tm), 256))
    m_pad = pl.cdiv(M, tm) * tm
    q_in = query
    if m_pad != M:
        q_in = jnp.pad(query, ((0, m_pad - M), (0, 0)))

    # Pre-transpose neighbors to (D, N): the MXU contracts D directly and the
    # kernel never has to transpose the resident slab.
    neighbors_t = jnp.transpose(neighbors)                  # (D, N)

    kernel = functools.partial(dknn_kernel, k=int(k), tau=float(tau),
                               tkk=int(tkk), use_bf16_matmul=use_bf16_matmul)

    cost = pl.CostEstimate(
        flops=2 * m_pad * N * D + 3 * m_pad * N * N + 8 * k * m_pad * N,
        transcendentals=k * m_pad * N,
        bytes_accessed=(m_pad * D + D * N + m_pad * N) * 4,
    )

    out = pl.pallas_call(
        kernel,
        out_shape=jax.ShapeDtypeStruct((m_pad, N), jnp.float32),
        grid=(m_pad // tm,),
        in_specs=[
            pl.BlockSpec((tm, D), lambda i: (i, 0)),        # query tile: pipelined
            pl.BlockSpec((D, N), lambda i: (0, 0)),         # neighbors: resident
        ],
        out_specs=pl.BlockSpec((tm, N), lambda i: (i, 0)),  # lane-dense output
        compiler_params=pltpu.CompilerParams(
            dimension_semantics=("parallel",),              # megacore split on v7x
            vmem_limit_bytes=32 * 1024 * 1024,              # fits v7x 64 MiB phys
        ),
        cost_estimate=cost,
    )(q_in, neighbors_t)
    return out[:M]


def dknn_reference(query, neighbors, *, k, tau=1.0):
    """Pure-JAX reference matching the PyTorch DKNN/NeuralSort forward."""
    q = query.astype(jnp.float32)
    x = neighbors.astype(jnp.float32)
    diffs = q[:, None, :] - x[None, :, :]
    l2 = jnp.sum(diffs ** 2, axis=2)
    s = -l2
    n = s.shape[1]
    a_abs = jnp.abs(s[:, :, None] - s[:, None, :])
    rowsum = jnp.sum(a_abs, axis=2)
    scaling = n + 1 - 2 * (jnp.arange(n, dtype=jnp.float32) + 1)
    p_max = scaling[None, :, None] * s[:, None, :] - rowsum[:, None, :]
    p_hat = jax.nn.softmax(p_max / tau, axis=-1)
    return jnp.sum(p_hat[:, :k, :], axis=1)


if __name__ == "__main__":
    key = jax.random.PRNGKey(0)
    kq, kn = jax.random.split(key)

    M, N, D = 16, 256, 32    # queries, neighbors (lane-dense multiple of 128), feat dim
    K = 3
    TAU = 16.0               # soft-but-structured regime for the relaxed sort

    query = jax.random.normal(kq, (M, D), dtype=jnp.float32)
    neighbors = jax.random.normal(kn, (N, D), dtype=jnp.float32)

    out = dknn_forward(query, neighbors, k=K, tau=TAU)   # exercises 2 grid steps,
    out = jax.block_until_ready(out)                     # 2 rowsum chunks

    ref = dknn_reference(query, neighbors, k=K, tau=TAU)

    assert out.shape == (M, N)
    assert bool(jnp.all(jnp.isfinite(out)))
    # Each of the k soft-permutation rows sums to 1 -> the soft k-hot sums to k.
    assert bool(jnp.allclose(jnp.sum(out, axis=-1), float(K), atol=1e-3))
    # Kernel reduces scores/rowsum in a different (but valid) order than the
    # pure-JAX reference and those logits feed an exp(); 1e-5 is tighter than
    # f32 permits here, so compare at a realistic tolerance.
    assert bool(jnp.allclose(out, ref, atol=5e-3, rtol=5e-3))

    print("KERNEL_OK")
</pallas_src>

<mosaic_0001>
module attributes {stable_mosaic.version = 11 : i64} {
  func.func @dknn_kernel(%arg0: i32, %arg1: memref<8x32xf32, #tpu.memory_space<vmem>>, %arg2: memref<32x256xf32, #tpu.memory_space<vmem>>, %arg3: memref<8x256xf32, #tpu.memory_space<vmem>>) attributes {dimension_semantics = [#tpu.dimension_semantics<parallel>], iteration_bounds = array<i64: 2>, scalar_prefetch = 0 : i64, scratch_operands = 0 : i64, tpu.core_type = #tpu.core_type<tc>, window_params = [{transform_indices = @transform_0, window_bounds = array<i64: 8, 32>}, {pipeline_mode = #tpu.pipeline_mode<synchronous>, transform_indices = @transform_1, window_bounds = array<i64: 32, 256>}, {transform_indices = @transform_2, window_bounds = array<i64: 8, 256>}]} {
    %c0 = arith.constant 0 : index
    %c0_0 = arith.constant 0 : index
    %0 = vector.load %arg1[%c0, %c0_0] : memref<8x32xf32, #tpu.memory_space<vmem>>, vector<8x32xf32>
    %c0_1 = arith.constant 0 : index
    %c0_2 = arith.constant 0 : index
    %1 = vector.load %arg2[%c0_1, %c0_2] : memref<32x256xf32, #tpu.memory_space<vmem>>, vector<32x256xf32>
    %2 = arith.mulf %0, %0 : vector<8x32xf32>
    %cst = arith.constant dense<0.000000e+00> : vector<8xf32>
    %3 = vector.multi_reduction <add>, %2, %cst [1] : vector<8x32xf32> to vector<8xf32>
    %4 = vector.shape_cast %3 : vector<8xf32> to vector<8x1xf32>
    %5 = arith.mulf %1, %1 : vector<32x256xf32>
    %cst_3 = arith.constant dense<0.000000e+00> : vector<256xf32>
    %6 = vector.multi_reduction <add>, %5, %cst_3 [0] : vector<32x256xf32> to vector<256xf32>
    %7 = vector.shape_cast %6 : vector<256xf32> to vector<1x256xf32>
    %cst_4 = arith.constant dense<0.000000e+00> : vector<8x256xf32>
    %8 = tpu.matmul %0, %1, %cst_4 {dimension_numbers = #tpu.dot_dimension_numbers<[1], [0], [0], [1], [0, 0, 1, 1], [], []>, precision = #tpu.contract_precision<fp32>} : vector<8x32xf32>, vector<32x256xf32>, vector<8x256xf32> -> vector<8x256xf32>
    %cst_5 = arith.constant 2.000000e+00 : f32
    %9 = vector.broadcast %cst_5 : f32 to vector<8x256xf32>
    %10 = arith.mulf %9, %8 : vector<8x256xf32>
    %11 = vector.broadcast %4 : vector<8x1xf32> to vector<8x256xf32>
    %12 = arith.subf %10, %11 : vector<8x256xf32>
    %13 = vector.broadcast %7 : vector<1x256xf32> to vector<8x256xf32>
    %14 = arith.subf %12, %13 : vector<8x256xf32>
    %cst_6 = arith.constant 0.000000e+00 : f32
    %15 = vector.broadcast %cst_6 : f32 to vector<8x256xf32>
    %16 = vector.extract_strided_slice %14 {offsets = [0, 0], sizes = [8, 128], strides = [1, 1]} : vector<8x256xf32> to vector<8x128xf32>
    %17 = vector.shape_cast %14 : vector<8x256xf32> to vector<8x256x1xf32>
    %18 = vector.shape_cast %16 : vector<8x128xf32> to vector<8x1x128xf32>
    %19 = vector.broadcast %17 : vector<8x256x1xf32> to vector<8x256x128xf32>
    %20 = vector.broadcast %18 : vector<8x1x128xf32> to vector<8x256x128xf32>
    %21 = arith.subf %19, %20 : vector<8x256x128xf32>
    %22 = math.absf %21 : vector<8x256x128xf32>
    %cst_7 = arith.constant dense<0.000000e+00> : vector<8x256xf32>
    %23 = vector.multi_reduction <add>, %22, %cst_7 [2] : vector<8x256x128xf32> to vector<8x256xf32>
    %24 = arith.addf %15, %23 : vector<8x256xf32>
    %25 = vector.extract_strided_slice %14 {offsets = [0, 128], sizes = [8, 128], strides = [1, 1]} : vector<8x256xf32> to vector<8x128xf32>
    %26 = vector.shape_cast %14 : vector<8x256xf32> to vector<8x256x1xf32>
    %27 = vector.shape_cast %25 : vector<8x128xf32> to vector<8x1x128xf32>
    %28 = vector.broadcast %26 : vector<8x256x1xf32> to vector<8x256x128xf32>
    %29 = vector.broadcast %27 : vector<8x1x128xf32> to vector<8x256x128xf32>
    %30 = arith.subf %28, %29 : vector<8x256x128xf32>
    %31 = math.absf %30 : vector<8x256x128xf32>
    %cst_8 = arith.constant dense<0.000000e+00> : vector<8x256xf32>
    %32 = vector.multi_reduction <add>, %31, %cst_8 [2] : vector<8x256x128xf32> to vector<8x256xf32>
    %33 = arith.addf %24, %32 : vector<8x256xf32>
    %cst_9 = arith.constant 6.250000e-02 : f32
    %34 = vector.broadcast %cst_9 : f32 to vector<8x256xf32>
    %35 = arith.mulf %33, %34 : vector<8x256xf32>
    %cst_10 = arith.constant 0.000000e+00 : f32
    %36 = vector.broadcast %cst_10 : f32 to vector<8x256xf32>
    %cst_11 = arith.constant 1.593750e+01 : f32
    %37 = vector.broadcast %cst_11 : f32 to vector<8x256xf32>
    %38 = arith.mulf %37, %14 : vector<8x256xf32>
    %39 = arith.subf %38, %35 : vector<8x256xf32>
    %cst_12 = arith.constant dense<0xFF800000> : vector<8xf32>
    %40 = vector.multi_reduction <maximumf>, %39, %cst_12 [1] : vector<8x256xf32> to vector<8xf32>
    %41 = vector.shape_cast %40 : vector<8xf32> to vector<8x1xf32>
    %42 = vector.broadcast %41 : vector<8x1xf32> to vector<8x256xf32>
    %43 = arith.subf %39, %42 : vector<8x256xf32>
    %44 = math.exp %43 : vector<8x256xf32>
    %cst_13 = arith.constant dense<0.000000e+00> : vector<8xf32>
    %45 = vector.multi_reduction <add>, %44, %cst_13 [1] : vector<8x256xf32> to vector<8xf32>
    %46 = vector.shape_cast %45 : vector<8xf32> to vector<8x1xf32>
    %cst_14 = arith.constant 1.000000e+00 : f32
    %47 = vector.broadcast %cst_14 : f32 to vector<8x1xf32>
    %48 = arith.divf %47, %46 : vector<8x1xf32>
    %49 = vector.broadcast %48 : vector<8x1xf32> to vector<8x256xf32>
    %50 = arith.mulf %44, %49 : vector<8x256xf32>
    %51 = arith.addf %36, %50 : vector<8x256xf32>
    %cst_15 = arith.constant 1.581250e+01 : f32
    %52 = vector.broadcast %cst_15 : f32 to vector<8x256xf32>
    %53 = arith.mulf %52, %14 : vector<8x256xf32>
    %54 = arith.subf %53, %35 : vector<8x256xf32>
    %cst_16 = arith.constant dense<0xFF800000> : vector<8xf32>
    %55 = vector.multi_reduction <maximumf>, %54, %cst_16 [1] : vector<8x256xf32> to vector<8xf32>
    %56 = vector.shape_cast %55 : vector<8xf32> to vector<8x1xf32>
    %57 = vector.broadcast %56 : vector<8x1xf32> to vector<8x256xf32>
    %58 = arith.subf %54, %57 : vector<8x256xf32>
    %59 = math.exp %58 : vector<8x256xf32>
    %cst_17 = arith.constant dense<0.000000e+00> : vector<8xf32>
    %60 = vector.multi_reduction <add>, %59, %cst_17 [1] : vector<8x256xf32> to vector<8xf32>
    %61 = vector.shape_cast %60 : vector<8xf32> to vector<8x1xf32>
    %cst_18 = arith.constant 1.000000e+00 : f32
    %62 = vector.broadcast %cst_18 : f32 to vector<8x1xf32>
    %63 = arith.divf %62, %61 : vector<8x1xf32>
    %64 = vector.broadcast %63 : vector<8x1xf32> to vector<8x256xf32>
    %65 = arith.mulf %59, %64 : vector<8x256xf32>
    %66 = arith.addf %51, %65 : vector<8x256xf32>
    %cst_19 = arith.constant 1.568750e+01 : f32
    %67 = vector.broadcast %cst_19 : f32 to vector<8x256xf32>
    %68 = arith.mulf %67, %14 : vector<8x256xf32>
    %69 = arith.subf %68, %35 : vector<8x256xf32>
    %cst_20 = arith.constant dense<0xFF800000> : vector<8xf32>
    %70 = vector.multi_reduction <maximumf>, %69, %cst_20 [1] : vector<8x256xf32> to vector<8xf32>
    %71 = vector.shape_cast %70 : vector<8xf32> to vector<8x1xf32>
    %72 = vector.broadcast %71 : vector<8x1xf32> to vector<8x256xf32>
    %73 = arith.subf %69, %72 : vector<8x256xf32>
    %74 = math.exp %73 : vector<8x256xf32>
    %cst_21 = arith.constant dense<0.000000e+00> : vector<8xf32>
    %75 = vector.multi_reduction <add>, %74, %cst_21 [1] : vector<8x256xf32> to vector<8xf32>
    %76 = vector.shape_cast %75 : vector<8xf32> to vector<8x1xf32>
    %cst_22 = arith.constant 1.000000e+00 : f32
    %77 = vector.broadcast %cst_22 : f32 to vector<8x1xf32>
    %78 = arith.divf %77, %76 : vector<8x1xf32>
    %79 = vector.broadcast %78 : vector<8x1xf32> to vector<8x256xf32>
    %80 = arith.mulf %74, %79 : vector<8x256xf32>
    %81 = arith.addf %66, %80 : vector<8x256xf32>
    %c0_23 = arith.constant 0 : index
    %c0_24 = arith.constant 0 : index
    %82 = vector.load %arg3[%c0_23, %c0_24] : memref<8x256xf32, #tpu.memory_space<vmem>>, vector<8x256xf32>
    tpu.vector_store %arg3[%c0_23, %c0_24], %81 {strides = array<i32>} : memref<8x256xf32, #tpu.memory_space<vmem>>, vector<8x256xf32>,
    return
  }
  func.func @transform_0(%arg0: i32) -> (i32, i32) {
    %c0_i32 = arith.constant 0 : i32
    %c0_i32_0 = arith.constant 0 : i32
    return %arg0, %c0_i32 : i32, i32
  }
  func.func @transform_1(%arg0: i32) -> (i32, i32) {
    %c0_i32 = arith.constant 0 : i32
    %c0_i32_0 = arith.constant 0 : i32
    %c0_i32_1 = arith.constant 0 : i32
    return %c0_i32, %c0_i32_0 : i32, i32
  }
  func.func @transform_2(%arg0: i32) -> (i32, i32) {
    %c0_i32 = arith.constant 0 : i32
    %c0_i32_0 = arith.constant 0 : i32
    return %arg0, %c0_i32 : i32, i32
  }
}

</mosaic_0001>

<bundles_post_ra>
// kernel: tpu_custom_call.1
= control target key start
LH: loop header
LB: loop body
LE: loop exit
PB: predicated region body
PF: predicated region fallthrough
CT: control target
= control target key end

     0   :  { %7 = vsyncpa [#allocation3], 0  ;;  %s10581_s0 = inlined_call_operand.hbm [shape: f32[16,32], index: 0, kind: input, shape index: {}]   ;;  %s10582_s1 = inlined_call_operand.hbm [shape: f32[32,256], index: 1, kind: input, shape index: {}]   ;;  %s10583_s2 = inlined_call_operand.hbm [shape: f32[16,256], index: 2, kind: output, shape index: {}]  }
   0x1   :  { %9 = vsyncpa [#allocation3 + $0x1], 0 }
   0x2   :  { %10 = vsyncpa [#allocation6], 0 }
   0x3   :  { %11 = vsyncpa [#allocation4], 0 }
   0x4   :  { %13 = vsyncpa [#allocation4 + $0x1], 0  ;;  %s6813_s9 = smov 0   ;;  %s6815_s10 = smov 0  }
   0x5   :  { %s6817_s11 = smov 0   ;;  %s6819_s12 = smov 0  }
   0x6 LB: > { %s6834_s13 = sadd.s32 4294967295, %s6789_s12   ;;  %s6572_s14 = sadd.s32 4294967294, %s6789_s12   ;;  %s6789_s12 = sphi %s6819_s12, %s12070_s12   ;;  %s6785_s11 = sphi %s6817_s11, %s12069_s11   ;;  %s6781_s10 = sphi %s6815_s10, %s12068_s10   ;;  %s6777_s9 = sphi %s6813_s9, %s12067_s9  }
   0x7   : > { %p39_p0 = scmp.ne.s32.totalorder %s6781_s10, %s6777_s9  ;;  %p10584_p1 = scmp.eq.s32.totalorder %s6834_s13, 0 }
   0x8   : > { %p90_p3 = scmp.eq.s32.totalorder %s6572_s14, 1  ;;  %p6573_p5 = scmp.ge.s32.totalorder %s6789_s12, 1 }
   0x9   : > { %p6843_p4 = por %p10584_p1, %p39_p0  ;;  %p97_p7 = scmp.lt.s32.totalorder %s6789_s12, 3 }
   0xa   : > { %p6848_p6 = por %p90_p3, %p39_p0  ;;  %s6791_s18 = smov [#allocation5]  }
   0xb   : > { %s10856_s15 = scalar_select %p6843_p4, 1, 0 }
   0xc   : > { %s10857_s16 = scalar_select %p6848_p6, 1, 0 }
   0xd   : > { %p6853_p8 = pnand %p6573_p5, %p97_p7  ;;  %s109_s19 = sshll.u32 %s6791_s18, 4  ;;  %s110_s19 = int_to_ptr.vmem [resolvable:$true] %s109_s19 }
   0xe   : > { %s6867_s21 = sadd.s32 1, %s6789_s12   ;;  %s26_s22 = sadd.s32 1, %s6785_s11 }
   0xf   : > { %s10858_s17 = scalar_select %p6853_p8, 1, 0 }
  0x10   : > { %p6596_p9 = pneg %p6853_p8  ;;  %s23_s23 = ssub.s32 %s6789_s12, %s6867_s21 }
  0x11   : > { %s6678_s24 = scalar_lea.vmem %s110_s19, 1024  ;;  %p6686_p5 = scmp.lt.s32.totalorder %s110_s19, %s110_s19 }
  0x12   : > { %p6862_p11 = pnand %p6596_p9, %p10584_p1  ;;  %p6679_p13 = scmp.ne.s32.totalorder %s110_s19, %s6678_s24 }
  0x13   : > { %p6687_p7 = scmp.lt.s32.totalorder %s6678_s24, %s6678_s24 }
  0x14   : > { %p6669_p12 = pneg %p6862_p11 }
  0x15   : > { %p6688_p10 = por %p6687_p7, %p6686_p5 }
  0x16   : > { %p6681_p0 = pnand %p6679_p13, %p6669_p12 }
  0x18   : > { %p6682_p3 = pneg %p6681_p0 }
  0x1a   : > { %p6689_p2 = pnand %p6688_p10, %p6682_p3 }
  0x1c   : > { %6692 = shalt.err (!%p6689_p2)
}
  0x1d   : > { %s6792_s25 = smov 256   ;;  %s6793_s26 = smov 16  }
  0x1e   : > { %6599 = dma.hbm_to_vmem [thread:$0]  (!%p6862_p11), %s10582_s1, 1024, %s110_s19, [#allocation6], %s6792_s25, %s6792_s25, %s6793_s26  }
  0x1f   : > { %p24_p9 = scmp.eq.s32.totalorder %s23_s23, 0  ;;  %p33_p12 = scmp.ne.s32.totalorder %s6785_s11, %s6781_s10 }
  0x20   : > { %p34_p10 = scmp.eq.s32.totalorder %s6789_s12, 0  ;;  %p6609_p2 = scmp.lt.s32.totalorder %s6789_s12, 2 }
  0x21   : > { %s6884_s29 = scalar_select %p24_p9, %s6785_s11, %s26_s22  }
  0x22   : > { %p35_p13 = por %p34_p10, %p33_p12  ;;  %p10860_p0 = scmp.eq.s32.totalorder %s6834_s13, 1 }
  0x23   : > { %s123_s3 = sand.u32 1, %s6785_s11   ;;  %s6577_s4 = sshll.u32 %s6789_s12, 7 }
  0x24   : > { %p6888_p3 = por %p10860_p0, %p33_p12  ;;  %s6576_s5 = sshll.u32 %s123_s3, 3 }
  0x25   : > { %s6897_s8 = scalar_lea.hbm %s10581_s0, %s6577_s4  ;;  %s127_s14 = scalar_lea.vmem [#allocation2], %s6576_s5 }
  0x26   : > { %s10861_s30 = scalar_select %p6888_p3, 1, 0 }
  0x27   : > { %s134_s18 = sshll.u32 %s127_s14, 4  ;;  %p6899_p11 = pnand %p6609_p2, %p35_p13  ;;  %s135_s18 = int_to_ptr.vmem [resolvable:$true] %s134_s18 }
  0x28   : > { %s124_s20 = scalar_lea.sflag [#allocation3], %s123_s3  ;;  %s6693_s22 = scalar_lea.hbm %s6897_s8, 128 }
  0x29   : > { %p6694_p5 = scmp.ne.s32.totalorder %s6897_s8, %s6693_s22  ;;  %p6695_p7 = pneg %p6899_p11 }
  0x2a   : > { %s6698_s25 = scalar_lea.hbm %s10581_s0, 256  ;;  %p6699_p10 = scmp.lt.s32.totalorder %s6897_s8, %s10581_s0 }
  0x2b   : > { %p6696_p9 = pnand %p6695_p7, %p6694_p5  ;;  %p6700_p2 = scmp.lt.s32.totalorder %s6698_s25, %s6693_s22 }
  0x2d   : > { %p6697_p12 = pneg %p6696_p9  ;;  %p6701_p13 = por %p6700_p2, %p6699_p10 }
  0x2f   : > { %p6702_p0 = pnand %p6701_p13, %p6697_p12 }
  0x31   : > { %6705 = shalt.err (!%p6702_p0)
}
  0x32   : > { %s6706_s28 = scalar_lea.vmem %s135_s18, 128  ;;  %s6794_s3 = smov [#allocation2]  }
  0x33   : > { %p6707_p1 = scmp.ne.s32.totalorder %s135_s18, %s6706_s28  ;;  %s6711_s4 = sshll.u32 %s6794_s3, 4  ;;  %s6712_s4 = int_to_ptr.vmem [resolvable:$false] %s6711_s4 }
  0x34   : > { %s6713_s5 = scalar_lea.vmem %s6712_s4, 256  ;;  %p6714_p5 = scmp.lt.s32.totalorder %s135_s18, %s6712_s4 }
  0x35   : > { %p6709_p6 = pnand %p6707_p1, %p6695_p7  ;;  %p6715_p9 = scmp.lt.s32.totalorder %s6713_s5, %s6706_s28 }
  0x37   : > { %p6710_p3 = pneg %p6709_p6  ;;  %p6716_p4 = por %p6715_p9, %p6714_p5 }
  0x39   : > { %p6717_p8 = pnand %p6716_p4, %p6710_p3 }
  0x3b   : > { %6720 = shalt.err (!%p6717_p8)
}
  0x3c   : > { %6603 = dma.hbm_to_vmem [thread:$0]  (!%p6899_p11), %s6897_s8, 128, %s135_s18, %s124_s20  }
  0x3d   : > { %p10863_p12 = scmp.ne.s32.totalorder %s10858_s17, 0 }
  0x3f   : > { %143 = sbr.rel (%p10863_p12) target bundleno = 2375 (0x947), region = 28 }
  0x44   : > { %s6920_s6 = sand.u32 1, %s6781_s10   ;;  %p10864_p1 = scmp.ne.s32.totalorder %s10856_s15, 0 }
  0x45   : > { %s6579_s7 = sshll.u32 %s6920_s6, 3  ;;  %s146_s14 = scalar_lea.sflag [#allocation3], %s6920_s6 }
  0x46   : > { %s149_s22 = scalar_lea.vmem [#allocation2], %s6579_s7 }
  0x47   : > { %6764 = dma.done.wait (%p10864_p1), %s146_s14, 128  }
  0x48   : > { %6766 = vsyncadd (%p10864_p1), %s146_s14, 4294967168  ;;  %p10865_p4 = scmp.eq.s32.totalorder %s6834_s13, 0 }
  0x4a   : > { %6768 = dma.done.wait (%p10865_p4), [#allocation6], 1024   ;;  %p10866_p6 = pmov %p10865_p4 }
  0x4b   : > { %v6795_v0 = vmov 0.0   ;;  %v6934_v1 = vld [vmem:[#allocation5 + $0x38] sm:$0xff]  ;;  %v6936_v2 = vld [vmem:[#allocation5 + $0x30] sm:$0xff]  ;;  %v6938_v3 = vld [vmem:[#allocation5 + $0x28] sm:$0xff]  ;;  %vm184_vm0 = vcmask 261120   ;;  %vm5103_vm1 = vcmask 130112  }
  0x4c   : > { %6770 = vsyncadd (%p10866_p6), [#allocation6], 4294966272  ;;  %289 = vmatprep.mubr.f32.mxu0 %v6795_v0  ;;  %405 = vmatprep.mubr.f32.mxu1 %v6795_v0  ;;  %v6941_v4 = vand.u32 4294901760, %v6934_v1  ;;  %v6944_v5 = vand.u32 4294901760, %v6936_v2  ;;  %v6946_v6 = vld [vmem:[#allocation5 + $0x20] sm:$0xff]  ;;  %v178_v7 = vld [vmem:[#allocation5 + $0x18] sm:$0xff] }
  0x4d   : > { %v177_v8 = vld [vmem:[#allocation5 + $0x10] sm:$0xff]  ;;  %v6949_v9 = vand.u32 4294901760, %v6938_v3  ;;  %v6952_v10 = vand.u32 4294901760, %v6946_v6  ;;  %v176_v11 = vld [vmem:[#allocation5 + $0x8] sm:$0xff]  ;;  %v175_v12 = vld [vmem:[#allocation5] sm:$0xff]  ;;  %v191_v14 = vmul.f32 %v178_v7, %v178_v7  ;;  %v6957_v15 = vand.u32 4294901760, %v178_v7 }
  0x4e   : > { %v6954_v13 = vld [vmem:[%s149_s22] sm:$0xff]  ;;  %242 = vmatprep.subr.mxu0 %v6941_v4  ;;  %v190_v16 = vmul.f32 %v177_v8, %v177_v8  ;;  %v6959_v17 = vand.u32 4294901760, %v177_v8  ;;  %v189_v18 = vmul.f32 %v176_v11, %v176_v11  ;;  %v6962_v19 = vand.u32 4294901760, %v176_v11  ;;  %s6581_s15 = sshll.u32 %s6920_s6, 4  ;;  %s6587_s17 = sshll.u32 %s6834_s13, 8 }
  0x4f   : > { %244 = vmatpush1.msra.mxu0 %v6944_v5  ;;  %v6966_v20 = vsub.f32 %v6934_v1, %v6941_v4  ;;  %v188_v21 = vmul.f32 %v175_v12, %v175_v12  ;;  %v6969_v22 = vand.u32 4294901760, %v175_v12  ;;  %v6973_v23 = vsub.f32 %v6936_v2, %v6944_v5  ;;  %s173_s8 = scalar_lea.vmem [#allocation7], %s6581_s15  ;;  %s10544_s23 = scalar_lea.hbm %s10583_s2, %s6587_s17 }
  0x50   : > { %246 = vmatprep.subr.mxu0 %v6949_v9  ;;  %v6977_v24 = vsub.f32 %v6938_v3, %v6949_v9  ;;  %v215_v25 = vsel %vm184_vm0, %v6954_v13, 0  ;;  %v6982_v26 = vadd.f32 %v191_v14, %v189_v18  ;;  %v344_v32 = vsub.f32 %v6946_v6, %v6952_v10  ;;  %s6492_s18 = sshll.u32 %s173_s8, 4  ;;  %s6478_s24 = scalar_lea.sflag [#allocation4], %s6920_s6  ;;  %s6493_s18 = int_to_ptr.vmem [resolvable:$true] %s6492_s18 }
  0x51   : > { %248 = vmatpush1.msra.mxu0 %v6952_v10  ;;  %v327_v27 = vand.u32 4294901760, %v6966_v20  ;;  %v6985_v28 = vadd.f32 %v190_v16, %v188_v21  ;;  %v6987_v29 = vand.u32 4294901760, %v215_v25  ;;  %v333_v30 = vand.u32 4294901760, %v6973_v23  ;;  %s6721_s25 = scalar_lea.vmem %s6493_s18, 256  ;;  %p12064_p3 = scmp.ne.s32.totalorder %s10861_s30, 0 }
  0x52   : > { %250 = vmatprep.subr.mxu0 %v6957_v15  ;;  %v339_v31 = vand.u32 4294901760, %v6977_v24  ;;  %v6995_v33 = vsub.f32 %v178_v7, %v6957_v15  ;;  %v7003_v36 = vsub.f32 %v177_v8, %v6959_v17  ;;  %v7006_v37 = vsub.f32 %v176_v11, %v6962_v19  ;;  %p6722_p8 = scmp.ne.s32.totalorder %s6493_s18, %s6721_s25  ;;  %s6797_s13 = smov [#allocation7]  }
  0x53   : > { %252 = vmatpush1.msra.mxu0 %v6959_v17  ;;  %v328_v34 = vsub.f32 %v6966_v20, %v327_v27  ;;  %v7000_v35 = vsub.f32 %v215_v25, %v6987_v29  ;;  %v334_v38 = vsub.f32 %v6973_v23, %v333_v30  ;;  %v345_v40 = vand.u32 4294901760, %v344_v32  ;;  %s6725_s26 = sshll.u32 %s6797_s13, 4  ;;  %s6726_s26 = int_to_ptr.vmem [resolvable:$false] %s6725_s26 }
  0x54   : > { %254 = vmatprep.subr.mxu0 %v6962_v19  ;;  %v340_v39 = vsub.f32 %v6977_v24, %v339_v31  ;;  %v351_v41 = vand.u32 4294901760, %v6995_v33  ;;  %v357_v44 = vand.u32 4294901760, %v7003_v36  ;;  %v363_v45 = vand.u32 4294901760, %v7006_v37  ;;  %p6723_p11 = pnand %p6722_p8, %p12064_p3  ;;  %s6727_s27 = scalar_lea.vmem %s6726_s26, 512 }
  0x55   : > { %v329_v42 = vand.u32 4294901760, %v328_v34  ;;  %256 = vmatpush1.msra.mxu0 %v6969_v22  ;;  %v292_v43 = vand.u32 4294901760, %v7000_v35  ;;  %v335_v46 = vand.u32 4294901760, %v334_v38  ;;  %v346_v48 = vsub.f32 %v344_v32, %v345_v40  ;;  %p6728_p10 = scmp.lt.s32.totalorder %s6493_s18, %s6726_s26  ;;  %p6729_p2 = scmp.lt.s32.totalorder %s6727_s27, %s6721_s25 }
  0x56   : > { %v341_v47 = vand.u32 4294901760, %v340_v39  ;;  %439 = vmatprep.subr.mxu0 %v6966_v20  ;;  %v352_v49 = vsub.f32 %v6995_v33, %v351_v41  ;;  %v358_v51 = vsub.f32 %v7003_v36, %v357_v44  ;;  %v364_v52 = vsub.f32 %v7006_v37, %v363_v45  ;;  %p6724_p7 = pneg %p6723_p11 }
  0x57   : > { %330 = vmatprep.subr.mxu1 %v329_v42  ;;  %v293_v50 = vsub.f32 %v7000_v35, %v292_v43  ;;  %v368_v53 = vsub.f32 %v175_v12, %v6969_v22  ;;  %v347_v54 = vand.u32 4294901760, %v346_v48  ;;  %v183_v62 = vmul.f32 %v6954_v13, %v6954_v13  ;;  %p6730_p13 = por %p6729_p2, %p6728_p10 }
  0x58   : > { %336 = vmatpush1.msra.mxu1 %v335_v46  ;;  %v353_v55 = vand.u32 4294901760, %v352_v49  ;;  %v359_v57 = vand.u32 4294901760, %v358_v51  ;;  %v365_v58 = vand.u32 4294901760, %v364_v52  ;;  %v195_v7 = vmul.f32 %v6934_v1, %v6934_v1 }
  0x59   : > { %342 = vmatprep.subr.mxu1 %v341_v47  ;;  %v294_v56 = vand.u32 4294901760, %v293_v50  ;;  %v369_v59 = vand.u32 4294901760, %v368_v53  ;;  %v185_v63 = vsel %vm184_vm0, %v183_v62, 0.0  ;;  %vm5110_vm2 = vcmask 195712   ;;  %p6731_p0 = pnand %p6730_p13, %p6724_p7 }
  0x5a   : > { %348 = vmatpush1.msra.mxu1 %v347_v54  ;;  %186 = vadd.xlane.f32.xlu0 %v185_v63  ;;  %vm5117_vm3 = vcmask 261312   ;;  %vm5124_vm4 = vcmask 326912   ;;  %vm5131_vm5 = vcmask 392512   ;;  %vm5138_vm6 = vcmask 458112  }
  0x5b   : > { %295 = vmatmul.mubr.f32.vlgmr.msra.gmra.mxu0 %v294_v56  ;;  %354 = vmatprep.subr.mxu1 %v353_v55  ;;  %v370_v60 = vsub.f32 %v368_v53, %v369_v59  ;;  %vm5145_vm7 = vcmask 523712   ;;  %vm5152_vm8 = vcmask 589312   ;;  %vm5159_vm9 = vcmask 654912  }
  0x5c   : > { %442 = vmatpush1.msra.mxu0 %v6973_v23  ;;  %360 = vmatpush1.msra.mxu1 %v359_v57  ;;  %vm5166_vm10 = vcmask 720512   ;;  %vm5173_vm11 = vcmask 786112   ;;  %vm5180_vm12 = vcmask 851712   ;;  %vm5187_vm13 = vcmask 917312  }
  0x5d   : > { %445 = vmatprep.subr.mxu0 %v6977_v24  ;;  %366 = vmatprep.subr.mxu1 %v365_v58  ;;  %v371_v61 = vand.u32 4294901760, %v370_v60  ;;  %vm5194_vm14 = vcmask 982912   ;;  %vm5201_vm15 = vcmask 1048512   ;;  %vm6388_vm0 = vcmask 1041409  }
  0x5e   : > { %448 = vmatpush1.msra.mxu0 %v344_v32  ;;  %493 = vmatprep.mubr.f32.mxu0 %v6795_v0 }
  0x5f   : > { %451 = vmatprep.subr.mxu0 %v6995_v33  ;;  %372 = vmatpush1.msra.mxu1 %v371_v61 }
  0x60   : > { %454 = vmatpush1.msra.mxu0 %v7003_v36  ;;  %407 = vmatmul.mubr.f32.vlgmr.msra.gmra.mxu1 %v6987_v29  ;;  %v6796_v36 = vmov 1966171168  }
  0x61   : > { %457 = vmatprep.subr.mxu0 %v7006_v37  ;;  %527 = vmatprep.subr.mxu1 %v6941_v4  ;;  %v1841_v37 = vunpack.c.l.s4 %v6796_v36 }
  0x62   : > { %460 = vmatpush1.msra.mxu0 %v368_v53  ;;  %529 = vmatpush1.msra.mxu1 %v6944_v5 }
  0x63   : > { %496 = vmatmul.mubr.f32.vlgmr.msra.gmra.mxu0 %v7000_v35  ;;  %531 = vmatprep.subr.mxu1 %v6949_v9  ;;  %v1842_v47 = vunpack.c.0.s8 %v1841_v37 }
  0x64   : > { %611 = vmatprep.subr.mxu0 %v327_v27  ;;  %533 = vmatpush1.msra.mxu1 %v6952_v10 }
  0x65   : > { %615 = vmatpush1.msra.mxu0 %v333_v30  ;;  %535 = vmatprep.subr.mxu1 %v6957_v15 }
  0x66   : > { %619 = vmatprep.subr.mxu0 %v339_v31  ;;  %537 = vmatpush1.msra.mxu1 %v6959_v17  ;;  %v10588_v31 = vlaneseq }
  0x67   : > { %623 = vmatpush1.msra.mxu0 %v345_v40  ;;  %539 = vmatprep.subr.mxu1 %v6962_v19 }
  0x68   : > { %627 = vmatprep.subr.mxu0 %v351_v41  ;;  %541 = vmatpush1.msra.mxu1 %v6969_v22  ;;  %v7065_v41 = vshrl.u32 %v10588_v31, 7 }
  0x69   : > { %574 = vmatprep.mubr.f32.mxu1 %v6795_v0  ;;  %631 = vmatpush1.msra.mxu0 %v357_v44 }
  0x6a   : > { %578 = vmatmul.mubr.f32.vlgmr.msra.gmra.mxu1 %v292_v43  ;;  %635 = vmatprep.subr.mxu0 %v363_v45  ;;  %10867 = vst [vmem:[#allocation11_spill] sm:$0xff] %v7065_v41  ;;  %v768_v50 = vsub.s32 0, %v7065_v41  ;;  %v902_v54 = vsub.s32 1, %v7065_v41  ;;  %v1036_v55 = vsub.s32 2, %v7065_v41  ;;  %v1170_v56 = vsub.s32 3, %v7065_v41 }
  0x6b   : > { %705 = vmatprep.subr.mxu1 %v6941_v4  ;;  %639 = vmatpush1.msra.mxu0 %v369_v59  ;;  %v192_v4 = vmul.f32 %v6946_v6, %v6946_v6  ;;  %v1845_v57 = vsub.s32 %v1842_v47, %v7065_v41 }
  0x6c   : > { %672 = vmatprep.mubr.f32.mxu0 %v6795_v0  ;;  %707 = vmatpush1.msra.mxu1 %v6944_v5  ;;  %v194_v5 = vmul.f32 %v6936_v2, %v6936_v2 }
  0x6d   : > { %674 = vmatmul.mubr.f32.vlgmr.msra.gmra.mxu0 %v6987_v29  ;;  %709 = vmatprep.subr.mxu1 %v6949_v9  ;;  %v197_v8 = vadd.f32 %v6985_v28, %v192_v4 }
  0x6e   : > { %711 = vmatpush1.msra.mxu1 %v6952_v10  ;;  %752 = vmatprep.mubr.f32.mxu1 %v6795_v0  ;;  %v193_v0 = vmul.f32 %v6938_v3, %v6938_v3 }
  0x6f   : > { %713 = vmatprep.subr.mxu1 %v6957_v15  ;;  %v198_v9 = vadd.f32 %v197_v8, %v194_v5 }
  0x70   : > { %715 = vmatpush1.msra.mxu1 %v6959_v17  ;;  %v206_v10 = vadd.f32 %v6982_v26, %v193_v0 }
  0x71   : > { %717 = vmatprep.subr.mxu1 %v6962_v19  ;;  %v199_v6 = vrot.slane %v198_v9, 4 }
  0x72   : > { %719 = vmatpush1.msra.mxu1 %v6969_v22  ;;  %v207_v11 = vadd.f32 %v206_v10, %v195_v7 }
  0x73   : > { %754 = vmatmul.mubr.f32.vlgmr.msra.gmra.mxu1 %v6987_v29  ;;  %v200_v3 = vadd.f32 %v199_v6, %v198_v9 }
  0x74   : > { %v208_v2 = vrot.slane %v207_v11, 4 }
  0x75   : > { %v201_v22 = vrot.slane %v200_v3, 2 }
  0x76   : > { %v209_v21 = vadd.f32 %v208_v2, %v207_v11 }
  0x77   : > { %v202_v29 = vadd.f32 %v201_v22, %v200_v3 }
  0x78   : > { %v210_v25 = vrot.slane %v209_v21, 2 }
  0x79   : > { %v203_v34 = vrot.slane %v202_v29, 1 }
  0x7a   : > { %v211_v30 = vadd.f32 %v210_v25, %v209_v21 }
  0x7b   : > { %v204_v46 = vadd.f32 %v203_v34, %v202_v29 }
  0x7c   : > { %v212_v40 = vrot.slane %v211_v30, 1 }
  0x7e   : > { %v213_v49 = vadd.f32 %v212_v40, %v211_v30 }
  0xe3   : > { %v187_v43 = vpop.xlane.xlu0 %186 }
 0x11b   : > { %v296_v12 = vpop.f32.mrf.mxu0 }
 0x11d   : > { %v298_v13 = vpop.f32.mrf.mxu0 }
 0x120   : > { %v408_v14 = vpop.f32.mrf.mxu1 }
 0x121   : > { %v409_v20 = vadd.f32 %v408_v14, %v296_v12 }
 0x122   : > { %v410_v15 = vpop.f32.mrf.mxu1 }
 0x123   : > { %v411_v16 = vadd.f32 %v410_v15, %v298_v13  ;;  %v497_v17 = vpop.f32.mrf.mxu0 }
 0x124   : > { %v498_v23 = vadd.f32 %v497_v17, %v409_v20 }
 0x125   : > { %v499_v18 = vpop.f32.mrf.mxu0 }
 0x126   : > { %v500_v19 = vadd.f32 %v499_v18, %v411_v16 }
 0x12a   : > { %v579_v1 = vpop.f32.mrf.mxu1 }
 0x12b   : > { %v580_v28 = vadd.f32 %v579_v1, %v498_v23 }
 0x12c   : > { %v581_v24 = vpop.f32.mrf.mxu1 }
 0x12d   : > { %v582_v26 = vadd.f32 %v581_v24, %v500_v19  ;;  %v675_v27 = vpop.f32.mrf.mxu0 }
 0x12e   : > { %v676_v33 = vadd.f32 %v675_v27, %v580_v28 }
 0x12f   : > { %v677_v32 = vpop.f32.mrf.mxu0 }
 0x130   : > { %v678_v38 = vadd.f32 %v677_v32, %v582_v26 }
 0x133   : > { %v755_v35 = vpop.f32.mrf.mxu1 }
 0x134   : > { %v756_v39 = vadd.f32 %v755_v35, %v676_v33 }
 0x135   : > { %v757_v42 = vpop.f32.mrf.mxu1 }
 0x136   : > { %v760_v44 = vmul.f32 2.0, %v756_v39  ;;  %v758_v45 = vadd.f32 %v757_v42, %v678_v38 }
 0x138   : > { %v761_v48 = vmul.f32 2.0, %v758_v45  ;;  %v762_v51 = vsub.f32 %v760_v44, %v187_v43 }
 0x13a   : > { %v763_v52 = vsub.f32 %v761_v48, %v187_v43  ;;  %v7068_v53 = vsub.f32 %v762_v51, %v204_v46 }
 0x13c   : > { %10868 = vst [vmem:[#allocation12_spill] sm:$0xff] %v7068_v53  ;;  %v7074_v58 = vsub.f32 %v763_v52, %v213_v49  ;;  %v7077_v59 = vrot.slane %v7068_v53, %v768_v50  ;;  %v1839_v4 = vcombine.high %v7068_v53, %v7068_v53  ;;  %v1846_v5 = vrot.slane %v7068_v53, %v1845_v57 }
 0x13d   : > { %v903_v44 = vrot.slane %v7068_v53, %v902_v54  ;;  %v1037_v45 = vrot.slane %v7068_v53, %v1036_v55  ;;  %v1171_v46 = vrot.slane %v7068_v53, %v1170_v56 }
 0x13e   : > { %10869 = vst [vmem:[#allocation13_spill] sm:$0xff] %v7074_v58  ;;  %v7080_v60 = vrot.slane %v7074_v58, %v768_v50  ;;  %v7083_v61 = vrot.slane %v7074_v58, %v902_v54  ;;  %v7088_v62 = vrot.slane %v7074_v58, %v1036_v55  ;;  %v7093_v63 = vrot.slane %v7074_v58, %v1170_v56 }
 0x13f   : > { %775 = vbcast.lane.b32.xlu1 %v7077_v59, 264  ;;  %771 = vbcast.lane.b32.xlu0 %v7077_v59, 256  ;;  %v3209_v0 = vcombine.high %v7074_v58, %v7074_v58  ;;  %v3216_v7 = vrot.slane %v7074_v58, %v1845_v57  ;;  %v1853_v8 = vrot.slane %v1839_v4, %v1845_v57 }
 0x140   : > { %v1854_v9 = vcombine.high %v1846_v5, %v1846_v5  ;;  %v1862_v10 = vrot.slane %v1846_v5, %v1845_v57 }
 0x141   : > { %v3223_v11 = vrot.slane %v3209_v0, %v1845_v57  ;;  %v3224_v12 = vcombine.high %v3216_v7, %v3216_v7  ;;  %v3232_v13 = vrot.slane %v3216_v7, %v1845_v57  ;;  %v1855_v14 = vcombine.high %v1853_v8, %v1853_v8 }
 0x142   : > { %v1869_v15 = vrot.slane %v1853_v8, %v1845_v57  ;;  %v1876_v6 = vrot.slane %v1854_v9, %v1845_v57  ;;  %v1884_v16 = vcombine.high %v1862_v10, %v1862_v10  ;;  %v7105_v17 = vrot.slane %v1862_v10, %v768_v50 }
 0x143   : > { %779 = vbcast.lane.b32.xlu1 %v7077_v59, 272  ;;  %803 = vbcast.lane.b32.xlu0 %v7077_v59, 320  ;;  %v3225_v2 = vcombine.high %v3223_v11, %v3223_v11  ;;  %v3239_v18 = vrot.slane %v3223_v11, %v1845_v57  ;;  %v3246_v19 = vrot.slane %v3224_v12, %v1845_v57 }
 0x144   : > { %v1883_v3 = vrot.slane %v1855_v14, %v1845_v57  ;;  %v1885_v20 = vcombine.high %v1869_v15, %v1869_v15  ;;  %v1886_v21 = vcombine.high %v1876_v6, %v1876_v6  ;;  %v7107_v1 = vrot.slane %v1876_v6, %v768_v50 }
 0x145   : > { %v7110_v22 = vrot.slane %v1884_v16, %v768_v50  ;;  %v7112_v23 = vrot.slane %v1869_v15, %v768_v50  ;;  %v3253_v24 = vrot.slane %v3225_v2, %v1845_v57  ;;  %v3254_v25 = vcombine.high %v3232_v13, %v3232_v13 }
 0x146   : > { %v1887_v26 = vcombine.high %v1883_v3, %v1883_v3  ;;  %v7115_v27 = vrot.slane %v1886_v21, %v768_v50  ;;  %v7117_v28 = vrot.slane %v1883_v3, %v768_v50  ;;  %v7119_v29 = vrot.slane %v1885_v20, %v768_v50 }
 0x147   : > { %783 = vbcast.lane.b32.xlu1 %v7077_v59, 280  ;;  %10870 = vst [vmem:[#allocation14_spill] sm:$0xff] %v7110_v22  ;;  %10871 = vst [vmem:[#allocation15_spill] sm:$0xff] %v7112_v23  ;;  %811 = vbcast.lane.b32.xlu0 %v7077_v59, 336  ;;  %v3255_v30 = vcombine.high %v3239_v18, %v3239_v18  ;;  %v3256_v32 = vcombine.high %v3246_v19, %v3246_v19 }
 0x148   : > { %10872 = vst [vmem:[#allocation16_spill] sm:$0xff] %v7115_v27  ;;  %10873 = vst [vmem:[#allocation17_spill] sm:$0xff] %v7117_v28  ;;  %v3257_v33 = vcombine.high %v3253_v24, %v3253_v24  ;;  %v7121_v34 = vrot.slane %v3232_v13, %v768_v50  ;;  %v7123_v35 = vrot.slane %v1887_v26, %v768_v50 }
 0x149   : > { %10874 = vst [vmem:[#allocation18_spill] sm:$0xff] %v7119_v29  ;;  %v7125_v36 = vrot.slane %v3246_v19, %v768_v50  ;;  %v7127_v37 = vrot.slane %v3254_v25, %v768_v50  ;;  %v7129_v38 = vrot.slane %v3239_v18, %v768_v50  ;;  %v7132_v39 = vrot.slane %v3256_v32, %v768_v50 }
 0x14a   : > { %10875 = vst [vmem:[#allocation19_spill] sm:$0xff] %v7121_v34  ;;  %10876 = vst [vmem:[#allocation20_spill] sm:$0xff] %v7123_v35  ;;  %v7134_v40 = vrot.slane %v3253_v24, %v768_v50  ;;  %v7136_v42 = vrot.slane %v3255_v30, %v768_v50  ;;  %v7138_v43 = vrot.slane %v3257_v33, %v768_v50 }
 0x14b   : > { %10877 = vst [vmem:[#allocation21_spill] sm:$0xff] %v7125_v36  ;;  %10878 = vst [vmem:[#allocation22_spill] sm:$0xff] %v7127_v37  ;;  %787 = vbcast.lane.b32.xlu1 %v7077_v59, 288  ;;  %819 = vbcast.lane.b32.xlu0 %v7077_v59, 352 }
 0x14c   : > { %10879 = vst [vmem:[#allocation23_spill] sm:$0xff] %v7129_v38  ;;  %10880 = vst [vmem:[#allocation24_spill] sm:$0xff] %v7132_v39 }
 0x14d   : > { %10881 = vst [vmem:[#allocation25_spill] sm:$0xff] %v7134_v40  ;;  %10882 = vst [vmem:[#allocation26_spill] sm:$0xff] %v7136_v42 }
 0x14e   : > { %10883 = vst [vmem:[#allocation27_spill] sm:$0xff] %v7138_v43 }
 0x14f   : > { %791 = vbcast.lane.b32.xlu1 %v7077_v59, 296  ;;  %827 = vbcast.lane.b32.xlu0 %v7077_v59, 368 }
 0x153   : > { %795 = vbcast.lane.b32.xlu1 %v7077_v59, 304  ;;  %905 = vbcast.lane.b32.xlu0 %v903_v44, 256 }
 0x157   : > { %799 = vbcast.lane.b32.xlu1 %v7077_v59, 312  ;;  %913 = vbcast.lane.b32.xlu0 %v903_v44, 272 }
 0x15b   : > { %807 = vbcast.lane.b32.xlu1 %v7077_v59, 328  ;;  %921 = vbcast.lane.b32.xlu0 %v903_v44, 288 }
 0x15f   : > { %815 = vbcast.lane.b32.xlu1 %v7077_v59, 344  ;;  %929 = vbcast.lane.b32.xlu0 %v903_v44, 304 }
 0x163   : > { %823 = vbcast.lane.b32.xlu1 %v7077_v59, 360  ;;  %937 = vbcast.lane.b32.xlu0 %v903_v44, 320 }
 0x167   : > { %831 = vbcast.lane.b32.xlu1 %v7077_v59, 376  ;;  %945 = vbcast.lane.b32.xlu0 %v903_v44, 336 }
 0x16b   : > { %909 = vbcast.lane.b32.xlu1 %v903_v44, 264  ;;  %953 = vbcast.lane.b32.xlu0 %v903_v44, 352 }
 0x16f   : > { %917 = vbcast.lane.b32.xlu1 %v903_v44, 280  ;;  %961 = vbcast.lane.b32.xlu0 %v903_v44, 368 }
 0x173   : > { %925 = vbcast.lane.b32.xlu1 %v903_v44, 296  ;;  %1039 = vbcast.lane.b32.xlu0 %v1037_v45, 256 }
 0x177   : > { %933 = vbcast.lane.b32.xlu1 %v903_v44, 312  ;;  %1047 = vbcast.lane.b32.xlu0 %v1037_v45, 272 }
 0x17b   : > { %941 = vbcast.lane.b32.xlu1 %v903_v44, 328  ;;  %1055 = vbcast.lane.b32.xlu0 %v1037_v45, 288 }
 0x17f   : > { %949 = vbcast.lane.b32.xlu1 %v903_v44, 344  ;;  %1063 = vbcast.lane.b32.xlu0 %v1037_v45, 304 }
 0x183   : > { %957 = vbcast.lane.b32.xlu1 %v903_v44, 360  ;;  %1071 = vbcast.lane.b32.xlu0 %v1037_v45, 320 }
 0x187   : > { %965 = vbcast.lane.b32.xlu1 %v903_v44, 376  ;;  %1079 = vbcast.lane.b32.xlu0 %v1037_v45, 336 }
 0x18b   : > { %1043 = vbcast.lane.b32.xlu1 %v1037_v45, 264  ;;  %1087 = vbcast.lane.b32.xlu0 %v1037_v45, 352 }
 0x18f   : > { %1051 = vbcast.lane.b32.xlu1 %v1037_v45, 280  ;;  %1095 = vbcast.lane.b32.xlu0 %v1037_v45, 368 }
 0x193   : > { %1059 = vbcast.lane.b32.xlu1 %v1037_v45, 296  ;;  %1173 = vbcast.lane.b32.xlu0 %v1171_v46, 256 }
 0x197   : > { %1067 = vbcast.lane.b32.xlu1 %v1037_v45, 312  ;;  %1181 = vbcast.lane.b32.xlu0 %v1171_v46, 272 }
 0x19b   : > { %1075 = vbcast.lane.b32.xlu1 %v1037_v45, 328  ;;  %1189 = vbcast.lane.b32.xlu0 %v1171_v46, 288 }
 0x19f   : > { %1083 = vbcast.lane.b32.xlu1 %v1037_v45, 344  ;;  %1197 = vbcast.lane.b32.xlu0 %v1171_v46, 304 }
 0x1a3   : > { %1091 = vbcast.lane.b32.xlu1 %v1037_v45, 360  ;;  %1205 = vbcast.lane.b32.xlu0 %v1171_v46, 320 }
 0x1a7   : > { %1099 = vbcast.lane.b32.xlu1 %v1037_v45, 376  ;;  %1213 = vbcast.lane.b32.xlu0 %v1171_v46, 336 }
 0x1ab   : > { %1177 = vbcast.lane.b32.xlu1 %v1171_v46, 264  ;;  %1221 = vbcast.lane.b32.xlu0 %v1171_v46, 352 }
 0x1af   : > { %1185 = vbcast.lane.b32.xlu1 %v1171_v46, 280  ;;  %1229 = vbcast.lane.b32.xlu0 %v1171_v46, 368 }
 0x1b1   : > { %v7156_v47 = vpop.permute.xlu1 %775  ;;  %v7158_v48 = vpop.permute.xlu0 %771 }
 0x1b2   : > { %10884 = vst [vmem:[#allocation28_spill] sm:$0xff] %v7156_v47  ;;  %10885 = vst [vmem:[#allocation29_spill] sm:$0xff] %v7158_v48 }
 0x1b3   : > { %1193 = vbcast.lane.b32.xlu1 %v1171_v46, 296  ;;  %838 = vbcast.lane.b32.xlu0 %v7080_v60, 256 }
 0x1b5   : > { %v7161_v49 = vpop.permute.xlu1 %779  ;;  %v7163_v50 = vpop.permute.xlu0 %803 }
 0x1b6   : > { %10886 = vst [vmem:[#allocation30_spill] sm:$0xff] %v7161_v49  ;;  %10887 = vst [vmem:[#allocation31_spill] sm:$0xff] %v7163_v50 }
 0x1b7   : > { %1201 = vbcast.lane.b32.xlu1 %v1171_v46, 312  ;;  %846 = vbcast.lane.b32.xlu0 %v7080_v60, 272 }
 0x1b9   : > { %v7166_v51 = vpop.permute.xlu1 %783  ;;  %v7168_v52 = vpop.permute.xlu0 %811 }
 0x1ba   : > { %10888 = vst [vmem:[#allocation32_spill] sm:$0xff] %v7166_v51  ;;  %10889 = vst [vmem:[#allocation33_spill] sm:$0xff] %v7168_v52 }
 0x1bb   : > { %1209 = vbcast.lane.b32.xlu1 %v1171_v46, 328  ;;  %854 = vbcast.lane.b32.xlu0 %v7080_v60, 288 }
 0x1bd   : > { %v7171_v54 = vpop.permute.xlu1 %787  ;;  %v7173_v55 = vpop.permute.xlu0 %819 }
 0x1be   : > { %10890 = vst [vmem:[#allocation34_spill] sm:$0xff] %v7171_v54  ;;  %10891 = vst [vmem:[#allocation35_spill] sm:$0xff] %v7173_v55 }
 0x1bf   : > { %1217 = vbcast.lane.b32.xlu1 %v1171_v46, 344  ;;  %862 = vbcast.lane.b32.xlu0 %v7080_v60, 304 }
 0x1c1   : > { %v7176_v56 = vpop.permute.xlu1 %791  ;;  %v7178_v57 = vpop.permute.xlu0 %827 }
 0x1c2   : > { %10892 = vst [vmem:[#allocation36_spill] sm:$0xff] %v7176_v56  ;;  %10893 = vst [vmem:[#allocation37_spill] sm:$0xff] %v7178_v57 }
 0x1c3   : > { %1225 = vbcast.lane.b32.xlu1 %v1171_v46, 360  ;;  %870 = vbcast.lane.b32.xlu0 %v7080_v60, 320 }
 0x1c5   : > { %v7181_v59 = vpop.permute.xlu1 %795  ;;  %v7183_v4 = vpop.permute.xlu0 %905 }
 0x1c6   : > { %10894 = vst [vmem:[#allocation38_spill] sm:$0xff] %v7181_v59  ;;  %10895 = vst [vmem:[#allocation39_spill] sm:$0xff] %v7183_v4 }
 0x1c7   : > { %1233 = vbcast.lane.b32.xlu1 %v1171_v46, 376  ;;  %878 = vbcast.lane.b32.xlu0 %v7080_v60, 336 }
 0x1c9   : > { %v7186_v5 = vpop.permute.xlu1 %799  ;;  %v7188_v0 = vpop.permute.xlu0 %913 }
 0x1ca   : > { %10896 = vst [vmem:[#allocation40_spill] sm:$0xff] %v7186_v5  ;;  %10897 = vst [vmem:[#allocation41_spill] sm:$0xff] %v7188_v0 }
 0x1cb   : > { %842 = vbcast.lane.b32.xlu1 %v7080_v60, 264  ;;  %886 = vbcast.lane.b32.xlu0 %v7080_v60, 352 }
 0x1cd   : > { %v7192_v7 = vpop.permute.xlu1 %807  ;;  %v7194_v8 = vpop.permute.xlu0 %921 }
 0x1ce   : > { %10898 = vst [vmem:[#allocation42_spill] sm:$0xff] %v7192_v7  ;;  %10899 = vst [vmem:[#allocation43_spill] sm:$0xff] %v7194_v8 }
 0x1cf   : > { %850 = vbcast.lane.b32.xlu1 %v7080_v60, 280  ;;  %894 = vbcast.lane.b32.xlu0 %v7080_v60, 368 }
 0x1d1   : > { %v7198_v9 = vpop.permute.xlu1 %815  ;;  %v7200_v10 = vpop.permute.xlu0 %929 }
 0x1d2   : > { %10900 = vst [vmem:[#allocation44_spill] sm:$0xff] %v7198_v9  ;;  %10901 = vst [vmem:[#allocation45_spill] sm:$0xff] %v7200_v10 }
 0x1d3   : > { %858 = vbcast.lane.b32.xlu1 %v7080_v60, 296  ;;  %972 = vbcast.lane.b32.xlu0 %v7083_v61, 256 }
 0x1d5   : > { %v7204_v11 = vpop.permute.xlu1 %823  ;;  %v7206_v12 = vpop.permute.xlu0 %937 }
 0x1d6   : > { %10902 = vst [vmem:[#allocation46_spill] sm:$0xff] %v7204_v11  ;;  %10903 = vst [vmem:[#allocation47_spill] sm:$0xff] %v7206_v12 }
 0x1d7   : > { %866 = vbcast.lane.b32.xlu1 %v7080_v60, 312  ;;  %980 = vbcast.lane.b32.xlu0 %v7083_v61, 272 }
 0x1d9   : > { %v7210_v13 = vpop.permute.xlu1 %831  ;;  %v7212_v14 = vpop.permute.xlu0 %945 }
 0x1da   : > { %10904 = vst [vmem:[#allocation48_spill] sm:$0xff] %v7210_v13  ;;  %10905 = vst [vmem:[#allocation49_spill] sm:$0xff] %v7212_v14 }
 0x1db   : > { %874 = vbcast.lane.b32.xlu1 %v7080_v60, 328  ;;  %988 = vbcast.lane.b32.xlu0 %v7083_v61, 288 }
 0x1dd   : > { %v7216_v15 = vpop.permute.xlu1 %909  ;;  %v7218_v6 = vpop.permute.xlu0 %953 }
 0x1de   : > { %10906 = vst [vmem:[#allocation50_spill] sm:$0xff] %v7216_v15  ;;  %10907 = vst [vmem:[#allocation51_spill] sm:$0xff] %v7218_v6 }
 0x1df   : > { %882 = vbcast.lane.b32.xlu1 %v7080_v60, 344  ;;  %996 = vbcast.lane.b32.xlu0 %v7083_v61, 304 }
 0x1e1   : > { %v7222_v16 = vpop.permute.xlu1 %917  ;;  %v7224_v2 = vpop.permute.xlu0 %961 }
 0x1e2   : > { %10908 = vst [vmem:[#allocation52_spill] sm:$0xff] %v7222_v16  ;;  %10909 = vst [vmem:[#allocation53_spill] sm:$0xff] %v7224_v2 }
 0x1e3   : > { %890 = vbcast.lane.b32.xlu1 %v7080_v60, 360  ;;  %1004 = vbcast.lane.b32.xlu0 %v7083_v61, 320 }
 0x1e5   : > { %v7228_v18 = vpop.permute.xlu1 %925  ;;  %v7230_v19 = vpop.permute.xlu0 %1039 }
 0x1e6   : > { %10910 = vst [vmem:[#allocation54_spill] sm:$0xff] %v7228_v18  ;;  %10911 = vst [vmem:[#allocation55_spill] sm:$0xff] %v7230_v19 }
 0x1e7   : > { %898 = vbcast.lane.b32.xlu1 %v7080_v60, 376  ;;  %1012 = vbcast.lane.b32.xlu0 %v7083_v61, 336 }
 0x1e9   : > { %v7234_v3 = vpop.permute.xlu1 %933  ;;  %v7236_v20 = vpop.permute.xlu0 %1047 }
 0x1ea   : > { %10912 = vst [vmem:[#allocation56_spill] sm:$0xff] %v7234_v3  ;;  %10913 = vst [vmem:[#allocation57_spill] sm:$0xff] %v7236_v20 }
 0x1eb   : > { %976 = vbcast.lane.b32.xlu1 %v7083_v61, 264  ;;  %1020 = vbcast.lane.b32.xlu0 %v7083_v61, 352 }
 0x1ed   : > { %v7240_v21 = vpop.permute.xlu1 %941  ;;  %v7242_v24 = vpop.permute.xlu0 %1055 }
 0x1ee   : > { %10914 = vst [vmem:[#allocation58_spill] sm:$0xff] %v7240_v21  ;;  %10915 = vst [vmem:[#allocation59_spill] sm:$0xff] %v7242_v24 }
 0x1ef   : > { %984 = vbcast.lane.b32.xlu1 %v7083_v61, 280  ;;  %1028 = vbcast.lane.b32.xlu0 %v7083_v61, 368 }
 0x1f1   : > { %v7246_v25 = vpop.permute.xlu1 %949  ;;  %v7248_v60 = vpop.permute.xlu0 %1063 }
 0x1f2   : > { %10916 = vst [vmem:[#allocation60_spill] sm:$0xff] %v7246_v25  ;;  %10917 = vst [vmem:[#allocation61_spill] sm:$0xff] %v7248_v60 }
 0x1f3   : > { %992 = vbcast.lane.b32.xlu1 %v7083_v61, 296  ;;  %1106 = vbcast.lane.b32.xlu0 %v7088_v62, 256 }
 0x1f5   : > { %v7252_v26 = vpop.permute.xlu1 %957  ;;  %v7254_v30 = vpop.permute.xlu0 %1071 }
 0x1f6   : > { %10918 = vst [vmem:[#allocation62_spill] sm:$0xff] %v7252_v26  ;;  %10919 = vst [vmem:[#allocation63_spill] sm:$0xff] %v7254_v30 }
 0x1f7   : > { %1000 = vbcast.lane.b32.xlu1 %v7083_v61, 312  ;;  %1114 = vbcast.lane.b32.xlu0 %v7088_v62, 272 }
 0x1f9   : > { %v7258_v32 = vpop.permute.xlu1 %965  ;;  %v7260_v33 = vpop.permute.xlu0 %1079 }
 0x1fa   : > { %10920 = vst [vmem:[#allocation64_spill] sm:$0xff] %v7258_v32  ;;  %10921 = vst [vmem:[#allocation65_spill] sm:$0xff] %v7260_v33 }
 0x1fb   : > { %1008 = vbcast.lane.b32.xlu1 %v7083_v61, 328  ;;  %1122 = vbcast.lane.b32.xlu0 %v7088_v62, 288 }
 0x1fd   : > { %v7264_v44 = vpop.permute.xlu1 %1043  ;;  %v7266_v45 = vpop.permute.xlu0 %1087 }
 0x1fe   : > { %10922 = vst [vmem:[#allocation66_spill] sm:$0xff] %v7264_v44  ;;  %10923 = vst [vmem:[#allocation67_spill] sm:$0xff] %v7266_v45 }
 0x1ff   : > { %1016 = vbcast.lane.b32.xlu1 %v7083_v61, 344  ;;  %1130 = vbcast.lane.b32.xlu0 %v7088_v62, 304 }
 0x201   : > { %v7270_v46 = vpop.permute.xlu1 %1051  ;;  %v7272_v31 = vpop.permute.xlu0 %1095 }
 0x202   : > { %10924 = vst [vmem:[#allocation68_spill] sm:$0xff] %v7270_v46  ;;  %10925 = vst [vmem:[#allocation69_spill] sm:$0xff] %v7272_v31 }
 0x203   : > { %1024 = vbcast.lane.b32.xlu1 %v7083_v61, 360  ;;  %1138 = vbcast.lane.b32.xlu0 %v7088_v62, 320 }
 0x205   : > { %v7276_v43 = vpop.permute.xlu1 %1059  ;;  %v7278_v42 = vpop.permute.xlu0 %1173 }
 0x206   : > { %10926 = vst [vmem:[#allocation70_spill] sm:$0xff] %v7276_v43  ;;  %10927 = vst [vmem:[#allocation71_spill] sm:$0xff] %v7278_v42 }
 0x207   : > { %1032 = vbcast.lane.b32.xlu1 %v7083_v61, 376  ;;  %1146 = vbcast.lane.b32.xlu0 %v7088_v62, 336 }
 0x209   : > { %v7282_v40 = vpop.permute.xlu1 %1067  ;;  %v7284_v38 = vpop.permute.xlu0 %1181 }
 0x20a   : > { %10928 = vst [vmem:[#allocation72_spill] sm:$0xff] %v7282_v40  ;;  %10929 = vst [vmem:[#allocation73_spill] sm:$0xff] %v7284_v38 }
 0x20b   : > { %1110 = vbcast.lane.b32.xlu1 %v7088_v62, 264  ;;  %1154 = vbcast.lane.b32.xlu0 %v7088_v62, 352 }
 0x20d   : > { %v7288_v39 = vpop.permute.xlu1 %1075  ;;  %v7290_v37 = vpop.permute.xlu0 %1189 }
 0x20e   : > { %10930 = vst [vmem:[#allocation74_spill] sm:$0xff] %v7288_v39  ;;  %10931 = vst [vmem:[#allocation75_spill] sm:$0xff] %v7290_v37 }
 0x20f   : > { %1118 = vbcast.lane.b32.xlu1 %v7088_v62, 280  ;;  %1162 = vbcast.lane.b32.xlu0 %v7088_v62, 368 }
 0x211   : > { %v7294_v36 = vpop.permute.xlu1 %1083  ;;  %v7296_v61 = vpop.permute.xlu0 %1197 }
 0x212   : > { %10932 = vst [vmem:[#allocation76_spill] sm:$0xff] %v7294_v36  ;;  %10933 = vst [vmem:[#allocation77_spill] sm:$0xff] %v7296_v61 }
 0x213   : > { %1126 = vbcast.lane.b32.xlu1 %v7088_v62, 296  ;;  %1240 = vbcast.lane.b32.xlu0 %v7093_v63, 256 }
 0x215   : > { %v7300_v34 = vpop.permute.xlu1 %1091  ;;  %v7302_v35 = vpop.permute.xlu0 %1205 }
 0x216   : > { %10934 = vst [vmem:[#allocation78_spill] sm:$0xff] %v7300_v34  ;;  %10935 = vst [vmem:[#allocation79_spill] sm:$0xff] %v7302_v35 }
 0x217   : > { %1134 = vbcast.lane.b32.xlu1 %v7088_v62, 312  ;;  %1248 = vbcast.lane.b32.xlu0 %v7093_v63, 272 }
 0x219   : > { %v7306_v29 = vpop.permute.xlu1 %1099  ;;  %v7308_v28 = vpop.permute.xlu0 %1213 }
 0x21a   : > { %10936 = vst [vmem:[#allocation80_spill] sm:$0xff] %v7306_v29  ;;  %10937 = vst [vmem:[#allocation81_spill] sm:$0xff] %v7308_v28 }
 0x21b   : > { %1142 = vbcast.lane.b32.xlu1 %v7088_v62, 328  ;;  %1256 = vbcast.lane.b32.xlu0 %v7093_v63, 288 }
 0x21d   : > { %v7312_v23 = vpop.permute.xlu1 %1177  ;;  %v7314_v61 = vpop.permute.xlu0 %1221 }
 0x21e   : > { %10938 = vst [vmem:[#allocation82_spill] sm:$0xff] %v7312_v23  ;;  %10939 = vst [vmem:[#allocation83_spill] sm:$0xff] %v7314_v61 }
 0x21f   : > { %1150 = vbcast.lane.b32.xlu1 %v7088_v62, 344  ;;  %1264 = vbcast.lane.b32.xlu0 %v7093_v63, 304 }
 0x221   : > { %v7318_v35 = vpop.permute.xlu1 %1185  ;;  %v7320_v37 = vpop.permute.xlu0 %1229 }
 0x222   : > { %10940 = vst [vmem:[#allocation84_spill] sm:$0xff] %v7318_v35  ;;  %10941 = vst [vmem:[#allocation85_spill] sm:$0xff] %v7320_v37  ;;  %v1304_v35 = vsub.s32 4, %v7065_v41 }
 0x223   : > { %1158 = vbcast.lane.b32.xlu1 %v7088_v62, 360  ;;  %1272 = vbcast.lane.b32.xlu0 %v7093_v63, 320 }
 0x224   : > { %v1372_v19 = vrot.slane %v7074_v58, %v1304_v35 }
 0x225   : > { %v7324_v28 = vpop.permute.xlu1 %1193  ;;  %v7326_v38 = vpop.permute.xlu0 %838 }
 0x226   : > { %10942 = vst [vmem:[#allocation86_spill] sm:$0xff] %v7324_v28  ;;  %10943 = vst [vmem:[#allocation87_spill] sm:$0xff] %v7326_v38 }
 0x227   : > { %1166 = vbcast.lane.b32.xlu1 %v7088_v62, 376  ;;  %1280 = vbcast.lane.b32.xlu0 %v7093_v63, 336 }
 0x229   : > { %v7330_v61 = vpop.permute.xlu1 %1201  ;;  %v7332_v42 = vpop.permute.xlu0 %846 }
 0x22a   : > { %10944 = vst [vmem:[#allocation88_spill] sm:$0xff] %v7330_v61  ;;  %10945 = vst [vmem:[#allocation89_spill] sm:$0xff] %v7332_v42  ;;  %v1305_v61 = vrot.slane %v7068_v53, %v1304_v35 }
 0x22b   : > { %1244 = vbcast.lane.b32.xlu1 %v7093_v63, 264  ;;  %1288 = vbcast.lane.b32.xlu0 %v7093_v63, 352 }
 0x22d   : > { %v7336_v37 = vpop.permute.xlu1 %1209  ;;  %v7339_v23 = vpop.permute.xlu0 %854 }
 0x22e   : > { %10946 = vst [vmem:[#allocation90_spill] sm:$0xff] %v7336_v37  ;;  %10947 = vst [vmem:[#allocation91_spill] sm:$0xff] %v7339_v23 }
 0x22f   : > { %1252 = vbcast.lane.b32.xlu1 %v7093_v63, 280  ;;  %1296 = vbcast.lane.b32.xlu0 %v7093_v63, 368 }
 0x231   : > { %v7343_v62 = vpop.permute.xlu1 %1217  ;;  %v7346_v28 = vpop.permute.xlu0 %862 }
 0x232   : > { %10948 = vst [vmem:[#allocation92_spill] sm:$0xff] %v7343_v62  ;;  %10949 = vst [vmem:[#allocation93_spill] sm:$0xff] %v7346_v28 }
 0x233   : > { %1260 = vbcast.lane.b32.xlu1 %v7093_v63, 296  ;;  %1307 = vbcast.lane.b32.xlu0 %v1305_v61, 256 }
 0x235   : > { %v7349_v27 = vpop.permute.xlu1 %1225  ;;  %v7351_v37 = vpop.permute.xlu0 %870 }
 0x236   : > { %10950 = vst [vmem:[#allocation94_spill] sm:$0xff] %v7349_v27  ;;  %10951 = vst [vmem:[#allocation95_spill] sm:$0xff] %v7351_v37 }
 0x237   : > { %1268 = vbcast.lane.b32.xlu1 %v7093_v63, 312  ;;  %1315 = vbcast.lane.b32.xlu0 %v1305_v61, 272 }
 0x239   : > { %v7354_v31 = vpop.permute.xlu1 %1233  ;;  %v7356_v45 = vpop.permute.xlu0 %878 }
 0x23a   : > { %10952 = vst [vmem:[#allocation96_spill] sm:$0xff] %v7354_v31  ;;  %10953 = vst [vmem:[#allocation97_spill] sm:$0xff] %v7356_v45 }
 0x23b   : > { %1276 = vbcast.lane.b32.xlu1 %v7093_v63, 328  ;;  %1323 = vbcast.lane.b32.xlu0 %v1305_v61, 288 }
 0x23d   : > { %v7359_v62 = vpop.permute.xlu1 %842  ;;  %v7361_v33 = vpop.permute.xlu0 %886 }
 0x23e   : > { %10954 = vst [vmem:[#allocation98_spill] sm:$0xff] %v7359_v62  ;;  %10955 = vst [vmem:[#allocation99_spill] sm:$0xff] %v7361_v33 }
 0x23f   : > { %1284 = vbcast.lane.b32.xlu1 %v7093_v63, 344  ;;  %1331 = vbcast.lane.b32.xlu0 %v1305_v61, 304 }
 0x241   : > { %v7364_v27 = vpop.permute.xlu1 %850  ;;  %v7366_v30 = vpop.permute.xlu0 %894 }
 0x242   : > { %10956 = vst [vmem:[#allocation100_spill] sm:$0xff] %v7364_v27  ;;  %10957 = vst [vmem:[#allocation101_spill] sm:$0xff] %v7366_v30 }
 0x243   : > { %1292 = vbcast.lane.b32.xlu1 %v7093_v63, 360  ;;  %1339 = vbcast.lane.b32.xlu0 %v1305_v61, 320 }
 0x245   : > { %v7369_v31 = vpop.permute.xlu1 %858  ;;  %v7371_v60 = vpop.permute.xlu0 %972 }
 0x246   : > { %10958 = vst [vmem:[#allocation102_spill] sm:$0xff] %v7369_v31  ;;  %10959 = vst [vmem:[#allocation103_spill] sm:$0xff] %v7371_v60  ;;  %v1438_v60 = vsub.s32 5, %v7065_v41 }
 0x247   : > { %1300 = vbcast.lane.b32.xlu1 %v7093_v63, 376  ;;  %1347 = vbcast.lane.b32.xlu0 %v1305_v61, 336 }
 0x249   : > { %v7374_v29 = vpop.permute.xlu1 %866  ;;  %v7376_v24 = vpop.permute.xlu0 %980 }
 0x24a   : > { %10960 = vst [vmem:[#allocation104_spill] sm:$0xff] %v7374_v29  ;;  %10961 = vst [vmem:[#allocation105_spill] sm:$0xff] %v7376_v24 }
 0x24b   : > { %1311 = vbcast.lane.b32.xlu1 %v1305_v61, 264  ;;  %1355 = vbcast.lane.b32.xlu0 %v1305_v61, 352 }
 0x24d   : > { %v7378_v34 = vpop.permute.xlu1 %874  ;;  %v7380_v20 = vpop.permute.xlu0 %988 }
 0x24e   : > { %10962 = vst [vmem:[#allocation106_spill] sm:$0xff] %v7378_v34  ;;  %10963 = vst [vmem:[#allocation107_spill] sm:$0xff] %v7380_v20 }
 0x24f   : > { %1319 = vbcast.lane.b32.xlu1 %v1305_v61, 280  ;;  %1363 = vbcast.lane.b32.xlu0 %v1305_v61, 368 }
 0x251   : > { %v7382_v36 = vpop.permute.xlu1 %882  ;;  %v7385_v39 = vpop.permute.xlu0 %996 }
 0x252   : > { %10964 = vst [vmem:[#allocation108_spill] sm:$0xff] %v7382_v36  ;;  %10965 = vst [vmem:[#allocation109_spill] sm:$0xff] %v7385_v39 }
 0x253   : > { %1327 = vbcast.lane.b32.xlu1 %v1305_v61, 296  ;;  %1374 = vbcast.lane.b32.xlu0 %v1372_v19, 256 }
 0x255   : > { %v7387_v63 = vpop.permute.xlu1 %890  ;;  %v7389_v40 = vpop.permute.xlu0 %1004 }
 0x256   : > { %10966 = vst [vmem:[#allocation110_spill] sm:$0xff] %v7387_v63  ;;  %10967 = vst [vmem:[#allocation111_spill] sm:$0xff] %v7389_v40 }
 0x257   : > { %1335 = vbcast.lane.b32.xlu1 %v1305_v61, 312  ;;  %1382 = vbcast.lane.b32.xlu0 %v1372_v19, 272 }
 0x259   : > { %v7391_v43 = vpop.permute.xlu1 %898  ;;  %v7393_v46 = vpop.permute.xlu0 %1012 }
 0x25a   : > { %10968 = vst [vmem:[#allocation112_spill] sm:$0xff] %v7391_v43  ;;  %10969 = vst [vmem:[#allocation113_spill] sm:$0xff] %v7393_v46 }
 0x25b   : > { %1343 = vbcast.lane.b32.xlu1 %v1305_v61, 328  ;;  %1390 = vbcast.lane.b32.xlu0 %v1372_v19, 288 }
 0x25d   : > { %v7395_v44 = vpop.permute.xlu1 %976  ;;  %v7397_v22 = vpop.permute.xlu0 %1020 }
 0x25e   : > { %10970 = vst [vmem:[#allocation114_spill] sm:$0xff] %v7395_v44  ;;  %10971 = vst [vmem:[#allocation115_spill] sm:$0xff] %v7397_v22 }
 0x25f   : > { %1351 = vbcast.lane.b32.xlu1 %v1305_v61, 344  ;;  %1398 = vbcast.lane.b32.xlu0 %v1372_v19, 304 }
 0x261   : > { %v7399_v35 = vpop.permute.xlu1 %984  ;;  %v7401_v39 = vpop.permute.xlu0 %1028 }
 0x262   : > { %10972 = vst [vmem:[#allocation116_spill] sm:$0xff] %v7399_v35  ;;  %10973 = vst [vmem:[#allocation117_spill] sm:$0xff] %v7401_v39 }
 0x263   : > { %1359 = vbcast.lane.b32.xlu1 %v1305_v61, 360  ;;  %1406 = vbcast.lane.b32.xlu0 %v1372_v19, 320 }
 0x265   : > { %v7403_v40 = vpop.permute.xlu1 %992  ;;  %v7405_v20 = vpop.permute.xlu0 %1106 }
 0x266   : > { %10974 = vst [vmem:[#allocation118_spill] sm:$0xff] %v7403_v40  ;;  %10975 = vst [vmem:[#allocation119_spill] sm:$0xff] %v7405_v20  ;;  %v1439_v20 = vrot.slane %v7068_v53, %v1438_v60 }
 0x267   : > { %1367 = vbcast.lane.b32.xlu1 %v1305_v61, 376  ;;  %1414 = vbcast.lane.b32.xlu0 %v1372_v19, 336 }
 0x269   : > { %v7407_v46 = vpop.permute.xlu1 %1000  ;;  %v7409_v24 = vpop.permute.xlu0 %1114 }
 0x26a   : > { %10976 = vst [vmem:[#allocation120_spill] sm:$0xff] %v7407_v46  ;;  %10977 = vst [vmem:[#allocation121_spill] sm:$0xff] %v7409_v24 }
 0x26b   : > { %1378 = vbcast.lane.b32.xlu1 %v1372_v19, 264  ;;  %1422 = vbcast.lane.b32.xlu0 %v1372_v19, 352 }
 0x26d   : > { %v7411_v22 = vpop.permute.xlu1 %1008  ;;  %v7414_v2 = vpop.permute.xlu0 %1122 }
 0x26e   : > { %10978 = vst [vmem:[#allocation122_spill] sm:$0xff] %v7411_v22  ;;  %10979 = vst [vmem:[#allocation123_spill] sm:$0xff] %v7414_v2 }
 0x26f   : > { %1386 = vbcast.lane.b32.xlu1 %v1372_v19, 280  ;;  %1430 = vbcast.lane.b32.xlu0 %v1372_v19, 368 }
 0x271   : > { %v7416_v39 = vpop.permute.xlu1 %1016  ;;  %v7419_v61 = vpop.permute.xlu0 %1130 }
 0x272   : > { %10980 = vst [vmem:[#allocation124_spill] sm:$0xff] %v7416_v39  ;;  %10981 = vst [vmem:[#allocation125_spill] sm:$0xff] %v7419_v61 }
 0x273   : > { %1394 = vbcast.lane.b32.xlu1 %v1372_v19, 296  ;;  %1441 = vbcast.lane.b32.xlu0 %v1439_v20, 256 }
 0x275   : > { %v7421_v46 = vpop.permute.xlu1 %1024  ;;  %v7423_v24 = vpop.permute.xlu0 %1138 }
 0x276   : > { %10982 = vst [vmem:[#allocation126_spill] sm:$0xff] %v7421_v46  ;;  %10983 = vst [vmem:[#allocation127_spill] sm:$0xff] %v7423_v24 }
 0x277   : > { %1402 = vbcast.lane.b32.xlu1 %v1372_v19, 312  ;;  %1449 = vbcast.lane.b32.xlu0 %v1439_v20, 272 }
 0x279   : > { %v7425_v22 = vpop.permute.xlu1 %1032  ;;  %v7427_v6 = vpop.permute.xlu0 %1146 }
 0x27a   : > { %10984 = vst [vmem:[#allocation128_spill] sm:$0xff] %v7425_v22  ;;  %10985 = vst [vmem:[#allocation129_spill] sm:$0xff] %v7427_v6 }
 0x27b   : > { %1410 = vbcast.lane.b32.xlu1 %v1372_v19, 328  ;;  %1457 = vbcast.lane.b32.xlu0 %v1439_v20, 288 }
 0x27d   : > { %v7429_v2 = vpop.permute.xlu1 %1110  ;;  %v7431_v39 = vpop.permute.xlu0 %1154 }
 0x27e   : > { %10986 = vst [vmem:[#allocation130_spill] sm:$0xff] %v7429_v2  ;;  %10987 = vst [vmem:[#allocation131_spill] sm:$0xff] %v7431_v39 }
 0x27f   : > { %1418 = vbcast.lane.b32.xlu1 %v1372_v19, 344  ;;  %1465 = vbcast.lane.b32.xlu0 %v1439_v20, 304 }
 0x281   : > { %v7433_v61 = vpop.permute.xlu1 %1118  ;;  %v7435_v40 = vpop.permute.xlu0 %1162 }
 0x282   : > { %10988 = vst [vmem:[#allocation132_spill] sm:$0xff] %v7433_v61  ;;  %10989 = vst [vmem:[#allocation133_spill] sm:$0xff] %v7435_v40 }
 0x283   : > { %1426 = vbcast.lane.b32.xlu1 %v1372_v19, 360  ;;  %1473 = vbcast.lane.b32.xlu0 %v1439_v20, 320 }
 0x285   : > { %v7437_v24 = vpop.permute.xlu1 %1126  ;;  %v7439_v46 = vpop.permute.xlu0 %1240 }
 0x286   : > { %10990 = vst [vmem:[#allocation134_spill] sm:$0xff] %v7437_v24  ;;  %10991 = vst [vmem:[#allocation135_spill] sm:$0xff] %v7439_v46  ;;  %v1506_v24 = vrot.slane %v7074_v58, %v1438_v60 }
 0x287   : > { %1434 = vbcast.lane.b32.xlu1 %v1372_v19, 376  ;;  %1481 = vbcast.lane.b32.xlu0 %v1439_v20, 336 }
 0x289   : > { %v7441_v6 = vpop.permute.xlu1 %1134  ;;  %v7443_v22 = vpop.permute.xlu0 %1248 }
 0x28a   : > { %10992 = vst [vmem:[#allocation136_spill] sm:$0xff] %v7441_v6  ;;  %10993 = vst [vmem:[#allocation137_spill] sm:$0xff] %v7443_v22 }
 0x28b   : > { %1445 = vbcast.lane.b32.xlu1 %v1439_v20, 264  ;;  %1489 = vbcast.lane.b32.xlu0 %v1439_v20, 352 }
 0x28d   : > { %v7445_v39 = vpop.permute.xlu1 %1142  ;;  %v7447_v2 = vpop.permute.xlu0 %1256 }
 0x28e   : > { %10994 = vst [vmem:[#allocation138_spill] sm:$0xff] %v7445_v39  ;;  %10995 = vst [vmem:[#allocation139_spill] sm:$0xff] %v7447_v2 }
 0x28f   : > { %1453 = vbcast.lane.b32.xlu1 %v1439_v20, 280  ;;  %1497 = vbcast.lane.b32.xlu0 %v1439_v20, 368 }
 0x291   : > { %v7449_v40 = vpop.permute.xlu1 %1150  ;;  %v7452_v61 = vpop.permute.xlu0 %1264 }
 0x292   : > { %10996 = vst [vmem:[#allocation140_spill] sm:$0xff] %v7449_v40  ;;  %10997 = vst [vmem:[#allocation141_spill] sm:$0xff] %v7452_v61 }
 0x293   : > { %1461 = vbcast.lane.b32.xlu1 %v1439_v20, 296  ;;  %1508 = vbcast.lane.b32.xlu0 %v1506_v24, 256 }
 0x295   : > { %v7454_v19 = vpop.permute.xlu1 %1158  ;;  %v7456_v46 = vpop.permute.xlu0 %1272 }
 0x296   : > { %10998 = vst [vmem:[#allocation142_spill] sm:$0xff] %v7454_v19  ;;  %10999 = vst [vmem:[#allocation143_spill] sm:$0xff] %v7456_v46 }
 0x297   : > { %1469 = vbcast.lane.b32.xlu1 %v1439_v20, 312  ;;  %1516 = vbcast.lane.b32.xlu0 %v1506_v24, 272 }
 0x299   : > { %v7458_v22 = vpop.permute.xlu1 %1166  ;;  %v7460_v39 = vpop.permute.xlu0 %1280 }
 0x29a   : > { %11000 = vst [vmem:[#allocation144_spill] sm:$0xff] %v7458_v22  ;;  %11001 = vst [vmem:[#allocation145_spill] sm:$0xff] %v7460_v39 }
 0x29b   : > { %1477 = vbcast.lane.b32.xlu1 %v1439_v20, 328  ;;  %1524 = vbcast.lane.b32.xlu0 %v1506_v24, 288 }
 0x29d   : > { %v7462_v2 = vpop.permute.xlu1 %1244  ;;  %v7464_v40 = vpop.permute.xlu0 %1288 }
 0x29e   : > { %11002 = vst [vmem:[#allocation146_spill] sm:$0xff] %v7462_v2  ;;  %11003 = vst [vmem:[#allocation147_spill] sm:$0xff] %v7464_v40 }
 0x29f   : > { %1485 = vbcast.lane.b32.xlu1 %v1439_v20, 344  ;;  %1532 = vbcast.lane.b32.xlu0 %v1506_v24, 304 }
 0x2a1   : > { %v7466_v60 = vpop.permute.xlu1 %1252  ;;  %v7468_v61 = vpop.permute.xlu0 %1296 }
 0x2a2   : > { %11004 = vst [vmem:[#allocation148_spill] sm:$0xff] %v7466_v60  ;;  %11005 = vst [vmem:[#allocation149_spill] sm:$0xff] %v7468_v61  ;;  %v1572_v60 = vsub.s32 6, %v7065_v41 }
 0x2a3   : > { %1493 = vbcast.lane.b32.xlu1 %v1439_v20, 360  ;;  %1540 = vbcast.lane.b32.xlu0 %v1506_v24, 320 }
 0x2a5   : > { %v7470_v46 = vpop.permute.xlu1 %1260  ;;  %v7472_v19 = vpop.permute.xlu0 %1307 }
 0x2a6   : > { %11006 = vst [vmem:[#allocation150_spill] sm:$0xff] %v7470_v46  ;;  %11007 = vst [vmem:[#allocation151_spill] sm:$0xff] %v7472_v19  ;;  %v1573_v19 = vrot.slane %v7068_v53, %v1572_v60 }
 0x2a7   : > { %1501 = vbcast.lane.b32.xlu1 %v1439_v20, 376  ;;  %1548 = vbcast.lane.b32.xlu0 %v1506_v24, 336 }
 0x2a9   : > { %v7474_v39 = vpop.permute.xlu1 %1268  ;;  %v7476_v22 = vpop.permute.xlu0 %1315 }
 0x2aa   : > { %11008 = vst [vmem:[#allocation152_spill] sm:$0xff] %v7474_v39  ;;  %11009 = vst [vmem:[#allocation153_spill] sm:$0xff] %v7476_v22 }
 0x2ab   : > { %1512 = vbcast.lane.b32.xlu1 %v1506_v24, 264  ;;  %1556 = vbcast.lane.b32.xlu0 %v1506_v24, 352 }
 0x2ad   : > { %v7478_v40 = vpop.permute.xlu1 %1276  ;;  %v7481_v2 = vpop.permute.xlu0 %1323 }
 0x2ae   : > { %11010 = vst [vmem:[#allocation154_spill] sm:$0xff] %v7478_v40  ;;  %11011 = vst [vmem:[#allocation155_spill] sm:$0xff] %v7481_v2 }
 0x2af   : > { %1520 = vbcast.lane.b32.xlu1 %v1506_v24, 280  ;;  %1564 = vbcast.lane.b32.xlu0 %v1506_v24, 368 }
 0x2b1   : > { %v7483_v61 = vpop.permute.xlu1 %1284  ;;  %v7486_v20 = vpop.permute.xlu0 %1331 }
 0x2b2   : > { %11012 = vst [vmem:[#allocation156_spill] sm:$0xff] %v7483_v61  ;;  %11013 = vst [vmem:[#allocation157_spill] sm:$0xff] %v7486_v20 }
 0x2b3   : > { %1528 = vbcast.lane.b32.xlu1 %v1506_v24, 296  ;;  %1575 = vbcast.lane.b32.xlu0 %v1573_v19, 256 }
 0x2b5   : > { %v7488_v39 = vpop.permute.xlu1 %1292  ;;  %v7490_v22 = vpop.permute.xlu0 %1339 }
 0x2b6   : > { %11014 = vst [vmem:[#allocation158_spill] sm:$0xff] %v7488_v39  ;;  %11015 = vst [vmem:[#allocation159_spill] sm:$0xff] %v7490_v22 }
 0x2b7   : > { %1536 = vbcast.lane.b32.xlu1 %v1506_v24, 312  ;;  %1583 = vbcast.lane.b32.xlu0 %v1573_v19, 272 }
 0x2b9   : > { %v7492_v40 = vpop.permute.xlu1 %1300  ;;  %v7494_v46 = vpop.permute.xlu0 %1347 }
 0x2ba   : > { %11016 = vst [vmem:[#allocation160_spill] sm:$0xff] %v7492_v40  ;;  %11017 = vst [vmem:[#allocation161_spill] sm:$0xff] %v7494_v46 }
 0x2bb   : > { %1544 = vbcast.lane.b32.xlu1 %v1506_v24, 328  ;;  %1591 = vbcast.lane.b32.xlu0 %v1573_v19, 288 }
 0x2bd   : > { %v7496_v2 = vpop.permute.xlu1 %1311  ;;  %v7498_v61 = vpop.permute.xlu0 %1355 }
 0x2be   : > { %11018 = vst [vmem:[#allocation162_spill] sm:$0xff] %v7496_v2  ;;  %11019 = vst [vmem:[#allocation163_spill] sm:$0xff] %v7498_v61 }
 0x2bf   : > { %1552 = vbcast.lane.b32.xlu1 %v1506_v24, 344  ;;  %1599 = vbcast.lane.b32.xlu0 %v1573_v19, 304 }
 0x2c1   : > { %v7500_v20 = vpop.permute.xlu1 %1319  ;;  %v7502_v6 = vpop.permute.xlu0 %1363 }
 0x2c2   : > { %11020 = vst [vmem:[#allocation164_spill] sm:$0xff] %v7500_v20  ;;  %11021 = vst [vmem:[#allocation165_spill] sm:$0xff] %v7502_v6 }
 0x2c3   : > { %1560 = vbcast.lane.b32.xlu1 %v1506_v24, 360  ;;  %1607 = vbcast.lane.b32.xlu0 %v1573_v19, 320 }
 0x2c5   : > { %v7504_v22 = vpop.permute.xlu1 %1327  ;;  %v7506_v39 = vpop.permute.xlu0 %1374 }
 0x2c6   : > { %11022 = vst [vmem:[#allocation166_spill] sm:$0xff] %v7504_v22  ;;  %11023 = vst [vmem:[#allocation167_spill] sm:$0xff] %v7506_v39  ;;  %v1640_v22 = vrot.slane %v7074_v58, %v1572_v60 }
 0x2c7   : > { %1568 = vbcast.lane.b32.xlu1 %v1506_v24, 376  ;;  %1615 = vbcast.lane.b32.xlu0 %v1573_v19, 336 }
 0x2c9   : > { %v7508_v46 = vpop.permute.xlu1 %1335  ;;  %v7510_v40 = vpop.permute.xlu0 %1382 }
 0x2ca   : > { %11024 = vst [vmem:[#allocation168_spill] sm:$0xff] %v7508_v46  ;;  %11025 = vst [vmem:[#allocation169_spill] sm:$0xff] %v7510_v40 }
 0x2cb   : > { %1579 = vbcast.lane.b32.xlu1 %v1573_v19, 264  ;;  %1623 = vbcast.lane.b32.xlu0 %v1573_v19, 352 }
 0x2cd   : > { %v7512_v61 = vpop.permute.xlu1 %1343  ;;  %v7514_v2 = vpop.permute.xlu0 %1390 }
 0x2ce   : > { %11026 = vst [vmem:[#allocation170_spill] sm:$0xff] %v7512_v61  ;;  %11027 = vst [vmem:[#allocation171_spill] sm:$0xff] %v7514_v2 }
 0x2cf   : > { %1587 = vbcast.lane.b32.xlu1 %v1573_v19, 280  ;;  %1631 = vbcast.lane.b32.xlu0 %v1573_v19, 368 }
 0x2d1   : > { %v7516_v6 = vpop.permute.xlu1 %1351  ;;  %v7519_v20 = vpop.permute.xlu0 %1398 }
 0x2d2   : > { %11028 = vst [vmem:[#allocation172_spill] sm:$0xff] %v7516_v6  ;;  %11029 = vst [vmem:[#allocation173_spill] sm:$0xff] %v7519_v20 }
 0x2d3   : > { %1595 = vbcast.lane.b32.xlu1 %v1573_v19, 296  ;;  %1642 = vbcast.lane.b32.xlu0 %v1640_v22, 256 }
 0x2d5   : > { %v7521_v24 = vpop.permute.xlu1 %1359  ;;  %v7523_v39 = vpop.permute.xlu0 %1406 }
 0x2d6   : > { %11030 = vst [vmem:[#allocation174_spill] sm:$0xff] %v7521_v24  ;;  %11031 = vst [vmem:[#allocation175_spill] sm:$0xff] %v7523_v39 }
 0x2d7   : > { %1603 = vbcast.lane.b32.xlu1 %v1573_v19, 312  ;;  %1650 = vbcast.lane.b32.xlu0 %v1640_v22, 272 }
 0x2d9   : > { %v7525_v40 = vpop.permute.xlu1 %1367  ;;  %v7527_v61 = vpop.permute.xlu0 %1414 }
 0x2da   : > { %11032 = vst [vmem:[#allocation176_spill] sm:$0xff] %v7525_v40  ;;  %11033 = vst [vmem:[#allocation177_spill] sm:$0xff] %v7527_v61 }
 0x2db   : > { %1611 = vbcast.lane.b32.xlu1 %v1573_v19, 328  ;;  %1658 = vbcast.lane.b32.xlu0 %v1640_v22, 288 }
 0x2dd   : > { %v7529_v2 = vpop.permute.xlu1 %1378  ;;  %v7531_v6 = vpop.permute.xlu0 %1422 }
 0x2de   : > { %11034 = vst [vmem:[#allocation178_spill] sm:$0xff] %v7529_v2  ;;  %11035 = vst [vmem:[#allocation179_spill] sm:$0xff] %v7531_v6 }
 0x2df   : > { %1619 = vbcast.lane.b32.xlu1 %v1573_v19, 344  ;;  %1666 = vbcast.lane.b32.xlu0 %v1640_v22, 304 }
 0x2e1   : > { %v7533_v60 = vpop.permute.xlu1 %1386  ;;  %v7535_v20 = vpop.permute.xlu0 %1430 }
 0x2e2   : > { %11036 = vst [vmem:[#allocation180_spill] sm:$0xff] %v7533_v60  ;;  %11037 = vst [vmem:[#allocation181_spill] sm:$0xff] %v7535_v20  ;;  %v1706_v60 = vsub.s32 7, %v7065_v41 }
 0x2e3   : > { %1627 = vbcast.lane.b32.xlu1 %v1573_v19, 360  ;;  %1674 = vbcast.lane.b32.xlu0 %v1640_v22, 320 }
 0x2e5   : > { %v7537_v39 = vpop.permute.xlu1 %1394  ;;  %v7539_v24 = vpop.permute.xlu0 %1441 }
 0x2e6   : > { %11038 = vst [vmem:[#allocation182_spill] sm:$0xff] %v7537_v39  ;;  %11039 = vst [vmem:[#allocation183_spill] sm:$0xff] %v7539_v24  ;;  %v1707_v24 = vrot.slane %v7068_v53, %v1706_v60 }
 0x2e7   : > { %1635 = vbcast.lane.b32.xlu1 %v1573_v19, 376  ;;  %1682 = vbcast.lane.b32.xlu0 %v1640_v22, 336 }
 0x2e9   : > { %v7541_v61 = vpop.permute.xlu1 %1402  ;;  %v7543_v40 = vpop.permute.xlu0 %1449 }
 0x2ea   : > { %11040 = vst [vmem:[#allocation184_spill] sm:$0xff] %v7541_v61  ;;  %11041 = vst [vmem:[#allocation185_spill] sm:$0xff] %v7543_v40 }
 0x2eb   : > { %1646 = vbcast.lane.b32.xlu1 %v1640_v22, 264  ;;  %1690 = vbcast.lane.b32.xlu0 %v1640_v22, 352 }
 0x2ed   : > { %v7545_v6 = vpop.permute.xlu1 %1410  ;;  %v7548_v2 = vpop.permute.xlu0 %1457 }
 0x2ee   : > { %11042 = vst [vmem:[#allocation186_spill] sm:$0xff] %v7545_v6  ;;  %11043 = vst [vmem:[#allocation187_spill] sm:$0xff] %v7548_v2 }
 0x2ef   : > { %1654 = vbcast.lane.b32.xlu1 %v1640_v22, 280  ;;  %1698 = vbcast.lane.b32.xlu0 %v1640_v22, 368 }
 0x2f1   : > { %v7550_v20 = vpop.permute.xlu1 %1418  ;;  %v7553_v19 = vpop.permute.xlu0 %1465 }
 0x2f2   : > { %11044 = vst [vmem:[#allocation188_spill] sm:$0xff] %v7550_v20  ;;  %11045 = vst [vmem:[#allocation189_spill] sm:$0xff] %v7553_v19 }
 0x2f3   : > { %1662 = vbcast.lane.b32.xlu1 %v1640_v22, 296  ;;  %1709 = vbcast.lane.b32.xlu0 %v1707_v24, 256 }
 0x2f5   : > { %v7555_v61 = vpop.permute.xlu1 %1426  ;;  %v7557_v40 = vpop.permute.xlu0 %1473 }
 0x2f6   : > { %11046 = vst [vmem:[#allocation190_spill] sm:$0xff] %v7555_v61  ;;  %11047 = vst [vmem:[#allocation191_spill] sm:$0xff] %v7557_v40 }
 0x2f7   : > { %1670 = vbcast.lane.b32.xlu1 %v1640_v22, 312  ;;  %1717 = vbcast.lane.b32.xlu0 %v1707_v24, 272 }
 0x2f9   : > { %v7559_v6 = vpop.permute.xlu1 %1434  ;;  %v7561_v41 = vpop.permute.xlu0 %1481 }
 0x2fa   : > { %11048 = vst [vmem:[#allocation192_spill] sm:$0xff] %v7559_v6  ;;  %11049 = vst [vmem:[#allocation193_spill] sm:$0xff] %v7561_v41 }
 0x2fb   : > { %1678 = vbcast.lane.b32.xlu1 %v1640_v22, 328  ;;  %1725 = vbcast.lane.b32.xlu0 %v1707_v24, 288 }
 0x2fd   : > { %v7563_v2 = vpop.permute.xlu1 %1445  ;;  %v7565_v20 = vpop.permute.xlu0 %1489 }
 0x2fe   : > { %11050 = vst [vmem:[#allocation194_spill] sm:$0xff] %v7563_v2  ;;  %11051 = vst [vmem:[#allocation195_spill] sm:$0xff] %v7565_v20 }
 0x2ff   : > { %1686 = vbcast.lane.b32.xlu1 %v1640_v22, 344  ;;  %1733 = vbcast.lane.b32.xlu0 %v1707_v24, 304 }
 0x301   : > { %v7567_v53 = vpop.permute.xlu1 %1453  ;;  %v7569_v19 = vpop.permute.xlu0 %1497 }
 0x302   : > { %11052 = vst [vmem:[#allocation196_spill] sm:$0xff] %v7567_v53  ;;  %11053 = vst [vmem:[#allocation197_spill] sm:$0xff] %v7569_v19 }
 0x303   : > { %1694 = vbcast.lane.b32.xlu1 %v1640_v22, 360  ;;  %1741 = vbcast.lane.b32.xlu0 %v1707_v24, 320 }
 0x305   : > { %v7571_v40 = vpop.permute.xlu1 %1461  ;;  %v7573_v61 = vpop.permute.xlu0 %1508 }
 0x306   : > { %11054 = vst [vmem:[#allocation198_spill] sm:$0xff] %v7571_v40  ;;  %11055 = vst [vmem:[#allocation199_spill] sm:$0xff] %v7573_v61  ;;  %v1774_v40 = vrot.slane %v7074_v58, %v1706_v60 }
 0x307   : > { %1702 = vbcast.lane.b32.xlu1 %v1640_v22, 376  ;;  %1749 = vbcast.lane.b32.xlu0 %v1707_v24, 336 }
 0x309   : > { %v7575_v41 = vpop.permute.xlu1 %1469  ;;  %v7577_v6 = vpop.permute.xlu0 %1516 }
 0x30a   : > { %11056 = vst [vmem:[#allocation200_spill] sm:$0xff] %v7575_v41  ;;  %11057 = vst [vmem:[#allocation201_spill] sm:$0xff] %v7577_v6 }
 0x30b   : > { %1713 = vbcast.lane.b32.xlu1 %v1707_v24, 264  ;;  %1757 = vbcast.lane.b32.xlu0 %v1707_v24, 352 }
 0x30d   : > { %v7579_v20 = vpop.permute.xlu1 %1477  ;;  %v7581_v2 = vpop.permute.xlu0 %1524 }
 0x30e   : > { %11058 = vst [vmem:[#allocation202_spill] sm:$0xff] %v7579_v20  ;;  %11059 = vst [vmem:[#allocation203_spill] sm:$0xff] %v7581_v2 }
 0x30f   : > { %1721 = vbcast.lane.b32.xlu1 %v1707_v24, 280  ;;  %1765 = vbcast.lane.b32.xlu0 %v1707_v24, 368 }
 0x311   : > { %v7583_v19 = vpop.permute.xlu1 %1485  ;;  %v7586_v53 = vpop.permute.xlu0 %1532 }
 0x312   : > { %11060 = vst [vmem:[#allocation204_spill] sm:$0xff] %v7583_v19  ;;  %11061 = vst [vmem:[#allocation205_spill] sm:$0xff] %v7586_v53 }
 0x313   : > { %1729 = vbcast.lane.b32.xlu1 %v1707_v24, 296  ;;  %1776 = vbcast.lane.b32.xlu0 %v1774_v40, 256 }
 0x315   : > { %v7588_v22 = vpop.permute.xlu1 %1493  ;;  %v7590_v61 = vpop.permute.xlu0 %1540 }
 0x316   : > { %11062 = vst [vmem:[#allocation206_spill] sm:$0xff] %v7588_v22  ;;  %11063 = vst [vmem:[#allocation207_spill] sm:$0xff] %v7590_v61 }
 0x317   : > { %1737 = vbcast.lane.b32.xlu1 %v1707_v24, 312  ;;  %1784 = vbcast.lane.b32.xlu0 %v1774_v40, 272 }
 0x319   : > { %v7592_v6 = vpop.permute.xlu1 %1501  ;;  %v7594_v20 = vpop.permute.xlu0 %1548 }
 0x31a   : > { %11064 = vst [vmem:[#allocation208_spill] sm:$0xff] %v7592_v6  ;;  %11065 = vst [vmem:[#allocation209_spill] sm:$0xff] %v7594_v20 }
 0x31b   : > { %1745 = vbcast.lane.b32.xlu1 %v1707_v24, 328  ;;  %1792 = vbcast.lane.b32.xlu0 %v1774_v40, 288 }
 0x31d   : > { %v7596_v2 = vpop.permute.xlu1 %1512  ;;  %v7598_v19 = vpop.permute.xlu0 %1556 }
 0x31e   : > { %11066 = vst [vmem:[#allocation210_spill] sm:$0xff] %v7596_v2  ;;  %11067 = vst [vmem:[#allocation211_spill] sm:$0xff] %v7598_v19 }
 0x31f   : > { %1753 = vbcast.lane.b32.xlu1 %v1707_v24, 344  ;;  %1800 = vbcast.lane.b32.xlu0 %v1774_v40, 304 }
 0x321   : > { %v7600_v60 = vpop.permute.xlu1 %1520  ;;  %v7602_v58 = vpop.permute.xlu0 %1564 }
 0x322   : > { %11068 = vst [vmem:[#allocation212_spill] sm:$0xff] %v7600_v60  ;;  %11069 = vst [vmem:[#allocation213_spill] sm:$0xff] %v7602_v58 }
 0x323   : > { %1761 = vbcast.lane.b32.xlu1 %v1707_v24, 360  ;;  %1808 = vbcast.lane.b32.xlu0 %v1774_v40, 320 }
 0x325   : > { %v7604_v61 = vpop.permute.xlu1 %1528  ;;  %v7606_v53 = vpop.permute.xlu0 %1575 }
 0x326   : > { %11070 = vst [vmem:[#allocation214_spill] sm:$0xff] %v7604_v61  ;;  %11071 = vst [vmem:[#allocation215_spill] sm:$0xff] %v7606_v53 }
 0x327   : > { %1769 = vbcast.lane.b32.xlu1 %v1707_v24, 376  ;;  %1816 = vbcast.lane.b32.xlu0 %v1774_v40, 336 }
 0x329   : > { %v7608_v20 = vpop.permute.xlu1 %1536  ;;  %v7610_v6 = vpop.permute.xlu0 %1583 }
 0x32a   : > { %11072 = vst [vmem:[#allocation216_spill] sm:$0xff] %v7608_v20  ;;  %11073 = vst [vmem:[#allocation217_spill] sm:$0xff] %v7610_v6 }
 0x32b   : > { %1780 = vbcast.lane.b32.xlu1 %v1774_v40, 264  ;;  %1824 = vbcast.lane.b32.xlu0 %v1774_v40, 352 }
 0x32d   : > { %v7612_v19 = vpop.permute.xlu1 %1544  ;;  %v7614_v2 = vpop.permute.xlu0 %1591 }
 0x32e   : > { %11074 = vst [vmem:[#allocation218_spill] sm:$0xff] %v7612_v19  ;;  %11075 = vst [vmem:[#allocation219_spill] sm:$0xff] %v7614_v2 }
 0x32f   : > { %1788 = vbcast.lane.b32.xlu1 %v1774_v40, 280  ;;  %1832 = vbcast.lane.b32.xlu0 %v1774_v40, 368 }
 0x331   : > { %v7616_v58 = vpop.permute.xlu1 %1552  ;;  %v7618_v60 = vpop.permute.xlu0 %1599 }
 0x332   : > { %11076 = vst [vmem:[#allocation220_spill] sm:$0xff] %v7616_v58  ;;  %11077 = vst [vmem:[#allocation221_spill] sm:$0xff] %v7618_v60 }
 0x333   : > { %1796 = vbcast.lane.b32.xlu1 %v1774_v40, 296 }
 0x335   : > { %v7620_v53 = vpop.permute.xlu1 %1560  ;;  %v7622_v24 = vpop.permute.xlu0 %1607 }
 0x336   : > { %11078 = vst [vmem:[#allocation222_spill] sm:$0xff] %v7620_v53  ;;  %11079 = vst [vmem:[#allocation223_spill] sm:$0xff] %v7622_v24  ;;  %v1928_v24 = vsub.f32 %v7158_v48, %v7105_v17  ;;  %v1933_v48 = vsub.f32 %v7176_v56, %v7105_v17 }
 0x337   : > { %1804 = vbcast.lane.b32.xlu1 %v1774_v40, 312 }
 0x339   : > { %v7624_v20 = vpop.permute.xlu1 %1568  ;;  %v7626_v6 = vpop.permute.xlu0 %1615 }
 0x33a   : > { %11080 = vst [vmem:[#allocation224_spill] sm:$0xff] %v7624_v20  ;;  %11081 = vst [vmem:[#allocation225_spill] sm:$0xff] %v7626_v6 }
 0x33b   : > { %1812 = vbcast.lane.b32.xlu1 %v1774_v40, 328 }
 0x33d   : > { %v7628_v19 = vpop.permute.xlu1 %1579  ;;  %v7630_v2 = vpop.permute.xlu0 %1623 }
 0x33e   : > { %11082 = vst [vmem:[#allocation226_spill] sm:$0xff] %v7628_v19  ;;  %11083 = vst [vmem:[#allocation227_spill] sm:$0xff] %v7630_v2  ;;  %v1930_v19 = vsub.f32 %v7161_v49, %v7105_v17  ;;  %v2184_v2 = vand.u32 2147483647, %v1928_v24  ;;  %v1935_v24 = vsub.f32 %v7186_v5, %v7105_v17 }
 0x33f   : > { %1820 = vbcast.lane.b32.xlu1 %v1774_v40, 344 }
 0x341   : > { %v7632_v61 = vpop.permute.xlu1 %1587  ;;  %v7634_v60 = vpop.permute.xlu0 %1631 }
 0x342   : > { %11084 = vst [vmem:[#allocation228_spill] sm:$0xff] %v7632_v61  ;;  %11085 = vst [vmem:[#allocation229_spill] sm:$0xff] %v7634_v60  ;;  %v1931_v60 = vsub.f32 %v7166_v51, %v7105_v17 }
 0x343   : > { %1828 = vbcast.lane.b32.xlu1 %v1774_v40, 360 }
 0x345   : > { %v7636_v58 = vpop.permute.xlu1 %1595  ;;  %v7642_v6 = vpop.permute.xlu0 %1642 }
 0x346   : > { %11086 = vst [vmem:[#allocation230_spill] sm:$0xff] %v7636_v58  ;;  %11088 = vst [vmem:[#allocation232_spill] sm:$0xff] %v7642_v6  ;;  %v2187_v6 = vand.u32 2147483647, %v1931_v60  ;;  %v1939_v60 = vsub.f32 %v7198_v9, %v7105_v17 }
 0x347   : > { %1836 = vbcast.lane.b32.xlu1 %v1774_v40, 376  ;;  %v2186_v40 = vand.u32 2147483647, %v1930_v19  ;;  %v1937_v19 = vsub.f32 %v7192_v7, %v7105_v17 }
 0x348   : > { %v2195_v5 = vand.u32 2147483647, %v1939_v60  ;;  %v1934_v60 = vsub.f32 %v7181_v59, %v7105_v17 }
 0x349   : > { %v7640_v20 = vpop.permute.xlu1 %1603  ;;  %v7648_v61 = vpop.permute.xlu0 %1650 }
 0x34a   : > { %11087 = vst [vmem:[#allocation231_spill] sm:$0xff] %v7640_v20  ;;  %11090 = vst [vmem:[#allocation234_spill] sm:$0xff] %v7648_v61 }
 0x34d   : > { %v7646_v53 = vpop.permute.xlu1 %1611  ;;  %v7656_v20 = vpop.permute.xlu0 %1658 }
 0x34e   : > { %11089 = vst [vmem:[#allocation233_spill] sm:$0xff] %v7646_v53  ;;  %2440 = vadd.xlane.f32.xlu0 %v2184_v2  ;;  %v2189_v2 = vand.u32 2147483647, %v1933_v48  ;;  %v1929_v48 = vsub.f32 %v7156_v47, %v7105_v17 }
 0x351   : > { %v7652_v58 = vpop.permute.xlu1 %1619  ;;  %v7662_v61 = vpop.permute.xlu0 %1666 }
 0x352   : > { %2444 = vadd.xlane.f32.xlu0 %v2186_v40  ;;  %11091 = vst [vmem:[#allocation235_spill] sm:$0xff] %v7652_v58  ;;  %11093 = vst [vmem:[#allocation237_spill] sm:$0xff] %v7662_v61  ;;  %v2191_v40 = vand.u32 2147483647, %v1935_v24 }
 0x355   : > { %v7660_v49 = vpop.permute.xlu1 %1627  ;;  %v7670_v56 = vpop.permute.xlu0 %1674 }
 0x356   : > { %2446 = vadd.xlane.f32.xlu0 %v2187_v6  ;;  %11092 = vst [vmem:[#allocation236_spill] sm:$0xff] %v7660_v49  ;;  %v2193_v6 = vand.u32 2147483647, %v1937_v19  ;;  %11095 = vst [vmem:[#allocation239_spill] sm:$0xff] %v7670_v56  ;;  %v1943_v19 = vsub.f32 %v7210_v13, %v7105_v17 }
 0x359   : > { %v7666_v51 = vpop.permute.xlu1 %1635  ;;  %v7678_v24 = vpop.permute.xlu0 %1682 }
 0x35a   : > { %2450 = vadd.xlane.f32.xlu0 %v2189_v2  ;;  %11094 = vst [vmem:[#allocation238_spill] sm:$0xff] %v7666_v51  ;;  %v1941_v2 = vsub.f32 %v7204_v11, %v7105_v17  ;;  %11096 = vst [vmem:[#allocation240_spill] sm:$0xff] %v7678_v24  ;;  %v2199_v11 = vand.u32 2147483647, %v1943_v19 }
 0x35c   : > { %v2197_v9 = vand.u32 2147483647, %v1941_v2  ;;  %v1936_v2 = vsub.f32 %v7163_v50, %v7105_v17 }
 0x35d   : > { %v7676_v61 = vpop.permute.xlu1 %1646  ;;  %v7690_v24 = vpop.permute.xlu0 %1690 }
 0x35e   : > { %2454 = vadd.xlane.f32.xlu0 %v2191_v40  ;;  %v1932_v40 = vsub.f32 %v7171_v54, %v7105_v17  ;;  %11097 = vst [vmem:[#allocation241_spill] sm:$0xff] %v7690_v24  ;;  %v2192_v19 = vand.u32 2147483647, %v1936_v2  ;;  %v1953_v2 = vsub.f32 %v7378_v34, %v7105_v17 }
 0x360   : > { %v2188_v47 = vand.u32 2147483647, %v1932_v40  ;;  %v1938_v40 = vsub.f32 %v7168_v52, %v7105_v17 }
 0x361   : > { %v7684_v7 = vpop.permute.xlu1 %1654  ;;  %v7698_v59 = vpop.permute.xlu0 %1698 }
 0x362   : > { %2458 = vadd.xlane.f32.xlu0 %v2193_v6  ;;  %v2185_v6 = vand.u32 2147483647, %v1929_v48  ;;  %11099 = vst [vmem:[#allocation243_spill] sm:$0xff] %v7698_v59 }
 0x365   : > { %v7696_v13 = vpop.permute.xlu1 %1662 }
 0x366   : > { %2462 = vadd.xlane.f32.xlu0 %v2195_v5  ;;  %v1945_v5 = vsub.f32 %v7359_v62, %v7105_v17  ;;  %11098 = vst [vmem:[#allocation242_spill] sm:$0xff] %v7696_v13 }
 0x368   : > { %v2201_v48 = vand.u32 2147483647, %v1945_v5  ;;  %v1951_v5 = vsub.f32 %v7374_v29, %v7105_v17 }
 0x369   : > { %v7704_v50 = vpop.permute.xlu1 %1670 }
 0x36a   : > { %2466 = vadd.xlane.f32.xlu0 %v2197_v9  ;;  %v1947_v9 = vsub.f32 %v7364_v27, %v7105_v17  ;;  %11100 = vst [vmem:[#allocation244_spill] sm:$0xff] %v7704_v50  ;;  %v7710_v27 = vpop.permute.xlu0 %1709 }
 0x36b   : > { %2442 = vadd.xlane.f32.xlu1 %v2185_v6  ;;  %v2190_v6 = vand.u32 2147483647, %v1934_v60  ;;  %v1940_v60 = vsub.f32 %v7173_v55, %v7105_v17 }
 0x36e   : > { %2470 = vadd.xlane.f32.xlu0 %v2199_v11  ;;  %v2203_v11 = vand.u32 2147483647, %v1947_v9  ;;  %v1942_v9 = vsub.f32 %v7178_v57, %v7105_v17  ;;  %v7718_v55 = vpop.permute.xlu0 %1717 }
 0x36f   : > { %2448 = vadd.xlane.f32.xlu1 %v2188_v47  ;;  %v1949_v47 = vsub.f32 %v7369_v31, %v7105_v17  ;;  %v7716_v31 = vpop.permute.xlu1 %1678  ;;  %11102 = vst [vmem:[#allocation246_spill] sm:$0xff] %v7718_v55 }
 0x370   : > { %11101 = vst [vmem:[#allocation245_spill] sm:$0xff] %v7716_v31 }
 0x372   : > { %2474 = vadd.xlane.f32.xlu0 %v2201_v48  ;;  %v2205_v48 = vand.u32 2147483647, %v1949_v47  ;;  %v1955_v47 = vsub.f32 %v7382_v36, %v7105_v17  ;;  %v7730_v34 = vpop.permute.xlu0 %1725 }
 0x373   : > { %2452 = vadd.xlane.f32.xlu1 %v2190_v6  ;;  %v2194_v6 = vand.u32 2147483647, %v1938_v40  ;;  %v1944_v40 = vsub.f32 %v7326_v38, %v7105_v17  ;;  %v7724_v57 = vpop.permute.xlu1 %1686  ;;  %11104 = vst [vmem:[#allocation248_spill] sm:$0xff] %v7730_v34 }
 0x374   : > { %11103 = vst [vmem:[#allocation247_spill] sm:$0xff] %v7724_v57 }
 0x376   : > { %2478 = vadd.xlane.f32.xlu0 %v2203_v11  ;;  %v2207_v11 = vand.u32 2147483647, %v1951_v5  ;;  %v1957_v5 = vsub.f32 %v7387_v63, %v7105_v17 }
 0x377   : > { %2456 = vadd.xlane.f32.xlu1 %v2192_v19  ;;  %v2196_v19 = vand.u32 2147483647, %v1940_v60  ;;  %v1946_v60 = vsub.f32 %v7332_v42, %v7105_v17  ;;  %v7736_v36 = vpop.permute.xlu1 %1694  ;;  %v7738_v42 = vpop.permute.xlu0 %1733 }
 0x378   : > { %11105 = vst [vmem:[#allocation249_spill] sm:$0xff] %v7736_v36  ;;  %11106 = vst [vmem:[#allocation250_spill] sm:$0xff] %v7738_v42 }
 0x37a   : > { %2482 = vadd.xlane.f32.xlu0 %v2205_v48  ;;  %v2209_v48 = vand.u32 2147483647, %v1953_v2  ;;  %v1948_v2 = vsub.f32 %v7339_v23, %v7105_v17 }
 0x37b   : > { %2460 = vadd.xlane.f32.xlu1 %v2194_v6  ;;  %v2198_v6 = vand.u32 2147483647, %v1942_v9  ;;  %v1959_v9 = vsub.f32 %v7391_v43, %v7105_v17  ;;  %v7744_v23 = vpop.permute.xlu1 %1702  ;;  %v7750_v43 = vpop.permute.xlu0 %1741 }
 0x37c   : > { %11107 = vst [vmem:[#allocation251_spill] sm:$0xff] %v7744_v23  ;;  %11108 = vst [vmem:[#allocation252_spill] sm:$0xff] %v7750_v43 }
 0x37e   : > { %2486 = vadd.xlane.f32.xlu0 %v2207_v11  ;;  %v2211_v11 = vand.u32 2147483647, %v1955_v47  ;;  %v1950_v47 = vsub.f32 %v7346_v28, %v7105_v17 }
 0x37f   : > { %2464 = vadd.xlane.f32.xlu1 %v2196_v19  ;;  %v2200_v19 = vand.u32 2147483647, %v1944_v40  ;;  %v1961_v40 = vsub.f32 %v7216_v15, %v7107_v1  ;;  %v7756_v28 = vpop.permute.xlu1 %1713 }
 0x382   : > { %2490 = vadd.xlane.f32.xlu0 %v2209_v48  ;;  %v2213_v48 = vand.u32 2147483647, %v1957_v5  ;;  %v1952_v5 = vsub.f32 %v7351_v37, %v7105_v17 }
 0x383   : > { %2468 = vadd.xlane.f32.xlu1 %v2198_v6  ;;  %v2202_v6 = vand.u32 2147483647, %v1946_v60  ;;  %v1963_v60 = vsub.f32 %v7222_v16, %v7107_v1  ;;  %v7758_v16 = vpop.permute.xlu0 %1749 }
 0x384   : > { %11109 = vst [vmem:[#allocation253_spill] sm:$0xff] %v7758_v16 }
 0x386   : > { %2494 = vadd.xlane.f32.xlu0 %v2211_v11  ;;  %v2215_v11 = vand.u32 2147483647, %v1959_v9  ;;  %v1965_v9 = vsub.f32 %v7228_v18, %v7107_v1  ;;  %v7764_v18 = vpop.permute.xlu1 %1721 }
 0x387   : > { %2472 = vadd.xlane.f32.xlu1 %v2200_v19  ;;  %v2204_v19 = vand.u32 2147483647, %v1948_v2  ;;  %v1954_v2 = vsub.f32 %v7356_v45, %v7105_v17  ;;  %11110 = vst [vmem:[#allocation254_spill] sm:$0xff] %v7764_v18  ;;  %v7770_v45 = vpop.permute.xlu0 %1757 }
 0x388   : > { %11111 = vst [vmem:[#allocation255_spill] sm:$0xff] %v7770_v45 }
 0x38a   : > { %2498 = vadd.xlane.f32.xlu0 %v2213_v48  ;;  %v2217_v48 = vand.u32 2147483647, %v1961_v40  ;;  %v1967_v40 = vsub.f32 %v7234_v3, %v7107_v1 }
 0x38b   : > { %2476 = vadd.xlane.f32.xlu1 %v2202_v6  ;;  %v2206_v6 = vand.u32 2147483647, %v1950_v47  ;;  %v1956_v47 = vsub.f32 %v7361_v33, %v7105_v17  ;;  %v7776_v33 = vpop.permute.xlu1 %1729 }
 0x38c   : > { %11112 = vst [vmem:[#allocation256_spill] sm:$0xff] %v7776_v33 }
 0x38e   : > { %2502 = vadd.xlane.f32.xlu0 %v2215_v11  ;;  %v2219_v11 = vand.u32 2147483647, %v1963_v60  ;;  %v1969_v60 = vsub.f32 %v7240_v21, %v7107_v1  ;;  %v7778_v21 = vpop.permute.xlu0 %1765 }
 0x38f   : > { %2480 = vadd.xlane.f32.xlu1 %v2204_v19  ;;  %v2208_v19 = vand.u32 2147483647, %v1952_v5  ;;  %v1958_v5 = vsub.f32 %v7366_v30, %v7105_v17  ;;  %11113 = vst [vmem:[#allocation257_spill] sm:$0xff] %v7778_v21  ;;  %v1962_v17 = vsub.f32 %v7188_v0, %v7107_v1 }
 0x392   : > { %2506 = vadd.xlane.f32.xlu0 %v2217_v48  ;;  %v2221_v48 = vand.u32 2147483647, %v1965_v9  ;;  %v1960_v9 = vsub.f32 %v7183_v4, %v7107_v1 }
 0x393   : > { %2484 = vadd.xlane.f32.xlu1 %v2206_v6  ;;  %v2210_v6 = vand.u32 2147483647, %v1954_v2  ;;  %v1971_v2 = vsub.f32 %v7246_v25, %v7107_v1  ;;  %v7790_v25 = vpop.permute.xlu0 %1776 }
 0x396   : > { %2510 = vadd.xlane.f32.xlu0 %v2219_v11  ;;  %v2223_v11 = vand.u32 2147483647, %v1967_v40  ;;  %v1973_v40 = vsub.f32 %v7252_v26, %v7107_v1 }
 0x397   : > { %2488 = vadd.xlane.f32.xlu1 %v2208_v19  ;;  %v2212_v19 = vand.u32 2147483647, %v1956_v47  ;;  %v2227_v47 = vand.u32 2147483647, %v1971_v2  ;;  %v1966_v2 = vsub.f32 %v7200_v10, %v7107_v1 }
 0x39a   : > { %2514 = vadd.xlane.f32.xlu0 %v2221_v48  ;;  %v2225_v48 = vand.u32 2147483647, %v1969_v60  ;;  %v1964_v60 = vsub.f32 %v7194_v8, %v7107_v1  ;;  %v7798_v8 = vpop.permute.xlu0 %1784 }
 0x39b   : > { %2492 = vadd.xlane.f32.xlu1 %v2210_v6  ;;  %v2214_v6 = vand.u32 2147483647, %v1958_v5  ;;  %v1975_v5 = vsub.f32 %v7258_v32, %v7107_v1 }
 0x39e   : > { %2518 = vadd.xlane.f32.xlu0 %v2223_v11  ;;  %v2216_v11 = vand.u32 2147483647, %v1960_v9  ;;  %v1977_v9 = vsub.f32 %v7395_v44, %v7107_v1  ;;  %v7810_v32 = vpop.permute.xlu0 %1792 }
 0x39f   : > { %2496 = vadd.xlane.f32.xlu1 %v2212_v19  ;;  %v7784_v19 = vpop.permute.xlu1 %1737  ;;  %11118 = vst [vmem:[#allocation261_spill] sm:$0xff] %v7810_v32 }
 0x3a0   : > { %11114 = vst [vmem:[#allocation258_spill] sm:$0xff] %v7784_v19 }
 0x3a2   : > { %2522 = vadd.xlane.f32.xlu0 %v2225_v48  ;;  %v2229_v48 = vand.u32 2147483647, %v1973_v40  ;;  %v1979_v40 = vsub.f32 %v7399_v35, %v7107_v1  ;;  %v11119_v35 = vld [vmem:[#allocation51_spill] sm:$0xff] }
 0x3a3   : > { %2500 = vadd.xlane.f32.xlu1 %v2214_v6  ;;  %v2218_v6 = vand.u32 2147483647, %v1962_v17  ;;  %v7796_v26 = vpop.permute.xlu1 %1745  ;;  %v1968_v17 = vsub.f32 %v7206_v12, %v7107_v1 }
 0x3a4   : > { %11115 = vst [vmem:[#allocation259_spill] sm:$0xff] %v7796_v26 }
 0x3a5   : > { %v2224_v44 = vand.u32 2147483647, %v1968_v17  ;;  %v11123_v17 = vld [vmem:[#allocation53_spill] sm:$0xff] }
 0x3a6   : > { %2526 = vadd.xlane.f32.xlu0 %v2227_v47  ;;  %v2231_v47 = vand.u32 2147483647, %v1975_v5  ;;  %v11117_v5 = vld [vmem:[#allocation118_spill] sm:$0xff] }
 0x3a7   : > { %2504 = vadd.xlane.f32.xlu1 %v2216_v11  ;;  %v2220_v11 = vand.u32 2147483647, %v1964_v60  ;;  %v7804_v10 = vpop.permute.xlu1 %1753  ;;  %v1970_v60 = vsub.f32 %v7212_v14, %v7107_v1  ;;  %v7818_v14 = vpop.permute.xlu0 %1800 }
 0x3a8   : > { %11116 = vst [vmem:[#allocation260_spill] sm:$0xff] %v7804_v10  ;;  %11122 = vst [vmem:[#allocation263_spill] sm:$0xff] %v7818_v14 }
 0x3a9   : > { %v2226_v12 = vand.u32 2147483647, %v1970_v60  ;;  %v11126_v60 = vld [vmem:[#allocation103_spill] sm:$0xff] }
 0x3aa   : > { %2530 = vadd.xlane.f32.xlu0 %v2229_v48  ;;  %v2233_v48 = vand.u32 2147483647, %v1977_v9  ;;  %v1972_v9 = vsub.f32 %v11119_v35, %v7107_v1 }
 0x3ab   : > { %2508 = vadd.xlane.f32.xlu1 %v2218_v6  ;;  %v2222_v6 = vand.u32 2147483647, %v1966_v2  ;;  %v11120_v2 = vld [vmem:[#allocation120_spill] sm:$0xff]  ;;  %v7816_v0 = vpop.permute.xlu1 %1761  ;;  %v7830_v3 = vpop.permute.xlu0 %1808 }
 0x3ac   : > { %11121 = vst [vmem:[#allocation262_spill] sm:$0xff] %v7816_v0  ;;  %v2228_v4 = vand.u32 2147483647, %v1972_v9  ;;  %11128 = vst [vmem:[#allocation265_spill] sm:$0xff] %v7830_v3 }
 0x3ae   : > { %2534 = vadd.xlane.f32.xlu0 %v2231_v47  ;;  %v1981_v47 = vsub.f32 %v11117_v5, %v7107_v1 }
 0x3af   : > { %2512 = vadd.xlane.f32.xlu1 %v2220_v11  ;;  %v2235_v11 = vand.u32 2147483647, %v1979_v40  ;;  %v1974_v40 = vsub.f32 %v11123_v17, %v7107_v1  ;;  %v7824_v35 = vpop.permute.xlu1 %1769 }
 0x3b0   : > { %11125 = vst [vmem:[#allocation264_spill] sm:$0xff] %v7824_v35 }
 0x3b1   : > { %v2230_v30 = vand.u32 2147483647, %v1974_v40  ;;  %v11132_v40 = vld [vmem:[#allocation107_spill] sm:$0xff] }
 0x3b2   : > { %2538 = vadd.xlane.f32.xlu0 %v2233_v48  ;;  %v1983_v48 = vsub.f32 %v11120_v2, %v7107_v1 }
 0x3b3   : > { %2516 = vadd.xlane.f32.xlu1 %v2222_v6  ;;  %v2237_v6 = vand.u32 2147483647, %v1981_v47  ;;  %v1976_v47 = vsub.f32 %v11126_v60, %v7107_v1  ;;  %v7836_v37 = vpop.permute.xlu1 %1780  ;;  %v7838_v60 = vpop.permute.xlu0 %1816 }
 0x3b4   : > { %v2239_v5 = vand.u32 2147483647, %v1983_v48  ;;  %11131 = vst [vmem:[#allocation266_spill] sm:$0xff] %v7838_v60 }
 0x3b5   : > { %v2232_v17 = vand.u32 2147483647, %v1976_v47  ;;  %v11135_v47 = vld [vmem:[#allocation66_spill] sm:$0xff] }
 0x3b6   : > { %2542 = vadd.xlane.f32.xlu0 %v2235_v11  ;;  %v11124_v11 = vld [vmem:[#allocation122_spill] sm:$0xff] }
 0x3b7   : > { %2520 = vadd.xlane.f32.xlu1 %v2224_v44  ;;  %v1985_v44 = vsub.f32 %v11124_v11, %v7107_v1  ;;  %v11129_v11 = vld [vmem:[#allocation105_spill] sm:$0xff]  ;;  %v7850_v29 = vpop.permute.xlu0 %1824 }
 0x3b8   : > { %v1978_v48 = vsub.f32 %v11129_v11, %v7107_v1  ;;  %v7844_v11 = vpop.permute.xlu1 %1788 }
 0x3b9   : > { %v2241_v2 = vand.u32 2147483647, %v1985_v44  ;;  %v1980_v44 = vsub.f32 %v11132_v40, %v7107_v1 }
 0x3ba   : > { %2546 = vadd.xlane.f32.xlu0 %v2237_v6  ;;  %v11127_v6 = vld [vmem:[#allocation124_spill] sm:$0xff]  ;;  %v2234_v15 = vand.u32 2147483647, %v1978_v48 }
 0x3bb   : > { %2524 = vadd.xlane.f32.xlu1 %v2226_v12  ;;  %v1987_v12 = vsub.f32 %v11127_v6, %v7107_v1  ;;  %v2236_v38 = vand.u32 2147483647, %v1980_v44  ;;  %v11142_v44 = vld [vmem:[#allocation70_spill] sm:$0xff] }
 0x3bc   : > { %v7856_v52 = vpop.permute.xlu1 %1796 }
 0x3bd   : > { %v2243_v9 = vand.u32 2147483647, %v1987_v12  ;;  %v11134_v12 = vld [vmem:[#allocation14_spill] sm:$0xff]  ;;  %11140 = vst [vmem:[#allocation267_spill] sm:$0xff] %v7856_v52 }
 0x3be   : > { %2550 = vadd.xlane.f32.xlu0 %v2239_v5  ;;  %v11130_v5 = vld [vmem:[#allocation126_spill] sm:$0xff]  ;;  %11137 = vst [vmem:[#allocation14_spill] sm:$0xff] %v7850_v29 }
 0x3bf   : > { %2528 = vadd.xlane.f32.xlu1 %v2228_v4  ;;  %v1989_v4 = vsub.f32 %v11130_v5, %v7107_v1  ;;  %v1993_v5 = vsub.f32 %v11135_v47, %v11134_v12  ;;  %v7858_v47 = vpop.permute.xlu0 %1832 }
 0x3c0   : > { %11141 = vst [vmem:[#allocation268_spill] sm:$0xff] %v7858_v47 }
 0x3c1   : > { %v2245_v6 = vand.u32 2147483647, %v1989_v4  ;;  %v2249_v48 = vand.u32 2147483647, %v1993_v5 }
 0x3c2   : > { %2554 = vadd.xlane.f32.xlu0 %v2241_v2  ;;  %v11133_v2 = vld [vmem:[#allocation128_spill] sm:$0xff] }
 0x3c3   : > { %2532 = vadd.xlane.f32.xlu1 %v2230_v30  ;;  %v1991_v30 = vsub.f32 %v11133_v2, %v7107_v1  ;;  %v11138_v2 = vld [vmem:[#allocation68_spill] sm:$0xff] }
 0x3c4   : > { %v1995_v4 = vsub.f32 %v11138_v2, %v11134_v12  ;;  %v7864_v2 = vpop.permute.xlu1 %1804 }
 0x3c5   : > { %v2247_v63 = vand.u32 2147483647, %v1991_v30  ;;  %v1997_v30 = vsub.f32 %v11142_v44, %v11134_v12  ;;  %11144 = vst [vmem:[#allocation269_spill] sm:$0xff] %v7864_v2 }
 0x3c6   : > { %2558 = vadd.xlane.f32.xlu0 %v2243_v9  ;;  %v11136_v9 = vld [vmem:[#allocation109_spill] sm:$0xff] }
 0x3c7   : > { %2536 = vadd.xlane.f32.xlu1 %v2232_v17  ;;  %v1982_v17 = vsub.f32 %v11136_v9, %v7107_v1  ;;  %v2251_v9 = vand.u32 2147483647, %v1995_v4  ;;  %v2253_v54 = vand.u32 2147483647, %v1997_v30  ;;  %v11149_v4 = vld [vmem:[#allocation74_spill] sm:$0xff]  ;;  %v11153_v30 = vld [vmem:[#allocation55_spill] sm:$0xff] }
 0x3c8   : > { %v7878_v29 = vpop.permute.xlu1 %1812 }
 0x3c9   : > { %v2238_v40 = vand.u32 2147483647, %v1982_v17  ;;  %v11146_v17 = vld [vmem:[#allocation72_spill] sm:$0xff]  ;;  %11151 = vst [vmem:[#allocation272_spill] sm:$0xff] %v7878_v29 }
 0x3ca   : > { %2562 = vadd.xlane.f32.xlu0 %v2245_v6  ;;  %v11139_v6 = vld [vmem:[#allocation111_spill] sm:$0xff] }
 0x3cb   : > { %2540 = vadd.xlane.f32.xlu1 %v2234_v15  ;;  %v1984_v15 = vsub.f32 %v11139_v6, %v7107_v1 }
 0x3cd   : > { %v2240_v62 = vand.u32 2147483647, %v1984_v15 }
 0x3ce   : > { %2566 = vadd.xlane.f32.xlu0 %v2247_v63  ;;  %v11143_v63 = vld [vmem:[#allocation113_spill] sm:$0xff] }
 0x3cf   : > { %2544 = vadd.xlane.f32.xlu1 %v2236_v38  ;;  %v1986_v38 = vsub.f32 %v11143_v63, %v7107_v1 }
 0x3d1   : > { %v2242_v47 = vand.u32 2147483647, %v1986_v38 }
 0x3d2   : > { %2570 = vadd.xlane.f32.xlu0 %v2249_v48  ;;  %v1999_v48 = vsub.f32 %v11146_v17, %v11134_v12 }
 0x3d3   : > { %2548 = vadd.xlane.f32.xlu1 %v2238_v40  ;;  %v11147_v40 = vld [vmem:[#allocation115_spill] sm:$0xff] }
 0x3d4   : > { %v1988_v6 = vsub.f32 %v11147_v40, %v7107_v1  ;;  %v2255_v63 = vand.u32 2147483647, %v1999_v48 }
 0x3d6   : > { %2574 = vadd.xlane.f32.xlu0 %v2251_v9  ;;  %v2001_v9 = vsub.f32 %v11149_v4, %v11134_v12  ;;  %v7886_v4 = vpop.permute.xlu1 %1820 }
 0x3d7   : > { %2552 = vadd.xlane.f32.xlu1 %v2240_v62  ;;  %v7866_v5 = vpop.xlane.xlu0 %2440  ;;  %v11150_v62 = vld [vmem:[#allocation117_spill] sm:$0xff]  ;;  %11155 = vst [vmem:[#allocation274_spill] sm:$0xff] %v7886_v4 }
 0x3d8   : > { %11145 = vst [vmem:[#allocation270_spill] sm:$0xff] %v7866_v5  ;;  %v1990_v15 = vsub.f32 %v11150_v62, %v7107_v1  ;;  %v2244_v5 = vand.u32 2147483647, %v1988_v6  ;;  %v11157_v6 = vld [vmem:[#allocation57_spill] sm:$0xff] }
 0x3da   : > { %2578 = vadd.xlane.f32.xlu0 %v2253_v54  ;;  %v1992_v54 = vsub.f32 %v11153_v30, %v11134_v12  ;;  %v2246_v40 = vand.u32 2147483647, %v1990_v15  ;;  %v7900_v60 = vpop.permute.xlu1 %1828 }
 0x3db   : > { %2556 = vadd.xlane.f32.xlu1 %v2242_v47  ;;  %v7872_v44 = vpop.xlane.xlu0 %2444  ;;  %v11154_v47 = vld [vmem:[#allocation76_spill] sm:$0xff]  ;;  %11162 = vst [vmem:[#allocation277_spill] sm:$0xff] %v7900_v60 }
 0x3dc   : > { %11148 = vst [vmem:[#allocation271_spill] sm:$0xff] %v7872_v44  ;;  %v2003_v38 = vsub.f32 %v11154_v47, %v11134_v12  ;;  %v2257_v44 = vand.u32 2147483647, %v2001_v9  ;;  %v2248_v62 = vand.u32 2147483647, %v1992_v54  ;;  %v11160_v9 = vld [vmem:[#allocation59_spill] sm:$0xff] }
 0x3dd   : > { %v11164_v54 = vld [vmem:[#allocation61_spill] sm:$0xff] }
 0x3de   : > { %2582 = vadd.xlane.f32.xlu0 %v2255_v63  ;;  %v1994_v63 = vsub.f32 %v11157_v6, %v11134_v12 }
 0x3df   : > { %2560 = vadd.xlane.f32.xlu1 %v2244_v5  ;;  %v7880_v17 = vpop.xlane.xlu0 %2446  ;;  %v11158_v5 = vld [vmem:[#allocation78_spill] sm:$0xff] }
 0x3e0   : > { %11152 = vst [vmem:[#allocation273_spill] sm:$0xff] %v7880_v17  ;;  %v2005_v48 = vsub.f32 %v11158_v5, %v11134_v12  ;;  %v2259_v17 = vand.u32 2147483647, %v2003_v38 }
 0x3e2   : > { %2586 = vadd.xlane.f32.xlu0 %v2257_v44  ;;  %v1996_v44 = vsub.f32 %v11160_v9, %v11134_v12  ;;  %v2261_v47 = vand.u32 2147483647, %v2005_v48  ;;  %v7908_v9 = vpop.permute.xlu1 %1836 }
 0x3e3   : > { %2564 = vadd.xlane.f32.xlu1 %v2246_v40  ;;  %v7888_v1 = vpop.xlane.xlu0 %2450  ;;  %v11161_v40 = vld [vmem:[#allocation80_spill] sm:$0xff]  ;;  %11166 = vst [vmem:[#allocation279_spill] sm:$0xff] %v7908_v9 }
 0x3e4   : > { %11156 = vst [vmem:[#allocation275_spill] sm:$0xff] %v7888_v1  ;;  %v2007_v15 = vsub.f32 %v11161_v40, %v11134_v12  ;;  %v2250_v1 = vand.u32 2147483647, %v1994_v63  ;;  %v2252_v5 = vand.u32 2147483647, %v1996_v44  ;;  %v11168_v63 = vld [vmem:[#allocation63_spill] sm:$0xff] }
 0x3e5   : > { %v11173_v44 = vld [vmem:[#allocation134_spill] sm:$0xff] }
 0x3e6   : > { %2590 = vadd.xlane.f32.xlu0 %v2259_v17  ;;  %v1998_v17 = vsub.f32 %v11164_v54, %v11134_v12 }
 0x3e7   : > { %2568 = vadd.xlane.f32.xlu1 %v2248_v62  ;;  %v7894_v30 = vpop.xlane.xlu0 %2454  ;;  %v11165_v62 = vld [vmem:[#allocation130_spill] sm:$0xff] }
 0x3e8   : > { %11159 = vst [vmem:[#allocation276_spill] sm:$0xff] %v7894_v30  ;;  %v2009_v38 = vsub.f32 %v11165_v62, %v11134_v12  ;;  %v2263_v30 = vand.u32 2147483647, %v2007_v15  ;;  %v2254_v3 = vand.u32 2147483647, %v1998_v17  ;;  %v11177_v17 = vld [vmem:[#allocation136_spill] sm:$0xff] }
 0x3ea   : > { %2594 = vadd.xlane.f32.xlu0 %v2261_v47  ;;  %v2000_v47 = vsub.f32 %v11168_v63, %v11134_v12  ;;  %v2265_v40 = vand.u32 2147483647, %v2009_v38 }
 0x3eb   : > { %2572 = vadd.xlane.f32.xlu1 %v2250_v1  ;;  %v7902_v6 = vpop.xlane.xlu0 %2458  ;;  %v11169_v1 = vld [vmem:[#allocation132_spill] sm:$0xff] }
 0x3ec   : > { %11163 = vst [vmem:[#allocation278_spill] sm:$0xff] %v7902_v6  ;;  %v2011_v6 = vsub.f32 %v11169_v1, %v11134_v12  ;;  %v2256_v14 = vand.u32 2147483647, %v2000_v47  ;;  %v11181_v47 = vld [vmem:[#allocation138_spill] sm:$0xff] }
 0x3ee   : > { %2598 = vadd.xlane.f32.xlu0 %v2263_v30  ;;  %v11172_v30 = vld [vmem:[#allocation65_spill] sm:$0xff]  ;;  %v2267_v62 = vand.u32 2147483647, %v2011_v6 }
 0x3ef   : > { %2576 = vadd.xlane.f32.xlu1 %v2252_v5  ;;  %v7910_v48 = vpop.xlane.xlu0 %2462  ;;  %v2002_v5 = vsub.f32 %v11172_v30, %v11134_v12 }
 0x3f0   : > { %11167 = vst [vmem:[#allocation280_spill] sm:$0xff] %v7910_v48  ;;  %v2013_v48 = vsub.f32 %v11173_v44, %v11134_v12 }
 0x3f2   : > { %2602 = vadd.xlane.f32.xlu0 %v2265_v40  ;;  %v2269_v1 = vand.u32 2147483647, %v2013_v48 }
 0x3f3   : > { %2580 = vadd.xlane.f32.xlu1 %v2254_v3  ;;  %v7916_v54 = vpop.xlane.xlu0 %2466  ;;  %v11176_v3 = vld [vmem:[#allocation67_spill] sm:$0xff] }
 0x3f4   : > { %11170 = vst [vmem:[#allocation281_spill] sm:$0xff] %v7916_v54  ;;  %v7918_v15 = vpop.xlane.xlu1 %2442  ;;  %v2004_v40 = vsub.f32 %v11176_v3, %v11134_v12  ;;  %v2015_v54 = vsub.f32 %v11177_v17, %v11134_v12 }
 0x3f5   : > { %11171 = vst [vmem:[#allocation282_spill] sm:$0xff] %v7918_v15  ;;  %v2258_v15 = vand.u32 2147483647, %v2002_v5  ;;  %v11185_v5 = vld [vmem:[#allocation140_spill] sm:$0xff] }
 0x3f6   : > { %2606 = vadd.xlane.f32.xlu0 %v2267_v62  ;;  %v2260_v44 = vand.u32 2147483647, %v2004_v40  ;;  %v11189_v40 = vld [vmem:[#allocation142_spill] sm:$0xff] }
 0x3f7   : > { %2584 = vadd.xlane.f32.xlu1 %v2256_v14  ;;  %v7924_v63 = vpop.xlane.xlu0 %2470  ;;  %v11180_v14 = vld [vmem:[#allocation69_spill] sm:$0xff] }
 0x3f8   : > { %11174 = vst [vmem:[#allocation283_spill] sm:$0xff] %v7924_v63  ;;  %v7926_v38 = vpop.xlane.xlu1 %2448  ;;  %v2006_v62 = vsub.f32 %v11180_v14, %v11134_v12  ;;  %v2017_v63 = vsub.f32 %v11181_v47, %v11134_v12 }
 0x3f9   : > { %11175 = vst [vmem:[#allocation284_spill] sm:$0xff] %v7926_v38  ;;  %v2271_v38 = vand.u32 2147483647, %v2015_v54 }
 0x3fa   : > { %2610 = vadd.xlane.f32.xlu0 %v2269_v1  ;;  %v11184_v1 = vld [vmem:[#allocation119_spill] sm:$0xff]  ;;  %v2262_v17 = vand.u32 2147483647, %v2006_v62  ;;  %v11193_v62 = vld [vmem:[#allocation144_spill] sm:$0xff] }
 0x3fb   : > { %2588 = vadd.xlane.f32.xlu1 %v2258_v15  ;;  %v7932_v30 = vpop.xlane.xlu0 %2474  ;;  %v2008_v15 = vsub.f32 %v11184_v1, %v11134_v12 }
 0x3fc   : > { %11178 = vst [vmem:[#allocation285_spill] sm:$0xff] %v7932_v30  ;;  %v7934_v6 = vpop.xlane.xlu1 %2452  ;;  %v2019_v30 = vsub.f32 %v11185_v5, %v11134_v12 }
 0x3fd   : > { %11179 = vst [vmem:[#allocation286_spill] sm:$0xff] %v7934_v6  ;;  %v2273_v6 = vand.u32 2147483647, %v2017_v63  ;;  %v2264_v47 = vand.u32 2147483647, %v2008_v15 }
 0x3fe   : > { %2614 = vadd.xlane.f32.xlu0 %v2271_v38 }
 0x3ff   : > { %2592 = vadd.xlane.f32.xlu1 %v2260_v44  ;;  %v7940_v3 = vpop.xlane.xlu0 %2478  ;;  %v11188_v44 = vld [vmem:[#allocation121_spill] sm:$0xff] }
 0x400   : > { %11182 = vst [vmem:[#allocation287_spill] sm:$0xff] %v7940_v3  ;;  %v7942_v48 = vpop.xlane.xlu1 %2456  ;;  %v2010_v38 = vsub.f32 %v11188_v44, %v11134_v12  ;;  %v2021_v3 = vsub.f32 %v11189_v40, %v11134_v12 }
 0x401   : > { %11183 = vst [vmem:[#allocation288_spill] sm:$0xff] %v7942_v48  ;;  %v2275_v48 = vand.u32 2147483647, %v2019_v30 }
 0x402   : > { %2618 = vadd.xlane.f32.xlu0 %v2273_v6  ;;  %v2266_v5 = vand.u32 2147483647, %v2010_v38  ;;  %v11202_v38 = vld [vmem:[#allocation127_spill] sm:$0xff] }
 0x403   : > { %2596 = vadd.xlane.f32.xlu1 %v2262_v17  ;;  %v7948_v14 = vpop.xlane.xlu0 %2482  ;;  %v11192_v17 = vld [vmem:[#allocation123_spill] sm:$0xff] }
 0x404   : > { %11186 = vst [vmem:[#allocation289_spill] sm:$0xff] %v7948_v14  ;;  %v7950_v54 = vpop.xlane.xlu1 %2460  ;;  %v2012_v6 = vsub.f32 %v11192_v17, %v11134_v12  ;;  %v2023_v14 = vsub.f32 %v11193_v62, %v11134_v12 }
 0x405   : > { %11187 = vst [vmem:[#allocation290_spill] sm:$0xff] %v7950_v54  ;;  %v2277_v54 = vand.u32 2147483647, %v2021_v3 }
 0x406   : > { %2622 = vadd.xlane.f32.xlu0 %v2275_v48  ;;  %v11196_v48 = vld [vmem:[#allocation16_spill] sm:$0xff]  ;;  %v2279_v40 = vand.u32 2147483647, %v2023_v14  ;;  %v2268_v9 = vand.u32 2147483647, %v2012_v6  ;;  %v11206_v6 = vld [vmem:[#allocation129_spill] sm:$0xff] }
 0x407   : > { %2600 = vadd.xlane.f32.xlu1 %v2264_v47  ;;  %v7956_v1 = vpop.xlane.xlu0 %2486  ;;  %v11197_v47 = vld [vmem:[#allocation82_spill] sm:$0xff] }
 0x408   : > { %11190 = vst [vmem:[#allocation291_spill] sm:$0xff] %v7956_v1  ;;  %v7958_v63 = vpop.xlane.xlu1 %2464  ;;  %v2025_v15 = vsub.f32 %v11197_v47, %v11196_v48  ;;  %v11198_v1 = vld [vmem:[#allocation125_spill] sm:$0xff] }
 0x409   : > { %11191 = vst [vmem:[#allocation292_spill] sm:$0xff] %v7958_v63  ;;  %v2014_v63 = vsub.f32 %v11198_v1, %v11134_v12 }
 0x40a   : > { %2626 = vadd.xlane.f32.xlu0 %v2277_v54 }
 0x40b   : > { %2604 = vadd.xlane.f32.xlu1 %v2266_v5  ;;  %v7964_v44 = vpop.xlane.xlu0 %2490  ;;  %v11201_v5 = vld [vmem:[#allocation84_spill] sm:$0xff]  ;;  %v2270_v62 = vand.u32 2147483647, %v2014_v63 }
 0x40c   : > { %11194 = vst [vmem:[#allocation293_spill] sm:$0xff] %v7964_v44  ;;  %v7966_v30 = vpop.xlane.xlu1 %2468  ;;  %v2027_v54 = vsub.f32 %v11201_v5, %v11196_v48  ;;  %v2016_v44 = vsub.f32 %v11202_v38, %v11134_v12  ;;  %v11209_v63 = vld [vmem:[#allocation88_spill] sm:$0xff] }
 0x40d   : > { %11195 = vst [vmem:[#allocation294_spill] sm:$0xff] %v7966_v30  ;;  %v2281_v30 = vand.u32 2147483647, %v2025_v15 }
 0x40e   : > { %2630 = vadd.xlane.f32.xlu0 %v2279_v40  ;;  %v2272_v1 = vand.u32 2147483647, %v2016_v44 }
 0x40f   : > { %2608 = vadd.xlane.f32.xlu1 %v2268_v9  ;;  %v7972_v17 = vpop.xlane.xlu0 %2494  ;;  %v11205_v9 = vld [vmem:[#allocation86_spill] sm:$0xff] }
 0x410   : > { %11199 = vst [vmem:[#allocation16_spill] sm:$0xff] %v7972_v17  ;;  %v7974_v3 = vpop.xlane.xlu1 %2472  ;;  %v2029_v40 = vsub.f32 %v11205_v9, %v11196_v48  ;;  %v2018_v17 = vsub.f32 %v11206_v6, %v11134_v12 }
 0x411   : > { %11200 = vst [vmem:[#allocation295_spill] sm:$0xff] %v7974_v3  ;;  %v2283_v3 = vand.u32 2147483647, %v2027_v54 }
 0x412   : > { %2634 = vadd.xlane.f32.xlu0 %v2281_v30  ;;  %v11210_v30 = vld [vmem:[#allocation131_spill] sm:$0xff]  ;;  %v2274_v38 = vand.u32 2147483647, %v2018_v17 }
 0x413   : > { %2612 = vadd.xlane.f32.xlu1 %v2270_v62  ;;  %v7980_v47 = vpop.xlane.xlu0 %2498  ;;  %v2031_v62 = vsub.f32 %v11209_v63, %v11196_v48  ;;  %v11217_v17 = vld [vmem:[#allocation71_spill] sm:$0xff] }
 0x414   : > { %11203 = vst [vmem:[#allocation296_spill] sm:$0xff] %v7980_v47  ;;  %v7982_v14 = vpop.xlane.xlu1 %2476  ;;  %v2020_v47 = vsub.f32 %v11210_v30, %v11134_v12 }
 0x415   : > { %11204 = vst [vmem:[#allocation297_spill] sm:$0xff] %v7982_v14  ;;  %v2285_v14 = vand.u32 2147483647, %v2029_v40 }
 0x416   : > { %2638 = vadd.xlane.f32.xlu0 %v2283_v3  ;;  %v11214_v3 = vld [vmem:[#allocation133_spill] sm:$0xff]  ;;  %v2276_v6 = vand.u32 2147483647, %v2020_v47 }
 0x417   : > { %2616 = vadd.xlane.f32.xlu1 %v2272_v1  ;;  %v7988_v5 = vpop.xlane.xlu0 %2502  ;;  %v11213_v1 = vld [vmem:[#allocation90_spill] sm:$0xff]  ;;  %v11221_v47 = vld [vmem:[#allocation73_spill] sm:$0xff] }
 0x418   : > { %11207 = vst [vmem:[#allocation298_spill] sm:$0xff] %v7988_v5  ;;  %v7990_v15 = vpop.xlane.xlu1 %2480  ;;  %v2033_v44 = vsub.f32 %v11213_v1, %v11196_v48  ;;  %v2022_v5 = vsub.f32 %v11214_v3, %v11134_v12 }
 0x419   : > { %11208 = vst [vmem:[#allocation299_spill] sm:$0xff] %v7990_v15  ;;  %v2287_v15 = vand.u32 2147483647, %v2031_v62 }
 0x41a   : > { %2642 = vadd.xlane.f32.xlu0 %v2285_v14  ;;  %v11218_v14 = vld [vmem:[#allocation92_spill] sm:$0xff]  ;;  %v2278_v30 = vand.u32 2147483647, %v2022_v5  ;;  %v11225_v5 = vld [vmem:[#allocation75_spill] sm:$0xff] }
 0x41b   : > { %2620 = vadd.xlane.f32.xlu1 %v2274_v38  ;;  %v7996_v9 = vpop.xlane.xlu0 %2506  ;;  %v2024_v38 = vsub.f32 %v11217_v17, %v11196_v48 }
 0x41c   : > { %11211 = vst [vmem:[#allocation300_spill] sm:$0xff] %v7996_v9  ;;  %v7998_v54 = vpop.xlane.xlu1 %2484  ;;  %v2035_v9 = vsub.f32 %v11218_v14, %v11196_v48 }
 0x41d   : > { %11212 = vst [vmem:[#allocation301_spill] sm:$0xff] %v7998_v54  ;;  %v2289_v54 = vand.u32 2147483647, %v2033_v44 }
 0x41e   : > { %2646 = vadd.xlane.f32.xlu0 %v2287_v15  ;;  %v11222_v15 = vld [vmem:[#allocation94_spill] sm:$0xff] }
 0x41f   : > { %2624 = vadd.xlane.f32.xlu1 %v2276_v6  ;;  %v8004_v63 = vpop.xlane.xlu0 %2510  ;;  %v2026_v6 = vsub.f32 %v11221_v47, %v11196_v48  ;;  %v2037_v62 = vsub.f32 %v11222_v15, %v11196_v48 }
 0x420   : > { %11215 = vst [vmem:[#allocation302_spill] sm:$0xff] %v8004_v63  ;;  %v8006_v40 = vpop.xlane.xlu1 %2488  ;;  %v2291_v63 = vand.u32 2147483647, %v2035_v9 }
 0x421   : > { %11216 = vst [vmem:[#allocation303_spill] sm:$0xff] %v8006_v40  ;;  %v2280_v40 = vand.u32 2147483647, %v2024_v38  ;;  %v2282_v14 = vand.u32 2147483647, %v2026_v6  ;;  %v11230_v38 = vld [vmem:[#allocation146_spill] sm:$0xff] }
 0x422   : > { %2650 = vadd.xlane.f32.xlu0 %v2289_v54  ;;  %v11226_v54 = vld [vmem:[#allocation96_spill] sm:$0xff] }
 0x423   : > { %2628 = vadd.xlane.f32.xlu1 %v2278_v30  ;;  %v8012_v1 = vpop.xlane.xlu0 %2514  ;;  %v2028_v30 = vsub.f32 %v11225_v5, %v11196_v48  ;;  %v11234_v6 = vld [vmem:[#allocation148_spill] sm:$0xff] }
 0x424   : > { %11219 = vst [vmem:[#allocation304_spill] sm:$0xff] %v8012_v1  ;;  %v8014_v12 = vpop.xlane.xlu1 %2492  ;;  %v2039_v1 = vsub.f32 %v11226_v54, %v11196_v48 }
 0x425   : > { %11220 = vst [vmem:[#allocation305_spill] sm:$0xff] %v8014_v12  ;;  %v2293_v12 = vand.u32 2147483647, %v2037_v62  ;;  %v2284_v15 = vand.u32 2147483647, %v2028_v30  ;;  %v11238_v30 = vld [vmem:[#allocation150_spill] sm:$0xff] }
 0x426   : > { %2654 = vadd.xlane.f32.xlu0 %v2291_v63  ;;  %v11229_v63 = vld [vmem:[#allocation77_spill] sm:$0xff] }
 0x427   : > { %2632 = vadd.xlane.f32.xlu1 %v2280_v40  ;;  %v8020_v17 = vpop.xlane.xlu0 %2518  ;;  %v2030_v40 = vsub.f32 %v11229_v63, %v11196_v48 }
 0x428   : > { %11223 = vst [vmem:[#allocation306_spill] sm:$0xff] %v8020_v17  ;;  %v8022_v44 = vpop.xlane.xlu1 %2496  ;;  %v2041_v17 = vsub.f32 %v11230_v38, %v11196_v48 }
 0x429   : > { %11224 = vst [vmem:[#allocation307_spill] sm:$0xff] %v8022_v44  ;;  %v2295_v44 = vand.u32 2147483647, %v2039_v1  ;;  %v2286_v54 = vand.u32 2147483647, %v2030_v40  ;;  %v11242_v40 = vld [vmem:[#allocation152_spill] sm:$0xff] }
 0x42a   : > { %2658 = vadd.xlane.f32.xlu0 %v2293_v12 }
 0x42b   : > { %2636 = vadd.xlane.f32.xlu1 %v2282_v14  ;;  %v8028_v47 = vpop.xlane.xlu0 %2522  ;;  %v11233_v14 = vld [vmem:[#allocation79_spill] sm:$0xff] }
 0x42c   : > { %11227 = vst [vmem:[#allocation308_spill] sm:$0xff] %v8028_v47  ;;  %v8030_v9 = vpop.xlane.xlu1 %2500  ;;  %v2032_v12 = vsub.f32 %v11233_v14, %v11196_v48  ;;  %v2043_v47 = vsub.f32 %v11234_v6, %v11196_v48 }
 0x42d   : > { %11228 = vst [vmem:[#allocation309_spill] sm:$0xff] %v8030_v9  ;;  %v2297_v9 = vand.u32 2147483647, %v2041_v17 }
 0x42e   : > { %2662 = vadd.xlane.f32.xlu0 %v2295_v44  ;;  %v2288_v38 = vand.u32 2147483647, %v2032_v12  ;;  %v11246_v12 = vld [vmem:[#allocation154_spill] sm:$0xff] }
 0x42f   : > { %2640 = vadd.xlane.f32.xlu1 %v2284_v15  ;;  %v8036_v5 = vpop.xlane.xlu0 %2526  ;;  %v11237_v15 = vld [vmem:[#allocation81_spill] sm:$0xff] }
 0x430   : > { %11231 = vst [vmem:[#allocation310_spill] sm:$0xff] %v8036_v5  ;;  %v8038_v62 = vpop.xlane.xlu1 %2504  ;;  %v2034_v44 = vsub.f32 %v11237_v15, %v11196_v48  ;;  %v2045_v5 = vsub.f32 %v11238_v30, %v11196_v48 }
 0x431   : > { %11232 = vst [vmem:[#allocation311_spill] sm:$0xff] %v8038_v62  ;;  %v2299_v62 = vand.u32 2147483647, %v2043_v47 }
 0x432   : > { %2666 = vadd.xlane.f32.xlu0 %v2297_v9  ;;  %v2290_v6 = vand.u32 2147483647, %v2034_v44  ;;  %v11250_v44 = vld [vmem:[#allocation156_spill] sm:$0xff] }
 0x433   : > { %2644 = vadd.xlane.f32.xlu1 %v2286_v54  ;;  %v8044_v63 = vpop.xlane.xlu0 %2530  ;;  %v11241_v54 = vld [vmem:[#allocation83_spill] sm:$0xff] }
 0x434   : > { %11235 = vst [vmem:[#allocation312_spill] sm:$0xff] %v8044_v63  ;;  %v8046_v1 = vpop.xlane.xlu1 %2508  ;;  %v2036_v9 = vsub.f32 %v11241_v54, %v11196_v48  ;;  %v2047_v63 = vsub.f32 %v11242_v40, %v11196_v48 }
 0x435   : > { %11236 = vst [vmem:[#allocation313_spill] sm:$0xff] %v8046_v1  ;;  %v2301_v1 = vand.u32 2147483647, %v2045_v5 }
 0x436   : > { %2670 = vadd.xlane.f32.xlu0 %v2299_v62  ;;  %v2292_v30 = vand.u32 2147483647, %v2036_v9  ;;  %v11254_v9 = vld [vmem:[#allocation158_spill] sm:$0xff] }
 0x437   : > { %2648 = vadd.xlane.f32.xlu1 %v2288_v38  ;;  %v8052_v14 = vpop.xlane.xlu0 %2534  ;;  %v11245_v38 = vld [vmem:[#allocation85_spill] sm:$0xff] }
 0x438   : > { %11239 = vst [vmem:[#allocation314_spill] sm:$0xff] %v8052_v14  ;;  %v8054_v17 = vpop.xlane.xlu1 %2512  ;;  %v2038_v62 = vsub.f32 %v11245_v38, %v11196_v48  ;;  %v2049_v14 = vsub.f32 %v11246_v12, %v11196_v48 }
 0x439   : > { %11240 = vst [vmem:[#allocation315_spill] sm:$0xff] %v8054_v17  ;;  %v2303_v17 = vand.u32 2147483647, %v2047_v63 }
 0x43a   : > { %2674 = vadd.xlane.f32.xlu0 %v2301_v1  ;;  %v2294_v40 = vand.u32 2147483647, %v2038_v62  ;;  %v11258_v62 = vld [vmem:[#allocation160_spill] sm:$0xff] }
 0x43b   : > { %2652 = vadd.xlane.f32.xlu1 %v2290_v6  ;;  %v8060_v15 = vpop.xlane.xlu0 %2538  ;;  %v11249_v6 = vld [vmem:[#allocation135_spill] sm:$0xff] }
 0x43c   : > { %11243 = vst [vmem:[#allocation316_spill] sm:$0xff] %v8060_v15  ;;  %v8062_v47 = vpop.xlane.xlu1 %2516  ;;  %v2040_v1 = vsub.f32 %v11249_v6, %v11196_v48  ;;  %v2051_v15 = vsub.f32 %v11250_v44, %v11196_v48  ;;  %v2055_v44 = vsub.f32 %v11258_v62, %v11196_v48 }
 0x43d   : > { %11244 = vst [vmem:[#allocation317_spill] sm:$0xff] %v8062_v47  ;;  %v2305_v47 = vand.u32 2147483647, %v2049_v14 }
 0x43e   : > { %2678 = vadd.xlane.f32.xlu0 %v2303_v17  ;;  %v2296_v12 = vand.u32 2147483647, %v2040_v1  ;;  %v11262_v1 = vld [vmem:[#allocation15_spill] sm:$0xff] }
 0x43f   : > { %2656 = vadd.xlane.f32.xlu1 %v2292_v30  ;;  %v8068_v54 = vpop.xlane.xlu0 %2542  ;;  %v11253_v30 = vld [vmem:[#allocation137_spill] sm:$0xff] }
 0x440   : > { %11247 = vst [vmem:[#allocation318_spill] sm:$0xff] %v8068_v54  ;;  %v8070_v5 = vpop.xlane.xlu1 %2520  ;;  %v2042_v17 = vsub.f32 %v11253_v30, %v11196_v48  ;;  %v2053_v54 = vsub.f32 %v11254_v9, %v11196_v48  ;;  %v11263_v9 = vld [vmem:[#allocation162_spill] sm:$0xff] }
 0x441   : > { %11248 = vst [vmem:[#allocation319_spill] sm:$0xff] %v8070_v5  ;;  %v2307_v5 = vand.u32 2147483647, %v2051_v15 }
 0x442   : > { %2682 = vadd.xlane.f32.xlu0 %v2305_v47 }
 0x443   : > { %2660 = vadd.xlane.f32.xlu1 %v2294_v40  ;;  %v8076_v38 = vpop.xlane.xlu0 %2546  ;;  %v11257_v40 = vld [vmem:[#allocation139_spill] sm:$0xff] }
 0x444   : > { %11251 = vst [vmem:[#allocation320_spill] sm:$0xff] %v8076_v38  ;;  %v8078_v63 = vpop.xlane.xlu1 %2524  ;;  %v2044_v47 = vsub.f32 %v11257_v40, %v11196_v48  ;;  %v2309_v38 = vand.u32 2147483647, %v2053_v54 }
 0x445   : > { %11252 = vst [vmem:[#allocation321_spill] sm:$0xff] %v8078_v63  ;;  %v2298_v63 = vand.u32 2147483647, %v2042_v17  ;;  %v11267_v17 = vld [vmem:[#allocation164_spill] sm:$0xff] }
 0x446   : > { %2686 = vadd.xlane.f32.xlu0 %v2307_v5  ;;  %v2300_v3 = vand.u32 2147483647, %v2044_v47  ;;  %v2059_v62 = vsub.f32 %v11267_v17, %v11262_v1  ;;  %v11271_v47 = vld [vmem:[#allocation166_spill] sm:$0xff] }
 0x447   : > { %2664 = vadd.xlane.f32.xlu1 %v2296_v12  ;;  %v8084_v6 = vpop.xlane.xlu0 %2550  ;;  %v11261_v12 = vld [vmem:[#allocation141_spill] sm:$0xff] }
 0x448   : > { %11255 = vst [vmem:[#allocation322_spill] sm:$0xff] %v8084_v6  ;;  %v8086_v14 = vpop.xlane.xlu1 %2528  ;;  %v2046_v5 = vsub.f32 %v11261_v12, %v11196_v48  ;;  %v2057_v6 = vsub.f32 %v11263_v9, %v11262_v1 }
 0x449   : > { %11256 = vst [vmem:[#allocation323_spill] sm:$0xff] %v8086_v14  ;;  %v2311_v14 = vand.u32 2147483647, %v2055_v44 }
 0x44a   : > { %2690 = vadd.xlane.f32.xlu0 %v2309_v38  ;;  %v11266_v38 = vld [vmem:[#allocation143_spill] sm:$0xff] }
 0x44b   : > { %2668 = vadd.xlane.f32.xlu1 %v2298_v63  ;;  %v8092_v30 = vpop.xlane.xlu0 %2554  ;;  %v2048_v63 = vsub.f32 %v11266_v38, %v11196_v48 }
 0x44c   : > { %11259 = vst [vmem:[#allocation324_spill] sm:$0xff] %v8092_v30  ;;  %v8094_v15 = vpop.xlane.xlu1 %2532  ;;  %v2313_v30 = vand.u32 2147483647, %v2057_v6 }
 0x44d   : > { %11260 = vst [vmem:[#allocation325_spill] sm:$0xff] %v8094_v15  ;;  %v2302_v15 = vand.u32 2147483647, %v2046_v5  ;;  %v2304_v9 = vand.u32 2147483647, %v2048_v63  ;;  %v2063_v5 = vsub.f32 %v7508_v46, %v11262_v1  ;;  %v11278_v63 = vld [vmem:[#allocation170_spill] sm:$0xff] }
 0x44e   : > { %2694 = vadd.xlane.f32.xlu0 %v2311_v14 }
 0x44f   : > { %2672 = vadd.xlane.f32.xlu1 %v2300_v3  ;;  %v8100_v40 = vpop.xlane.xlu0 %2558  ;;  %v11270_v3 = vld [vmem:[#allocation145_spill] sm:$0xff] }
 0x450   : > { %11264 = vst [vmem:[#allocation15_spill] sm:$0xff] %v8100_v40  ;;  %v8102_v54 = vpop.xlane.xlu1 %2536  ;;  %v2050_v14 = vsub.f32 %v11270_v3, %v11196_v48  ;;  %v2061_v40 = vsub.f32 %v11271_v47, %v11262_v1  ;;  %v2065_v47 = vsub.f32 %v11278_v63, %v11262_v1 }
 0x451   : > { %11265 = vst [vmem:[#allocation326_spill] sm:$0xff] %v8102_v54  ;;  %v2315_v54 = vand.u32 2147483647, %v2059_v62 }
 0x452   : > { %2698 = vadd.xlane.f32.xlu0 %v2313_v30  ;;  %v11274_v30 = vld [vmem:[#allocation147_spill] sm:$0xff]  ;;  %v2317_v17 = vand.u32 2147483647, %v2061_v40 }
 0x453   : > { %2676 = vadd.xlane.f32.xlu1 %v2302_v15  ;;  %v8108_v12 = vpop.xlane.xlu0 %2562  ;;  %v2052_v15 = vsub.f32 %v11274_v30, %v11196_v48 }
 0x454   : > { %11268 = vst [vmem:[#allocation327_spill] sm:$0xff] %v8108_v12  ;;  %v8110_v44 = vpop.xlane.xlu1 %2540  ;;  %v2306_v12 = vand.u32 2147483647, %v2050_v14  ;;  %v11282_v14 = vld [vmem:[#allocation172_spill] sm:$0xff] }
 0x455   : > { %11269 = vst [vmem:[#allocation328_spill] sm:$0xff] %v8110_v44  ;;  %v2067_v46 = vsub.f32 %v11282_v14, %v11262_v1 }
 0x456   : > { %2702 = vadd.xlane.f32.xlu0 %v2315_v54 }
 0x457   : > { %2680 = vadd.xlane.f32.xlu1 %v2304_v9  ;;  %v8116_v38 = vpop.xlane.xlu0 %2566  ;;  %v11277_v9 = vld [vmem:[#allocation149_spill] sm:$0xff]  ;;  %v2323_v63 = vand.u32 2147483647, %v2067_v46 }
 0x458   : > { %11272 = vst [vmem:[#allocation329_spill] sm:$0xff] %v8116_v38  ;;  %v8118_v6 = vpop.xlane.xlu1 %2544  ;;  %v2054_v54 = vsub.f32 %v11277_v9, %v11196_v48  ;;  %v2319_v38 = vand.u32 2147483647, %v2063_v5 }
 0x459   : > { %11273 = vst [vmem:[#allocation330_spill] sm:$0xff] %v8118_v6  ;;  %v2308_v6 = vand.u32 2147483647, %v2052_v15  ;;  %v11286_v15 = vld [vmem:[#allocation174_spill] sm:$0xff] }
 0x45a   : > { %2706 = vadd.xlane.f32.xlu0 %v2317_v17  ;;  %v2069_v9 = vsub.f32 %v11286_v15, %v11262_v1 }
 0x45b   : > { %2684 = vadd.xlane.f32.xlu1 %v2306_v12  ;;  %v8124_v3 = vpop.xlane.xlu0 %2570  ;;  %v11281_v12 = vld [vmem:[#allocation151_spill] sm:$0xff] }
 0x45c   : > { %11275 = vst [vmem:[#allocation331_spill] sm:$0xff] %v8124_v3  ;;  %v8126_v62 = vpop.xlane.xlu1 %2548  ;;  %v2056_v17 = vsub.f32 %v11281_v12, %v11262_v1  ;;  %v2321_v3 = vand.u32 2147483647, %v2065_v47 }
 0x45d   : > { %11276 = vst [vmem:[#allocation332_spill] sm:$0xff] %v8126_v62  ;;  %v2310_v62 = vand.u32 2147483647, %v2054_v54  ;;  %v11290_v54 = vld [vmem:[#allocation176_spill] sm:$0xff] }
 0x45e   : > { %2710 = vadd.xlane.f32.xlu0 %v2319_v38  ;;  %v11285_v38 = vld [vmem:[#allocation153_spill] sm:$0xff]  ;;  %v2071_v14 = vsub.f32 %v11290_v54, %v11262_v1 }
 0x45f   : > { %2688 = vadd.xlane.f32.xlu1 %v2308_v6  ;;  %v8132_v30 = vpop.xlane.xlu0 %2574  ;;  %v2058_v6 = vsub.f32 %v11285_v38, %v11262_v1 }
 0x460   : > { %11279 = vst [vmem:[#allocation333_spill] sm:$0xff] %v8132_v30  ;;  %v8134_v40 = vpop.xlane.xlu1 %2552  ;;  %v2312_v30 = vand.u32 2147483647, %v2056_v17  ;;  %v11294_v17 = vld [vmem:[#allocation178_spill] sm:$0xff] }
 0x461   : > { %11280 = vst [vmem:[#allocation334_spill] sm:$0xff] %v8134_v40  ;;  %v2073_v15 = vsub.f32 %v11294_v17, %v11262_v1 }
 0x462   : > { %2714 = vadd.xlane.f32.xlu0 %v2321_v3  ;;  %v11289_v3 = vld [vmem:[#allocation155_spill] sm:$0xff] }
 0x463   : > { %2692 = vadd.xlane.f32.xlu1 %v2310_v62  ;;  %v8140_v48 = vpop.xlane.xlu0 %2578  ;;  %v2060_v62 = vsub.f32 %v11289_v3, %v11262_v1 }
 0x464   : > { %11283 = vst [vmem:[#allocation335_spill] sm:$0xff] %v8140_v48  ;;  %v8142_v5 = vpop.xlane.xlu1 %2556  ;;  %v2325_v48 = vand.u32 2147483647, %v2069_v9 }
 0x465   : > { %11284 = vst [vmem:[#allocation336_spill] sm:$0xff] %v8142_v5  ;;  %v2314_v5 = vand.u32 2147483647, %v2058_v6  ;;  %v11298_v6 = vld [vmem:[#allocation180_spill] sm:$0xff] }
 0x466   : > { %2718 = vadd.xlane.f32.xlu0 %v2323_v63  ;;  %v2075_v54 = vsub.f32 %v11298_v6, %v11262_v1 }
 0x467   : > { %2696 = vadd.xlane.f32.xlu1 %v2312_v30  ;;  %v8148_v40 = vpop.xlane.xlu0 %2582  ;;  %v11293_v30 = vld [vmem:[#allocation157_spill] sm:$0xff] }
 0x468   : > { %11287 = vst [vmem:[#allocation337_spill] sm:$0xff] %v8148_v40  ;;  %v8150_v47 = vpop.xlane.xlu1 %2560  ;;  %v2062_v63 = vsub.f32 %v11293_v30, %v11262_v1  ;;  %v2327_v40 = vand.u32 2147483647, %v2071_v14 }
 0x469   : > { %11288 = vst [vmem:[#allocation338_spill] sm:$0xff] %v8150_v47  ;;  %v2316_v47 = vand.u32 2147483647, %v2060_v62  ;;  %v2077_v62 = vsub.f32 %v7537_v39, %v11262_v1 }
 0x46a   : > { %2722 = vadd.xlane.f32.xlu0 %v2325_v48  ;;  %v11297_v48 = vld [vmem:[#allocation159_spill] sm:$0xff] }
 0x46b   : > { %2700 = vadd.xlane.f32.xlu1 %v2314_v5  ;;  %v8156_v38 = vpop.xlane.xlu0 %2586  ;;  %v2064_v5 = vsub.f32 %v11297_v48, %v11262_v1 }
 0x46c   : > { %11291 = vst [vmem:[#allocation339_spill] sm:$0xff] %v8156_v38  ;;  %v8158_v46 = vpop.xlane.xlu1 %2564  ;;  %v2329_v38 = vand.u32 2147483647, %v2073_v15 }
 0x46d   : > { %11292 = vst [vmem:[#allocation340_spill] sm:$0xff] %v8158_v46  ;;  %v2318_v46 = vand.u32 2147483647, %v2062_v63  ;;  %v11305_v63 = vld [vmem:[#allocation184_spill] sm:$0xff] }
 0x46e   : > { %2726 = vadd.xlane.f32.xlu0 %v2327_v40  ;;  %v11301_v40 = vld [vmem:[#allocation161_spill] sm:$0xff] }
 0x46f   : > { %2704 = vadd.xlane.f32.xlu1 %v2316_v47  ;;  %v8164_v3 = vpop.xlane.xlu0 %2590  ;;  %v2066_v47 = vsub.f32 %v11301_v40, %v11262_v1 }
 0x470   : > { %11295 = vst [vmem:[#allocation178_spill] sm:$0xff] %v8164_v3  ;;  %v8166_v9 = vpop.xlane.xlu1 %2568  ;;  %v2331_v3 = vand.u32 2147483647, %v2075_v54 }
 0x471   : > { %11296 = vst [vmem:[#allocation341_spill] sm:$0xff] %v8166_v9  ;;  %v2320_v9 = vand.u32 2147483647, %v2064_v5  ;;  %v2322_v44 = vand.u32 2147483647, %v2066_v47  ;;  %v11309_v5 = vld [vmem:[#allocation186_spill] sm:$0xff] }
 0x472   : > { %2730 = vadd.xlane.f32.xlu0 %v2329_v38  ;;  %v11304_v38 = vld [vmem:[#allocation163_spill] sm:$0xff]  ;;  %v11313_v47 = vld [vmem:[#allocation188_spill] sm:$0xff] }
 0x473   : > { %2708 = vadd.xlane.f32.xlu1 %v2318_v46  ;;  %v8172_v30 = vpop.xlane.xlu0 %2594  ;;  %v2068_v46 = vsub.f32 %v11304_v38, %v11262_v1 }
 0x474   : > { %11299 = vst [vmem:[#allocation342_spill] sm:$0xff] %v8172_v30  ;;  %v8174_v14 = vpop.xlane.xlu1 %2572  ;;  %v2079_v30 = vsub.f32 %v11305_v63, %v11262_v1  ;;  %v2083_v63 = vsub.f32 %v11313_v47, %v11262_v1 }
 0x475   : > { %11300 = vst [vmem:[#allocation343_spill] sm:$0xff] %v8174_v14  ;;  %v2333_v14 = vand.u32 2147483647, %v2077_v62  ;;  %v2324_v39 = vand.u32 2147483647, %v2068_v46  ;;  %v11317_v46 = vld [vmem:[#allocation190_spill] sm:$0xff] }
 0x476   : > { %2734 = vadd.xlane.f32.xlu0 %v2331_v3  ;;  %v11308_v3 = vld [vmem:[#allocation165_spill] sm:$0xff] }
 0x477   : > { %2712 = vadd.xlane.f32.xlu1 %v2320_v9  ;;  %v8180_v48 = vpop.xlane.xlu0 %2598  ;;  %v2070_v9 = vsub.f32 %v11308_v3, %v11262_v1 }
 0x478   : > { %11302 = vst [vmem:[#allocation344_spill] sm:$0xff] %v8180_v48  ;;  %v8182_v15 = vpop.xlane.xlu1 %2576  ;;  %v2081_v48 = vsub.f32 %v11309_v5, %v11262_v1  ;;  %v2085_v5 = vsub.f32 %v11317_v46, %v11262_v1  ;;  %v11326_v46 = vld [vmem:[#allocation194_spill] sm:$0xff] }
 0x479   : > { %11303 = vst [vmem:[#allocation345_spill] sm:$0xff] %v8182_v15  ;;  %v2335_v15 = vand.u32 2147483647, %v2079_v30 }
 0x47a   : > { %2738 = vadd.xlane.f32.xlu0 %v2333_v14 }
 0x47b   : > { %2716 = vadd.xlane.f32.xlu1 %v2322_v44  ;;  %v8188_v40 = vpop.xlane.xlu0 %2602  ;;  %v11312_v44 = vld [vmem:[#allocation167_spill] sm:$0xff] }
 0x47c   : > { %11306 = vst [vmem:[#allocation346_spill] sm:$0xff] %v8188_v40  ;;  %v8190_v54 = vpop.xlane.xlu1 %2580  ;;  %v2072_v14 = vsub.f32 %v11312_v44, %v11262_v1  ;;  %v2337_v40 = vand.u32 2147483647, %v2081_v48 }
 0x47d   : > { %11307 = vst [vmem:[#allocation347_spill] sm:$0xff] %v8190_v54  ;;  %v2326_v54 = vand.u32 2147483647, %v2070_v9  ;;  %v11321_v9 = vld [vmem:[#allocation192_spill] sm:$0xff] }
 0x47e   : > { %2742 = vadd.xlane.f32.xlu0 %v2335_v15  ;;  %v2087_v47 = vsub.f32 %v11321_v9, %v11262_v1 }
 0x47f   : > { %2720 = vadd.xlane.f32.xlu1 %v2324_v39  ;;  %v8196_v38 = vpop.xlane.xlu0 %2606  ;;  %v11316_v39 = vld [vmem:[#allocation169_spill] sm:$0xff] }
 0x480   : > { %11310 = vst [vmem:[#allocation348_spill] sm:$0xff] %v8196_v38  ;;  %v8198_v62 = vpop.xlane.xlu1 %2584  ;;  %v2074_v15 = vsub.f32 %v11316_v39, %v11262_v1  ;;  %v2339_v38 = vand.u32 2147483647, %v2083_v63 }
 0x481   : > { %11311 = vst [vmem:[#allocation349_spill] sm:$0xff] %v8198_v62  ;;  %v2328_v62 = vand.u32 2147483647, %v2072_v14  ;;  %v11325_v14 = vld [vmem:[#allocation17_spill] sm:$0xff] }
 0x482   : > { %2746 = vadd.xlane.f32.xlu0 %v2337_v40  ;;  %v11320_v40 = vld [vmem:[#allocation171_spill] sm:$0xff] }
 0x483   : > { %2724 = vadd.xlane.f32.xlu1 %v2326_v54  ;;  %v8204_v3 = vpop.xlane.xlu0 %2610  ;;  %v2076_v54 = vsub.f32 %v11320_v40, %v11262_v1 }
 0x484   : > { %11314 = vst [vmem:[#allocation350_spill] sm:$0xff] %v8204_v3  ;;  %v8206_v30 = vpop.xlane.xlu1 %2588  ;;  %v2341_v3 = vand.u32 2147483647, %v2085_v5 }
 0x485   : > { %11315 = vst [vmem:[#allocation351_spill] sm:$0xff] %v8206_v30  ;;  %v2330_v30 = vand.u32 2147483647, %v2074_v15  ;;  %v2332_v12 = vand.u32 2147483647, %v2076_v54  ;;  %v11330_v15 = vld [vmem:[#allocation196_spill] sm:$0xff] }
 0x486   : > { %2750 = vadd.xlane.f32.xlu0 %v2339_v38  ;;  %v11324_v38 = vld [vmem:[#allocation173_spill] sm:$0xff]  ;;  %v2091_v9 = vsub.f32 %v11330_v15, %v11325_v14  ;;  %v11334_v54 = vld [vmem:[#allocation198_spill] sm:$0xff] }
 0x487   : > { %2728 = vadd.xlane.f32.xlu1 %v2328_v62  ;;  %v8212_v44 = vpop.xlane.xlu0 %2614  ;;  %v2078_v62 = vsub.f32 %v11324_v38, %v11262_v1 }
 0x488   : > { %11318 = vst [vmem:[#allocation169_spill] sm:$0xff] %v8212_v44  ;;  %v8214_v48 = vpop.xlane.xlu1 %2592  ;;  %v2089_v44 = vsub.f32 %v11326_v46, %v11325_v14 }
 0x489   : > { %11319 = vst [vmem:[#allocation352_spill] sm:$0xff] %v8214_v48  ;;  %v2343_v48 = vand.u32 2147483647, %v2087_v47 }
 0x48a   : > { %2754 = vadd.xlane.f32.xlu0 %v2341_v3  ;;  %v11329_v3 = vld [vmem:[#allocation175_spill] sm:$0xff] }
 0x48b   : > { %2732 = vadd.xlane.f32.xlu1 %v2330_v30  ;;  %v8220_v6 = vpop.xlane.xlu0 %2618  ;;  %v2080_v30 = vsub.f32 %v11329_v3, %v11262_v1 }
 0x48c   : > { %11322 = vst [vmem:[#allocation353_spill] sm:$0xff] %v8220_v6  ;;  %v8222_v63 = vpop.xlane.xlu1 %2596  ;;  %v2345_v6 = vand.u32 2147483647, %v2089_v44 }
 0x48d   : > { %11323 = vst [vmem:[#allocation354_spill] sm:$0xff] %v8222_v63  ;;  %v2334_v63 = vand.u32 2147483647, %v2078_v62  ;;  %v2336_v46 = vand.u32 2147483647, %v2080_v30  ;;  %v2095_v62 = vsub.f32 %v7575_v41, %v11325_v14  ;;  %v11341_v30 = vld [vmem:[#allocation202_spill] sm:$0xff] }
 0x48e   : > { %2758 = vadd.xlane.f32.xlu0 %v2343_v48 }
 0x48f   : > { %2736 = vadd.xlane.f32.xlu1 %v2332_v12  ;;  %v8228_v40 = vpop.xlane.xlu0 %2622  ;;  %v11333_v12 = vld [vmem:[#allocation177_spill] sm:$0xff] }
 0x490   : > { %11327 = vst [vmem:[#allocation17_spill] sm:$0xff] %v8228_v40  ;;  %v8230_v5 = vpop.xlane.xlu1 %2600  ;;  %v2082_v48 = vsub.f32 %v11333_v12, %v11262_v1  ;;  %v2093_v40 = vsub.f32 %v11334_v54, %v11325_v14  ;;  %v2351_v54 = vand.u32 2147483647, %v2095_v62 }
 0x491   : > { %11328 = vst [vmem:[#allocation355_spill] sm:$0xff] %v8230_v5  ;;  %v2347_v5 = vand.u32 2147483647, %v2091_v9 }
 0x492   : > { %2762 = vadd.xlane.f32.xlu0 %v2345_v6  ;;  %v11337_v6 = vld [vmem:[#allocation179_spill] sm:$0xff] }
 0x493   : > { %2740 = vadd.xlane.f32.xlu1 %v2334_v63  ;;  %v8236_v38 = vpop.xlane.xlu0 %2626  ;;  %v2084_v63 = vsub.f32 %v11337_v6, %v11262_v1 }
 0x494   : > { %11331 = vst [vmem:[#allocation356_spill] sm:$0xff] %v8236_v38  ;;  %v8238_v47 = vpop.xlane.xlu1 %2604  ;;  %v2349_v38 = vand.u32 2147483647, %v2093_v40 }
 0x495   : > { %11332 = vst [vmem:[#allocation357_spill] sm:$0xff] %v8238_v47  ;;  %v2338_v47 = vand.u32 2147483647, %v2082_v48  ;;  %v11345_v48 = vld [vmem:[#allocation204_spill] sm:$0xff] }
 0x496   : > { %2766 = vadd.xlane.f32.xlu0 %v2347_v5  ;;  %v2099_v41 = vsub.f32 %v11345_v48, %v11325_v14 }
 0x497   : > { %2744 = vadd.xlane.f32.xlu1 %v2336_v46  ;;  %v8244_v3 = vpop.xlane.xlu0 %2630  ;;  %v11340_v46 = vld [vmem:[#allocation181_spill] sm:$0xff] }
 0x498   : > { %11335 = vst [vmem:[#allocation358_spill] sm:$0xff] %v8244_v3  ;;  %v8246_v44 = vpop.xlane.xlu1 %2608  ;;  %v2086_v5 = vsub.f32 %v11340_v46, %v11262_v1  ;;  %v2097_v3 = vsub.f32 %v11341_v30, %v11325_v14  ;;  %v2355_v46 = vand.u32 2147483647, %v2099_v41 }
 0x499   : > { %11336 = vst [vmem:[#allocation359_spill] sm:$0xff] %v8246_v44  ;;  %v2340_v44 = vand.u32 2147483647, %v2084_v63  ;;  %v2101_v63 = vsub.f32 %v7588_v22, %v11325_v14 }
 0x49a   : > { %2770 = vadd.xlane.f32.xlu0 %v2349_v38  ;;  %v11344_v38 = vld [vmem:[#allocation183_spill] sm:$0xff] }
 0x49b   : > { %2748 = vadd.xlane.f32.xlu1 %v2338_v47  ;;  %v8252_v12 = vpop.xlane.xlu0 %2634  ;;  %v2088_v47 = vsub.f32 %v11344_v38, %v11325_v14 }
 0x49c   : > { %11338 = vst [vmem:[#allocation360_spill] sm:$0xff] %v8252_v12  ;;  %v8254_v9 = vpop.xlane.xlu1 %2612  ;;  %v2353_v12 = vand.u32 2147483647, %v2097_v3 }
 0x49d   : > { %11339 = vst [vmem:[#allocation361_spill] sm:$0xff] %v8254_v9  ;;  %v2342_v9 = vand.u32 2147483647, %v2086_v5  ;;  %v2344_v30 = vand.u32 2147483647, %v2088_v47  ;;  %v11352_v5 = vld [vmem:[#allocation208_spill] sm:$0xff] }
 0x49e   : > { %2774 = vadd.xlane.f32.xlu0 %v2351_v54  ;;  %v11348_v54 = vld [vmem:[#allocation185_spill] sm:$0xff]  ;;  %v2103_v48 = vsub.f32 %v11352_v5, %v11325_v14  ;;  %v11356_v47 = vld [vmem:[#allocation210_spill] sm:$0xff] }
 0x49f   : > { %2752 = vadd.xlane.f32.xlu1 %v2340_v44  ;;  %v8260_v6 = vpop.xlane.xlu0 %2638  ;;  %v2090_v44 = vsub.f32 %v11348_v54, %v11325_v14  ;;  %v2105_v22 = vsub.f32 %v11356_v47, %v11325_v14 }
 0x4a0   : > { %11342 = vst [vmem:[#allocation362_spill] sm:$0xff] %v8260_v6  ;;  %v8262_v40 = vpop.xlane.xlu1 %2616 }
 0x4a1   : > { %11343 = vst [vmem:[#allocation363_spill] sm:$0xff] %v8262_v40 }
 0x4a2   : > { %2778 = vadd.xlane.f32.xlu0 %v2353_v12  ;;  %v11351_v12 = vld [vmem:[#allocation187_spill] sm:$0xff] }
 0x4a3   : > { %2756 = vadd.xlane.f32.xlu1 %v2342_v9  ;;  %v8268_v1 = vpop.xlane.xlu0 %2642  ;;  %v2092_v9 = vsub.f32 %v11351_v12, %v11325_v14 }
 0x4a4   : > { %11346 = vst [vmem:[#allocation364_spill] sm:$0xff] %v8268_v1  ;;  %v8270_v62 = vpop.xlane.xlu1 %2620  ;;  %v2357_v1 = vand.u32 2147483647, %v2101_v63 }
 0x4a5   : > { %11347 = vst [vmem:[#allocation365_spill] sm:$0xff] %v8270_v62  ;;  %v2346_v62 = vand.u32 2147483647, %v2090_v44  ;;  %v11360_v44 = vld [vmem:[#allocation212_spill] sm:$0xff] }
 0x4a6   : > { %2782 = vadd.xlane.f32.xlu0 %v2355_v46  ;;  %v11355_v46 = vld [vmem:[#allocation189_spill] sm:$0xff]  ;;  %v2107_v5 = vsub.f32 %v11360_v44, %v11325_v14 }
 0x4a7   : > { %2760 = vadd.xlane.f32.xlu1 %v2344_v30  ;;  %v8276_v6 = vpop.xlane.xlu0 %2646  ;;  %v2094_v30 = vsub.f32 %v11355_v46, %v11325_v14 }
 0x4a8   : > { %11349 = vst [vmem:[#allocation366_spill] sm:$0xff] %v8276_v6  ;;  %v8278_v3 = vpop.xlane.xlu1 %2624  ;;  %v2359_v6 = vand.u32 2147483647, %v2103_v48 }
 0x4a9   : > { %11350 = vst [vmem:[#allocation367_spill] sm:$0xff] %v8278_v3  ;;  %v2348_v3 = vand.u32 2147483647, %v2092_v9  ;;  %v11364_v9 = vld [vmem:[#allocation214_spill] sm:$0xff] }
 0x4aa   : > { %2786 = vadd.xlane.f32.xlu0 %v2357_v1  ;;  %v11359_v1 = vld [vmem:[#allocation191_spill] sm:$0xff] }
 0x4ab   : > { %2764 = vadd.xlane.f32.xlu1 %v2346_v62  ;;  %v8284_v40 = vpop.xlane.xlu0 %2650  ;;  %v2096_v62 = vsub.f32 %v11359_v1, %v11325_v14 }
 0x4ac   : > { %11353 = vst [vmem:[#allocation368_spill] sm:$0xff] %v8284_v40  ;;  %v8286_v41 = vpop.xlane.xlu1 %2628  ;;  %v2361_v40 = vand.u32 2147483647, %v2105_v22 }
 0x4ad   : > { %11354 = vst [vmem:[#allocation369_spill] sm:$0xff] %v8286_v41  ;;  %v2350_v41 = vand.u32 2147483647, %v2094_v30  ;;  %v2352_v15 = vand.u32 2147483647, %v2096_v62  ;;  %v11368_v30 = vld [vmem:[#allocation216_spill] sm:$0xff] }
 0x4ae   : > { %2790 = vadd.xlane.f32.xlu0 %v2359_v6  ;;  %v11363_v6 = vld [vmem:[#allocation193_spill] sm:$0xff]  ;;  %v11372_v62 = vld [vmem:[#allocation218_spill] sm:$0xff] }
 0x4af   : > { %2768 = vadd.xlane.f32.xlu1 %v2348_v3  ;;  %v8292_v12 = vpop.xlane.xlu0 %2654  ;;  %v2098_v3 = vsub.f32 %v11363_v6, %v11325_v14 }
 0x4b0   : > { %11357 = vst [vmem:[#allocation210_spill] sm:$0xff] %v8292_v12  ;;  %v8294_v63 = vpop.xlane.xlu1 %2632  ;;  %v2109_v12 = vsub.f32 %v11364_v9, %v11325_v14 }
 0x4b1   : > { %11358 = vst [vmem:[#allocation370_spill] sm:$0xff] %v8294_v63  ;;  %v2363_v63 = vand.u32 2147483647, %v2107_v5  ;;  %v2354_v54 = vand.u32 2147483647, %v2098_v3  ;;  %v11376_v3 = vld [vmem:[#allocation220_spill] sm:$0xff] }
 0x4b2   : > { %2794 = vadd.xlane.f32.xlu0 %v2361_v40  ;;  %v11367_v40 = vld [vmem:[#allocation195_spill] sm:$0xff] }
 0x4b3   : > { %2772 = vadd.xlane.f32.xlu1 %v2350_v41  ;;  %v8300_v46 = vpop.xlane.xlu0 %2658  ;;  %v2100_v41 = vsub.f32 %v11367_v40, %v11325_v14 }
 0x4b4   : > { %11361 = vst [vmem:[#allocation371_spill] sm:$0xff] %v8300_v46  ;;  %v8302_v48 = vpop.xlane.xlu1 %2636  ;;  %v2111_v46 = vsub.f32 %v11368_v30, %v11325_v14 }
 0x4b5   : > { %11362 = vst [vmem:[#allocation372_spill] sm:$0xff] %v8302_v48  ;;  %v2365_v48 = vand.u32 2147483647, %v2109_v12  ;;  %v2356_v9 = vand.u32 2147483647, %v2100_v41  ;;  %v11380_v41 = vld [vmem:[#allocation222_spill] sm:$0xff] }
 0x4b6   : > { %2798 = vadd.xlane.f32.xlu0 %v2363_v63 }
 0x4b7   : > { %2776 = vadd.xlane.f32.xlu1 %v2352_v15  ;;  %v8308_v1 = vpop.xlane.xlu0 %2662  ;;  %v11371_v15 = vld [vmem:[#allocation197_spill] sm:$0xff] }
 0x4b8   : > { %11365 = vst [vmem:[#allocation373_spill] sm:$0xff] %v8308_v1  ;;  %v8310_v22 = vpop.xlane.xlu1 %2640  ;;  %v2102_v63 = vsub.f32 %v11371_v15, %v11325_v14  ;;  %v2113_v1 = vsub.f32 %v11372_v62, %v11325_v14 }
 0x4b9   : > { %11366 = vst [vmem:[#allocation374_spill] sm:$0xff] %v8310_v22  ;;  %v2367_v22 = vand.u32 2147483647, %v2111_v46 }
 0x4ba   : > { %2802 = vadd.xlane.f32.xlu0 %v2365_v48  ;;  %v2358_v30 = vand.u32 2147483647, %v2102_v63  ;;  %v11384_v63 = vld [vmem:[#allocation224_spill] sm:$0xff] }
 0x4bb   : > { %2780 = vadd.xlane.f32.xlu1 %v2354_v54  ;;  %v8316_v6 = vpop.xlane.xlu0 %2666  ;;  %v11375_v54 = vld [vmem:[#allocation199_spill] sm:$0xff] }
 0x4bc   : > { %11369 = vst [vmem:[#allocation375_spill] sm:$0xff] %v8316_v6  ;;  %v8318_v5 = vpop.xlane.xlu1 %2644  ;;  %v2104_v48 = vsub.f32 %v11375_v54, %v11325_v14  ;;  %v2115_v6 = vsub.f32 %v11376_v3, %v11325_v14  ;;  %v2119_v3 = vsub.f32 %v11384_v63, %v11325_v14 }
 0x4bd   : > { %11370 = vst [vmem:[#allocation376_spill] sm:$0xff] %v8318_v5  ;;  %v2369_v5 = vand.u32 2147483647, %v2113_v1 }
 0x4be   : > { %2806 = vadd.xlane.f32.xlu0 %v2367_v22  ;;  %v2371_v62 = vand.u32 2147483647, %v2115_v6 }
 0x4bf   : > { %2784 = vadd.xlane.f32.xlu1 %v2356_v9  ;;  %v8324_v40 = vpop.xlane.xlu0 %2670  ;;  %v11379_v9 = vld [vmem:[#allocation201_spill] sm:$0xff] }
 0x4c0   : > { %11373 = vst [vmem:[#allocation377_spill] sm:$0xff] %v8324_v40  ;;  %v8326_v12 = vpop.xlane.xlu1 %2648  ;;  %v2106_v22 = vsub.f32 %v11379_v9, %v11325_v14  ;;  %v2117_v40 = vsub.f32 %v11380_v41, %v11325_v14  ;;  %v11389_v41 = vld [vmem:[#allocation226_spill] sm:$0xff] }
 0x4c1   : > { %11374 = vst [vmem:[#allocation378_spill] sm:$0xff] %v8326_v12  ;;  %v2360_v12 = vand.u32 2147483647, %v2104_v48  ;;  %v11388_v48 = vld [vmem:[#allocation18_spill] sm:$0xff] }
 0x4c2   : > { %2810 = vadd.xlane.f32.xlu0 %v2369_v5 }
 0x4c3   : > { %2788 = vadd.xlane.f32.xlu1 %v2358_v30  ;;  %v8332_v15 = vpop.xlane.xlu0 %2674  ;;  %v11383_v30 = vld [vmem:[#allocation203_spill] sm:$0xff] }
 0x4c4   : > { %11377 = vst [vmem:[#allocation379_spill] sm:$0xff] %v8332_v15  ;;  %v8334_v46 = vpop.xlane.xlu1 %2652  ;;  %v2108_v5 = vsub.f32 %v11383_v30, %v11325_v14  ;;  %v2373_v15 = vand.u32 2147483647, %v2117_v40 }
 0x4c5   : > { %11378 = vst [vmem:[#allocation380_spill] sm:$0xff] %v8334_v46  ;;  %v2362_v46 = vand.u32 2147483647, %v2106_v22  ;;  %v11393_v22 = vld [vmem:[#allocation228_spill] sm:$0xff] }
 0x4c6   : > { %2814 = vadd.xlane.f32.xlu0 %v2371_v62  ;;  %v11387_v62 = vld [vmem:[#allocation205_spill] sm:$0xff]  ;;  %v2364_v38 = vand.u32 2147483647, %v2108_v5  ;;  %v2123_v63 = vsub.f32 %v11393_v22, %v11388_v48  ;;  %v11397_v5 = vld [vmem:[#allocation230_spill] sm:$0xff] }
 0x4c7   : > { %2792 = vadd.xlane.f32.xlu1 %v2360_v12  ;;  %v8340_v44 = vpop.xlane.xlu0 %2678  ;;  %v2110_v12 = vsub.f32 %v11387_v62, %v11325_v14 }
 0x4c8   : > { %11381 = vst [vmem:[#allocation201_spill] sm:$0xff] %v8340_v44  ;;  %v8342_v1 = vpop.xlane.xlu1 %2656  ;;  %v2121_v44 = vsub.f32 %v11389_v41, %v11388_v48 }
 0x4c9   : > { %11382 = vst [vmem:[#allocation381_spill] sm:$0xff] %v8342_v1  ;;  %v2375_v1 = vand.u32 2147483647, %v2119_v3 }
 0x4ca   : > { %2818 = vadd.xlane.f32.xlu0 %v2373_v15  ;;  %v11392_v15 = vld [vmem:[#allocation207_spill] sm:$0xff] }
 0x4cb   : > { %2796 = vadd.xlane.f32.xlu1 %v2362_v46  ;;  %v8348_v54 = vpop.xlane.xlu0 %2682  ;;  %v2112_v46 = vsub.f32 %v11392_v15, %v11325_v14 }
 0x4cc   : > { %11385 = vst [vmem:[#allocation382_spill] sm:$0xff] %v8348_v54  ;;  %v8350_v6 = vpop.xlane.xlu1 %2660  ;;  %v2377_v54 = vand.u32 2147483647, %v2121_v44 }
 0x4cd   : > { %11386 = vst [vmem:[#allocation383_spill] sm:$0xff] %v8350_v6  ;;  %v2366_v6 = vand.u32 2147483647, %v2110_v12  ;;  %v2368_v41 = vand.u32 2147483647, %v2112_v46  ;;  %v11401_v12 = vld [vmem:[#allocation231_spill] sm:$0xff]  ;;  %v2129_v46 = vsub.f32 %v7646_v53, %v11388_v48 }
 0x4ce   : > { %2822 = vadd.xlane.f32.xlu0 %v2375_v1 }
 0x4cf   : > { %2800 = vadd.xlane.f32.xlu1 %v2364_v38  ;;  %v8356_v30 = vpop.xlane.xlu0 %2686  ;;  %v11396_v38 = vld [vmem:[#allocation209_spill] sm:$0xff] }
 0x4d0   : > { %11390 = vst [vmem:[#allocation18_spill] sm:$0xff] %v8356_v30  ;;  %v8358_v40 = vpop.xlane.xlu1 %2664  ;;  %v2114_v1 = vsub.f32 %v11396_v38, %v11325_v14  ;;  %v2125_v30 = vsub.f32 %v11397_v5, %v11388_v48  ;;  %v11656_v5 = vld [vmem:[#allocation138_spill] sm:$0xff] }
 0x4d1   : > { %11391 = vst [vmem:[#allocation384_spill] sm:$0xff] %v8358_v40  ;;  %v2379_v40 = vand.u32 2147483647, %v2123_v63 }
 0x4d2   : > { %2826 = vadd.xlane.f32.xlu0 %v2377_v54  ;;  %v11400_v54 = vld [vmem:[#allocation211_spill] sm:$0xff]  ;;  %v2370_v22 = vand.u32 2147483647, %v2114_v1  ;;  %v2131_v1 = vsub.f32 %v7652_v58, %v11388_v48 }
 0x4d3   : > { %2804 = vadd.xlane.f32.xlu1 %v2366_v6  ;;  %v8364_v62 = vpop.xlane.xlu0 %2690  ;;  %v2116_v6 = vsub.f32 %v11400_v54, %v11325_v14 }
 0x4d4   : > { %11394 = vst [vmem:[#allocation385_spill] sm:$0xff] %v8364_v62  ;;  %v8366_v3 = vpop.xlane.xlu1 %2668  ;;  %v2127_v62 = vsub.f32 %v11401_v12, %v11388_v48 }
 0x4d5   : > { %11395 = vst [vmem:[#allocation386_spill] sm:$0xff] %v8366_v3  ;;  %v2381_v3 = vand.u32 2147483647, %v2125_v30 }
 0x4d6   : > { %2830 = vadd.xlane.f32.xlu0 %v2379_v40 }
 0x4d7   : > { %2808 = vadd.xlane.f32.xlu1 %v2368_v41  ;;  %v8372_v15 = vpop.xlane.xlu0 %2694  ;;  %v11404_v41 = vld [vmem:[#allocation213_spill] sm:$0xff] }
 0x4d8   : > { %11398 = vst [vmem:[#allocation387_spill] sm:$0xff] %v8372_v15  ;;  %v8374_v44 = vpop.xlane.xlu1 %2672  ;;  %v2118_v40 = vsub.f32 %v11404_v41, %v11325_v14  ;;  %v2383_v15 = vand.u32 2147483647, %v2127_v62  ;;  %v2387_v41 = vand.u32 2147483647, %v2131_v1 }
 0x4d9   : > { %11399 = vst [vmem:[#allocation388_spill] sm:$0xff] %v8374_v44  ;;  %v2372_v44 = vand.u32 2147483647, %v2116_v6  ;;  %v2133_v6 = vsub.f32 %v7660_v49, %v11388_v48 }
 0x4da   : > { %2834 = vadd.xlane.f32.xlu0 %v2381_v3 }
 0x4db   : > { %2812 = vadd.xlane.f32.xlu1 %v2370_v22  ;;  %v8380_v38 = vpop.xlane.xlu0 %2698  ;;  %v11407_v22 = vld [vmem:[#allocation215_spill] sm:$0xff] }
 0x4dc   : > { %11402 = vst [vmem:[#allocation389_spill] sm:$0xff] %v8380_v38  ;;  %v8382_v63 = vpop.xlane.xlu1 %2676  ;;  %v2120_v3 = vsub.f32 %v11407_v22, %v11388_v48  ;;  %v2385_v38 = vand.u32 2147483647, %v2129_v46 }
 0x4dd   : > { %11403 = vst [vmem:[#allocation390_spill] sm:$0xff] %v8382_v63  ;;  %v2374_v63 = vand.u32 2147483647, %v2118_v40  ;;  %v2135_v40 = vsub.f32 %v7666_v51, %v11388_v48 }
 0x4de   : > { %2838 = vadd.xlane.f32.xlu0 %v2383_v15  ;;  %v11410_v15 = vld [vmem:[#allocation217_spill] sm:$0xff] }
 0x4df   : > { %2816 = vadd.xlane.f32.xlu1 %v2372_v44  ;;  %v8388_v54 = vpop.xlane.xlu0 %2702  ;;  %v2122_v44 = vsub.f32 %v11410_v15, %v11388_v48 }
 0x4e0   : > { %11405 = vst [vmem:[#allocation391_spill] sm:$0xff] %v8388_v54  ;;  %v8390_v30 = vpop.xlane.xlu1 %2680  ;;  %v2376_v54 = vand.u32 2147483647, %v2120_v3  ;;  %v2137_v3 = vsub.f32 %v7676_v61, %v11388_v48 }
 0x4e1   : > { %11406 = vst [vmem:[#allocation392_spill] sm:$0xff] %v8390_v30 }
 0x4e2   : > { %2842 = vadd.xlane.f32.xlu0 %v2385_v38  ;;  %v11413_v38 = vld [vmem:[#allocation219_spill] sm:$0xff] }
 0x4e3   : > { %2820 = vadd.xlane.f32.xlu1 %v2374_v63  ;;  %v8396_v14 = vpop.xlane.xlu0 %2706  ;;  %v2124_v63 = vsub.f32 %v11413_v38, %v11388_v48 }
 0x4e4   : > { %11408 = vst [vmem:[#allocation215_spill] sm:$0xff] %v8396_v14  ;;  %v8398_v62 = vpop.xlane.xlu1 %2684  ;;  %v2378_v14 = vand.u32 2147483647, %v2122_v44  ;;  %v2139_v44 = vsub.f32 %v7684_v7, %v11388_v48 }
 0x4e5   : > { %11409 = vst [vmem:[#allocation393_spill] sm:$0xff] %v8398_v62  ;;  %v2389_v62 = vand.u32 2147483647, %v2133_v6  ;;  %v2380_v49 = vand.u32 2147483647, %v2124_v63  ;;  %v2141_v63 = vsub.f32 %v7696_v13, %v11388_v48 }
 0x4e6   : > { %2846 = vadd.xlane.f32.xlu0 %v2387_v41 }
 0x4e7   : > { %2824 = vadd.xlane.f32.xlu1 %v2376_v54  ;;  %v8404_v53 = vpop.xlane.xlu0 %2710  ;;  %v11416_v54 = vld [vmem:[#allocation221_spill] sm:$0xff] }
 0x4e8   : > { %11411 = vst [vmem:[#allocation217_spill] sm:$0xff] %v8404_v53  ;;  %v8406_v46 = vpop.xlane.xlu1 %2688  ;;  %v2126_v41 = vsub.f32 %v11416_v54, %v11388_v48 }
 0x4e9   : > { %11412 = vst [vmem:[#allocation394_spill] sm:$0xff] %v8406_v46  ;;  %v2391_v46 = vand.u32 2147483647, %v2135_v40 }
 0x4ea   : > { %2850 = vadd.xlane.f32.xlu0 %v2389_v62  ;;  %v2382_v51 = vand.u32 2147483647, %v2126_v41  ;;  %v2143_v41 = vsub.f32 %v7704_v50, %v11388_v48  ;;  %v11648_v50 = vld [vmem:[#allocation82_spill] sm:$0xff] }
 0x4eb   : > { %2828 = vadd.xlane.f32.xlu1 %v2378_v14  ;;  %v8412_v58 = vpop.xlane.xlu0 %2714  ;;  %v11419_v14 = vld [vmem:[#allocation223_spill] sm:$0xff] }
 0x4ec   : > { %11414 = vst [vmem:[#allocation395_spill] sm:$0xff] %v8412_v58  ;;  %v8414_v1 = vpop.xlane.xlu1 %2692  ;;  %v2128_v62 = vsub.f32 %v11419_v14, %v11388_v48 }
 0x4ed   : > { %11415 = vst [vmem:[#allocation396_spill] sm:$0xff] %v8414_v1  ;;  %v2393_v1 = vand.u32 2147483647, %v2137_v3 }
 0x4ee   : > { %2854 = vadd.xlane.f32.xlu0 %v2391_v46 }
 0x4ef   : > { %2832 = vadd.xlane.f32.xlu1 %v2380_v49  ;;  %v8420_v53 = vpop.xlane.xlu0 %2718  ;;  %v11422_v49 = vld [vmem:[#allocation225_spill] sm:$0xff] }
 0x4f0   : > { %11417 = vst [vmem:[#allocation397_spill] sm:$0xff] %v8420_v53  ;;  %v8422_v6 = vpop.xlane.xlu1 %2696  ;;  %v2130_v46 = vsub.f32 %v11422_v49, %v11388_v48  ;;  %v2395_v53 = vand.u32 2147483647, %v2139_v44 }
 0x4f1   : > { %11418 = vst [vmem:[#allocation398_spill] sm:$0xff] %v8422_v6  ;;  %v2384_v6 = vand.u32 2147483647, %v2128_v62  ;;  %v2145_v62 = vsub.f32 %v7716_v31, %v11388_v48 }
 0x4f2   : > { %2858 = vadd.xlane.f32.xlu0 %v2393_v1 }
 0x4f3   : > { %2836 = vadd.xlane.f32.xlu1 %v2382_v51  ;;  %v8428_v58 = vpop.xlane.xlu0 %2722  ;;  %v11425_v51 = vld [vmem:[#allocation227_spill] sm:$0xff] }
 0x4f4   : > { %11420 = vst [vmem:[#allocation399_spill] sm:$0xff] %v8428_v58  ;;  %v8430_v40 = vpop.xlane.xlu1 %2700  ;;  %v2132_v1 = vsub.f32 %v11425_v51, %v11388_v48  ;;  %v2397_v58 = vand.u32 2147483647, %v2141_v63 }
 0x4f5   : > { %11421 = vst [vmem:[#allocation400_spill] sm:$0xff] %v8430_v40  ;;  %v2386_v40 = vand.u32 2147483647, %v2130_v46  ;;  %v2147_v46 = vsub.f32 %v7724_v57, %v11388_v48 }
 0x4f6   : > { %2862 = vadd.xlane.f32.xlu0 %v2395_v53  ;;  %v11428_v53 = vld [vmem:[#allocation229_spill] sm:$0xff] }
 0x4f7   : > { %2840 = vadd.xlane.f32.xlu1 %v2384_v6  ;;  %v8436_v14 = vpop.xlane.xlu0 %2726  ;;  %v2134_v6 = vsub.f32 %v11428_v53, %v11388_v48 }
 0x4f8   : > { %11423 = vst [vmem:[#allocation401_spill] sm:$0xff] %v8436_v14  ;;  %v8438_v3 = vpop.xlane.xlu1 %2704  ;;  %v2399_v14 = vand.u32 2147483647, %v2143_v41 }
 0x4f9   : > { %11424 = vst [vmem:[#allocation402_spill] sm:$0xff] %v8438_v3  ;;  %v2388_v3 = vand.u32 2147483647, %v2132_v1  ;;  %v2149_v1 = vsub.f32 %v7736_v36, %v11388_v48 }
 0x4fa   : > { %2866 = vadd.xlane.f32.xlu0 %v2397_v58  ;;  %v11431_v58 = vld [vmem:[#allocation232_spill] sm:$0xff] }
 0x4fb   : > { %2844 = vadd.xlane.f32.xlu1 %v2386_v40  ;;  %v8444_v49 = vpop.xlane.xlu0 %2730  ;;  %v2136_v40 = vsub.f32 %v11431_v58, %v11388_v48 }
 0x4fc   : > { %11426 = vst [vmem:[#allocation403_spill] sm:$0xff] %v8444_v49  ;;  %v8446_v44 = vpop.xlane.xlu1 %2708  ;;  %v2390_v49 = vand.u32 2147483647, %v2134_v6  ;;  %v2405_v6 = vand.u32 2147483647, %v2149_v1 }
 0x4fd   : > { %11427 = vst [vmem:[#allocation404_spill] sm:$0xff] %v8446_v44  ;;  %v2401_v44 = vand.u32 2147483647, %v2145_v62  ;;  %v2392_v31 = vand.u32 2147483647, %v2136_v40  ;;  %v11440_v40 = vld [vmem:[#allocation20_spill] sm:$0xff] }
 0x4fe   : > { %2870 = vadd.xlane.f32.xlu0 %v2399_v14  ;;  %v11434_v14 = vld [vmem:[#allocation234_spill] sm:$0xff] }
 0x4ff   : > { %2848 = vadd.xlane.f32.xlu1 %v2388_v3  ;;  %v8452_v51 = vpop.xlane.xlu0 %2734  ;;  %v2138_v3 = vsub.f32 %v11434_v14, %v11388_v48 }
 0x500   : > { %11429 = vst [vmem:[#allocation405_spill] sm:$0xff] %v8452_v51  ;;  %v8454_v63 = vpop.xlane.xlu1 %2712 }
 0x501   : > { %11430 = vst [vmem:[#allocation406_spill] sm:$0xff] %v8454_v63  ;;  %v2403_v63 = vand.u32 2147483647, %v2147_v46 }
 0x502   : > { %2874 = vadd.xlane.f32.xlu0 %v2401_v44  ;;  %v2151_v44 = vsub.f32 %v7744_v23, %v11388_v48 }
 0x503   : > { %2852 = vadd.xlane.f32.xlu1 %v2390_v49  ;;  %v8460_v53 = vpop.xlane.xlu0 %2738  ;;  %v2140_v49 = vsub.f32 %v7656_v20, %v11388_v48 }
 0x504   : > { %11432 = vst [vmem:[#allocation232_spill] sm:$0xff] %v8460_v53  ;;  %v8462_v41 = vpop.xlane.xlu1 %2716  ;;  %v2407_v36 = vand.u32 2147483647, %v2151_v44 }
 0x505   : > { %11433 = vst [vmem:[#allocation407_spill] sm:$0xff] %v8462_v41  ;;  %v2394_v41 = vand.u32 2147483647, %v2138_v3  ;;  %v2155_v3 = vsub.f32 %v7764_v18, %v11440_v40 }
 0x506   : > { %2878 = vadd.xlane.f32.xlu0 %v2403_v63 }
 0x507   : > { %2856 = vadd.xlane.f32.xlu1 %v2392_v31  ;;  %v8468_v51 = vpop.xlane.xlu0 %2742  ;;  %v11439_v31 = vld [vmem:[#allocation237_spill] sm:$0xff] }
 0x508   : > { %11435 = vst [vmem:[#allocation234_spill] sm:$0xff] %v8468_v51  ;;  %v8470_v62 = vpop.xlane.xlu1 %2720  ;;  %v2142_v63 = vsub.f32 %v11439_v31, %v11388_v48  ;;  %v2396_v51 = vand.u32 2147483647, %v2140_v49  ;;  %v2157_v49 = vsub.f32 %v7776_v33, %v11440_v40 }
 0x509   : > { %11436 = vst [vmem:[#allocation408_spill] sm:$0xff] %v8470_v62  ;;  %v2153_v62 = vsub.f32 %v7756_v28, %v11440_v40 }
 0x50a   : > { %2882 = vadd.xlane.f32.xlu0 %v2405_v6 }
 0x50b   : > { %2860 = vadd.xlane.f32.xlu1 %v2394_v41  ;;  %v8476_v57 = vpop.xlane.xlu0 %2746  ;;  %v2144_v41 = vsub.f32 %v7670_v56, %v11388_v48  ;;  %v2409_v6 = vand.u32 2147483647, %v2153_v62 }
 0x50c   : > { %11437 = vst [vmem:[#allocation409_spill] sm:$0xff] %v8476_v57  ;;  %v8478_v46 = vpop.xlane.xlu1 %2724 }
 0x50d   : > { %11438 = vst [vmem:[#allocation410_spill] sm:$0xff] %v8478_v46  ;;  %v2398_v46 = vand.u32 2147483647, %v2142_v63  ;;  %v2400_v23 = vand.u32 2147483647, %v2144_v41  ;;  %v2159_v63 = vsub.f32 %v7784_v19, %v11440_v40  ;;  %v11642_v19 = vld [vmem:[#allocation132_spill] sm:$0xff] }
 0x50e   : > { %2886 = vadd.xlane.f32.xlu0 %v2407_v36  ;;  %v11445_v36 = vld [vmem:[#allocation240_spill] sm:$0xff] }
 0x50f   : > { %2864 = vadd.xlane.f32.xlu1 %v2396_v51  ;;  %v8484_v53 = vpop.xlane.xlu0 %2750  ;;  %v2146_v51 = vsub.f32 %v11445_v36, %v11388_v48  ;;  %v2415_v41 = vand.u32 2147483647, %v2159_v63 }
 0x510   : > { %11441 = vst [vmem:[#allocation20_spill] sm:$0xff] %v8484_v53  ;;  %v8486_v1 = vpop.xlane.xlu1 %2728  ;;  %v2411_v53 = vand.u32 2147483647, %v2155_v3 }
 0x511   : > { %11442 = vst [vmem:[#allocation411_spill] sm:$0xff] %v8486_v1 }
 0x512   : > { %2890 = vadd.xlane.f32.xlu0 %v2409_v6  ;;  %v2413_v6 = vand.u32 2147483647, %v2157_v49 }
 0x513   : > { %2868 = vadd.xlane.f32.xlu1 %v2398_v46  ;;  %v8492_v57 = vpop.xlane.xlu0 %2754  ;;  %v2148_v46 = vsub.f32 %v7690_v24, %v11388_v48 }
 0x514   : > { %11443 = vst [vmem:[#allocation412_spill] sm:$0xff] %v8492_v57  ;;  %v8494_v44 = vpop.xlane.xlu1 %2732  ;;  %v2402_v57 = vand.u32 2147483647, %v2146_v51  ;;  %v2163_v51 = vsub.f32 %v7804_v10, %v11440_v40 }
 0x515   : > { %11444 = vst [vmem:[#allocation413_spill] sm:$0xff] %v8494_v44 }
 0x516   : > { %2894 = vadd.xlane.f32.xlu0 %v2411_v53  ;;  %v2161_v53 = vsub.f32 %v7796_v26, %v11440_v40 }
 0x517   : > { %2872 = vadd.xlane.f32.xlu1 %v2400_v23  ;;  %v8500_v1 = vpop.xlane.xlu0 %2758  ;;  %v2150_v23 = vsub.f32 %v7698_v59, %v11388_v48 }
 0x518   : > { %11446 = vst [vmem:[#allocation414_spill] sm:$0xff] %v8500_v1  ;;  %v8502_v62 = vpop.xlane.xlu1 %2736  ;;  %v2404_v1 = vand.u32 2147483647, %v2148_v46  ;;  %v2165_v46 = vsub.f32 %v7816_v0, %v11440_v40 }
 0x519   : > { %11447 = vst [vmem:[#allocation415_spill] sm:$0xff] %v8502_v62 }
 0x51a   : > { %2898 = vadd.xlane.f32.xlu0 %v2413_v6  ;;  %v2417_v6 = vand.u32 2147483647, %v2161_v53 }
 0x51b   : > { %2876 = vadd.xlane.f32.xlu1 %v2402_v57  ;;  %v8508_v36 = vpop.xlane.xlu0 %2762  ;;  %v2152_v57 = vsub.f32 %v7710_v27, %v11440_v40 }
 0x51c   : > { %11448 = vst [vmem:[#allocation416_spill] sm:$0xff] %v8508_v36  ;;  %v8510_v3 = vpop.xlane.xlu1 %2740  ;;  %v11641_v36 = vld [vmem:[#allocation119_spill] sm:$0xff] }
 0x51d   : > { %11449 = vst [vmem:[#allocation417_spill] sm:$0xff] %v8510_v3  ;;  %v2406_v3 = vand.u32 2147483647, %v2150_v23  ;;  %v2167_v23 = vsub.f32 %v7824_v35, %v11440_v40 }
 0x51e   : > { %2902 = vadd.xlane.f32.xlu0 %v2415_v41  ;;  %v2419_v41 = vand.u32 2147483647, %v2163_v51 }
 0x51f   : > { %2880 = vadd.xlane.f32.xlu1 %v2404_v1  ;;  %v8516_v24 = vpop.xlane.xlu0 %2766  ;;  %v2154_v1 = vsub.f32 %v7718_v55, %v11440_v40 }
 0x520   : > { %11450 = vst [vmem:[#allocation418_spill] sm:$0xff] %v8516_v24  ;;  %v8518_v49 = vpop.xlane.xlu1 %2744 }
 0x521   : > { %11451 = vst [vmem:[#allocation419_spill] sm:$0xff] %v8518_v49  ;;  %v2408_v49 = vand.u32 2147483647, %v2152_v57  ;;  %v2169_v57 = vsub.f32 %v7836_v37, %v11440_v40 }
 0x522   : > { %2906 = vadd.xlane.f32.xlu0 %v2417_v6  ;;  %v2421_v6 = vand.u32 2147483647, %v2165_v46 }
 0x523   : > { %2884 = vadd.xlane.f32.xlu1 %v2406_v3  ;;  %v8524_v48 = vpop.xlane.xlu0 %2770  ;;  %v2156_v3 = vsub.f32 %v7730_v34, %v11440_v40 }
 0x524   : > { %11452 = vst [vmem:[#allocation420_spill] sm:$0xff] %v8524_v48  ;;  %v8526_v63 = vpop.xlane.xlu1 %2748 }
 0x525   : > { %11453 = vst [vmem:[#allocation421_spill] sm:$0xff] %v8526_v63  ;;  %v2410_v63 = vand.u32 2147483647, %v2154_v1  ;;  %v2171_v1 = vsub.f32 %v7844_v11, %v11440_v40 }
 0x526   : > { %2910 = vadd.xlane.f32.xlu0 %v2419_v41  ;;  %v2423_v41 = vand.u32 2147483647, %v2167_v23 }
 0x527   : > { %2888 = vadd.xlane.f32.xlu1 %v2408_v49  ;;  %v8532_v59 = vpop.xlane.xlu0 %2774  ;;  %v2158_v49 = vsub.f32 %v7738_v42, %v11440_v40 }
 0x528   : > { %11454 = vst [vmem:[#allocation422_spill] sm:$0xff] %v8532_v59  ;;  %v8534_v53 = vpop.xlane.xlu1 %2752 }
 0x529   : > { %11455 = vst [vmem:[#allocation423_spill] sm:$0xff] %v8534_v53  ;;  %v2412_v53 = vand.u32 2147483647, %v2156_v3  ;;  %v2173_v3 = vsub.f32 %v7856_v52, %v11440_v40 }
 0x52a   : > { %2914 = vadd.xlane.f32.xlu0 %v2421_v6  ;;  %v2425_v6 = vand.u32 2147483647, %v2169_v57 }
 0x52b   : > { %2892 = vadd.xlane.f32.xlu1 %v2410_v63  ;;  %v8540_v48 = vpop.xlane.xlu0 %2778  ;;  %v2160_v63 = vsub.f32 %v7750_v43, %v11440_v40 }
 0x52c   : > { %11456 = vst [vmem:[#allocation424_spill] sm:$0xff] %v8540_v48  ;;  %v8542_v51 = vpop.xlane.xlu1 %2756 }
 0x52d   : > { %11457 = vst [vmem:[#allocation425_spill] sm:$0xff] %v8542_v51  ;;  %v2414_v51 = vand.u32 2147483647, %v2158_v49  ;;  %v2175_v49 = vsub.f32 %v7864_v2, %v11440_v40 }
 0x52e   : > { %2918 = vadd.xlane.f32.xlu0 %v2423_v41  ;;  %v2427_v41 = vand.u32 2147483647, %v2171_v1 }
 0x52f   : > { %2896 = vadd.xlane.f32.xlu1 %v2412_v53  ;;  %v8548_v59 = vpop.xlane.xlu0 %2782  ;;  %v2162_v53 = vsub.f32 %v7758_v16, %v11440_v40 }
 0x530   : > { %11458 = vst [vmem:[#allocation426_spill] sm:$0xff] %v8548_v59  ;;  %v8550_v46 = vpop.xlane.xlu1 %2760  ;;  %v2416_v59 = vand.u32 2147483647, %v2160_v63  ;;  %v2177_v63 = vsub.f32 %v7878_v29, %v11440_v40 }
 0x531   : > { %11459 = vst [vmem:[#allocation427_spill] sm:$0xff] %v8550_v46 }
 0x532   : > { %2922 = vadd.xlane.f32.xlu0 %v2425_v6  ;;  %v2429_v6 = vand.u32 2147483647, %v2173_v3 }
 0x533   : > { %2900 = vadd.xlane.f32.xlu1 %v2414_v51  ;;  %v8556_v48 = vpop.xlane.xlu0 %2786  ;;  %v2164_v51 = vsub.f32 %v7770_v45, %v11440_v40 }
 0x534   : > { %11460 = vst [vmem:[#allocation428_spill] sm:$0xff] %v8556_v48  ;;  %v8558_v23 = vpop.xlane.xlu1 %2764  ;;  %v2418_v48 = vand.u32 2147483647, %v2162_v53  ;;  %v2179_v53 = vsub.f32 %v7886_v4, %v11440_v40 }
 0x535   : > { %11461 = vst [vmem:[#allocation429_spill] sm:$0xff] %v8558_v23 }
 0x536   : > { %2926 = vadd.xlane.f32.xlu0 %v2427_v41  ;;  %v2431_v41 = vand.u32 2147483647, %v2175_v49 }
 0x537   : > { %2904 = vadd.xlane.f32.xlu1 %v2416_v59  ;;  %v8564_v35 = vpop.xlane.xlu0 %2790  ;;  %v2166_v59 = vsub.f32 %v7778_v21, %v11440_v40 }
 0x538   : > { %11462 = vst [vmem:[#allocation430_spill] sm:$0xff] %v8564_v35  ;;  %v8566_v57 = vpop.xlane.xlu1 %2768  ;;  %v2420_v35 = vand.u32 2147483647, %v2164_v51  ;;  %v2181_v51 = vsub.f32 %v7900_v60, %v11440_v40 }
 0x539   : > { %11463 = vst [vmem:[#allocation431_spill] sm:$0xff] %v8566_v57 }
 0x53a   : > { %2930 = vadd.xlane.f32.xlu0 %v2429_v6  ;;  %v2433_v6 = vand.u32 2147483647, %v2177_v63 }
 0x53b   : > { %2908 = vadd.xlane.f32.xlu1 %v2418_v48  ;;  %v8572_v0 = vpop.xlane.xlu0 %2794  ;;  %v2168_v48 = vsub.f32 %v7790_v25, %v11440_v40 }
 0x53c   : > { %11464 = vst [vmem:[#allocation432_spill] sm:$0xff] %v8572_v0  ;;  %v8574_v1 = vpop.xlane.xlu1 %2772 }
 0x53d   : > { %11465 = vst [vmem:[#allocation433_spill] sm:$0xff] %v8574_v1  ;;  %v2422_v1 = vand.u32 2147483647, %v2166_v59  ;;  %v11472_v59 = vld [vmem:[#allocation279_spill] sm:$0xff] }
 0x53e   : > { %2934 = vadd.xlane.f32.xlu0 %v2431_v41  ;;  %v2435_v41 = vand.u32 2147483647, %v2179_v53 }
 0x53f   : > { %2912 = vadd.xlane.f32.xlu1 %v2420_v35  ;;  %v8580_v45 = vpop.xlane.xlu0 %2798  ;;  %v2170_v35 = vsub.f32 %v7798_v8, %v11440_v40 }
 0x540   : > { %11466 = vst [vmem:[#allocation434_spill] sm:$0xff] %v8580_v45  ;;  %v8582_v3 = vpop.xlane.xlu1 %2776  ;;  %v11632_v45 = vlaneseq }
 0x541   : > { %11467 = vst [vmem:[#allocation435_spill] sm:$0xff] %v8582_v3  ;;  %v2424_v3 = vand.u32 2147483647, %v2168_v48  ;;  %v11475_v48 = vld [vmem:[#allocation19_spill] sm:$0xff] }
 0x542   : > { %2938 = vadd.xlane.f32.xlu0 %v2433_v6  ;;  %v2183_v6 = vsub.f32 %v11472_v59, %v11440_v40 }
 0x543   : > { %2916 = vadd.xlane.f32.xlu1 %v2422_v1  ;;  %v8588_v21 = vpop.xlane.xlu0 %2802  ;;  %v2172_v1 = vsub.f32 %v7810_v32, %v11440_v40 }
 0x544   : > { %11468 = vst [vmem:[#allocation436_spill] sm:$0xff] %v8588_v21  ;;  %v8590_v49 = vpop.xlane.xlu1 %2780  ;;  %v2426_v21 = vand.u32 2147483647, %v2170_v35  ;;  %v2439_v60 = vand.u32 2147483647, %v2183_v6  ;;  %v11481_v35 = vld [vmem:[#allocation265_spill] sm:$0xff] }
 0x545   : > { %11469 = vst [vmem:[#allocation437_spill] sm:$0xff] %v8590_v49  ;;  %v2437_v49 = vand.u32 2147483647, %v2181_v51  ;;  %v2428_v4 = vand.u32 2147483647, %v2172_v1  ;;  %v11485_v1 = vld [vmem:[#allocation266_spill] sm:$0xff] }
 0x546   : > { %2942 = vadd.xlane.f32.xlu0 %v2435_v41 }
 0x547   : > { %2920 = vadd.xlane.f32.xlu1 %v2424_v3  ;;  %v8596_v10 = vpop.xlane.xlu0 %2806  ;;  %v11476_v3 = vld [vmem:[#allocation28_spill] sm:$0xff] }
 0x548   : > { %11470 = vst [vmem:[#allocation438_spill] sm:$0xff] %v8596_v10  ;;  %v8598_v63 = vpop.xlane.xlu1 %2784  ;;  %v3299_v41 = vsub.f32 %v11476_v3, %v11475_v48  ;;  %v11477_v10 = vld [vmem:[#allocation263_spill] sm:$0xff] }
 0x549   : > { %11471 = vst [vmem:[#allocation439_spill] sm:$0xff] %v8598_v63  ;;  %v2174_v63 = vsub.f32 %v11477_v10, %v11440_v40 }
 0x54a   : > { %2946 = vadd.xlane.f32.xlu0 %v2437_v49 }
 0x54b   : > { %2924 = vadd.xlane.f32.xlu1 %v2426_v21  ;;  %v8604_v57 = vpop.xlane.xlu0 %2810  ;;  %v11480_v21 = vld [vmem:[#allocation32_spill] sm:$0xff]  ;;  %v2430_v59 = vand.u32 2147483647, %v2174_v63 }
 0x54c   : > { %11473 = vst [vmem:[#allocation440_spill] sm:$0xff] %v8604_v57  ;;  %v8606_v53 = vpop.xlane.xlu1 %2788  ;;  %v3301_v49 = vsub.f32 %v11480_v21, %v11475_v48  ;;  %v3555_v57 = vand.u32 2147483647, %v3299_v41 }
 0x54d   : > { %11474 = vst [vmem:[#allocation441_spill] sm:$0xff] %v8606_v53  ;;  %v2176_v53 = vsub.f32 %v11481_v35, %v11440_v40 }
 0x54e   : > { %2950 = vadd.xlane.f32.xlu0 %v2439_v60  ;;  %v11484_v60 = vld [vmem:[#allocation36_spill] sm:$0xff]  ;;  %v3557_v24 = vand.u32 2147483647, %v3301_v49 }
 0x54f   : > { %2928 = vadd.xlane.f32.xlu1 %v2428_v4  ;;  %v8612_v26 = vpop.xlane.xlu0 %2814  ;;  %v3303_v4 = vsub.f32 %v11484_v60, %v11475_v48  ;;  %v2432_v16 = vand.u32 2147483647, %v2176_v53  ;;  %v11493_v53 = vld [vmem:[#allocation268_spill] sm:$0xff] }
 0x550   : > { %11478 = vst [vmem:[#allocation19_spill] sm:$0xff] %v8612_v26  ;;  %v8614_v51 = vpop.xlane.xlu1 %2792  ;;  %v2178_v26 = vsub.f32 %v11485_v1, %v11440_v40 }
 0x551   : > { %11479 = vst [vmem:[#allocation28_spill] sm:$0xff] %v8614_v51  ;;  %v3559_v35 = vand.u32 2147483647, %v3303_v4 }
 0x552   : > { %3812 = vadd.xlane.f32.xlu0 %v3555_v57  ;;  %v11488_v57 = vld [vmem:[#allocation40_spill] sm:$0xff]  ;;  %v2434_v23 = vand.u32 2147483647, %v2178_v26  ;;  %v11496_v26 = vld [vmem:[#allocation29_spill] sm:$0xff] }
 0x553   : > { %2932 = vadd.xlane.f32.xlu1 %v2430_v59  ;;  %v8620_v3 = vpop.xlane.xlu0 %2818  ;;  %v3305_v63 = vsub.f32 %v11488_v57, %v11475_v48  ;;  %v11489_v59 = vld [vmem:[#allocation14_spill] sm:$0xff] }
 0x554   : > { %11482 = vst [vmem:[#allocation32_spill] sm:$0xff] %v8620_v3  ;;  %v8622_v6 = vpop.xlane.xlu1 %2796  ;;  %v2180_v3 = vsub.f32 %v11489_v59, %v11440_v40 }
 0x555   : > { %11483 = vst [vmem:[#allocation442_spill] sm:$0xff] %v8622_v6  ;;  %v3561_v1 = vand.u32 2147483647, %v3305_v63  ;;  %v11639_v6 = vld [vmem:[#allocation282_spill] sm:$0xff] }
 0x556   : > { %3816 = vadd.xlane.f32.xlu0 %v3557_v24 }
 0x557   : > { %2936 = vadd.xlane.f32.xlu1 %v2432_v16  ;;  %v8628_v21 = vpop.xlane.xlu0 %2822  ;;  %v11492_v16 = vld [vmem:[#allocation42_spill] sm:$0xff] }
 0x558   : > { %11486 = vst [vmem:[#allocation36_spill] sm:$0xff] %v8628_v21  ;;  %v8630_v41 = vpop.xlane.xlu1 %2800  ;;  %v3307_v24 = vsub.f32 %v11492_v16, %v11475_v48  ;;  %v2182_v21 = vsub.f32 %v11493_v53, %v11440_v40 }
 0x559   : > { %11487 = vst [vmem:[#allocation443_spill] sm:$0xff] %v8630_v41  ;;  %v2436_v41 = vand.u32 2147483647, %v2180_v3  ;;  %v11500_v3 = vld [vmem:[#allocation30_spill] sm:$0xff] }
 0x55a   : > { %3820 = vadd.xlane.f32.xlu0 %v3559_v35  ;;  %v11497_v35 = vld [vmem:[#allocation44_spill] sm:$0xff] }
 0x55b   : > { %2940 = vadd.xlane.f32.xlu1 %v2434_v23  ;;  %v8636_v60 = vpop.xlane.xlu0 %2826  ;;  %v3298_v23 = vsub.f32 %v11496_v26, %v11475_v48  ;;  %v3309_v59 = vsub.f32 %v11497_v35, %v11475_v48 }
 0x55c   : > { %11490 = vst [vmem:[#allocation40_spill] sm:$0xff] %v8636_v60  ;;  %v8638_v49 = vpop.xlane.xlu1 %2804  ;;  %v2438_v60 = vand.u32 2147483647, %v2182_v21  ;;  %v11504_v21 = vld [vmem:[#allocation34_spill] sm:$0xff] }
 0x55d   : > { %11491 = vst [vmem:[#allocation444_spill] sm:$0xff] %v8638_v49  ;;  %v3563_v49 = vand.u32 2147483647, %v3307_v24  ;;  %v3554_v53 = vand.u32 2147483647, %v3298_v23  ;;  %v11509_v23 = vld [vmem:[#allocation98_spill] sm:$0xff] }
 0x55e   : > { %3824 = vadd.xlane.f32.xlu0 %v3561_v1  ;;  %v3300_v1 = vsub.f32 %v11500_v3, %v11475_v48 }
 0x55f   : > { %2944 = vadd.xlane.f32.xlu1 %v2436_v41  ;;  %v8644_v57 = vpop.xlane.xlu0 %2830  ;;  %v11501_v41 = vld [vmem:[#allocation46_spill] sm:$0xff] }
 0x560   : > { %11494 = vst [vmem:[#allocation42_spill] sm:$0xff] %v8644_v57  ;;  %v8646_v4 = vpop.xlane.xlu1 %2808  ;;  %v3311_v63 = vsub.f32 %v11501_v41, %v11475_v48  ;;  %v3315_v41 = vsub.f32 %v11509_v23, %v11475_v48 }
 0x561   : > { %11495 = vst [vmem:[#allocation445_spill] sm:$0xff] %v8646_v4  ;;  %v3565_v4 = vand.u32 2147483647, %v3309_v59 }
 0x562   : > { %3828 = vadd.xlane.f32.xlu0 %v3563_v49  ;;  %v11505_v49 = vld [vmem:[#allocation48_spill] sm:$0xff] }
 0x563   : > { %2948 = vadd.xlane.f32.xlu1 %v2438_v60  ;;  %v8652_v16 = vpop.xlane.xlu0 %2834  ;;  %v3302_v60 = vsub.f32 %v11504_v21, %v11475_v48  ;;  %v3313_v35 = vsub.f32 %v11505_v49, %v11475_v48 }
 0x564   : > { %11498 = vst [vmem:[#allocation29_spill] sm:$0xff] %v8652_v16  ;;  %v8654_v40 = vpop.xlane.xlu1 %2812  ;;  %v3556_v16 = vand.u32 2147483647, %v3300_v1  ;;  %v11513_v1 = vld [vmem:[#allocation100_spill] sm:$0xff] }
 0x565   : > { %11499 = vst [vmem:[#allocation44_spill] sm:$0xff] %v8654_v40  ;;  %v3567_v40 = vand.u32 2147483647, %v3311_v63  ;;  %v3317_v49 = vsub.f32 %v11513_v1, %v11475_v48 }
 0x566   : > { %3832 = vadd.xlane.f32.xlu0 %v3565_v4 }
 0x567   : > { %3810 = vadd.xlane.f32.xlu1 %v3554_v53  ;;  %v8660_v26 = vpop.xlane.xlu0 %2838  ;;  %v11508_v53 = vld [vmem:[#allocation38_spill] sm:$0xff] }
 0x568   : > { %11502 = vst [vmem:[#allocation30_spill] sm:$0xff] %v8660_v26  ;;  %v8662_v24 = vpop.xlane.xlu1 %2816  ;;  %v3304_v4 = vsub.f32 %v11508_v53, %v11475_v48  ;;  %v3558_v26 = vand.u32 2147483647, %v3302_v60  ;;  %v11517_v60 = vld [vmem:[#allocation102_spill] sm:$0xff] }
 0x569   : > { %11503 = vst [vmem:[#allocation46_spill] sm:$0xff] %v8662_v24  ;;  %v3569_v24 = vand.u32 2147483647, %v3313_v35  ;;  %v3319_v23 = vsub.f32 %v11517_v60, %v11475_v48 }
 0x56a   : > { %3836 = vadd.xlane.f32.xlu0 %v3567_v40 }
 0x56b   : > { %3814 = vadd.xlane.f32.xlu1 %v3556_v16  ;;  %v8668_v3 = vpop.xlane.xlu0 %2842  ;;  %v11512_v16 = vld [vmem:[#allocation31_spill] sm:$0xff] }
 0x56c   : > { %11506 = vst [vmem:[#allocation34_spill] sm:$0xff] %v8668_v3  ;;  %v8670_v59 = vpop.xlane.xlu1 %2820  ;;  %v3306_v40 = vsub.f32 %v11512_v16, %v11475_v48  ;;  %v3560_v3 = vand.u32 2147483647, %v3304_v4  ;;  %v11521_v4 = vld [vmem:[#allocation104_spill] sm:$0xff] }
 0x56d   : > { %11507 = vst [vmem:[#allocation48_spill] sm:$0xff] %v8670_v59  ;;  %v3571_v59 = vand.u32 2147483647, %v3315_v41  ;;  %v3321_v1 = vsub.f32 %v11521_v4, %v11475_v48 }
 0x56e   : > { %3840 = vadd.xlane.f32.xlu0 %v3569_v24  ;;  %v3562_v57 = vand.u32 2147483647, %v3306_v40  ;;  %v11525_v40 = vld [vmem:[#allocation106_spill] sm:$0xff] }
 0x56f   : > { %3818 = vadd.xlane.f32.xlu1 %v3558_v26  ;;  %v8676_v21 = vpop.xlane.xlu0 %2846  ;;  %v11516_v26 = vld [vmem:[#allocation33_spill] sm:$0xff]  ;;  %v3323_v60 = vsub.f32 %v11525_v40, %v11475_v48 }
 0x570   : > { %11510 = vst [vmem:[#allocation38_spill] sm:$0xff] %v8676_v21  ;;  %v8678_v63 = vpop.xlane.xlu1 %2824  ;;  %v3308_v24 = vsub.f32 %v11516_v26, %v11475_v48  ;;  %v3573_v21 = vand.u32 2147483647, %v3317_v49 }
 0x571   : > { %11511 = vst [vmem:[#allocation98_spill] sm:$0xff] %v8678_v63 }
 0x572   : > { %3844 = vadd.xlane.f32.xlu0 %v3571_v59 }
 0x573   : > { %3822 = vadd.xlane.f32.xlu1 %v3560_v3  ;;  %v8684_v53 = vpop.xlane.xlu0 %2850  ;;  %v11520_v3 = vld [vmem:[#allocation35_spill] sm:$0xff] }
 0x574   : > { %11514 = vst [vmem:[#allocation31_spill] sm:$0xff] %v8684_v53  ;;  %v8686_v35 = vpop.xlane.xlu1 %2828  ;;  %v3310_v59 = vsub.f32 %v11520_v3, %v11475_v48  ;;  %v3575_v53 = vand.u32 2147483647, %v3319_v23 }
 0x575   : > { %11515 = vst [vmem:[#allocation100_spill] sm:$0xff] %v8686_v35  ;;  %v3564_v35 = vand.u32 2147483647, %v3308_v24  ;;  %v11529_v24 = vld [vmem:[#allocation108_spill] sm:$0xff] }
 0x576   : > { %3848 = vadd.xlane.f32.xlu0 %v3573_v21  ;;  %v3325_v4 = vsub.f32 %v11529_v24, %v11475_v48 }
 0x577   : > { %3826 = vadd.xlane.f32.xlu1 %v3562_v57  ;;  %v8692_v16 = vpop.xlane.xlu0 %2854  ;;  %v11524_v57 = vld [vmem:[#allocation37_spill] sm:$0xff] }
 0x578   : > { %11518 = vst [vmem:[#allocation33_spill] sm:$0xff] %v8692_v16  ;;  %v8694_v41 = vpop.xlane.xlu1 %2832  ;;  %v3312_v21 = vsub.f32 %v11524_v57, %v11475_v48  ;;  %v3577_v16 = vand.u32 2147483647, %v3321_v1 }
 0x579   : > { %11519 = vst [vmem:[#allocation102_spill] sm:$0xff] %v8694_v41  ;;  %v3566_v41 = vand.u32 2147483647, %v3310_v59  ;;  %v11533_v59 = vld [vmem:[#allocation110_spill] sm:$0xff] }
 0x57a   : > { %3852 = vadd.xlane.f32.xlu0 %v3575_v53  ;;  %v11528_v53 = vld [vmem:[#allocation87_spill] sm:$0xff]  ;;  %v3568_v63 = vand.u32 2147483647, %v3312_v21  ;;  %v3327_v40 = vsub.f32 %v11533_v59, %v11475_v48  ;;  %v11537_v21 = vld [vmem:[#allocation112_spill] sm:$0xff]  ;;  %v11542_v59 = vld [vmem:[#allocation93_spill] sm:$0xff] }
 0x57b   : > { %3830 = vadd.xlane.f32.xlu1 %v3564_v35  ;;  %v8700_v26 = vpop.xlane.xlu0 %2858  ;;  %v3314_v35 = vsub.f32 %v11528_v53, %v11475_v48  ;;  %v3329_v24 = vsub.f32 %v11537_v21, %v11475_v48 }
 0x57c   : > { %11522 = vst [vmem:[#allocation35_spill] sm:$0xff] %v8700_v26  ;;  %v8702_v49 = vpop.xlane.xlu1 %2836 }
 0x57d   : > { %11523 = vst [vmem:[#allocation104_spill] sm:$0xff] %v8702_v49  ;;  %v3579_v49 = vand.u32 2147483647, %v3323_v60 }
 0x57e   : > { %3856 = vadd.xlane.f32.xlu0 %v3577_v16  ;;  %v11532_v16 = vld [vmem:[#allocation89_spill] sm:$0xff] }
 0x57f   : > { %3834 = vadd.xlane.f32.xlu1 %v3566_v41  ;;  %v8708_v3 = vpop.xlane.xlu0 %2862  ;;  %v3316_v41 = vsub.f32 %v11532_v16, %v11475_v48 }
 0x580   : > { %11526 = vst [vmem:[#allocation37_spill] sm:$0xff] %v8708_v3  ;;  %v8710_v23 = vpop.xlane.xlu1 %2840  ;;  %v3570_v3 = vand.u32 2147483647, %v3314_v35 }
 0x581   : > { %11527 = vst [vmem:[#allocation106_spill] sm:$0xff] %v8710_v23  ;;  %v3581_v23 = vand.u32 2147483647, %v3325_v4 }
 0x582   : > { %3860 = vadd.xlane.f32.xlu0 %v3579_v49 }
 0x583   : > { %3838 = vadd.xlane.f32.xlu1 %v3568_v63  ;;  %v8716_v57 = vpop.xlane.xlu0 %2866  ;;  %v11536_v63 = vld [vmem:[#allocation91_spill] sm:$0xff] }
 0x584   : > { %11530 = vst [vmem:[#allocation87_spill] sm:$0xff] %v8716_v57  ;;  %v8718_v1 = vpop.xlane.xlu1 %2844  ;;  %v3318_v49 = vsub.f32 %v11536_v63, %v11475_v48  ;;  %v3572_v57 = vand.u32 2147483647, %v3316_v41  ;;  %v11546_v41 = vld [vmem:[#allocation95_spill] sm:$0xff] }
 0x585   : > { %11531 = vst [vmem:[#allocation108_spill] sm:$0xff] %v8718_v1  ;;  %v3583_v1 = vand.u32 2147483647, %v3327_v40  ;;  %v3322_v21 = vsub.f32 %v11546_v41, %v11475_v48 }
 0x586   : > { %3864 = vadd.xlane.f32.xlu0 %v3581_v23  ;;  %v11540_v23 = vld [vmem:[#allocation21_spill] sm:$0xff]  ;;  %v3574_v26 = vand.u32 2147483647, %v3318_v49 }
 0x587   : > { %3842 = vadd.xlane.f32.xlu1 %v3570_v3  ;;  %v8724_v53 = vpop.xlane.xlu0 %2870  ;;  %v11541_v3 = vld [vmem:[#allocation50_spill] sm:$0xff]  ;;  %v11550_v49 = vld [vmem:[#allocation97_spill] sm:$0xff] }
 0x588   : > { %11534 = vst [vmem:[#allocation89_spill] sm:$0xff] %v8724_v53  ;;  %v8726_v60 = vpop.xlane.xlu1 %2848  ;;  %v3331_v35 = vsub.f32 %v11541_v3, %v11540_v23  ;;  %v3585_v53 = vand.u32 2147483647, %v3329_v24 }
 0x589   : > { %11535 = vst [vmem:[#allocation110_spill] sm:$0xff] %v8726_v60  ;;  %v3320_v60 = vsub.f32 %v11542_v59, %v11475_v48  ;;  %v3324_v59 = vsub.f32 %v11550_v49, %v11475_v48 }
 0x58a   : > { %3868 = vadd.xlane.f32.xlu0 %v3583_v1 }
 0x58b   : > { %3846 = vadd.xlane.f32.xlu1 %v3572_v57  ;;  %v8732_v16 = vpop.xlane.xlu0 %2874  ;;  %v11545_v57 = vld [vmem:[#allocation52_spill] sm:$0xff] }
 0x58c   : > { %11538 = vst [vmem:[#allocation91_spill] sm:$0xff] %v8732_v16  ;;  %v8734_v4 = vpop.xlane.xlu1 %2852  ;;  %v3333_v1 = vsub.f32 %v11545_v57, %v11540_v23  ;;  %v3576_v16 = vand.u32 2147483647, %v3320_v60  ;;  %v11553_v60 = vld [vmem:[#allocation56_spill] sm:$0xff] }
 0x58d   : > { %11539 = vst [vmem:[#allocation112_spill] sm:$0xff] %v8734_v4  ;;  %v3587_v4 = vand.u32 2147483647, %v3331_v35 }
 0x58e   : > { %3872 = vadd.xlane.f32.xlu0 %v3585_v53 }
 0x58f   : > { %3850 = vadd.xlane.f32.xlu1 %v3574_v26  ;;  %v8740_v63 = vpop.xlane.xlu0 %2878  ;;  %v11549_v26 = vld [vmem:[#allocation54_spill] sm:$0xff] }
 0x590   : > { %11543 = vst [vmem:[#allocation21_spill] sm:$0xff] %v8740_v63  ;;  %v8742_v40 = vpop.xlane.xlu1 %2856  ;;  %v3335_v53 = vsub.f32 %v11549_v26, %v11540_v23  ;;  %v3589_v63 = vand.u32 2147483647, %v3333_v1 }
 0x591   : > { %11544 = vst [vmem:[#allocation50_spill] sm:$0xff] %v8742_v40  ;;  %v3578_v40 = vand.u32 2147483647, %v3322_v21  ;;  %v11558_v21 = vld [vmem:[#allocation101_spill] sm:$0xff] }
 0x592   : > { %3876 = vadd.xlane.f32.xlu0 %v3587_v4  ;;  %v11554_v4 = vld [vmem:[#allocation99_spill] sm:$0xff]  ;;  %v3328_v49 = vsub.f32 %v11558_v21, %v11475_v48 }
 0x593   : > { %3854 = vadd.xlane.f32.xlu1 %v3576_v16  ;;  %v8748_v3 = vpop.xlane.xlu0 %2882  ;;  %v3337_v16 = vsub.f32 %v11553_v60, %v11540_v23  ;;  %v3326_v41 = vsub.f32 %v11554_v4, %v11475_v48 }
 0x594   : > { %11547 = vst [vmem:[#allocation93_spill] sm:$0xff] %v8748_v3  ;;  %v8750_v24 = vpop.xlane.xlu1 %2860  ;;  %v3591_v3 = vand.u32 2147483647, %v3335_v53 }
 0x595   : > { %11548 = vst [vmem:[#allocation52_spill] sm:$0xff] %v8750_v24  ;;  %v3580_v24 = vand.u32 2147483647, %v3324_v59  ;;  %v11562_v59 = vld [vmem:[#allocation60_spill] sm:$0xff] }
 0x596   : > { %3880 = vadd.xlane.f32.xlu0 %v3589_v63  ;;  %v11557_v63 = vld [vmem:[#allocation58_spill] sm:$0xff]  ;;  %v3341_v4 = vsub.f32 %v11562_v59, %v11540_v23 }
 0x597   : > { %3858 = vadd.xlane.f32.xlu1 %v3578_v40  ;;  %v8756_v57 = vpop.xlane.xlu0 %2886  ;;  %v3339_v40 = vsub.f32 %v11557_v63, %v11540_v23 }
 0x598   : > { %11551 = vst [vmem:[#allocation95_spill] sm:$0xff] %v8756_v57  ;;  %v8758_v35 = vpop.xlane.xlu1 %2864  ;;  %v3593_v57 = vand.u32 2147483647, %v3337_v16  ;;  %v11566_v16 = vld [vmem:[#allocation62_spill] sm:$0xff]  ;;  %v3597_v21 = vand.u32 2147483647, %v3341_v4 }
 0x599   : > { %11552 = vst [vmem:[#allocation54_spill] sm:$0xff] %v8758_v35  ;;  %v3582_v35 = vand.u32 2147483647, %v3326_v41  ;;  %v3343_v41 = vsub.f32 %v11566_v16, %v11540_v23  ;;  %v11574_v16 = vld [vmem:[#allocation114_spill] sm:$0xff] }
 0x59a   : > { %3884 = vadd.xlane.f32.xlu0 %v3591_v3  ;;  %v11561_v3 = vld [vmem:[#allocation39_spill] sm:$0xff] }
 0x59b   : > { %3862 = vadd.xlane.f32.xlu1 %v3580_v24  ;;  %v8764_v26 = vpop.xlane.xlu0 %2890  ;;  %v3330_v24 = vsub.f32 %v11561_v3, %v11540_v23 }
 0x59c   : > { %11555 = vst [vmem:[#allocation97_spill] sm:$0xff] %v8764_v26  ;;  %v8766_v1 = vpop.xlane.xlu1 %2868  ;;  %v3584_v26 = vand.u32 2147483647, %v3328_v49  ;;  %v11570_v49 = vld [vmem:[#allocation64_spill] sm:$0xff] }
 0x59d   : > { %11556 = vst [vmem:[#allocation56_spill] sm:$0xff] %v8766_v1  ;;  %v3595_v1 = vand.u32 2147483647, %v3339_v40  ;;  %v3345_v59 = vsub.f32 %v11570_v49, %v11540_v23 }
 0x59e   : > { %3888 = vadd.xlane.f32.xlu0 %v3593_v57  ;;  %v11565_v57 = vld [vmem:[#allocation41_spill] sm:$0xff] }
 0x59f   : > { %3866 = vadd.xlane.f32.xlu1 %v3582_v35  ;;  %v8772_v60 = vpop.xlane.xlu0 %2894  ;;  %v3332_v35 = vsub.f32 %v11565_v57, %v11540_v23 }
 0x5a0   : > { %11559 = vst [vmem:[#allocation99_spill] sm:$0xff] %v8772_v60  ;;  %v8774_v53 = vpop.xlane.xlu1 %2872 }
 0x5a1   : > { %11560 = vst [vmem:[#allocation58_spill] sm:$0xff] %v8774_v53  ;;  %v3586_v53 = vand.u32 2147483647, %v3330_v24 }
 0x5a2   : > { %3892 = vadd.xlane.f32.xlu0 %v3595_v1 }
 0x5a3   : > { %3870 = vadd.xlane.f32.xlu1 %v3584_v26  ;;  %v8780_v63 = vpop.xlane.xlu0 %2898  ;;  %v11569_v26 = vld [vmem:[#allocation43_spill] sm:$0xff] }
 0x5a4   : > { %11563 = vst [vmem:[#allocation101_spill] sm:$0xff] %v8780_v63  ;;  %v8782_v48 = vpop.xlane.xlu1 %2876  ;;  %v3334_v1 = vsub.f32 %v11569_v26, %v11540_v23  ;;  %v3588_v63 = vand.u32 2147483647, %v3332_v35  ;;  %v11578_v35 = vld [vmem:[#allocation116_spill] sm:$0xff] }
 0x5a5   : > { %11564 = vst [vmem:[#allocation39_spill] sm:$0xff] %v8782_v48  ;;  %v3599_v48 = vand.u32 2147483647, %v3343_v41  ;;  %v3349_v49 = vsub.f32 %v11578_v35, %v11540_v23 }
 0x5a6   : > { %3896 = vadd.xlane.f32.xlu0 %v3597_v21  ;;  %v3347_v21 = vsub.f32 %v11574_v16, %v11540_v23 }
 0x5a7   : > { %3874 = vadd.xlane.f32.xlu1 %v3586_v53  ;;  %v8788_v3 = vpop.xlane.xlu0 %2902  ;;  %v11573_v53 = vld [vmem:[#allocation45_spill] sm:$0xff] }
 0x5a8   : > { %11567 = vst [vmem:[#allocation60_spill] sm:$0xff] %v8788_v3  ;;  %v8790_v40 = vpop.xlane.xlu1 %2880  ;;  %v3336_v24 = vsub.f32 %v11573_v53, %v11540_v23  ;;  %v3590_v3 = vand.u32 2147483647, %v3334_v1  ;;  %v11582_v1 = vld [vmem:[#allocation118_spill] sm:$0xff] }
 0x5a9   : > { %11568 = vst [vmem:[#allocation41_spill] sm:$0xff] %v8790_v40  ;;  %v3601_v40 = vand.u32 2147483647, %v3345_v59  ;;  %v3351_v16 = vsub.f32 %v11582_v1, %v11540_v23 }
 0x5aa   : > { %3900 = vadd.xlane.f32.xlu0 %v3599_v48 }
 0x5ab   : > { %3878 = vadd.xlane.f32.xlu1 %v3588_v63  ;;  %v8796_v57 = vpop.xlane.xlu0 %2906  ;;  %v11577_v63 = vld [vmem:[#allocation47_spill] sm:$0xff] }
 0x5ac   : > { %11571 = vst [vmem:[#allocation62_spill] sm:$0xff] %v8796_v57  ;;  %v8798_v4 = vpop.xlane.xlu1 %2884  ;;  %v3338_v48 = vsub.f32 %v11577_v63, %v11540_v23  ;;  %v3592_v57 = vand.u32 2147483647, %v3336_v24  ;;  %v11586_v24 = vld [vmem:[#allocation120_spill] sm:$0xff] }
 0x5ad   : > { %11572 = vst [vmem:[#allocation43_spill] sm:$0xff] %v8798_v4  ;;  %v3603_v4 = vand.u32 2147483647, %v3347_v21  ;;  %v3353_v35 = vsub.f32 %v11586_v24, %v11540_v23 }
 0x5ae   : > { %3904 = vadd.xlane.f32.xlu0 %v3601_v40  ;;  %v3594_v60 = vand.u32 2147483647, %v3338_v48  ;;  %v11590_v48 = vld [vmem:[#allocation122_spill] sm:$0xff] }
 0x5af   : > { %3882 = vadd.xlane.f32.xlu1 %v3590_v3  ;;  %v8804_v26 = vpop.xlane.xlu0 %2910  ;;  %v11581_v3 = vld [vmem:[#allocation49_spill] sm:$0xff]  ;;  %v3355_v1 = vsub.f32 %v11590_v48, %v11540_v23 }
 0x5b0   : > { %11575 = vst [vmem:[#allocation64_spill] sm:$0xff] %v8804_v26  ;;  %v8806_v41 = vpop.xlane.xlu1 %2888  ;;  %v3340_v40 = vsub.f32 %v11581_v3, %v11540_v23  ;;  %v3605_v26 = vand.u32 2147483647, %v3349_v49 }
 0x5b1   : > { %11576 = vst [vmem:[#allocation45_spill] sm:$0xff] %v8806_v41 }
 0x5b2   : > { %3908 = vadd.xlane.f32.xlu0 %v3603_v4 }
 0x5b3   : > { %3886 = vadd.xlane.f32.xlu1 %v3592_v57  ;;  %v8812_v53 = vpop.xlane.xlu0 %2914  ;;  %v11585_v57 = vld [vmem:[#allocation51_spill] sm:$0xff] }
 0x5b4   : > { %11579 = vst [vmem:[#allocation114_spill] sm:$0xff] %v8812_v53  ;;  %v8814_v59 = vpop.xlane.xlu1 %2892  ;;  %v3342_v4 = vsub.f32 %v11585_v57, %v11540_v23  ;;  %v3607_v53 = vand.u32 2147483647, %v3351_v16 }
 0x5b5   : > { %11580 = vst [vmem:[#allocation47_spill] sm:$0xff] %v8814_v59  ;;  %v3596_v59 = vand.u32 2147483647, %v3340_v40  ;;  %v11594_v40 = vld [vmem:[#allocation124_spill] sm:$0xff] }
 0x5b6   : > { %3912 = vadd.xlane.f32.xlu0 %v3605_v26  ;;  %v3357_v24 = vsub.f32 %v11594_v40, %v11540_v23 }
 0x5b7   : > { %3890 = vadd.xlane.f32.xlu1 %v3594_v60  ;;  %v8820_v63 = vpop.xlane.xlu0 %2918  ;;  %v11589_v60 = vld [vmem:[#allocation53_spill] sm:$0xff] }
 0x5b8   : > { %11583 = vst [vmem:[#allocation116_spill] sm:$0xff] %v8820_v63  ;;  %v8822_v21 = vpop.xlane.xlu1 %2896  ;;  %v3344_v26 = vsub.f32 %v11589_v60, %v11540_v23  ;;  %v3609_v63 = vand.u32 2147483647, %v3353_v35 }
 0x5b9   : > { %11584 = vst [vmem:[#allocation49_spill] sm:$0xff] %v8822_v21  ;;  %v3598_v21 = vand.u32 2147483647, %v3342_v4  ;;  %v11598_v4 = vld [vmem:[#allocation126_spill] sm:$0xff] }
 0x5ba   : > { %3916 = vadd.xlane.f32.xlu0 %v3607_v53  ;;  %v11593_v53 = vld [vmem:[#allocation103_spill] sm:$0xff]  ;;  %v3600_v41 = vand.u32 2147483647, %v3344_v26  ;;  %v3359_v48 = vsub.f32 %v11598_v4, %v11540_v23  ;;  %v11602_v26 = vld [vmem:[#allocation128_spill] sm:$0xff]  ;;  %v11607_v4 = vld [vmem:[#allocation109_spill] sm:$0xff] }
 0x5bb   : > { %3894 = vadd.xlane.f32.xlu1 %v3596_v59  ;;  %v8828_v3 = vpop.xlane.xlu0 %2922  ;;  %v3346_v59 = vsub.f32 %v11593_v53, %v11540_v23  ;;  %v3361_v40 = vsub.f32 %v11602_v26, %v11540_v23 }
 0x5bc   : > { %11587 = vst [vmem:[#allocation118_spill] sm:$0xff] %v8828_v3  ;;  %v8830_v49 = vpop.xlane.xlu1 %2900 }
 0x5bd   : > { %11588 = vst [vmem:[#allocation51_spill] sm:$0xff] %v8830_v49  ;;  %v3611_v49 = vand.u32 2147483647, %v3355_v1 }
 0x5be   : > { %3920 = vadd.xlane.f32.xlu0 %v3609_v63  ;;  %v11597_v63 = vld [vmem:[#allocation105_spill] sm:$0xff] }
 0x5bf   : > { %3898 = vadd.xlane.f32.xlu1 %v3598_v21  ;;  %v8836_v57 = vpop.xlane.xlu0 %2926  ;;  %v3348_v21 = vsub.f32 %v11597_v63, %v11540_v23 }
 0x5c0   : > { %11591 = vst [vmem:[#allocation120_spill] sm:$0xff] %v8836_v57  ;;  %v8838_v16 = vpop.xlane.xlu1 %2904  ;;  %v3602_v57 = vand.u32 2147483647, %v3346_v59 }
 0x5c1   : > { %11592 = vst [vmem:[#allocation53_spill] sm:$0xff] %v8838_v16  ;;  %v3613_v16 = vand.u32 2147483647, %v3357_v24 }
 0x5c2   : > { %3924 = vadd.xlane.f32.xlu0 %v3611_v49 }
 0x5c3   : > { %3902 = vadd.xlane.f32.xlu1 %v3600_v41  ;;  %v8844_v60 = vpop.xlane.xlu0 %2930  ;;  %v11601_v41 = vld [vmem:[#allocation107_spill] sm:$0xff] }
 0x5c4   : > { %11595 = vst [vmem:[#allocation122_spill] sm:$0xff] %v8844_v60  ;;  %v8846_v35 = vpop.xlane.xlu1 %2908  ;;  %v3350_v49 = vsub.f32 %v11601_v41, %v11540_v23  ;;  %v3604_v60 = vand.u32 2147483647, %v3348_v21  ;;  %v11611_v21 = vld [vmem:[#allocation111_spill] sm:$0xff] }
 0x5c5   : > { %11596 = vst [vmem:[#allocation103_spill] sm:$0xff] %v8846_v35  ;;  %v3615_v35 = vand.u32 2147483647, %v3359_v48  ;;  %v3354_v26 = vsub.f32 %v11611_v21, %v11540_v23 }
 0x5c6   : > { %3928 = vadd.xlane.f32.xlu0 %v3613_v16  ;;  %v11605_v16 = vld [vmem:[#allocation22_spill] sm:$0xff]  ;;  %v3606_v3 = vand.u32 2147483647, %v3350_v49  ;;  %v11615_v49 = vld [vmem:[#allocation113_spill] sm:$0xff] }
 0x5c7   : > { %3906 = vadd.xlane.f32.xlu1 %v3602_v57  ;;  %v8852_v53 = vpop.xlane.xlu0 %2934  ;;  %v11606_v57 = vld [vmem:[#allocation66_spill] sm:$0xff] }
 0x5c8   : > { %11599 = vst [vmem:[#allocation124_spill] sm:$0xff] %v8852_v53  ;;  %v8854_v1 = vpop.xlane.xlu1 %2912  ;;  %v3363_v59 = vsub.f32 %v11606_v57, %v11605_v16  ;;  %v3617_v53 = vand.u32 2147483647, %v3361_v40 }
 0x5c9   : > { %11600 = vst [vmem:[#allocation105_spill] sm:$0xff] %v8854_v1  ;;  %v3352_v1 = vsub.f32 %v11607_v4, %v11540_v23  ;;  %v3356_v4 = vsub.f32 %v11615_v49, %v11540_v23 }
 0x5ca   : > { %3932 = vadd.xlane.f32.xlu0 %v3615_v35 }
 0x5cb   : > { %3910 = vadd.xlane.f32.xlu1 %v3604_v60  ;;  %v8860_v63 = vpop.xlane.xlu0 %2938  ;;  %v11610_v60 = vld [vmem:[#allocation68_spill] sm:$0xff] }
 0x5cc   : > { %11603 = vst [vmem:[#allocation126_spill] sm:$0xff] %v8860_v63  ;;  %v8862_v24 = vpop.xlane.xlu1 %2916  ;;  %v3365_v35 = vsub.f32 %v11610_v60, %v11605_v16  ;;  %v3608_v63 = vand.u32 2147483647, %v3352_v1  ;;  %v11618_v1 = vld [vmem:[#allocation72_spill] sm:$0xff] }
 0x5cd   : > { %11604 = vst [vmem:[#allocation107_spill] sm:$0xff] %v8862_v24  ;;  %v3619_v24 = vand.u32 2147483647, %v3363_v59 }
 0x5ce   : > { %3936 = vadd.xlane.f32.xlu0 %v3617_v53 }
 0x5cf   : > { %3914 = vadd.xlane.f32.xlu1 %v3606_v3  ;;  %v8868_v41 = vpop.xlane.xlu0 %2942  ;;  %v11614_v3 = vld [vmem:[#allocation70_spill] sm:$0xff] }
 0x5d0   : > { %11608 = vst [vmem:[#allocation128_spill] sm:$0xff] %v8868_v41  ;;  %v8870_v48 = vpop.xlane.xlu1 %2920  ;;  %v3367_v53 = vsub.f32 %v11614_v3, %v11605_v16  ;;  %v3621_v41 = vand.u32 2147483647, %v3365_v35  ;;  %v11622_v35 = vld [vmem:[#allocation117_spill] sm:$0xff] }
 0x5d1   : > { %11609 = vst [vmem:[#allocation22_spill] sm:$0xff] %v8870_v48  ;;  %v3610_v48 = vand.u32 2147483647, %v3354_v26  ;;  %v3360_v26 = vsub.f32 %v11622_v35, %v11540_v23 }
 0x5d2   : > { %3940 = vadd.xlane.f32.xlu0 %v3619_v24  ;;  %v11619_v24 = vld [vmem:[#allocation115_spill] sm:$0xff] }
 0x5d3   : > { %3918 = vadd.xlane.f32.xlu1 %v3608_v63  ;;  %v8876_v57 = vpop.xlane.xlu0 %2946  ;;  %v3369_v63 = vsub.f32 %v11618_v1, %v11605_v16  ;;  %v3358_v21 = vsub.f32 %v11619_v24, %v11540_v23 }
 0x5d4   : > { %11612 = vst [vmem:[#allocation66_spill] sm:$0xff] %v8876_v57  ;;  %v8878_v40 = vpop.xlane.xlu1 %2924  ;;  %v3623_v57 = vand.u32 2147483647, %v3367_v53  ;;  %v11624_v53 = vld [vmem:[#allocation55_spill] sm:$0xff] }
 0x5d5   : > { %11613 = vst [vmem:[#allocation109_spill] sm:$0xff] %v8878_v40  ;;  %v3612_v40 = vand.u32 2147483647, %v3356_v4 }
 0x5d6   : > { %3944 = vadd.xlane.f32.xlu0 %v3621_v41  ;;  %v11621_v41 = vld [vmem:[#allocation74_spill] sm:$0xff] }
 0x5d7   : > { %3922 = vadd.xlane.f32.xlu1 %v3610_v48  ;;  %v8884_v60 = vpop.xlane.xlu0 %2950  ;;  %v3371_v48 = vsub.f32 %v11621_v41, %v11605_v16  ;;  %v11626_v41 = vld [vmem:[#allocation57_spill] sm:$0xff] }
 0x5d8   : > { %11616 = vst [vmem:[#allocation68_spill] sm:$0xff] %v8884_v60  ;;  %v8886_v59 = vpop.xlane.xlu1 %2928  ;;  %v3625_v60 = vand.u32 2147483647, %v3369_v63  ;;  %v3364_v23 = vsub.f32 %v11626_v41, %v11605_v16 }
 0x5d9   : > { %11617 = vst [vmem:[#allocation111_spill] sm:$0xff] %v8886_v59  ;;  %v3614_v59 = vand.u32 2147483647, %v3358_v21  ;;  %v3627_v24 = vand.u32 2147483647, %v3371_v48 }
 0x5da   : > { %3948 = vadd.xlane.f32.xlu0 %v3623_v57  ;;  %v3362_v57 = vsub.f32 %v11624_v53, %v11605_v16 }
 0x5db   : > { %3926 = vadd.xlane.f32.xlu1 %v3612_v40  ;;  %v3813_v3 = vpop.xlane.xlu0 %3812  ;;  %v11625_v40 = vld [vmem:[#allocation76_spill] sm:$0xff] }
 0x5dc   : > { %v8892_v49 = vpop.xlane.xlu1 %2932  ;;  %v3373_v4 = vsub.f32 %v11625_v40, %v11605_v16  ;;  %v4323_v46 = vadd.f32 %v3813_v3, %v11639_v6 }
 0x5dd   : > { %11620 = vst [vmem:[#allocation70_spill] sm:$0xff] %v8892_v49  ;;  %v3616_v49 = vand.u32 2147483647, %v3360_v26  ;;  %v3620_v26 = vand.u32 2147483647, %v3364_v23  ;;  %v11636_v23 = vld [vmem:[#allocation67_spill] sm:$0xff] }
 0x5de   : > { %3952 = vadd.xlane.f32.xlu0 %v3625_v60  ;;  %v3629_v35 = vand.u32 2147483647, %v3373_v4  ;;  %v11633_v4 = vld [vmem:[#allocation61_spill] sm:$0xff] }
 0x5df   : > { %3930 = vadd.xlane.f32.xlu1 %v3614_v59  ;;  %v3817_v1 = vpop.xlane.xlu0 %3816  ;;  %v11628_v59 = vld [vmem:[#allocation78_spill] sm:$0xff] }
 0x5e0   : > { %v8898_v29 = vpop.xlane.xlu1 %2936  ;;  %v3375_v21 = vsub.f32 %v11628_v59, %v11605_v16 }
 0x5e1   : > { %11623 = vst [vmem:[#allocation113_spill] sm:$0xff] %v8898_v29  ;;  %v3618_v29 = vand.u32 2147483647, %v3362_v57  ;;  %v3368_v57 = vsub.f32 %v11633_v4, %v11605_v16 }
 0x5e2   : > { %3956 = vadd.xlane.f32.xlu0 %v3627_v24  ;;  %v11631_v24 = vld [vmem:[#allocation80_spill] sm:$0xff]  ;;  %v3631_v51 = vand.u32 2147483647, %v3375_v21 }
 0x5e3   : > { %3934 = vadd.xlane.f32.xlu1 %v3616_v49  ;;  %v8906_v63 = vpop.xlane.xlu0 %3820  ;;  %v11630_v49 = vld [vmem:[#allocation59_spill] sm:$0xff]  ;;  %v3377_v41 = vsub.f32 %v11631_v24, %v11605_v16  ;;  %v11637_v24 = vld [vmem:[#allocation130_spill] sm:$0xff] }
 0x5e4   : > { %v8908_v60 = vpop.xlane.xlu1 %2940  ;;  %v3366_v40 = vsub.f32 %v11630_v49, %v11605_v16  ;;  %v3374_v49 = vsub.f32 %v11636_v23, %v11605_v16  ;;  %v3379_v62 = vsub.f32 %v11637_v24, %v11605_v16  ;;  %v3378_v23 = vsub.f32 %v11641_v36, %v11605_v16 }
 0x5e5   : > { %11627 = vst [vmem:[#allocation72_spill] sm:$0xff] %v8908_v60  ;;  %v8921_v60 = vand.u32 127, %v11632_v45  ;;  %v3381_v24 = vsub.f32 %v11642_v19, %v11605_v16  ;;  %v11644_v19 = vld [vmem:[#allocation270_spill] sm:$0xff] }
 0x5e6   : > { %3960 = vadd.xlane.f32.xlu0 %v3629_v35  ;;  %v11635_v35 = vld [vmem:[#allocation65_spill] sm:$0xff]  ;;  %v3622_v0 = vand.u32 2147483647, %v3366_v40  ;;  %v3635_v6 = vand.u32 2147483647, %v3379_v62 }
 0x5e7   : > { %3938 = vadd.xlane.f32.xlu1 %v3618_v29  ;;  %v8912_v53 = vpop.xlane.xlu0 %3824  ;;  %v11634_v29 = vld [vmem:[#allocation63_spill] sm:$0xff]  ;;  %v5098_v4 = vadd.s32 4294967288, %v8921_v60  ;;  %v5105_v3 = vadd.s32 4294967280, %v8921_v60  ;;  %v8948_v40 = vand.u32 2147483647, %v3374_v49  ;;  %v11646_v62 = vld [vmem:[#allocation273_spill] sm:$0xff] }
 0x5e8   : > { %v8914_v48 = vpop.xlane.xlu1 %2944  ;;  %v3370_v59 = vsub.f32 %v11634_v29, %v11605_v16  ;;  %v3633_v29 = vand.u32 2147483647, %v3377_v41  ;;  %v11643_v41 = vld [vmem:[#allocation11_spill] sm:$0xff]  ;;  %v4325_v10 = vadd.f32 %v3817_v1, %v11646_v62  ;;  %v11647_v49 = vld [vmem:[#allocation24_spill] sm:$0xff]  ;;  %v8966_v33 = vand.u32 2147483647, %v3378_v23 }
 0x5e9   : > { %11629 = vst [vmem:[#allocation115_spill] sm:$0xff] %v8914_v48  ;;  %v3372_v48 = vsub.f32 %v11635_v35, %v11605_v16  ;;  %v11640_v35 = vld [vmem:[#allocation69_spill] sm:$0xff]  ;;  %v8955_v36 = vsub.s32 %v8921_v60, %v11643_v41  ;;  %v8974_v1 = vsub.s32 %v5105_v3, %v11643_v41  ;;  %v5119_v23 = vadd.s32 4294967264, %v8921_v60  ;;  %v11652_v3 = vld [vmem:[#allocation123_spill] sm:$0xff] }
 0x5ea   : > { %3964 = vadd.xlane.f32.xlu0 %v3631_v51  ;;  %v3376_v51 = vsub.f32 %v11640_v35, %v11605_v16  ;;  %v3626_v43 = vand.u32 2147483647, %v3370_v59  ;;  %v4579_v35 = vmul.f32 0.0625, %v4323_v46  ;;  %v3637_v46 = vand.u32 2147483647, %v3381_v24 }
 0x5eb   : > { %3942 = vadd.xlane.f32.xlu1 %v3620_v26  ;;  %v8933_v45 = vpop.xlane.xlu0 %3828  ;;  %v3624_v26 = vand.u32 2147483647, %v3368_v57  ;;  %v8951_v57 = vsub.s32 %v5098_v4, %v11643_v41  ;;  %v11651_v4 = vld [vmem:[#allocation275_spill] sm:$0xff] }
 0x5ec   : > { %v8935_v21 = vpop.xlane.xlu1 %2948  ;;  %v8962_v2 = vand.u32 2147483647, %v3376_v51  ;;  %v4327_v54 = vadd.f32 %v8906_v63, %v11651_v4 }
 0x5ed   : > { %11638 = vst [vmem:[#allocation74_spill] sm:$0xff] %v8935_v21  ;;  %v3628_v21 = vand.u32 2147483647, %v3372_v48  ;;  %v11645_v48 = vld [vmem:[#allocation121_spill] sm:$0xff]  ;;  %v5102_v62 = vrot.slane %v4579_v35, %v8951_v57  ;;  %v11653_v35 = vld [vmem:[#allocation136_spill] sm:$0xff] }
 0x5ee   : > { %3968 = vadd.xlane.f32.xlu0 %v3633_v29  ;;  %v3380_v59 = vsub.f32 %v11645_v48, %v11605_v16  ;;  %v5112_v29 = vadd.s32 4294967272, %v8921_v60  ;;  %v5126_v48 = vadd.s32 4294967256, %v8921_v60  ;;  %v3385_v52 = vsub.f32 %v11653_v35, %v11605_v16  ;;  %v11654_v35 = vld [vmem:[#allocation284_spill] sm:$0xff] }
 0x5ef   : > { %3946 = vadd.xlane.f32.xlu1 %v3622_v0  ;;  %v8945_v44 = vpop.xlane.xlu0 %3832 }
 0x5f0   : > { %v3811_v30 = vpop.xlane.xlu1 %3810  ;;  %v8985_v12 = vand.u32 2147483647, %v3380_v59 }
 0x5f1   : > { %v4322_v0 = vadd.f32 %v3811_v30, %v11644_v19  ;;  %v11649_v30 = vld [vmem:[#allocation134_spill] sm:$0xff] }
 0x5f2   : > { %3972 = vadd.xlane.f32.xlu0 %v3635_v6  ;;  %v3383_v19 = vsub.f32 %v11649_v30, %v11605_v16  ;;  %v4581_v30 = vmul.f32 0.0625, %v4325_v10 }
 0x5f3   : > { %v4578_v56 = vmul.f32 0.0625, %v4322_v0  ;;  %3950 = vadd.xlane.f32.xlu1 %v3624_v26  ;;  %v8971_v42 = vpop.xlane.xlu0 %3836  ;;  %v11650_v26 = vld [vmem:[#allocation271_spill] sm:$0xff]  ;;  %v8981_v0 = vsub.s32 %v5112_v29, %v11643_v41  ;;  %v8993_v29 = vsub.s32 %v5126_v48, %v11643_v41  ;;  %v5140_v48 = vadd.s32 4294967240, %v8921_v60 }
 0x5f4   : > { %v3815_v51 = vpop.xlane.xlu1 %3814  ;;  %v3639_v59 = vand.u32 2147483647, %v3383_v19  ;;  %v3387_v19 = vsub.f32 %v11656_v5, %v11605_v16  ;;  %v11657_v5 = vld [vmem:[#allocation286_spill] sm:$0xff] }
 0x5f5   : > { %v5097_v6 = vrot.slane %v4578_v56, %v8955_v36  ;;  %v4324_v24 = vadd.f32 %v3815_v51, %v11650_v26  ;;  %v8999_v26 = vsub.s32 %v5119_v23, %v11643_v41  ;;  %v3641_v23 = vand.u32 2147483647, %v3385_v52 }
 0x5f6   : > { %3976 = vadd.xlane.f32.xlu0 %v3637_v46  ;;  %v4583_v46 = vmul.f32 0.0625, %v4327_v54 }
 0x5f7   : > { %v5104_v56 = vsel %vm5103_vm1, %v5102_v62, %v5097_v6  ;;  %v4580_v51 = vmul.f32 0.0625, %v4324_v24  ;;  %3954 = vadd.xlane.f32.xlu1 %v3626_v43  ;;  %v8995_v10 = vpop.xlane.xlu0 %3840  ;;  %v5133_v62 = vadd.s32 4294967248, %v8921_v60  ;;  %v5116_v43 = vrot.slane %v4581_v30, %v8981_v0  ;;  %v11655_v6 = vld [vmem:[#allocation276_spill] sm:$0xff] }
 0x5f8   : > { %v3819_v63 = vpop.xlane.xlu1 %3818  ;;  %v4329_v24 = vadd.f32 %v8912_v53, %v11655_v6  ;;  %v5130_v52 = vrot.slane %v4583_v46, %v8993_v29 }
 0x5f9   : > { %v5109_v4 = vrot.slane %v4580_v51, %v8974_v1  ;;  %v4326_v34 = vadd.f32 %v3819_v63, %v11654_v35  ;;  %v5154_v63 = vadd.s32 4294967224, %v8921_v60  ;;  %v9016_v6 = vsub.s32 %v5133_v62, %v11643_v41 }
 0x5fa   : > { %3980 = vadd.xlane.f32.xlu0 %v3639_v59  ;;  %v4585_v59 = vmul.f32 0.0625, %v4329_v24 }
 0x5fb   : > { %v5111_v51 = vsel %vm5110_vm2, %v5109_v4, %v5104_v56  ;;  %v4582_v31 = vmul.f32 0.0625, %v4326_v34  ;;  %3958 = vadd.xlane.f32.xlu1 %v3628_v21  ;;  %v9012_v54 = vpop.xlane.xlu0 %3844  ;;  %v5147_v34 = vadd.s32 4294967232, %v8921_v60  ;;  %v9022_v21 = vsub.s32 %v5140_v48, %v11643_v41  ;;  %v11658_v4 = vld [vmem:[#allocation278_spill] sm:$0xff] }
 0x5fc   : > { %v5118_v30 = vsel %vm5117_vm3, %v5116_v43, %v5111_v51  ;;  %v3823_v35 = vpop.xlane.xlu1 %3822  ;;  %v4331_v43 = vadd.f32 %v8933_v45, %v11658_v4  ;;  %v11659_v51 = vld [vmem:[#allocation140_spill] sm:$0xff] }
 0x5fd   : > { %v5123_v53 = vrot.slane %v4582_v31, %v8999_v26  ;;  %v4328_v56 = vadd.f32 %v3823_v35, %v11657_v5  ;;  %v3389_v18 = vsub.f32 %v11659_v51, %v11605_v16  ;;  %v3643_v35 = vand.u32 2147483647, %v3387_v19  ;;  %v11662_v51 = vld [vmem:[#allocation142_spill] sm:$0xff] }
 0x5fe   : > { %3984 = vadd.xlane.f32.xlu0 %v3641_v23  ;;  %v9031_v5 = vsub.s32 %v5154_v63, %v11643_v41  ;;  %v9038_v4 = vsub.s32 %v5147_v34, %v11643_v41  ;;  %v5144_v19 = vrot.slane %v4585_v59, %v9022_v21  ;;  %v4587_v63 = vmul.f32 0.0625, %v4331_v43 }
 0x5ff   : > { %v5125_v31 = vsel %vm5124_vm4, %v5123_v53, %v5118_v30  ;;  %v4584_v62 = vmul.f32 0.0625, %v4328_v56  ;;  %3962 = vadd.xlane.f32.xlu1 %v8948_v40  ;;  %v9034_v48 = vpop.xlane.xlu0 %3848  ;;  %v11660_v30 = vld [vmem:[#allocation288_spill] sm:$0xff]  ;;  %v5161_v40 = vadd.s32 4294967216, %v8921_v60  ;;  %v5168_v53 = vadd.s32 4294967208, %v8921_v60 }
 0x600   : > { %v5132_v46 = vsel %vm5131_vm5, %v5130_v52, %v5125_v31  ;;  %v3827_v45 = vpop.xlane.xlu1 %3826  ;;  %v11661_v56 = vld [vmem:[#allocation280_spill] sm:$0xff]  ;;  %v3391_v31 = vsub.f32 %v11662_v51, %v11605_v16  ;;  %v3645_v34 = vand.u32 2147483647, %v3389_v18  ;;  %v5158_v18 = vrot.slane %v4587_v63, %v9031_v5 }
 0x601   : > { %v5137_v24 = vrot.slane %v4584_v62, %v9016_v6  ;;  %v4330_v23 = vadd.f32 %v3827_v45, %v11660_v30  ;;  %v4333_v52 = vadd.f32 %v8945_v44, %v11661_v56  ;;  %v5182_v45 = vadd.s32 4294967192, %v8921_v60 }
 0x602   : > { %3988 = vadd.xlane.f32.xlu0 %v3643_v35  ;;  %v9056_v56 = vsub.s32 %v5161_v40, %v11643_v41  ;;  %v5175_v35 = vadd.s32 4294967200, %v8921_v60 }
 0x603   : > { %v5139_v62 = vsel %vm5138_vm6, %v5137_v24, %v5132_v46  ;;  %v4586_v32 = vmul.f32 0.0625, %v4330_v23  ;;  %3966 = vadd.xlane.f32.xlu1 %v8962_v2  ;;  %v9052_v43 = vpop.xlane.xlu0 %3852  ;;  %v11663_v46 = vld [vmem:[#allocation290_spill] sm:$0xff]  ;;  %v9062_v2 = vsub.s32 %v5168_v53, %v11643_v41  ;;  %v4589_v23 = vmul.f32 0.0625, %v4333_v52 }
 0x604   : > { %v5146_v59 = vsel %vm5145_vm7, %v5144_v19, %v5139_v62  ;;  %v3831_v30 = vpop.xlane.xlu1 %3830  ;;  %v11664_v19 = vld [vmem:[#allocation281_spill] sm:$0xff]  ;;  %v11665_v62 = vld [vmem:[#allocation144_spill] sm:$0xff] }
 0x605   : > { %v5151_v44 = vrot.slane %v4586_v32, %v9038_v4  ;;  %v4332_v24 = vadd.f32 %v3831_v30, %v11663_v46  ;;  %v4335_v51 = vadd.f32 %v8971_v42, %v11664_v19  ;;  %v3393_v38 = vsub.f32 %v11665_v62, %v11605_v16  ;;  %v11668_v62 = vld [vmem:[#allocation125_spill] sm:$0xff] }
 0x606   : > { %3992 = vadd.xlane.f32.xlu0 %v3645_v34  ;;  %v3647_v30 = vand.u32 2147483647, %v3391_v31  ;;  %v9071_v46 = vsub.s32 %v5182_v45, %v11643_v41  ;;  %v9078_v19 = vsub.s32 %v5175_v35, %v11643_v41  ;;  %v5172_v31 = vrot.slane %v4589_v23, %v9062_v2 }
 0x607   : > { %v5153_v32 = vsel %vm5152_vm8, %v5151_v44, %v5146_v59  ;;  %v4588_v40 = vmul.f32 0.0625, %v4332_v24  ;;  %3970 = vadd.xlane.f32.xlu1 %v8966_v33  ;;  %v9074_v53 = vpop.xlane.xlu0 %3856  ;;  %v11666_v59 = vld [vmem:[#allocation292_spill] sm:$0xff]  ;;  %v5189_v33 = vadd.s32 4294967184, %v8921_v60  ;;  %v4591_v45 = vmul.f32 0.0625, %v4335_v51  ;;  %v11667_v24 = vld [vmem:[#allocation283_spill] sm:$0xff] }
 0x608   : > { %v5160_v63 = vsel %vm5159_vm9, %v5158_v18, %v5153_v32  ;;  %v3835_v42 = vpop.xlane.xlu1 %3834  ;;  %v5196_v44 = vadd.s32 4294967176, %v8921_v60  ;;  %v4337_v18 = vadd.f32 %v8995_v10, %v11667_v24  ;;  %v3384_v32 = vsub.f32 %v11668_v62, %v11605_v16  ;;  %v11672_v62 = vld [vmem:[#allocation84_spill] sm:$0xff] }
 0x609   : > { %v5165_v52 = vrot.slane %v4588_v40, %v9056_v56  ;;  %v4334_v34 = vadd.f32 %v3835_v42, %v11666_v59  ;;  %v11669_v35 = vsub.f32 %v11652_v3, %v11605_v16  ;;  %v3649_v51 = vand.u32 2147483647, %v3393_v38  ;;  %v11670_v59 = vld [vmem:[#allocation285_spill] sm:$0xff] }
 0x60a   : > { %3996 = vadd.xlane.f32.xlu0 %v3647_v30  ;;  %v4339_v24 = vadd.f32 %v9012_v54, %v11670_v59  ;;  %v9100_v30 = vsub.s32 %v5189_v33, %v11643_v41  ;;  %v5186_v3 = vrot.slane %v4591_v45, %v9071_v46  ;;  %v11674_v33 = vld [vmem:[#allocation127_spill] sm:$0xff] }
 0x60b   : > { %v5167_v40 = vsel %vm5166_vm10, %v5165_v52, %v5160_v63  ;;  %v4590_v13 = vmul.f32 0.0625, %v4334_v34  ;;  %3974 = vadd.xlane.f32.xlu1 %v8985_v12  ;;  %v3638_v42 = vand.u32 2147483647, %v11669_v35  ;;  %v9094_v60 = vpop.xlane.xlu0 %3860  ;;  %v11671_v12 = vld [vmem:[#allocation294_spill] sm:$0xff]  ;;  %v9105_v34 = vsub.s32 %v5196_v44, %v11643_v41 }
 0x60c   : > { %v5174_v23 = vsel %vm5173_vm11, %v5172_v31, %v5167_v40  ;;  %v3839_v10 = vpop.xlane.xlu1 %3838  ;;  %v4593_v31 = vmul.f32 0.0625, %v4337_v18  ;;  %v3397_v40 = vsub.f32 %v11672_v62, %v11647_v49  ;;  %v3640_v18 = vand.u32 2147483647, %v3384_v32 }
 0x60d   : > { %v5179_v63 = vrot.slane %v4590_v13, %v9078_v19  ;;  %v4336_v52 = vadd.f32 %v3839_v10, %v11671_v12  ;;  %v11673_v13 = vsub.f32 %v11648_v50, %v11647_v49  ;;  %v3386_v10 = vsub.f32 %v11674_v33, %v11605_v16  ;;  %v11676_v50 = vld [vmem:[#allocation287_spill] sm:$0xff] }
 0x60e   : > { %4000 = vadd.xlane.f32.xlu0 %v3649_v51  ;;  %v4595_v59 = vmul.f32 0.0625, %v4339_v24  ;;  %v11675_v51 = vld [vmem:[#allocation295_spill] sm:$0xff]  ;;  %v4341_v12 = vadd.f32 %v9034_v48, %v11676_v50 }
 0x60f   : > { %v5181_v38 = vsel %vm5180_vm12, %v5179_v63, %v5174_v23  ;;  %v4592_v35 = vmul.f32 0.0625, %v4336_v52  ;;  %3978 = vadd.xlane.f32.xlu1 %v3638_v42  ;;  %v3651_v54 = vand.u32 2147483647, %v11673_v13  ;;  %v9116_v45 = vpop.xlane.xlu0 %3864  ;;  %v5200_v63 = vrot.slane %v4593_v31, %v9105_v34  ;;  %v11678_v31 = vld [vmem:[#allocation129_spill] sm:$0xff] }
 0x610   : > { %v5188_v41 = vsel %vm5187_vm13, %v5186_v3, %v5181_v38  ;;  %v3843_v44 = vpop.xlane.xlu1 %3842  ;;  %v11677_v3 = vld [vmem:[#allocation86_spill] sm:$0xff]  ;;  %v3653_v13 = vand.u32 2147483647, %v3397_v40  ;;  %v3642_v33 = vand.u32 2147483647, %v3386_v10  ;;  %v5210_v48 = vrot.slane %v4595_v59, %v8951_v57  ;;  %v11681_v40 = vld [vmem:[#allocation88_spill] sm:$0xff] }
 0x611   : > { %v5193_v23 = vrot.slane %v4592_v35, %v9100_v30  ;;  %v4338_v42 = vadd.f32 %v3843_v44, %v11675_v51  ;;  %v3399_v38 = vsub.f32 %v11677_v3, %v11647_v49  ;;  %v3388_v44 = vsub.f32 %v11678_v31, %v11605_v16  ;;  %v11680_v51 = vld [vmem:[#allocation289_spill] sm:$0xff] }
 0x612   : > { %4004 = vadd.xlane.f32.xlu0 %v3651_v54  ;;  %v11679_v54 = vld [vmem:[#allocation297_spill] sm:$0xff]  ;;  %v3401_v10 = vsub.f32 %v11681_v40, %v11647_v49 }
 0x613   : > { %v5195_v52 = vsel %vm5194_vm14, %v5193_v23, %v5188_v41  ;;  %v4594_v62 = vmul.f32 0.0625, %v4338_v42  ;;  %3982 = vadd.xlane.f32.xlu1 %v3640_v18  ;;  %v9129_v24 = vpop.xlane.xlu0 %3868  ;;  %v4597_v23 = vmul.f32 0.0625, %v4341_v12  ;;  %v4343_v42 = vadd.f32 %v9052_v43, %v11680_v51 }
 0x614   : > { %v9127_v32 = vsel %vm5201_vm15, %v5200_v63, %v5195_v52  ;;  %v3847_v35 = vpop.xlane.xlu1 %3846  ;;  %v3655_v59 = vand.u32 2147483647, %v3399_v38  ;;  %v3644_v43 = vand.u32 2147483647, %v3388_v44  ;;  %v11685_v38 = vld [vmem:[#allocation90_spill] sm:$0xff] }
 0x615   : > { %v5206_v41 = vrot.slane %v4594_v62, %v8955_v36  ;;  %v4340_v18 = vadd.f32 %v3847_v35, %v11679_v54  ;;  %v11682_v62 = vld [vmem:[#allocation131_spill] sm:$0xff]  ;;  %v3403_v40 = vsub.f32 %v11685_v38, %v11647_v49  ;;  %v3657_v44 = vand.u32 2147483647, %v3401_v10 }
 0x616   : > { %4008 = vadd.xlane.f32.xlu0 %v3653_v13  ;;  %v3390_v31 = vsub.f32 %v11682_v62, %v11605_v16  ;;  %v11683_v35 = vld [vmem:[#allocation299_spill] sm:$0xff] }
 0x617   : > { %v5211_v63 = vsel %vm5103_vm1, %v5210_v48, %v5206_v41  ;;  %v4596_v50 = vmul.f32 0.0625, %v4340_v18  ;;  %3986 = vadd.xlane.f32.xlu1 %v3642_v33  ;;  %v9141_v52 = vpop.xlane.xlu0 %3872  ;;  %v5220_v48 = vrot.slane %v4597_v23, %v8981_v0  ;;  %v4599_v41 = vmul.f32 0.0625, %v4343_v42  ;;  %v11684_v13 = vld [vmem:[#allocation291_spill] sm:$0xff]  ;;  %v11686_v23 = vld [vmem:[#allocation133_spill] sm:$0xff] }
 0x618   : > { %v3851_v3 = vpop.xlane.xlu1 %3850  ;;  %v4345_v33 = vadd.f32 %v9074_v53, %v11684_v13  ;;  %v3392_v42 = vsub.f32 %v11686_v23, %v11605_v16  ;;  %v11687_v53 = vld [vmem:[#allocation301_spill] sm:$0xff]  ;;  %v11689_v10 = vld [vmem:[#allocation71_spill] sm:$0xff] }
 0x619   : > { %v5215_v12 = vrot.slane %v4596_v50, %v8974_v1  ;;  %v4342_v54 = vadd.f32 %v3851_v3, %v11683_v35  ;;  %v3394_v38 = vsub.f32 %v11689_v10, %v11647_v49 }
 0x61a   : > { %4012 = vadd.xlane.f32.xlu0 %v3655_v59  ;;  %v5230_v59 = vrot.slane %v4599_v41, %v8993_v29  ;;  %v11690_v41 = vld [vmem:[#allocation92_spill] sm:$0xff] }
 0x61b   : > { %v5216_v18 = vsel %vm5110_vm2, %v5215_v12, %v5211_v63  ;;  %v4598_v51 = vmul.f32 0.0625, %v4342_v54  ;;  %3990 = vadd.xlane.f32.xlu1 %v3644_v43  ;;  %v9154_v50 = vpop.xlane.xlu0 %3876  ;;  %v3646_v63 = vand.u32 2147483647, %v3390_v31  ;;  %v4601_v12 = vmul.f32 0.0625, %v4345_v33  ;;  %v11688_v54 = vld [vmem:[#allocation293_spill] sm:$0xff] }
 0x61c   : > { %v5221_v62 = vsel %vm5117_vm3, %v5220_v48, %v5216_v18  ;;  %v3855_v3 = vpop.xlane.xlu1 %3854  ;;  %v4347_v43 = vadd.f32 %v9094_v60, %v11688_v54  ;;  %v3659_v31 = vand.u32 2147483647, %v3403_v40  ;;  %v3405_v33 = vsub.f32 %v11690_v41, %v11647_v49  ;;  %v11691_v60 = vld [vmem:[#allocation303_spill] sm:$0xff]  ;;  %v11693_v40 = vld [vmem:[#allocation73_spill] sm:$0xff] }
 0x61d   : > { %v5225_v35 = vrot.slane %v4598_v51, %v8999_v26  ;;  %v4344_v13 = vadd.f32 %v3855_v3, %v11687_v53 }
 0x61e   : > { %4016 = vadd.xlane.f32.xlu0 %v3657_v44  ;;  %v5240_v44 = vrot.slane %v4601_v12, %v9022_v21  ;;  %v11694_v12 = vld [vmem:[#allocation94_spill] sm:$0xff] }
 0x61f   : > { %v5226_v48 = vsel %vm5124_vm4, %v5225_v35, %v5221_v62  ;;  %v4600_v18 = vmul.f32 0.0625, %v4344_v13  ;;  %3994 = vadd.xlane.f32.xlu1 %v3646_v63  ;;  %v9167_v51 = vpop.xlane.xlu0 %3880  ;;  %v3648_v62 = vand.u32 2147483647, %v3392_v42  ;;  %v4603_v35 = vmul.f32 0.0625, %v4347_v43  ;;  %v11692_v13 = vld [vmem:[#allocation16_spill] sm:$0xff] }
 0x620   : > { %v5231_v16 = vsel %vm5131_vm5, %v5230_v59, %v5226_v48  ;;  %v3859_v3 = vpop.xlane.xlu1 %3858  ;;  %v4349_v63 = vadd.f32 %v9116_v45, %v11692_v13  ;;  %v3396_v48 = vsub.f32 %v11693_v40, %v11647_v49  ;;  %v3650_v42 = vand.u32 2147483647, %v3394_v38  ;;  %v11695_v45 = vld [vmem:[#allocation305_spill] sm:$0xff]  ;;  %v11697_v38 = vld [vmem:[#allocation75_spill] sm:$0xff]  ;;  %v11698_v40 = vld [vmem:[#allocation96_spill] sm:$0xff] }
 0x621   : > { %v5235_v23 = vrot.slane %v4600_v18, %v9016_v6  ;;  %v4346_v53 = vadd.f32 %v3859_v3, %v11691_v60  ;;  %v3407_v43 = vsub.f32 %v11694_v12, %v11647_v49  ;;  %v11699_v12 = vld [vmem:[#allocation307_spill] sm:$0xff] }
 0x622   : > { %4020 = vadd.xlane.f32.xlu0 %v3659_v31  ;;  %v5250_v31 = vrot.slane %v4603_v35, %v9031_v5 }
 0x623   : > { %v5236_v59 = vsel %vm5138_vm6, %v5235_v23, %v5231_v16  ;;  %v4602_v54 = vmul.f32 0.0625, %v4346_v53  ;;  %3998 = vadd.xlane.f32.xlu1 %v3648_v62  ;;  %v9180_v18 = vpop.xlane.xlu0 %3884  ;;  %v3661_v16 = vand.u32 2147483647, %v3405_v33  ;;  %v4605_v23 = vmul.f32 0.0625, %v4349_v63  ;;  %v11696_v53 = vld [vmem:[#allocation296_spill] sm:$0xff] }
 0x624   : > { %v5241_v10 = vsel %vm5145_vm7, %v5240_v44, %v5236_v59  ;;  %v3863_v3 = vpop.xlane.xlu1 %3862  ;;  %v4351_v62 = vadd.f32 %v9129_v24, %v11696_v53  ;;  %v3398_v59 = vsub.f32 %v11697_v38, %v11647_v49 }
 0x625   : > { %v5245_v41 = vrot.slane %v4602_v54, %v9038_v4  ;;  %v4348_v60 = vadd.f32 %v3863_v3, %v11695_v45  ;;  %v3409_v54 = vsub.f32 %v11698_v40, %v11647_v49  ;;  %v3663_v45 = vand.u32 2147483647, %v3407_v43 }
 0x626   : > { %4024 = vadd.xlane.f32.xlu0 %v3661_v16 }
 0x627   : > { %v5246_v44 = vsel %vm5152_vm8, %v5245_v41, %v5241_v10  ;;  %v4604_v13 = vmul.f32 0.0625, %v4348_v60  ;;  %4002 = vadd.xlane.f32.xlu1 %v3650_v42  ;;  %v9195_v33 = vpop.xlane.xlu0 %3888  ;;  %v3652_v10 = vand.u32 2147483647, %v3396_v48  ;;  %v5260_v41 = vrot.slane %v4605_v23, %v9062_v2  ;;  %v11700_v60 = vld [vmem:[#allocation298_spill] sm:$0xff] }
 0x628   : > { %v5251_v3 = vsel %vm5159_vm9, %v5250_v31, %v5246_v44  ;;  %v3867_v35 = vpop.xlane.xlu1 %3866  ;;  %v4607_v42 = vmul.f32 0.0625, %v4351_v62  ;;  %v4353_v16 = vadd.f32 %v9141_v52, %v11700_v60  ;;  %v11701_v31 = vld [vmem:[#allocation77_spill] sm:$0xff]  ;;  %v3665_v48 = vand.u32 2147483647, %v3409_v54  ;;  %v11702_v23 = vld [vmem:[#allocation146_spill] sm:$0xff] }
 0x629   : > { %v5255_v63 = vrot.slane %v4604_v13, %v9056_v56  ;;  %v4350_v24 = vadd.f32 %v3867_v35, %v11699_v12  ;;  %v3400_v44 = vsub.f32 %v11701_v31, %v11647_v49  ;;  %v3654_v35 = vand.u32 2147483647, %v3398_v59  ;;  %v11703_v12 = vld [vmem:[#allocation300_spill] sm:$0xff]  ;;  %v11705_v59 = vld [vmem:[#allocation79_spill] sm:$0xff] }
 0x62a   : > { %4028 = vadd.xlane.f32.xlu0 %v3663_v45  ;;  %v3411_v62 = vsub.f32 %v11702_v23, %v11647_v49  ;;  %v4355_v52 = vadd.f32 %v9154_v50, %v11703_v12  ;;  %v5270_v45 = vrot.slane %v4607_v42, %v9071_v46  ;;  %v3402_v54 = vsub.f32 %v11705_v59, %v11647_v49 }
 0x62b   : > { %v5256_v53 = vsel %vm5166_vm10, %v5255_v63, %v5251_v3  ;;  %v4606_v38 = vmul.f32 0.0625, %v4350_v24  ;;  %4006 = vadd.xlane.f32.xlu1 %v3652_v10  ;;  %v9206_v40 = vpop.xlane.xlu0 %3892  ;;  %v11704_v63 = vld [vmem:[#allocation309_spill] sm:$0xff]  ;;  %v4609_v10 = vmul.f32 0.0625, %v4353_v16  ;;  %v11707_v16 = vld [vmem:[#allocation311_spill] sm:$0xff] }
 0x62c   : > { %v5261_v13 = vsel %vm5173_vm11, %v5260_v41, %v5256_v53  ;;  %v3871_v43 = vpop.xlane.xlu1 %3870  ;;  %v11706_v53 = vld [vmem:[#allocation148_spill] sm:$0xff]  ;;  %v4611_v12 = vmul.f32 0.0625, %v4355_v52 }
 0x62d   : > { %v5265_v3 = vrot.slane %v4606_v38, %v9078_v19  ;;  %v4352_v24 = vadd.f32 %v3871_v43, %v11704_v63  ;;  %v3413_v31 = vsub.f32 %v11706_v53, %v11647_v49  ;;  %v3656_v43 = vand.u32 2147483647, %v3400_v44 }
 0x62e   : > { %4032 = vadd.xlane.f32.xlu0 %v3665_v48  ;;  %v5280_v48 = vrot.slane %v4609_v10, %v9105_v34  ;;  %v3658_v53 = vand.u32 2147483647, %v3402_v54  ;;  %v11710_v10 = vld [vmem:[#allocation150_spill] sm:$0xff]  ;;  %v11713_v54 = vld [vmem:[#allocation83_spill] sm:$0xff] }
 0x62f   : > { %v5266_v41 = vsel %vm5180_vm12, %v5265_v3, %v5261_v13  ;;  %v4608_v60 = vmul.f32 0.0625, %v4352_v24  ;;  %4010 = vadd.xlane.f32.xlu1 %v3654_v35  ;;  %v9221_v23 = vpop.xlane.xlu0 %3896  ;;  %v3667_v3 = vand.u32 2147483647, %v3411_v62  ;;  %v11708_v35 = vld [vmem:[#allocation302_spill] sm:$0xff]  ;;  %v3669_v62 = vand.u32 2147483647, %v3413_v31 }
 0x630   : > { %v5271_v50 = vsel %vm5187_vm13, %v5270_v45, %v5266_v41  ;;  %v3875_v38 = vpop.xlane.xlu1 %3874  ;;  %v4357_v63 = vadd.f32 %v9167_v51, %v11708_v35  ;;  %v11709_v45 = vld [vmem:[#allocation81_spill] sm:$0xff]  ;;  %v5289_v51 = vrot.slane %v4611_v12, %v8951_v57  ;;  %v3406_v31 = vsub.f32 %v11713_v54, %v11647_v49 }
 0x631   : > { %v5275_v42 = vrot.slane %v4608_v60, %v9100_v30  ;;  %v4354_v13 = vadd.f32 %v3875_v38, %v11707_v16  ;;  %v3404_v41 = vsub.f32 %v11709_v45, %v11647_v49  ;;  %v3415_v38 = vsub.f32 %v11710_v10, %v11647_v49 }
 0x632   : > { %4036 = vadd.xlane.f32.xlu0 %v3667_v3  ;;  %v4613_v16 = vmul.f32 0.0625, %v4357_v63 }
 0x633   : > { %v5276_v24 = vsel %vm5194_vm14, %v5275_v42, %v5271_v50  ;;  %v4610_v59 = vmul.f32 0.0625, %v4354_v13  ;;  %4014 = vadd.xlane.f32.xlu1 %v3656_v43  ;;  %v9234_v52 = vpop.xlane.xlu0 %3900  ;;  %v11711_v42 = vld [vmem:[#allocation313_spill] sm:$0xff]  ;;  %v11712_v13 = vld [vmem:[#allocation304_spill] sm:$0xff]  ;;  %v3660_v12 = vand.u32 2147483647, %v3404_v41 }
 0x634   : > { %v9232_v44 = vsel %vm5201_vm15, %v5280_v48, %v5276_v24  ;;  %v3879_v60 = vpop.xlane.xlu1 %3878  ;;  %v4359_v3 = vadd.f32 %v9180_v18, %v11712_v13  ;;  %v3671_v18 = vand.u32 2147483647, %v3415_v38  ;;  %v11717_v41 = vld [vmem:[#allocation85_spill] sm:$0xff]  ;;  %v3662_v38 = vand.u32 2147483647, %v3406_v31  ;;  %v11721_v31 = vld [vmem:[#allocation135_spill] sm:$0xff] }
 0x635   : > { %v5285_v50 = vrot.slane %v4610_v59, %v8955_v36  ;;  %v4356_v43 = vadd.f32 %v3879_v60, %v11711_v42  ;;  %v11714_v59 = vld [vmem:[#allocation152_spill] sm:$0xff]  ;;  %v11715_v60 = vld [vmem:[#allocation315_spill] sm:$0xff]  ;;  %v3408_v54 = vsub.f32 %v11717_v41, %v11647_v49  ;;  %v3410_v41 = vsub.f32 %v11721_v31, %v11647_v49 }
 0x636   : > { %4040 = vadd.xlane.f32.xlu0 %v3669_v62  ;;  %v3417_v10 = vsub.f32 %v11714_v59, %v11647_v49  ;;  %v11716_v62 = vld [vmem:[#allocation306_spill] sm:$0xff] }
 0x637   : > { %v5290_v48 = vsel %vm5103_vm1, %v5289_v51, %v5285_v50  ;;  %v4612_v35 = vmul.f32 0.0625, %v4356_v43  ;;  %4018 = vadd.xlane.f32.xlu1 %v3658_v53  ;;  %v9246_v24 = vpop.xlane.xlu0 %3904  ;;  %v5299_v51 = vrot.slane %v4613_v16, %v8981_v0  ;;  %v4615_v50 = vmul.f32 0.0625, %v4359_v3  ;;  %v11718_v16 = vld [vmem:[#allocation154_spill] sm:$0xff] }
 0x638   : > { %v3883_v45 = vpop.xlane.xlu1 %3882  ;;  %v4361_v53 = vadd.f32 %v9195_v33, %v11716_v62  ;;  %v3419_v3 = vsub.f32 %v11718_v16, %v11647_v49  ;;  %v11719_v33 = vld [vmem:[#allocation317_spill] sm:$0xff] }
 0x639   : > { %v5294_v63 = vrot.slane %v4612_v35, %v8974_v1  ;;  %v4358_v42 = vadd.f32 %v3883_v45, %v11715_v60 }
 0x63a   : > { %4044 = vadd.xlane.f32.xlu0 %v3671_v18 }
 0x63b   : > { %v5295_v43 = vsel %vm5110_vm2, %v5294_v63, %v5290_v48  ;;  %v4614_v13 = vmul.f32 0.0625, %v4358_v42  ;;  %4022 = vadd.xlane.f32.xlu1 %v3660_v12  ;;  %v9259_v35 = vpop.xlane.xlu0 %3908  ;;  %v3673_v48 = vand.u32 2147483647, %v3417_v10  ;;  %v5309_v63 = vrot.slane %v4615_v50, %v8993_v29  ;;  %v11720_v42 = vld [vmem:[#allocation308_spill] sm:$0xff]  ;;  %v11723_v50 = vld [vmem:[#allocation162_spill] sm:$0xff] }
 0x63c   : > { %v5300_v59 = vsel %vm5117_vm3, %v5299_v51, %v5295_v43  ;;  %v3887_v45 = vpop.xlane.xlu1 %3886  ;;  %v4617_v12 = vmul.f32 0.0625, %v4361_v53  ;;  %v4363_v18 = vadd.f32 %v9206_v40, %v11720_v42  ;;  %v3664_v10 = vand.u32 2147483647, %v3408_v54  ;;  %v11724_v40 = vld [vmem:[#allocation319_spill] sm:$0xff]  ;;  %v11726_v54 = vld [vmem:[#allocation137_spill] sm:$0xff] }
 0x63d   : > { %v5304_v60 = vrot.slane %v4614_v13, %v8999_v26  ;;  %v4360_v62 = vadd.f32 %v3887_v45, %v11719_v33  ;;  %v11722_v33 = vld [vmem:[#allocation23_spill] sm:$0xff]  ;;  %v3412_v31 = vsub.f32 %v11726_v54, %v11647_v49 }
 0x63e   : > { %4048 = vadd.xlane.f32.xlu0 %v3673_v48  ;;  %v3427_v53 = vsub.f32 %v11723_v50, %v11722_v33 }
 0x63f   : > { %v5305_v51 = vsel %vm5124_vm4, %v5304_v60, %v5300_v59  ;;  %v4616_v43 = vmul.f32 0.0625, %v4360_v62  ;;  %4026 = vadd.xlane.f32.xlu1 %v3662_v38  ;;  %v9272_v13 = vpop.xlane.xlu0 %3912  ;;  %v3675_v59 = vand.u32 2147483647, %v3419_v3  ;;  %v5319_v60 = vrot.slane %v4617_v12, %v9022_v21  ;;  %v11725_v62 = vld [vmem:[#allocation310_spill] sm:$0xff] }
 0x640   : > { %v5310_v16 = vsel %vm5131_vm5, %v5309_v63, %v5305_v51  ;;  %v3891_v45 = vpop.xlane.xlu1 %3890  ;;  %v4619_v38 = vmul.f32 0.0625, %v4363_v18  ;;  %v4365_v48 = vadd.f32 %v9221_v23, %v11725_v62  ;;  %v3666_v3 = vand.u32 2147483647, %v3410_v41  ;;  %v11727_v23 = vld [vmem:[#allocation321_spill] sm:$0xff]  ;;  %v11729_v41 = vld [vmem:[#allocation139_spill] sm:$0xff] }
 0x641   : > { %v5314_v55 = vrot.slane %v4616_v43, %v9016_v6  ;;  %v4362_v42 = vadd.f32 %v3891_v45, %v11724_v40  ;;  %v3443_v12 = vsub.f32 %v11294_v17, %v11722_v33 }
 0x642   : > { %4052 = vadd.xlane.f32.xlu0 %v3675_v59 }
 0x643   : > { %v5315_v63 = vsel %vm5138_vm6, %v5314_v55, %v5310_v16  ;;  %v4618_v51 = vmul.f32 0.0625, %v4362_v42  ;;  %4030 = vadd.xlane.f32.xlu1 %v3664_v10  ;;  %v9285_v43 = vpop.xlane.xlu0 %3916  ;;  %v3683_v55 = vand.u32 2147483647, %v3427_v53  ;;  %v5329_v16 = vrot.slane %v4619_v38, %v9031_v5  ;;  %v11728_v42 = vld [vmem:[#allocation312_spill] sm:$0xff] }
 0x644   : > { %v5320_v50 = vsel %vm5145_vm7, %v5319_v60, %v5315_v63  ;;  %v3895_v45 = vpop.xlane.xlu1 %3894  ;;  %v4621_v10 = vmul.f32 0.0625, %v4365_v48  ;;  %v4367_v59 = vadd.f32 %v9234_v52, %v11728_v42  ;;  %v3414_v63 = vsub.f32 %v11729_v41, %v11647_v49  ;;  %v11730_v52 = vld [vmem:[#allocation323_spill] sm:$0xff] }
 0x645   : > { %v5324_v18 = vrot.slane %v4618_v51, %v9038_v4  ;;  %v4364_v40 = vadd.f32 %v3895_v45, %v11727_v23  ;;  %v3668_v53 = vand.u32 2147483647, %v3412_v31  ;;  %v3444_v38 = vsub.f32 %v11316_v39, %v11722_v33  ;;  %v11731_v23 = vld [vmem:[#allocation314_spill] sm:$0xff]  ;;  %v11732_v31 = vld [vmem:[#allocation141_spill] sm:$0xff] }
 0x646   : > { %4068 = vadd.xlane.f32.xlu0 %v3683_v55  ;;  %v3416_v42 = vsub.f32 %v11732_v31, %v11647_v49  ;;  %v11733_v39 = vld [vmem:[#allocation25_spill] sm:$0xff] }
 0x647   : > { %v5325_v60 = vsel %vm5152_vm8, %v5324_v18, %v5320_v50  ;;  %v4620_v62 = vmul.f32 0.0625, %v4364_v40  ;;  %4034 = vadd.xlane.f32.xlu1 %v3666_v3  ;;  %v9298_v51 = vpop.xlane.xlu0 %3920  ;;  %v3699_v50 = vand.u32 2147483647, %v3443_v12  ;;  %v5339_v18 = vrot.slane %v4621_v10, %v9062_v2 }
 0x648   : > { %v5330_v17 = vsel %vm5159_vm9, %v5329_v16, %v5325_v60  ;;  %v3899_v54 = vpop.xlane.xlu1 %3898  ;;  %v4623_v3 = vmul.f32 0.0625, %v4367_v59  ;;  %v4369_v40 = vadd.f32 %v9246_v24, %v11731_v23  ;;  %v11734_v60 = vld [vmem:[#allocation194_spill] sm:$0xff]  ;;  %v3670_v59 = vand.u32 2147483647, %v3414_v63 }
 0x649   : > { %v5334_v48 = vrot.slane %v4620_v62, %v9056_v56  ;;  %v4366_v45 = vadd.f32 %v3899_v54, %v11730_v52  ;;  %v3459_v62 = vsub.f32 %v11734_v60, %v11733_v39  ;;  %v11735_v54 = vld [vmem:[#allocation316_spill] sm:$0xff] }
 0x64a   : > { %4100 = vadd.xlane.f32.xlu0 %v3699_v50  ;;  %v4371_v24 = vadd.f32 %v9259_v35, %v11735_v54  ;;  %v4625_v50 = vmul.f32 0.0625, %v4369_v40  ;;  %v3672_v54 = vand.u32 2147483647, %v3416_v42  ;;  %v11740_v42 = vld [vmem:[#allocation151_spill] sm:$0xff] }
 0x64b   : > { %v5335_v55 = vsel %vm5166_vm10, %v5334_v48, %v5330_v17  ;;  %v4622_v16 = vmul.f32 0.0625, %v4366_v45  ;;  %4038 = vadd.xlane.f32.xlu1 %v3668_v53  ;;  %v9313_v12 = vpop.xlane.xlu0 %3924  ;;  %v11736_v48 = vld [vmem:[#allocation325_spill] sm:$0xff]  ;;  %v3700_v53 = vand.u32 2147483647, %v3444_v38  ;;  %v5349_v45 = vrot.slane %v4623_v3, %v9071_v46 }
 0x64c   : > { %v5340_v41 = vsel %vm5173_vm11, %v5339_v18, %v5335_v55  ;;  %v3903_v10 = vpop.xlane.xlu1 %3902  ;;  %v11737_v18 = vld [vmem:[#allocation143_spill] sm:$0xff]  ;;  %v3475_v38 = vsub.f32 %v11356_v47, %v11733_v39  ;;  %v4627_v3 = vmul.f32 0.0625, %v4371_v24  ;;  %v11741_v47 = vld [vmem:[#allocation180_spill] sm:$0xff] }
 0x64d   : > { %v5344_v17 = vrot.slane %v4622_v16, %v9078_v19  ;;  %v4368_v52 = vadd.f32 %v3903_v10, %v11736_v48  ;;  %v3418_v55 = vsub.f32 %v11737_v18, %v11647_v49  ;;  %v3715_v16 = vand.u32 2147483647, %v3459_v62 }
 0x64e   : > { %4102 = vadd.xlane.f32.xlu0 %v3700_v53  ;;  %v3426_v62 = vsub.f32 %v11740_v42, %v11722_v33  ;;  %v3445_v24 = vsub.f32 %v11741_v47, %v11722_v33  ;;  %v5368_v18 = vrot.slane %v4627_v3, %v8951_v57 }
 0x64f   : > { %v5345_v23 = vsel %vm5180_vm12, %v5344_v17, %v5340_v41  ;;  %v4624_v31 = vmul.f32 0.0625, %v4368_v52  ;;  %4042 = vadd.xlane.f32.xlu1 %v3670_v59  ;;  %v9324_v60 = vpop.xlane.xlu0 %3928  ;;  %v11738_v41 = vld [vmem:[#allocation326_spill] sm:$0xff]  ;;  %v5359_v59 = vrot.slane %v4625_v50, %v9105_v34 }
 0x650   : > { %v5350_v63 = vsel %vm5187_vm13, %v5349_v45, %v5345_v23  ;;  %v3907_v35 = vpop.xlane.xlu1 %3906  ;;  %v11739_v17 = vld [vmem:[#allocation318_spill] sm:$0xff]  ;;  %v3682_v47 = vand.u32 2147483647, %v3426_v62 }
 0x651   : > { %v5354_v40 = vrot.slane %v4624_v31, %v9100_v30  ;;  %v4370_v10 = vadd.f32 %v3907_v35, %v11738_v41  ;;  %v4373_v48 = vadd.f32 %v9272_v13, %v11739_v17  ;;  %v3674_v31 = vand.u32 2147483647, %v3418_v55  ;;  %v11744_v55 = vld [vmem:[#allocation167_spill] sm:$0xff] }
 0x652   : > { %4132 = vadd.xlane.f32.xlu0 %v3715_v16  ;;  %v3731_v35 = vand.u32 2147483647, %v3475_v38  ;;  %v11742_v16 = vld [vmem:[#allocation320_spill] sm:$0xff]  ;;  %v3442_v3 = vsub.f32 %v11744_v55, %v11722_v33  ;;  %v3476_v38 = vsub.f32 %v11379_v9, %v11733_v39 }
 0x653   : > { %v5355_v52 = vsel %vm5194_vm14, %v5354_v40, %v5350_v63  ;;  %v4626_v53 = vmul.f32 0.0625, %v4370_v10  ;;  %4046 = vadd.xlane.f32.xlu1 %v3672_v54  ;;  %v9339_v23 = vpop.xlane.xlu0 %3932  ;;  %v4375_v54 = vadd.f32 %v9285_v43, %v11742_v16  ;;  %v11743_v40 = vld [vmem:[#allocation328_spill] sm:$0xff]  ;;  %v4629_v10 = vmul.f32 0.0625, %v4373_v48 }
 0x654   : > { %v5360_v45 = vsel %vm5201_vm15, %v5359_v59, %v5355_v52  ;;  %v3911_v50 = vpop.xlane.xlu1 %3910  ;;  %v3701_v43 = vand.u32 2147483647, %v3445_v24  ;;  %v3698_v62 = vand.u32 2147483647, %v3442_v3  ;;  %v11752_v3 = vld [vmem:[#allocation183_spill] sm:$0xff] }
 0x655   : > { %v9344_v13 = vsel %vm6388_vm0, %v5360_v45, %v9127_v32  ;;  %v5364_v63 = vrot.slane %v4626_v53, %v8955_v36  ;;  %v4372_v41 = vadd.f32 %v3911_v50, %v11743_v40  ;;  %v11745_v53 = vld [vmem:[#allocation330_spill] sm:$0xff]  ;;  %v4631_v45 = vmul.f32 0.0625, %v4375_v54 }
 0x656   : > { %4164 = vadd.xlane.f32.xlu0 %v3731_v35  ;;  %v5378_v50 = vrot.slane %v4629_v10, %v8981_v0  ;;  %v11747_v35 = vld [vmem:[#allocation153_spill] sm:$0xff]  ;;  %v11748_v54 = vld [vmem:[#allocation26_spill] sm:$0xff] }
 0x657   : > { %v5369_v59 = vsel %vm5103_vm1, %v5368_v18, %v5364_v63  ;;  %4050 = vadd.xlane.f32.xlu1 %v3674_v31  ;;  %v4628_v17 = vmul.f32 0.0625, %v4372_v41  ;;  %v9353_v52 = vpop.xlane.xlu0 %3936  ;;  %v11746_v31 = vld [vmem:[#allocation322_spill] sm:$0xff]  ;;  %v3428_v16 = vsub.f32 %v11747_v35, %v11722_v33 }
 0x658   : > { %v3915_v32 = vpop.xlane.xlu1 %3914  ;;  %v4377_v18 = vadd.f32 %v9298_v51, %v11746_v31  ;;  %v11749_v41 = vld [vmem:[#allocation226_spill] sm:$0xff]  ;;  %v3732_v51 = vand.u32 2147483647, %v3476_v38  ;;  %v3458_v31 = vsub.f32 %v11752_v3, %v11733_v39 }
 0x659   : > { %v4374_v42 = vadd.f32 %v3915_v32, %v11745_v53  ;;  %v5373_v48 = vrot.slane %v4628_v17, %v8974_v1  ;;  %v3491_v55 = vsub.f32 %v11749_v41, %v11748_v54  ;;  %v5388_v32 = vrot.slane %v4631_v45, %v8993_v29  ;;  %v11750_v53 = vld [vmem:[#allocation324_spill] sm:$0xff] }
 0x65a   : > { %4104 = vadd.xlane.f32.xlu0 %v3701_v43  ;;  %v11751_v43 = vld [vmem:[#allocation332_spill] sm:$0xff]  ;;  %v3507_v45 = vsub.f32 %v7676_v61, %v11748_v54 }
 0x65b   : > { %v4630_v63 = vmul.f32 0.0625, %v4374_v42  ;;  %4066 = vadd.xlane.f32.xlu1 %v3682_v47  ;;  %v5374_v9 = vsel %vm5110_vm2, %v5373_v48, %v5369_v59  ;;  %v9365_v40 = vpop.xlane.xlu0 %3940  ;;  %v4379_v42 = vadd.f32 %v9313_v12, %v11750_v53  ;;  %v4633_v59 = vmul.f32 0.0625, %v4377_v18  ;;  %v11753_v12 = vld [vmem:[#allocation334_spill] sm:$0xff] }
 0x65c   : > { %v3919_v24 = vpop.xlane.xlu1 %3918  ;;  %v5379_v10 = vsel %vm5117_vm3, %v5378_v50, %v5374_v9  ;;  %v3684_v18 = vand.u32 2147483647, %v3428_v16  ;;  %v3714_v16 = vand.u32 2147483647, %v3458_v31  ;;  %v11759_v31 = vld [vmem:[#allocation164_spill] sm:$0xff] }
 0x65d   : > { %v5383_v17 = vrot.slane %v4630_v63, %v8999_v26  ;;  %v4376_v47 = vadd.f32 %v3919_v24, %v11751_v43  ;;  %v3747_v24 = vand.u32 2147483647, %v3491_v55  ;;  %v4635_v41 = vmul.f32 0.0625, %v4379_v42  ;;  %v11756_v42 = vld [vmem:[#allocation199_spill] sm:$0xff] }
 0x65e   : > { %4166 = vadd.xlane.f32.xlu0 %v3732_v51 }
 0x65f   : > { %v5384_v48 = vsel %vm5124_vm4, %v5383_v17, %v5379_v10  ;;  %4098 = vadd.xlane.f32.xlu1 %v3698_v62  ;;  %v4632_v35 = vmul.f32 0.0625, %v4376_v47  ;;  %v9379_v63 = vpop.xlane.xlu0 %3944  ;;  %v5398_v62 = vrot.slane %v4633_v59, %v9022_v21  ;;  %v11754_v17 = vld [vmem:[#allocation15_spill] sm:$0xff] }
 0x660   : > { %v5389_v50 = vsel %vm5131_vm5, %v5388_v32, %v5384_v48  ;;  %v3923_v38 = vpop.xlane.xlu1 %3922  ;;  %v4381_v51 = vadd.f32 %v9324_v60, %v11754_v17  ;;  %v11755_v32 = vld [vmem:[#allocation171_spill] sm:$0xff]  ;;  %v3474_v48 = vsub.f32 %v11756_v42, %v11733_v39  ;;  %v3763_v60 = vand.u32 2147483647, %v3507_v45 }
 0x661   : > { %v4378_v9 = vadd.f32 %v3923_v38, %v11753_v12  ;;  %v5393_v10 = vrot.slane %v4632_v35, %v9016_v6  ;;  %v3446_v43 = vsub.f32 %v11755_v32, %v11722_v33  ;;  %v5408_v35 = vrot.slane %v4635_v41, %v9031_v5  ;;  %v11757_v38 = vld [vmem:[#allocation327_spill] sm:$0xff] }
 0x662   : > { %4196 = vadd.xlane.f32.xlu0 %v3747_v24  ;;  %v4383_v12 = vadd.f32 %v9339_v23, %v11757_v38  ;;  %v11761_v23 = vld [vmem:[#allocation338_spill] sm:$0xff] }
 0x663   : > { %v4634_v53 = vmul.f32 0.0625, %v4378_v9  ;;  %4070 = vadd.xlane.f32.xlu1 %v3684_v18  ;;  %v5394_v61 = vsel %vm5138_vm6, %v5393_v10, %v5389_v50  ;;  %v9391_v47 = vpop.xlane.xlu0 %3948  ;;  %v11758_v9 = vld [vmem:[#allocation336_spill] sm:$0xff]  ;;  %v4637_v50 = vmul.f32 0.0625, %v4381_v51  ;;  %v3429_v10 = vsub.f32 %v11759_v31, %v11722_v33 }
 0x664   : > { %v3927_v55 = vpop.xlane.xlu1 %3926  ;;  %v5399_v59 = vsel %vm5145_vm7, %v5398_v62, %v5394_v61  ;;  %v11760_v62 = vld [vmem:[#allocation212_spill] sm:$0xff]  ;;  %v3730_v51 = vand.u32 2147483647, %v3474_v48  ;;  %v4639_v42 = vmul.f32 0.0625, %v4383_v12  ;;  %v3508_v31 = vsub.f32 %v11434_v14, %v11748_v54  ;;  %v11766_v14 = vld [vmem:[#allocation27_spill] sm:$0xff] }
 0x665   : > { %v5403_v3 = vrot.slane %v4634_v53, %v9038_v4  ;;  %v4380_v24 = vadd.f32 %v3927_v55, %v11758_v9  ;;  %v3477_v17 = vsub.f32 %v11760_v62, %v11733_v39  ;;  %v3702_v55 = vand.u32 2147483647, %v3446_v43 }
 0x666   : > { %4228 = vadd.xlane.f32.xlu0 %v3763_v60  ;;  %v3685_v12 = vand.u32 2147483647, %v3429_v10  ;;  %v3490_v10 = vsub.f32 %v11407_v22, %v11748_v54 }
 0x667   : > { %v5404_v18 = vsel %vm5152_vm8, %v5403_v3, %v5399_v59  ;;  %4130 = vadd.xlane.f32.xlu1 %v3714_v16  ;;  %v4636_v53 = vmul.f32 0.0625, %v4380_v24  ;;  %v9407_v41 = vpop.xlane.xlu0 %3952  ;;  %v5418_v16 = vrot.slane %v4637_v50, %v9062_v2  ;;  %v11762_v3 = vld [vmem:[#allocation329_spill] sm:$0xff]  ;;  %v3733_v48 = vand.u32 2147483647, %v3477_v17  ;;  %v11764_v50 = vld [vmem:[#allocation331_spill] sm:$0xff] }
 0x668   : > { %v5409_v45 = vsel %vm5159_vm9, %v5408_v35, %v5404_v18  ;;  %v3931_v32 = vpop.xlane.xlu1 %3930  ;;  %v4385_v60 = vadd.f32 %v9353_v52, %v11762_v3  ;;  %v11763_v35 = vld [vmem:[#allocation185_spill] sm:$0xff]  ;;  %v4387_v62 = vadd.f32 %v9365_v40, %v11764_v50  ;;  %v3523_v17 = vsub.f32 %v7756_v28, %v11766_v14 }
 0x669   : > { %v4382_v61 = vadd.f32 %v3931_v32, %v11761_v23  ;;  %v5413_v59 = vrot.slane %v4636_v53, %v9056_v56  ;;  %v3460_v9 = vsub.f32 %v11763_v35, %v11733_v39  ;;  %v5428_v32 = vrot.slane %v4639_v42, %v9071_v46  ;;  %v11765_v23 = vld [vmem:[#allocation340_spill] sm:$0xff]  ;;  %v11767_v3 = vld [vmem:[#allocation341_spill] sm:$0xff] }
 0x66a   : > { %4106 = vadd.xlane.f32.xlu0 %v3702_v55  ;;  %v4643_v42 = vmul.f32 0.0625, %v4387_v62  ;;  %v3506_v28 = vsub.f32 %v11431_v58, %v11748_v54 }
 0x66b   : > { %v4638_v38 = vmul.f32 0.0625, %v4382_v61  ;;  %4162 = vadd.xlane.f32.xlu1 %v3730_v51  ;;  %v5414_v24 = vsel %vm5166_vm10, %v5413_v59, %v5409_v45  ;;  %v9417_v18 = vpop.xlane.xlu0 %3956  ;;  %v4641_v45 = vmul.f32 0.0625, %v4385_v60  ;;  %v3764_v60 = vand.u32 2147483647, %v3508_v31 }
 0x66c   : > { %v3935_v43 = vpop.xlane.xlu1 %3934  ;;  %v5419_v52 = vsel %vm5173_vm11, %v5418_v16, %v5414_v24  ;;  %v3716_v35 = vand.u32 2147483647, %v3460_v9  ;;  %v3779_v31 = vand.u32 2147483647, %v3523_v17  ;;  %v3746_v9 = vand.u32 2147483647, %v3490_v10 }
 0x66d   : > { %v5423_v53 = vrot.slane %v4638_v38, %v9078_v19  ;;  %v4384_v61 = vadd.f32 %v3935_v43, %v11765_v23  ;;  %v5438_v43 = vrot.slane %v4641_v45, %v9105_v34 }
 0x66e   : > { %4168 = vadd.xlane.f32.xlu0 %v3733_v48  ;;  %v11768_v48 = vld [vmem:[#allocation333_spill] sm:$0xff] }
 0x66f   : > { %v5424_v55 = vsel %vm5180_vm12, %v5423_v53, %v5419_v52  ;;  %4072 = vadd.xlane.f32.xlu1 %v3685_v12  ;;  %v4640_v40 = vmul.f32 0.0625, %v4384_v61  ;;  %v9433_v59 = vpop.xlane.xlu0 %3960  ;;  %v4389_v22 = vadd.f32 %v9379_v63, %v11768_v48  ;;  %v3539_v53 = vsub.f32 %v7836_v37, %v11766_v14  ;;  %v11769_v61 = vld [vmem:[#allocation335_spill] sm:$0xff] }
 0x670   : > { %v5429_v51 = vsel %vm5187_vm13, %v5428_v32, %v5424_v55  ;;  %v3939_v16 = vpop.xlane.xlu1 %3938  ;;  %v5447_v32 = vrot.slane %v4643_v42, %v8951_v57  ;;  %v4391_v45 = vadd.f32 %v9391_v47, %v11769_v61  ;;  %v11770_v55 = vld [vmem:[#allocation343_spill] sm:$0xff] }
 0x671   : > { %v4386_v38 = vadd.f32 %v3939_v16, %v11767_v3  ;;  %v5433_v24 = vrot.slane %v4640_v40, %v9100_v30  ;;  %v4645_v17 = vmul.f32 0.0625, %v4389_v22  ;;  %v11771_v37 = vld [vmem:[#allocation155_spill] sm:$0xff]  ;;  %v11772_v16 = vld [vmem:[#allocation182_spill] sm:$0xff] }
 0x672   : > { %4230 = vadd.xlane.f32.xlu0 %v3764_v60  ;;  %v3447_v42 = vsub.f32 %v11772_v16, %v11722_v33  ;;  %v11773_v60 = vld [vmem:[#allocation345_spill] sm:$0xff]  ;;  %v11776_v61 = vld [vmem:[#allocation203_spill] sm:$0xff] }
 0x673   : > { %v4642_v12 = vmul.f32 0.0625, %v4386_v38  ;;  %4134 = vadd.xlane.f32.xlu1 %v3716_v35  ;;  %v5434_v50 = vsel %vm5194_vm14, %v5433_v24, %v5429_v51  ;;  %v9443_v62 = vpop.xlane.xlu0 %3964  ;;  %v3430_v51 = vsub.f32 %v11771_v37, %v11722_v33  ;;  %v3795_v35 = vand.u32 2147483647, %v3539_v53  ;;  %v11778_v37 = vld [vmem:[#allocation347_spill] sm:$0xff] }
 0x674   : > { %v3943_v52 = vpop.xlane.xlu1 %3942  ;;  %v5439_v63 = vsel %vm5201_vm15, %v5438_v43, %v5434_v50  ;;  %v3762_v24 = vand.u32 2147483647, %v3506_v28  ;;  %v4647_v43 = vmul.f32 0.0625, %v4391_v45  ;;  %v5457_v22 = vrot.slane %v4645_v17, %v8981_v0  ;;  %v11775_v28 = vld [vmem:[#allocation196_spill] sm:$0xff]  ;;  %v11777_v17 = vld [vmem:[#allocation339_spill] sm:$0xff] }
 0x675   : > { %v5443_v23 = vrot.slane %v4642_v12, %v8955_v36  ;;  %v9454_v58 = vsel %vm6388_vm0, %v5439_v63, %v9232_v44  ;;  %v4388_v40 = vadd.f32 %v3943_v52, %v11770_v55  ;;  %v11774_v12 = vld [vmem:[#allocation337_spill] sm:$0xff]  ;;  %v3703_v63 = vand.u32 2147483647, %v3447_v42 }
 0x676   : > { %4260 = vadd.xlane.f32.xlu0 %v3779_v31  ;;  %v4393_v50 = vadd.f32 %v9407_v41, %v11774_v12  ;;  %v3461_v53 = vsub.f32 %v11775_v28, %v11733_v39  ;;  %v3478_v45 = vsub.f32 %v11776_v61, %v11733_v39  ;;  %v3492_v42 = vsub.f32 %v11410_v15, %v11748_v54 }
 0x677   : > { %v5448_v10 = vsel %vm5103_vm1, %v5447_v32, %v5443_v23  ;;  %4194 = vadd.xlane.f32.xlu1 %v3746_v9  ;;  %v4644_v3 = vmul.f32 0.0625, %v4388_v40  ;;  %v9462_v38 = vpop.xlane.xlu0 %3968  ;;  %v3686_v23 = vand.u32 2147483647, %v3430_v51  ;;  %v5467_v40 = vrot.slane %v4647_v43, %v8993_v29 }
 0x678   : > { %v3947_v47 = vpop.xlane.xlu1 %3946  ;;  %v3748_v61 = vand.u32 2147483647, %v3492_v42  ;;  %vm6390_vm0 = vcmask 1042434  }
 0x679   : > { %v4390_v44 = vadd.f32 %v3947_v47, %v11773_v60  ;;  %v5452_v48 = vrot.slane %v4644_v3, %v8974_v1  ;;  %v4649_v3 = vmul.f32 0.0625, %v4393_v50  ;;  %v3509_v47 = vsub.f32 %v7684_v7, %v11748_v54 }
 0x67a   : > { %4292 = vadd.xlane.f32.xlu0 %v3795_v35 }
 0x67b   : > { %v4646_v52 = vmul.f32 0.0625, %v4390_v44  ;;  %4226 = vadd.xlane.f32.xlu1 %v3762_v24  ;;  %v5453_v31 = vsel %vm5110_vm2, %v5452_v48, %v5448_v10  ;;  %v9470_v9 = vpop.xlane.xlu0 %3972  ;;  %v4395_v10 = vadd.f32 %v9417_v18, %v11777_v17  ;;  %v11779_v18 = vld [vmem:[#allocation349_spill] sm:$0xff]  ;;  %v3734_v48 = vand.u32 2147483647, %v3478_v45 }
 0x67c   : > { %v3951_v32 = vpop.xlane.xlu1 %3950  ;;  %v5458_v55 = vsel %vm5117_vm3, %v5457_v22, %v5453_v31  ;;  %v3717_v22 = vand.u32 2147483647, %v3461_v53  ;;  %v11780_v31 = vld [vmem:[#allocation178_spill] sm:$0xff]  ;;  %v3765_v28 = vand.u32 2147483647, %v3509_v47  ;;  %v3522_v53 = vsub.f32 %v7710_v27, %v11766_v14  ;;  %v11783_v27 = vld [vmem:[#allocation173_spill] sm:$0xff] }
 0x67d   : > { %v5462_v41 = vrot.slane %v4646_v52, %v8999_v26  ;;  %v4392_v16 = vadd.f32 %v3951_v32, %v11778_v37  ;;  %v4651_v12 = vmul.f32 0.0625, %v4395_v10  ;;  %v5477_v52 = vrot.slane %v4649_v3, %v9022_v21  ;;  %v11782_v10 = vld [vmem:[#allocation351_spill] sm:$0xff] }
 0x67e   : > { %4108 = vadd.xlane.f32.xlu0 %v3703_v63  ;;  %v4397_v15 = vadd.f32 %v9433_v59, %v11780_v31  ;;  %v3540_v45 = vsub.f32 %v7798_v8, %v11766_v14 }
 0x67f   : > { %v5463_v51 = vsel %vm5124_vm4, %v5462_v41, %v5458_v55  ;;  %4074 = vadd.xlane.f32.xlu1 %v3686_v23  ;;  %v4648_v60 = vmul.f32 0.0625, %v4392_v16  ;;  %v9488_v35 = vpop.xlane.xlu0 %3976  ;;  %v5487_v41 = vrot.slane %v4651_v12, %v9031_v5 }
 0x680   : > { %v5468_v44 = vsel %vm5131_vm5, %v5467_v40, %v5463_v51  ;;  %v3955_v24 = vpop.xlane.xlu1 %3954  ;;  %v11781_v40 = vld [vmem:[#allocation342_spill] sm:$0xff]  ;;  %v4653_v16 = vmul.f32 0.0625, %v4397_v15  ;;  %v3448_v51 = vsub.f32 %v11783_v27, %v11722_v33 }
 0x681   : > { %v4394_v43 = vadd.f32 %v3955_v24, %v11779_v18  ;;  %v5472_v50 = vrot.slane %v4648_v60, %v9016_v6  ;;  %v4399_v17 = vadd.f32 %v9443_v62, %v11781_v40  ;;  %v11784_v62 = vld [vmem:[#allocation352_spill] sm:$0xff]  ;;  %v3796_v18 = vand.u32 2147483647, %v3540_v45  ;;  %v11786_v15 = vld [vmem:[#allocation166_spill] sm:$0xff] }
 0x682   : > { %4170 = vadd.xlane.f32.xlu0 %v3734_v48  ;;  %v5497_v12 = vrot.slane %v4653_v16, %v9062_v2  ;;  %v11788_v45 = vld [vmem:[#allocation346_spill] sm:$0xff] }
 0x683   : > { %v4650_v32 = vmul.f32 0.0625, %v4394_v43  ;;  %4136 = vadd.xlane.f32.xlu1 %v3717_v22  ;;  %v5473_v7 = vsel %vm5138_vm6, %v5472_v50, %v5468_v44  ;;  %v9496_v63 = vpop.xlane.xlu0 %3980  ;;  %v3538_v44 = vsub.f32 %v7790_v25, %v11766_v14  ;;  %v3778_v43 = vand.u32 2147483647, %v3522_v53  ;;  %v11785_v50 = vld [vmem:[#allocation344_spill] sm:$0xff]  ;;  %v11787_v25 = vld [vmem:[#allocation214_spill] sm:$0xff] }
 0x684   : > { %v3959_v23 = vpop.xlane.xlu1 %3958  ;;  %v5478_v55 = vsel %vm5145_vm7, %v5477_v52, %v5473_v7  ;;  %v4655_v48 = vmul.f32 0.0625, %v4399_v17  ;;  %v4401_v52 = vadd.f32 %v9462_v38, %v11785_v50  ;;  %v3479_v7 = vsub.f32 %v11787_v25, %v11733_v39  ;;  %v11789_v17 = vld [vmem:[#allocation354_spill] sm:$0xff] }
 0x685   : > { %v5482_v59 = vrot.slane %v4650_v32, %v9038_v4  ;;  %v4396_v37 = vadd.f32 %v3959_v23, %v11782_v10  ;;  %v3431_v32 = vsub.f32 %v11786_v15, %v11722_v33  ;;  %v3704_v53 = vand.u32 2147483647, %v3448_v51 }
 0x686   : > { %4232 = vadd.xlane.f32.xlu0 %v3765_v28  ;;  %v5507_v40 = vrot.slane %v4655_v48, %v9071_v46 }
 0x687   : > { %v5483_v3 = vsel %vm5152_vm8, %v5482_v59, %v5478_v55  ;;  %4198 = vadd.xlane.f32.xlu1 %v3748_v61  ;;  %v4652_v8 = vmul.f32 0.0625, %v4396_v37  ;;  %v9512_v47 = vpop.xlane.xlu0 %3984  ;;  %v4403_v55 = vadd.f32 %v9470_v9, %v11788_v45  ;;  %v4657_v37 = vmul.f32 0.0625, %v4401_v52  ;;  %v11793_v52 = vld [vmem:[#allocation228_spill] sm:$0xff] }
 0x688   : > { %v5488_v42 = vsel %vm5159_vm9, %v5487_v41, %v5483_v3  ;;  %v3963_v60 = vpop.xlane.xlu1 %3962  ;;  %v3794_v41 = vand.u32 2147483647, %v3538_v44  ;;  %v11790_v3 = vld [vmem:[#allocation187_spill] sm:$0xff]  ;;  %v3510_v9 = vsub.f32 %v7656_v20, %v11748_v54 }
 0x689   : > { %v4398_v24 = vadd.f32 %v3963_v60, %v11784_v62  ;;  %v5492_v22 = vrot.slane %v4652_v8, %v9056_v56  ;;  %v3462_v27 = vsub.f32 %v11790_v3, %v11733_v39  ;;  %v4659_v44 = vmul.f32 0.0625, %v4403_v55  ;;  %v11791_v62 = vld [vmem:[#allocation355_spill] sm:$0xff]  ;;  %v11794_v55 = vld [vmem:[#allocation350_spill] sm:$0xff] }
 0x68a   : > { %4294 = vadd.xlane.f32.xlu0 %v3796_v18  ;;  %v3735_v18 = vand.u32 2147483647, %v3479_v7 }
 0x68b   : > { %v4654_v31 = vmul.f32 0.0625, %v4398_v24  ;;  %4258 = vadd.xlane.f32.xlu1 %v3778_v43  ;;  %v5493_v23 = vsel %vm5166_vm10, %v5492_v22, %v5488_v42  ;;  %v9526_v28 = vpop.xlane.xlu0 %3988  ;;  %v3687_v43 = vand.u32 2147483647, %v3431_v32  ;;  %v5517_v22 = vrot.slane %v4657_v37, %v9105_v34 }
 0x68c   : > { %v3967_v61 = vpop.xlane.xlu1 %3966  ;;  %v5498_v38 = vsel %vm5173_vm11, %v5497_v12, %v5493_v23  ;;  %v11792_v12 = vld [vmem:[#allocation348_spill] sm:$0xff]  ;;  %v3766_v32 = vand.u32 2147483647, %v3510_v9  ;;  %v3718_v23 = vand.u32 2147483647, %v3462_v27 }
 0x68d   : > { %v5502_v59 = vrot.slane %v4654_v31, %v9078_v19  ;;  %v4400_v10 = vadd.f32 %v3967_v61, %v11789_v17  ;;  %v4405_v50 = vadd.f32 %v9488_v35, %v11792_v12  ;;  %v3493_v31 = vsub.f32 %v11793_v52, %v11748_v54 }
 0x68e   : > { %4110 = vadd.xlane.f32.xlu0 %v3704_v53  ;;  %v3541_v61 = vsub.f32 %v7844_v11, %v11766_v14  ;;  %v5526_v53 = vrot.slane %v4659_v44, %v8951_v57  ;;  %v11796_v11 = vld [vmem:[#allocation184_spill] sm:$0xff] }
 0x68f   : > { %v5503_v16 = vsel %vm5180_vm12, %v5502_v59, %v5498_v38  ;;  %4290 = vadd.xlane.f32.xlu1 %v3794_v41  ;;  %v4656_v51 = vmul.f32 0.0625, %v4400_v10  ;;  %v9540_v42 = vpop.xlane.xlu0 %3992  ;;  %v4407_v38 = vadd.f32 %v9496_v63, %v11794_v55  ;;  %v11795_v41 = vld [vmem:[#allocation357_spill] sm:$0xff]  ;;  %v4661_v17 = vmul.f32 0.0625, %v4405_v50  ;;  %v11797_v63 = vld [vmem:[#allocation246_spill] sm:$0xff] }
 0x690   : > { %v5508_v8 = vsel %vm5187_vm13, %v5507_v40, %v5503_v16  ;;  %v3971_v60 = vpop.xlane.xlu1 %3970  ;;  %v3449_v37 = vsub.f32 %v11796_v11, %v11722_v33  ;;  %v3524_v9 = vsub.f32 %v11797_v63, %v11766_v14 }
 0x691   : > { %v4402_v24 = vadd.f32 %v3971_v60, %v11791_v62  ;;  %v5512_v48 = vrot.slane %v4656_v51, %v9100_v30  ;;  %v11798_v51 = vld [vmem:[#allocation359_spill] sm:$0xff]  ;;  %v3749_v60 = vand.u32 2147483647, %v3493_v31  ;;  %v4663_v44 = vmul.f32 0.0625, %v4407_v38 }
 0x692   : > { %4172 = vadd.xlane.f32.xlu0 %v3735_v18  ;;  %v11799_v18 = vld [vmem:[#allocation169_spill] sm:$0xff]  ;;  %v3705_v31 = vand.u32 2147483647, %v3449_v37 }
 0x693   : > { %v4658_v20 = vmul.f32 0.0625, %v4402_v24  ;;  %4076 = vadd.xlane.f32.xlu1 %v3687_v43  ;;  %v5513_v15 = vsel %vm5194_vm14, %v5512_v48, %v5508_v8  ;;  %v9550_v25 = vpop.xlane.xlu0 %3996  ;;  %v3797_v8 = vand.u32 2147483647, %v3541_v61  ;;  %v5536_v24 = vrot.slane %v4661_v17, %v8981_v0 }
 0x694   : > { %v3975_v7 = vpop.xlane.xlu1 %3974  ;;  %v5518_v35 = vsel %vm5201_vm15, %v5517_v22, %v5513_v15  ;;  %v4409_v43 = vadd.f32 %v9512_v47, %v11799_v18  ;;  %v11800_v22 = vld [vmem:[#allocation157_spill] sm:$0xff]  ;;  %v3780_v47 = vand.u32 2147483647, %v3524_v9  ;;  %v5546_v61 = vrot.slane %v4663_v44, %v8993_v29 }
 0x695   : > { %v5522_v45 = vrot.slane %v4658_v20, %v8955_v36  ;;  %v9561_v59 = vsel %vm6390_vm0, %v5518_v35, %v9344_v13  ;;  %v4404_v40 = vadd.f32 %v3975_v7, %v11795_v41  ;;  %v3432_v12 = vsub.f32 %v11800_v22, %v11722_v33  ;;  %v11801_v15 = vld [vmem:[#allocation205_spill] sm:$0xff] }
 0x696   : > { %4234 = vadd.xlane.f32.xlu0 %v3766_v32  ;;  %v3480_v7 = vsub.f32 %v11801_v15, %v11733_v39  ;;  %v4665_v38 = vmul.f32 0.0625, %v4409_v43  ;;  %v11808_v43 = vld [vmem:[#allocation219_spill] sm:$0xff] }
 0x697   : > { %v5527_v10 = vsel %vm5103_vm1, %v5526_v53, %v5522_v45  ;;  %4138 = vadd.xlane.f32.xlu1 %v3718_v23  ;;  %v4660_v16 = vmul.f32 0.0625, %v4404_v40  ;;  %v9567_v3 = vpop.xlane.xlu0 %4000  ;;  %v11802_v53 = vld [vmem:[#allocation353_spill] sm:$0xff]  ;;  %v11804_v40 = vld [vmem:[#allocation198_spill] sm:$0xff] }
 0x698   : > { %v3979_v27 = vpop.xlane.xlu1 %3978  ;;  %v4411_v35 = vadd.f32 %v9526_v28, %v11802_v53  ;;  %v11803_v45 = vld [vmem:[#allocation361_spill] sm:$0xff]  ;;  %v3463_v17 = vsub.f32 %v11804_v40, %v11733_v39  ;;  %v11806_v28 = vld [vmem:[#allocation363_spill] sm:$0xff]  ;;  %v5556_v44 = vrot.slane %v4665_v38, %v9022_v21 }
 0x699   : > { %v4406_v13 = vadd.f32 %v3979_v27, %v11798_v51  ;;  %v5531_v62 = vrot.slane %v4660_v16, %v8974_v1  ;;  %v11805_v27 = vld [vmem:[#allocation242_spill] sm:$0xff]  ;;  %v3736_v51 = vand.u32 2147483647, %v3480_v7  ;;  %v11811_v53 = vld [vmem:[#allocation365_spill] sm:$0xff]  ;;  %v11812_v38 = vld [vmem:[#allocation175_spill] sm:$0xff] }
 0x69a   : > { %4296 = vadd.xlane.f32.xlu0 %v3797_v8  ;;  %v3511_v63 = vsub.f32 %v11805_v27, %v11748_v54  ;;  %v4667_v8 = vmul.f32 0.0625, %v4411_v35 }
 0x69b   : > { %v4662_v48 = vmul.f32 0.0625, %v4406_v13  ;;  %4200 = vadd.xlane.f32.xlu1 %v3749_v60  ;;  %v5532_v50 = vsel %vm5110_vm2, %v5531_v62, %v5527_v10  ;;  %v9579_v20 = vpop.xlane.xlu0 %4004  ;;  %v3688_v13 = vand.u32 2147483647, %v3432_v12  ;;  %v11807_v62 = vld [vmem:[#allocation17_spill] sm:$0xff]  ;;  %v3719_v12 = vand.u32 2147483647, %v3463_v17 }
 0x69c   : > { %v3983_v52 = vpop.xlane.xlu1 %3982  ;;  %v5537_v32 = vsel %vm5117_vm3, %v5536_v24, %v5532_v50  ;;  %v4413_v24 = vadd.f32 %v9540_v42, %v11807_v62  ;;  %v3767_v42 = vand.u32 2147483647, %v3511_v63 }
 0x69d   : > { %v5541_v23 = vrot.slane %v4662_v48, %v8999_v26  ;;  %v4408_v55 = vadd.f32 %v3983_v52, %v11803_v45  ;;  %v3494_v48 = vsub.f32 %v11808_v43, %v11748_v54  ;;  %v11817_v43 = vld [vmem:[#allocation216_spill] sm:$0xff] }
 0x69e   : > { %4112 = vadd.xlane.f32.xlu0 %v3705_v31  ;;  %v11809_v31 = vld [vmem:[#allocation261_spill] sm:$0xff]  ;;  %v4669_v45 = vmul.f32 0.0625, %v4413_v24  ;;  %v11816_v24 = vld [vmem:[#allocation168_spill] sm:$0xff] }
 0x69f   : > { %v5542_v41 = vsel %vm5124_vm4, %v5541_v23, %v5537_v32  ;;  %4262 = vadd.xlane.f32.xlu1 %v3780_v47  ;;  %v4664_v10 = vmul.f32 0.0625, %v4408_v55  ;;  %v9593_v37 = vpop.xlane.xlu0 %4008  ;;  %v3542_v15 = vsub.f32 %v11809_v31, %v11766_v14  ;;  %v5566_v23 = vrot.slane %v4667_v8, %v9031_v5  ;;  %v11810_v47 = vld [vmem:[#allocation356_spill] sm:$0xff] }
 0x6a0   : > { %v5547_v11 = vsel %vm5131_vm5, %v5546_v61, %v5542_v41  ;;  %v3987_v16 = vpop.xlane.xlu1 %3986  ;;  %v4415_v61 = vadd.f32 %v9550_v25, %v11810_v47  ;;  %v3450_v41 = vsub.f32 %v11812_v38, %v11722_v33  ;;  %v11814_v25 = vld [vmem:[#allocation367_spill] sm:$0xff]  ;;  %v5576_v8 = vrot.slane %v4669_v45, %v9062_v2  ;;  %v11819_v47 = vld [vmem:[#allocation369_spill] sm:$0xff] }
 0x6a1   : > { %v4410_v9 = vadd.f32 %v3987_v16, %v11806_v28  ;;  %v5551_v60 = vrot.slane %v4664_v10, %v9016_v6  ;;  %v11813_v16 = vld [vmem:[#allocation254_spill] sm:$0xff]  ;;  %v3798_v28 = vand.u32 2147483647, %v3542_v15  ;;  %v11818_v15 = vld [vmem:[#allocation360_spill] sm:$0xff]  ;;  %v11820_v45 = vld [vmem:[#allocation189_spill] sm:$0xff] }
 0x6a2   : > { %4174 = vadd.xlane.f32.xlu0 %v3736_v51  ;;  %v3525_v27 = vsub.f32 %v11813_v16, %v11766_v14  ;;  %v4671_v51 = vmul.f32 0.0625, %v4415_v61  ;;  %v3706_v31 = vand.u32 2147483647, %v3450_v41  ;;  %v11821_v38 = vld [vmem:[#allocation237_spill] sm:$0xff] }
 0x6a3   : > { %v4666_v18 = vmul.f32 0.0625, %v4410_v9  ;;  %4078 = vadd.xlane.f32.xlu1 %v3688_v13  ;;  %v5552_v22 = vsel %vm5138_vm6, %v5551_v60, %v5547_v11  ;;  %v9605_v50 = vpop.xlane.xlu0 %4012  ;;  %v3750_v9 = vand.u32 2147483647, %v3494_v48  ;;  %v11815_v60 = vld [vmem:[#allocation358_spill] sm:$0xff] }
 0x6a4   : > { %v3991_v52 = vpop.xlane.xlu1 %3990  ;;  %v5557_v7 = vsel %vm5145_vm7, %v5556_v44, %v5552_v22  ;;  %v4417_v44 = vadd.f32 %v9567_v3, %v11815_v60  ;;  %v3481_v22 = vsub.f32 %v11817_v43, %v11733_v39 }
 0x6a5   : > { %v5561_v32 = vrot.slane %v4666_v18, %v9038_v4  ;;  %v4412_v35 = vadd.f32 %v3991_v52, %v11811_v53  ;;  %v3433_v18 = vsub.f32 %v11816_v24, %v11722_v33 }
 0x6a6   : > { %4236 = vadd.xlane.f32.xlu0 %v3767_v42  ;;  %v3781_v42 = vand.u32 2147483647, %v3525_v27  ;;  %v4673_v53 = vmul.f32 0.0625, %v4417_v44  ;;  %v11822_v27 = vld [vmem:[#allocation370_spill] sm:$0xff] }
 0x6a7   : > { %v5562_v55 = vsel %vm5152_vm8, %v5561_v32, %v5557_v7  ;;  %4140 = vadd.xlane.f32.xlu1 %v3719_v12  ;;  %v4668_v40 = vmul.f32 0.0625, %v4412_v35  ;;  %v9619_v10 = vpop.xlane.xlu0 %4016  ;;  %v4419_v7 = vadd.f32 %v9579_v20, %v11818_v15  ;;  %v3512_v20 = vsub.f32 %v11821_v38, %v11748_v54  ;;  %v11824_v44 = vld [vmem:[#allocation230_spill] sm:$0xff] }
 0x6a8   : > { %v5567_v17 = vsel %vm5159_vm9, %v5566_v23, %v5562_v55  ;;  %v3995_v11 = vpop.xlane.xlu1 %3994  ;;  %v5586_v23 = vrot.slane %v4671_v51, %v9071_v46  ;;  %v3464_v55 = vsub.f32 %v11820_v45, %v11733_v39  ;;  %v5596_v51 = vrot.slane %v4673_v53, %v9105_v34 }
 0x6a9   : > { %v4414_v63 = vadd.f32 %v3995_v11, %v11814_v25  ;;  %v5571_v13 = vrot.slane %v4668_v40, %v9056_v56  ;;  %v4675_v16 = vmul.f32 0.0625, %v4419_v7 }
 0x6aa   : > { %4298 = vadd.xlane.f32.xlu0 %v3798_v28  ;;  %v3689_v28 = vand.u32 2147483647, %v3433_v18  ;;  %v3720_v18 = vand.u32 2147483647, %v3464_v55 }
 0x6ab   : > { %v4670_v62 = vmul.f32 0.0625, %v4414_v63  ;;  %4202 = vadd.xlane.f32.xlu1 %v3750_v9  ;;  %v5572_v52 = vsel %vm5166_vm10, %v5571_v13, %v5567_v17  ;;  %v9633_v48 = vpop.xlane.xlu0 %4020  ;;  %v3737_v63 = vand.u32 2147483647, %v3481_v22  ;;  %v11823_v13 = vld [vmem:[#allocation362_spill] sm:$0xff]  ;;  %v3768_v22 = vand.u32 2147483647, %v3512_v20 }
 0x6ac   : > { %v3999_v12 = vpop.xlane.xlu1 %3998  ;;  %v5577_v3 = vsel %vm5173_vm11, %v5576_v8, %v5572_v52  ;;  %v4421_v8 = vadd.f32 %v9593_v37, %v11823_v13  ;;  %v5605_v15 = vrot.slane %v4675_v16, %v8951_v57  ;;  %v11832_v13 = vld [vmem:[#allocation159_spill] sm:$0xff] }
 0x6ad   : > { %v5581_v32 = vrot.slane %v4670_v62, %v9078_v19  ;;  %v4416_v61 = vadd.f32 %v3999_v12, %v11819_v47  ;;  %v3495_v62 = vsub.f32 %v11824_v44, %v11748_v54  ;;  %v11825_v12 = vld [vmem:[#allocation267_spill] sm:$0xff] }
 0x6ae   : > { %4114 = vadd.xlane.f32.xlu0 %v3706_v31  ;;  %v3543_v31 = vsub.f32 %v11825_v12, %v11766_v14 }
 0x6af   : > { %v5582_v35 = vsel %vm5180_vm12, %v5581_v32, %v5577_v3  ;;  %4264 = vadd.xlane.f32.xlu1 %v3781_v42  ;;  %v4672_v41 = vmul.f32 0.0625, %v4416_v61  ;;  %v9647_v17 = vpop.xlane.xlu0 %4024  ;;  %v11826_v3 = vld [vmem:[#allocation364_spill] sm:$0xff]  ;;  %v4677_v61 = vmul.f32 0.0625, %v4421_v8  ;;  %v3751_v16 = vand.u32 2147483647, %v3495_v62 }
 0x6b0   : > { %v5587_v40 = vsel %vm5187_vm13, %v5586_v23, %v5582_v35  ;;  %v4003_v11 = vpop.xlane.xlu1 %4002  ;;  %v4423_v32 = vadd.f32 %v9605_v50, %v11826_v3  ;;  %v11827_v23 = vld [vmem:[#allocation372_spill] sm:$0xff]  ;;  %v11828_v35 = vld [vmem:[#allocation170_spill] sm:$0xff]  ;;  %v3434_v8 = vsub.f32 %v11832_v13, %v11722_v33 }
 0x6b1   : > { %v4418_v25 = vadd.f32 %v4003_v11, %v11822_v27  ;;  %v5591_v9 = vrot.slane %v4672_v41, %v9100_v30  ;;  %v3435_v45 = vsub.f32 %v11828_v35, %v11722_v33  ;;  %v11829_v50 = vld [vmem:[#allocation248_spill] sm:$0xff]  ;;  %v3799_v11 = vand.u32 2147483647, %v3543_v31 }
 0x6b2   : > { %4176 = vadd.xlane.f32.xlu0 %v3737_v63  ;;  %v3526_v41 = vsub.f32 %v11829_v50, %v11766_v14  ;;  %v4679_v27 = vmul.f32 0.0625, %v4423_v32  ;;  %v5615_v63 = vrot.slane %v4677_v61, %v8981_v0 }
 0x6b3   : > { %v4674_v60 = vmul.f32 0.0625, %v4418_v25  ;;  %4080 = vadd.xlane.f32.xlu1 %v3689_v28  ;;  %v5592_v24 = vsel %vm5194_vm14, %v5591_v9, %v5587_v40  ;;  %v9657_v43 = vpop.xlane.xlu0 %4028  ;;  %v11830_v40 = vld [vmem:[#allocation374_spill] sm:$0xff]  ;;  %v3691_v62 = vand.u32 2147483647, %v3435_v45 }
 0x6b4   : > { %v4007_v52 = vpop.xlane.xlu1 %4006  ;;  %v5597_v37 = vsel %vm5201_vm15, %v5596_v51, %v5592_v24  ;;  %v11831_v28 = vld [vmem:[#allocation366_spill] sm:$0xff]  ;;  %v5625_v31 = vrot.slane %v4679_v27, %v8993_v29 }
 0x6b5   : > { %v5601_v7 = vrot.slane %v4674_v60, %v8955_v36  ;;  %v9668_v42 = vsel %vm6390_vm0, %v5597_v37, %v9454_v58  ;;  %v4420_v47 = vadd.f32 %v4007_v52, %v11827_v23  ;;  %v4425_v9 = vadd.f32 %v9619_v10, %v11831_v28  ;;  %v11833_v52 = vld [vmem:[#allocation191_spill] sm:$0xff] }
 0x6b6   : > { %4238 = vadd.xlane.f32.xlu0 %v3768_v22  ;;  %v3466_v22 = vsub.f32 %v11833_v52, %v11733_v39  ;;  %v3782_v10 = vand.u32 2147483647, %v3526_v41  ;;  %vm6392_vm0 = vcmask 1043459  }
 0x6b7   : > { %v5606_v53 = vsel %vm5103_vm1, %v5605_v15, %v5601_v7  ;;  %4142 = vadd.xlane.f32.xlu1 %v3720_v18  ;;  %v4676_v55 = vmul.f32 0.0625, %v4420_v47  ;;  %v9674_v38 = vpop.xlane.xlu0 %4032  ;;  %v11834_v15 = vld [vmem:[#allocation368_spill] sm:$0xff]  ;;  %v4681_v32 = vmul.f32 0.0625, %v4425_v9  ;;  %v11840_v9 = vld [vmem:[#allocation221_spill] sm:$0xff] }
 0x6b8   : > { %v4011_v20 = vpop.xlane.xlu1 %4010  ;;  %v4427_v37 = vadd.f32 %v9633_v48, %v11834_v15  ;;  %v11835_v7 = vld [vmem:[#allocation376_spill] sm:$0xff]  ;;  %v11838_v48 = vld [vmem:[#allocation378_spill] sm:$0xff] }
 0x6b9   : > { %v4422_v58 = vadd.f32 %v4011_v20, %v11830_v40  ;;  %v5610_v25 = vrot.slane %v4676_v55, %v8974_v1  ;;  %v11836_v47 = vld [vmem:[#allocation200_spill] sm:$0xff]  ;;  %v11837_v20 = vld [vmem:[#allocation231_spill] sm:$0xff]  ;;  %v3722_v40 = vand.u32 2147483647, %v3466_v22  ;;  %v5635_v27 = vrot.slane %v4681_v32, %v9022_v21 }
 0x6ba   : > { %4300 = vadd.xlane.f32.xlu0 %v3799_v11  ;;  %v3465_v61 = vsub.f32 %v11836_v47, %v11733_v39  ;;  %v3497_v50 = vsub.f32 %v11837_v20, %v11748_v54  ;;  %v4683_v11 = vmul.f32 0.0625, %v4427_v37  ;;  %v11843_v15 = vld [vmem:[#allocation380_spill] sm:$0xff] }
 0x6bb   : > { %v4678_v51 = vmul.f32 0.0625, %v4422_v58  ;;  %4204 = vadd.xlane.f32.xlu1 %v3751_v16  ;;  %v5611_v60 = vsel %vm5110_vm2, %v5610_v25, %v5606_v53  ;;  %v9686_v44 = vpop.xlane.xlu0 %4036  ;;  %v3690_v58 = vand.u32 2147483647, %v3434_v8  ;;  %v11839_v25 = vld [vmem:[#allocation210_spill] sm:$0xff]  ;;  %v11844_v32 = vld [vmem:[#allocation156_spill] sm:$0xff] }
 0x6bc   : > { %v4015_v24 = vpop.xlane.xlu1 %4014  ;;  %v5616_v18 = vsel %vm5117_vm3, %v5615_v63, %v5611_v60  ;;  %v4429_v63 = vadd.f32 %v9647_v17, %v11839_v25  ;;  %v3721_v8 = vand.u32 2147483647, %v3465_v61  ;;  %v3753_v17 = vand.u32 2147483647, %v3497_v50 }
 0x6bd   : > { %v5620_v12 = vrot.slane %v4678_v51, %v8999_v26  ;;  %v4424_v3 = vadd.f32 %v4015_v24, %v11835_v7  ;;  %v3496_v51 = vsub.f32 %v11840_v9, %v11748_v54  ;;  %v11849_v9 = vld [vmem:[#allocation177_spill] sm:$0xff] }
 0x6be   : > { %4084 = vadd.xlane.f32.xlu0 %v3691_v62  ;;  %v11841_v62 = vld [vmem:[#allocation250_spill] sm:$0xff]  ;;  %v4685_v7 = vmul.f32 0.0625, %v4429_v63  ;;  %v11848_v63 = vld [vmem:[#allocation145_spill] sm:$0xff] }
 0x6bf   : > { %v5621_v23 = vsel %vm5124_vm4, %v5620_v12, %v5616_v18  ;;  %4266 = vadd.xlane.f32.xlu1 %v3782_v10  ;;  %v4680_v53 = vmul.f32 0.0625, %v4424_v3  ;;  %v9700_v45 = vpop.xlane.xlu0 %4040  ;;  %v3528_v52 = vsub.f32 %v11841_v62, %v11766_v14  ;;  %v5645_v12 = vrot.slane %v4683_v11, %v9031_v5  ;;  %v11842_v10 = vld [vmem:[#allocation371_spill] sm:$0xff] }
 0x6c0   : > { %v5626_v35 = vsel %vm5131_vm5, %v5625_v31, %v5621_v23  ;;  %v4019_v55 = vpop.xlane.xlu1 %4018  ;;  %v4431_v31 = vadd.f32 %v9657_v43, %v11842_v10  ;;  %v3421_v23 = vsub.f32 %v11844_v32, %v11647_v49  ;;  %v11846_v43 = vld [vmem:[#allocation381_spill] sm:$0xff]  ;;  %v5655_v11 = vrot.slane %v4685_v7, %v9062_v2  ;;  %v11851_v10 = vld [vmem:[#allocation383_spill] sm:$0xff]  ;;  %v11852_v7 = vld [vmem:[#allocation186_spill] sm:$0xff] }
 0x6c1   : > { %v4426_v41 = vadd.f32 %v4019_v55, %v11838_v48  ;;  %v5630_v16 = vrot.slane %v4680_v53, %v9016_v6  ;;  %v11845_v55 = vld [vmem:[#allocation256_spill] sm:$0xff]  ;;  %v3784_v48 = vand.u32 2147483647, %v3528_v52  ;;  %v11850_v52 = vld [vmem:[#allocation375_spill] sm:$0xff]  ;;  %v11853_v32 = vld [vmem:[#allocation218_spill] sm:$0xff] }
 0x6c2   : > { %4146 = vadd.xlane.f32.xlu0 %v3722_v40  ;;  %v3527_v20 = vsub.f32 %v11845_v55, %v11766_v14  ;;  %v4687_v40 = vmul.f32 0.0625, %v4431_v31  ;;  %v3677_v62 = vand.u32 2147483647, %v3421_v23 }
 0x6c3   : > { %v4682_v28 = vmul.f32 0.0625, %v4426_v41  ;;  %4082 = vadd.xlane.f32.xlu1 %v3690_v58  ;;  %v5631_v13 = vsel %vm5138_vm6, %v5630_v16, %v5626_v35  ;;  %v9712_v60 = vpop.xlane.xlu0 %4044  ;;  %v3752_v41 = vand.u32 2147483647, %v3496_v51  ;;  %v11847_v16 = vld [vmem:[#allocation373_spill] sm:$0xff] }
 0x6c4   : > { %v4023_v24 = vpop.xlane.xlu1 %4022  ;;  %v5636_v22 = vsel %vm5145_vm7, %v5635_v27, %v5631_v13  ;;  %v4433_v27 = vadd.f32 %v9674_v38, %v11847_v16  ;;  %v3452_v13 = vsub.f32 %v11849_v9, %v11722_v33 }
 0x6c5   : > { %v5640_v18 = vrot.slane %v4682_v28, %v9038_v4  ;;  %v4428_v37 = vadd.f32 %v4023_v24, %v11843_v15  ;;  %v3420_v28 = vsub.f32 %v11848_v63, %v11647_v49 }
 0x6c6   : > { %4208 = vadd.xlane.f32.xlu0 %v3753_v17  ;;  %v3783_v17 = vand.u32 2147483647, %v3527_v20  ;;  %v4689_v15 = vmul.f32 0.0625, %v4433_v27  ;;  %v11854_v20 = vld [vmem:[#allocation384_spill] sm:$0xff]  ;;  %v11856_v27 = vld [vmem:[#allocation207_spill] sm:$0xff] }
 0x6c7   : > { %v5641_v3 = vsel %vm5152_vm8, %v5640_v18, %v5636_v22  ;;  %4144 = vadd.xlane.f32.xlu1 %v3721_v8  ;;  %v4684_v47 = vmul.f32 0.0625, %v4428_v37  ;;  %v9726_v53 = vpop.xlane.xlu0 %4048  ;;  %v4435_v22 = vadd.f32 %v9686_v44, %v11850_v52  ;;  %v3483_v44 = vsub.f32 %v11853_v32, %v11733_v39 }
 0x6c8   : > { %v5646_v61 = vsel %vm5159_vm9, %v5645_v12, %v5641_v3  ;;  %v4027_v35 = vpop.xlane.xlu1 %4026  ;;  %v5665_v12 = vrot.slane %v4687_v40, %v9071_v46  ;;  %v3451_v3 = vsub.f32 %v11852_v7, %v11722_v33  ;;  %v5675_v40 = vrot.slane %v4689_v15, %v9105_v34 }
 0x6c9   : > { %v4430_v50 = vadd.f32 %v4027_v35, %v11846_v43  ;;  %v5650_v58 = vrot.slane %v4684_v47, %v9056_v56  ;;  %v4691_v55 = vmul.f32 0.0625, %v4435_v22 }
 0x6ca   : > { %4270 = vadd.xlane.f32.xlu0 %v3784_v48  ;;  %v3676_v48 = vand.u32 2147483647, %v3420_v28  ;;  %v3739_v28 = vand.u32 2147483647, %v3483_v44 }
 0x6cb   : > { %v4686_v25 = vmul.f32 0.0625, %v4430_v50  ;;  %4206 = vadd.xlane.f32.xlu1 %v3752_v41  ;;  %v5651_v24 = vsel %vm5166_vm10, %v5650_v58, %v5646_v61  ;;  %v9740_v51 = vpop.xlane.xlu0 %4052  ;;  %v3708_v50 = vand.u32 2147483647, %v3452_v13  ;;  %v11855_v58 = vld [vmem:[#allocation377_spill] sm:$0xff]  ;;  %v5684_v52 = vrot.slane %v4691_v55, %v8951_v57 }
 0x6cc   : > { %v4031_v8 = vpop.xlane.xlu1 %4030  ;;  %v5656_v38 = vsel %vm5173_vm11, %v5655_v11, %v5651_v24  ;;  %v4437_v11 = vadd.f32 %v9700_v45, %v11855_v58  ;;  %v3707_v24 = vand.u32 2147483647, %v3451_v3  ;;  %v11864_v58 = vld [vmem:[#allocation172_spill] sm:$0xff] }
 0x6cd   : > { %v5660_v18 = vrot.slane %v4686_v25, %v9078_v19  ;;  %v4432_v31 = vadd.f32 %v4031_v8, %v11851_v10  ;;  %v3482_v25 = vsub.f32 %v11856_v27, %v11733_v39  ;;  %v11857_v8 = vld [vmem:[#allocation239_spill] sm:$0xff] }
 0x6ce   : > { %4056 = vadd.xlane.f32.xlu0 %v3677_v62  ;;  %v3514_v62 = vsub.f32 %v11857_v8, %v11748_v54 }
 0x6cf   : > { %v5661_v37 = vsel %vm5180_vm12, %v5660_v18, %v5656_v38  ;;  %4268 = vadd.xlane.f32.xlu1 %v3783_v17  ;;  %v4688_v23 = vmul.f32 0.0625, %v4432_v31  ;;  %v9754_v61 = vpop.xlane.xlu0 %4068  ;;  %v11858_v38 = vld [vmem:[#allocation379_spill] sm:$0xff]  ;;  %v11859_v17 = vld [vmem:[#allocation386_spill] sm:$0xff]  ;;  %v4693_v31 = vmul.f32 0.0625, %v4437_v11  ;;  %v3437_v11 = vsub.f32 %v11864_v58, %v11722_v33 }
 0x6d0   : > { %v5666_v47 = vsel %vm5187_vm13, %v5665_v12, %v5661_v37  ;;  %v4035_v35 = vpop.xlane.xlu1 %4034  ;;  %v4439_v18 = vadd.f32 %v9712_v60, %v11858_v38  ;;  %v11860_v37 = vld [vmem:[#allocation244_spill] sm:$0xff]  ;;  %v3770_v55 = vand.u32 2147483647, %v3514_v62 }
 0x6d1   : > { %v4434_v43 = vadd.f32 %v4035_v35, %v11854_v20  ;;  %v5670_v41 = vrot.slane %v4688_v23, %v9100_v30  ;;  %v3513_v7 = vsub.f32 %v11860_v37, %v11748_v54  ;;  %v11861_v23 = vld [vmem:[#allocation269_spill] sm:$0xff]  ;;  %v3738_v20 = vand.u32 2147483647, %v3482_v25 }
 0x6d2   : > { %4118 = vadd.xlane.f32.xlu0 %v3708_v50  ;;  %v3545_v60 = vsub.f32 %v11861_v23, %v11766_v14  ;;  %v5694_v50 = vrot.slane %v4693_v31, %v8981_v0 }
 0x6d3   : > { %v4690_v16 = vmul.f32 0.0625, %v4434_v43  ;;  %4054 = vadd.xlane.f32.xlu1 %v3676_v48  ;;  %v5671_v63 = vsel %vm5194_vm14, %v5670_v41, %v5666_v47  ;;  %v9764_v9 = vpop.xlane.xlu0 %4100  ;;  %v11862_v47 = vld [vmem:[#allocation388_spill] sm:$0xff]  ;;  %v11863_v48 = vld [vmem:[#allocation201_spill] sm:$0xff]  ;;  %v3769_v25 = vand.u32 2147483647, %v3513_v7 }
 0x6d4   : > { %v4039_v13 = vpop.xlane.xlu1 %4038  ;;  %v5676_v45 = vsel %vm5201_vm15, %v5675_v40, %v5671_v63  ;;  %v4441_v41 = vadd.f32 %v9726_v53, %v11863_v48  ;;  %v3801_v53 = vand.u32 2147483647, %v3545_v60 }
 0x6d5   : > { %v5680_v22 = vrot.slane %v4690_v16, %v8955_v36  ;;  %v4436_v12 = vadd.f32 %v4039_v13, %v11859_v17  ;;  %v9776_v10 = vsel %vm6392_vm0, %v5676_v45, %v9561_v59  ;;  %v4695_v59 = vmul.f32 0.0625, %v4439_v18  ;;  %v11865_v13 = vld [vmem:[#allocation263_spill] sm:$0xff] }
 0x6d6   : > { %4180 = vadd.xlane.f32.xlu0 %v3739_v28  ;;  %v3544_v28 = vsub.f32 %v11865_v13, %v11766_v14  ;;  %v4697_v18 = vmul.f32 0.0625, %v4441_v41  ;;  %v11872_v41 = vld [vmem:[#allocation202_spill] sm:$0xff]  ;;  %v11873_v13 = vld [vmem:[#allocation233_spill] sm:$0xff] }
 0x6d7   : > { %v5685_v15 = vsel %vm5103_vm1, %v5684_v52, %v5680_v22  ;;  %4116 = vadd.xlane.f32.xlu1 %v3707_v24  ;;  %v4692_v3 = vmul.f32 0.0625, %v4436_v12  ;;  %v4103_v32 = vpop.xlane.xlu0 %4102  ;;  %v5704_v62 = vrot.slane %v4695_v59, %v8993_v29  ;;  %v11866_v52 = vld [vmem:[#allocation382_spill] sm:$0xff]  ;;  %v11868_v12 = vld [vmem:[#allocation161_spill] sm:$0xff] }
 0x6d8   : > { %v4043_v44 = vpop.xlane.xlu1 %4042  ;;  %v4443_v45 = vadd.f32 %v9740_v51, %v11866_v52  ;;  %v11867_v22 = vld [vmem:[#allocation390_spill] sm:$0xff]  ;;  %v3436_v31 = vsub.f32 %v11868_v12, %v11722_v33  ;;  %v11870_v51 = vld [vmem:[#allocation392_spill] sm:$0xff] }
 0x6d9   : > { %v4438_v35 = vadd.f32 %v4043_v44, %v11862_v47  ;;  %v5689_v43 = vrot.slane %v4692_v3, %v8974_v1  ;;  %v3693_v47 = vand.u32 2147483647, %v3437_v11 }
 0x6da   : > { %4242 = vadd.xlane.f32.xlu0 %v3770_v55  ;;  %v4699_v55 = vmul.f32 0.0625, %v4443_v45  ;;  %v11875_v45 = vld [vmem:[#allocation413_spill] sm:$0xff] }
 0x6db   : > { %v4694_v40 = vmul.f32 0.0625, %v4438_v35  ;;  %4178 = vadd.xlane.f32.xlu1 %v3738_v20  ;;  %v5690_v16 = vsel %vm5110_vm2, %v5689_v43, %v5685_v15  ;;  %v9791_v27 = vpop.xlane.xlu0 %4132  ;;  %v11869_v15 = vld [vmem:[#allocation193_spill] sm:$0xff]  ;;  %v3800_v35 = vand.u32 2147483647, %v3544_v28  ;;  %v3499_v28 = vsub.f32 %v11873_v13, %v11748_v54 }
 0x6dc   : > { %v4047_v63 = vpop.xlane.xlu1 %4046  ;;  %v5695_v24 = vsel %vm5117_vm3, %v5694_v50, %v5690_v16  ;;  %v3468_v37 = vsub.f32 %v11869_v15, %v11733_v39  ;;  %v11871_v20 = vld [vmem:[#allocation389_spill] sm:$0xff]  ;;  %v5714_v50 = vrot.slane %v4697_v18, %v9022_v21 }
 0x6dd   : > { %v5699_v8 = vrot.slane %v4694_v40, %v8999_v26  ;;  %v4440_v38 = vadd.f32 %v4047_v63, %v11867_v22  ;;  %v4451_v59 = vadd.f32 %v9754_v61, %v11871_v20  ;;  %v3467_v40 = vsub.f32 %v11872_v41, %v11733_v39  ;;  %v11874_v61 = vld [vmem:[#allocation403_spill] sm:$0xff] }
 0x6de   : > { %4304 = vadd.xlane.f32.xlu0 %v3801_v53  ;;  %v3724_v11 = vand.u32 2147483647, %v3468_v37  ;;  %v4468_v22 = vadd.f32 %v4103_v32, %v11875_v45  ;;  %v11879_v37 = vld [vmem:[#allocation405_spill] sm:$0xff] }
 0x6df   : > { %v5700_v17 = vsel %vm5124_vm4, %v5699_v8, %v5695_v24  ;;  %4240 = vadd.xlane.f32.xlu1 %v3769_v25  ;;  %v4696_v7 = vmul.f32 0.0625, %v4440_v38  ;;  %v9807_v44 = vpop.xlane.xlu0 %4164  ;;  %v3692_v25 = vand.u32 2147483647, %v3436_v31  ;;  %v4467_v24 = vadd.f32 %v9764_v9, %v11874_v61  ;;  %v11876_v38 = vld [vmem:[#allocation398_spill] sm:$0xff]  ;;  %v11878_v9 = vld [vmem:[#allocation252_spill] sm:$0xff] }
 0x6e0   : > { %v5705_v3 = vsel %vm5131_vm5, %v5704_v62, %v5700_v17  ;;  %v4051_v23 = vpop.xlane.xlu1 %4050  ;;  %v5724_v62 = vrot.slane %v4699_v55, %v9031_v5  ;;  %v4707_v52 = vmul.f32 0.0625, %v4451_v59  ;;  %v11877_v17 = vld [vmem:[#allocation223_spill] sm:$0xff]  ;;  %v3530_v15 = vsub.f32 %v11878_v9, %v11766_v14 }
 0x6e1   : > { %v4442_v60 = vadd.f32 %v4051_v23, %v11870_v51  ;;  %v5709_v43 = vrot.slane %v4696_v7, %v9016_v6  ;;  %v3498_v12 = vsub.f32 %v11877_v17, %v11748_v54  ;;  %v4723_v32 = vmul.f32 0.0625, %v4467_v24  ;;  %v11886_v9 = vld [vmem:[#allocation179_spill] sm:$0xff] }
 0x6e2   : > { %4088 = vadd.xlane.f32.xlu0 %v3693_v47  ;;  %v11880_v47 = vld [vmem:[#allocation411_spill] sm:$0xff]  ;;  %v3755_v55 = vand.u32 2147483647, %v3499_v28  ;;  %v3723_v20 = vand.u32 2147483647, %v3467_v40  ;;  %v5763_v59 = vrot.slane %v4707_v52, %v8951_v57  ;;  %v11884_v52 = vld [vmem:[#allocation400_spill] sm:$0xff] }
 0x6e3   : > { %v4698_v48 = vmul.f32 0.0625, %v4442_v60  ;;  %4302 = vadd.xlane.f32.xlu1 %v3800_v35  ;;  %v5710_v58 = vsel %vm5138_vm6, %v5709_v43, %v5705_v3  ;;  %v4105_v16 = vpop.xlane.xlu0 %4104  ;;  %v4724_v43 = vmul.f32 0.0625, %v4468_v22  ;;  %v3786_v61 = vand.u32 2147483647, %v3530_v15 }
 0x6e4   : > { %v4067_v63 = vpop.xlane.xlu1 %4066  ;;  %v5715_v8 = vsel %vm5145_vm7, %v5714_v50, %v5710_v58  ;;  %v4469_v7 = vadd.f32 %v4105_v16, %v11879_v37  ;;  %v3754_v16 = vand.u32 2147483647, %v3498_v12  ;;  %v5842_v24 = vrot.slane %v4723_v32, %v8951_v57  ;;  %v11887_v37 = vld [vmem:[#allocation432_spill] sm:$0xff] }
 0x6e5   : > { %v5719_v53 = vrot.slane %v4698_v48, %v9038_v4  ;;  %v4450_v18 = vadd.f32 %v4067_v63, %v11876_v38  ;;  %v11881_v48 = vld [vmem:[#allocation158_spill] sm:$0xff]  ;;  %v5847_v22 = vrot.slane %v4724_v43, %v8974_v1  ;;  %v11885_v38 = vld [vmem:[#allocation147_spill] sm:$0xff]  ;;  %v3454_v15 = vsub.f32 %v11886_v9, %v11722_v33  ;;  %v11895_v9 = vld [vmem:[#allocation240_spill] sm:$0xff] }
 0x6e6   : > { %4150 = vadd.xlane.f32.xlu0 %v3724_v11  ;;  %v3423_v41 = vsub.f32 %v11881_v48, %v11647_v49  ;;  %v11882_v63 = vld [vmem:[#allocation258_spill] sm:$0xff] }
 0x6e7   : > { %v5720_v31 = vsel %vm5152_vm8, %v5719_v53, %v5715_v8  ;;  %4086 = vadd.xlane.f32.xlu1 %v3692_v25  ;;  %v4706_v3 = vmul.f32 0.0625, %v4450_v18  ;;  %v4167_v23 = vpop.xlane.xlu0 %4166  ;;  %v3529_v11 = vsub.f32 %v11882_v63, %v11766_v14  ;;  %v4725_v25 = vmul.f32 0.0625, %v4469_v7  ;;  %v11883_v8 = vld [vmem:[#allocation416_spill] sm:$0xff]  ;;  %v11889_v43 = vld [vmem:[#allocation442_spill] sm:$0xff] }
 0x6e8   : > { %v4099_v51 = vpop.xlane.xlu1 %4098  ;;  %v9833_v60 = vsel %vm5159_vm9, %v5724_v62, %v5720_v31  ;;  %v4483_v53 = vadd.f32 %v9791_v27, %v11883_v8  ;;  %v3422_v18 = vsub.f32 %v11885_v38, %v11647_v49  ;;  %v3679_v31 = vand.u32 2147483647, %v3423_v41 }
 0x6e9   : > { %v4466_v35 = vadd.f32 %v4099_v51, %v11880_v47  ;;  %v5759_v50 = vrot.slane %v4706_v3, %v8955_v36  ;;  %v4499_v27 = vadd.f32 %v9807_v44, %v11887_v37  ;;  %v5852_v7 = vrot.slane %v4725_v25, %v8981_v0  ;;  %v11891_v25 = vld [vmem:[#allocation220_spill] sm:$0xff] }
 0x6ea   : > { %4212 = vadd.xlane.f32.xlu0 %v3755_v55  ;;  %v4739_v47 = vmul.f32 0.0625, %v4483_v53  ;;  %v11888_v55 = vld [vmem:[#allocation427_spill] sm:$0xff] }
 0x6eb   : > { %v4722_v58 = vmul.f32 0.0625, %v4466_v35  ;;  %4148 = vadd.xlane.f32.xlu1 %v3723_v20  ;;  %v5764_v13 = vsel %vm5103_vm1, %v5763_v59, %v5759_v50  ;;  %v9843_v28 = vpop.xlane.xlu0 %4196  ;;  %v3785_v59 = vand.u32 2147483647, %v3529_v11  ;;  %v4500_v50 = vadd.f32 %v4167_v23, %v11889_v43 }
 0x6ec   : > { %v4071_v40 = vpop.xlane.xlu1 %4070  ;;  %v3710_v11 = vand.u32 2147483647, %v3454_v15  ;;  %v5921_v23 = vrot.slane %v4739_v47, %v8951_v57  ;;  %v3516_v15 = vsub.f32 %v11895_v9, %v11748_v54  ;;  %v11902_v9 = vld [vmem:[#allocation174_spill] sm:$0xff] }
 0x6ed   : > { %v5838_v62 = vrot.slane %v4722_v58, %v8955_v36  ;;  %v4452_v45 = vadd.f32 %v4071_v40, %v11884_v52  ;;  %v3678_v58 = vand.u32 2147483647, %v3422_v18  ;;  %v3485_v40 = vsub.f32 %v11891_v25, %v11733_v39  ;;  %v11893_v52 = vld [vmem:[#allocation28_spill] sm:$0xff] }
 0x6ee   : > { %4274 = vadd.xlane.f32.xlu0 %v3786_v61  ;;  %v4755_v61 = vmul.f32 0.0625, %v4499_v27  ;;  %v4756_v18 = vmul.f32 0.0625, %v4500_v50 }
 0x6ef   : > { %v5843_v17 = vsel %vm5103_vm1, %v5842_v24, %v5838_v62  ;;  %v4708_v12 = vmul.f32 0.0625, %v4452_v45  ;;  %4210 = vadd.xlane.f32.xlu1 %v3754_v16  ;;  %v9860_v51 = vpop.xlane.xlu0 %4228  ;;  %v11890_v16 = vld [vmem:[#allocation188_spill] sm:$0xff]  ;;  %v11892_v62 = vld [vmem:[#allocation415_spill] sm:$0xff] }
 0x6f0   : > { %v5848_v3 = vsel %vm5110_vm2, %v5847_v22, %v5843_v17  ;;  %v4131_v32 = vpop.xlane.xlu1 %4130  ;;  %v3453_v63 = vsub.f32 %v11890_v16, %v11722_v33  ;;  %v11894_v22 = vld [vmem:[#allocation209_spill] sm:$0xff]  ;;  %v6000_v37 = vrot.slane %v4755_v61, %v8951_v57  ;;  %v6005_v50 = vrot.slane %v4756_v18, %v8974_v1 }
 0x6f1   : > { %v5768_v35 = vrot.slane %v4708_v12, %v8974_v1  ;;  %v4482_v20 = vadd.f32 %v4131_v32, %v11888_v55  ;;  %v5853_v48 = vsel %vm5117_vm3, %v5852_v7, %v5848_v3  ;;  %v3484_v38 = vsub.f32 %v11894_v22, %v11733_v39  ;;  %v11896_v55 = vld [vmem:[#allocation434_spill] sm:$0xff]  ;;  %v11901_v22 = vld [vmem:[#allocation429_spill] sm:$0xff] }
 0x6f2   : > { %4060 = vadd.xlane.f32.xlu0 %v3679_v31  ;;  %v3741_v3 = vand.u32 2147483647, %v3485_v40  ;;  %v3709_v32 = vand.u32 2147483647, %v3453_v63  ;;  %v11898_v63 = vld [vmem:[#allocation245_spill] sm:$0xff] }
 0x6f3   : > { %v5769_v41 = vsel %vm5110_vm2, %v5768_v35, %v5764_v13  ;;  %v4738_v44 = vmul.f32 0.0625, %v4482_v20  ;;  %4272 = vadd.xlane.f32.xlu1 %v3785_v59  ;;  %v4107_v24 = vpop.xlane.xlu0 %4106  ;;  %v11897_v59 = vld [vmem:[#allocation391_spill] sm:$0xff]  ;;  %v3515_v40 = vsub.f32 %v11898_v63, %v11748_v54 }
 0x6f4   : > { %v4163_v8 = vpop.xlane.xlu1 %4162  ;;  %v4470_v13 = vadd.f32 %v4107_v24, %v11892_v62  ;;  %v11899_v24 = vld [vmem:[#allocation272_spill] sm:$0xff]  ;;  %v3772_v62 = vand.u32 2147483647, %v3516_v15  ;;  %v3439_v15 = vsub.f32 %v11902_v9, %v11722_v33  ;;  %v11908_v63 = vld [vmem:[#allocation195_spill] sm:$0xff] }
 0x6f5   : > { %v5917_v53 = vrot.slane %v4738_v44, %v8955_v36  ;;  %v4498_v45 = vadd.f32 %v4163_v8, %v11893_v52  ;;  %v3740_v44 = vand.u32 2147483647, %v3484_v38  ;;  %v3547_v8 = vsub.f32 %v11899_v24, %v11766_v14 }
 0x6f6   : > { %v4726_v12 = vmul.f32 0.0625, %v4470_v13  ;;  %4122 = vadd.xlane.f32.xlu0 %v3710_v11  ;;  %v11900_v13 = vld [vmem:[#allocation40_spill] sm:$0xff] }
 0x6f7   : > { %v5922_v17 = vsel %vm5103_vm1, %v5921_v23, %v5917_v53  ;;  %v4754_v31 = vmul.f32 0.0625, %v4498_v45  ;;  %4058 = vadd.xlane.f32.xlu1 %v3678_v58  ;;  %v4169_v27 = vpop.xlane.xlu0 %4168 }
 0x6f8   : > { %v4073_v7 = vpop.xlane.xlu1 %4072  ;;  %v5857_v47 = vrot.slane %v4726_v12, %v8999_v26  ;;  %v4501_v20 = vadd.f32 %v4169_v27, %v11896_v55 }
 0x6f9   : > { %v5996_v35 = vrot.slane %v4754_v31, %v8955_v36  ;;  %v4453_v43 = vadd.f32 %v4073_v7, %v11897_v59 }
 0x6fa   : > { %v9887_v58 = vsel %vm5124_vm4, %v5857_v47, %v5853_v48  ;;  %v4757_v25 = vmul.f32 0.0625, %v4501_v20  ;;  %4184 = vadd.xlane.f32.xlu0 %v3741_v3  ;;  %v4515_v48 = vadd.f32 %v9843_v28, %v11900_v13  ;;  %v11903_v28 = vld [vmem:[#allocation265_spill] sm:$0xff]  ;;  %v3803_v3 = vand.u32 2147483647, %v3547_v8  ;;  %v11905_v20 = vld [vmem:[#allocation98_spill] sm:$0xff] }
 0x6fb   : > { %v6001_v16 = vsel %vm5103_vm1, %v6000_v37, %v5996_v35  ;;  %v4709_v61 = vmul.f32 0.0625, %v4453_v43  ;;  %4120 = vadd.xlane.f32.xlu1 %v3709_v32  ;;  %v4231_v23 = vpop.xlane.xlu0 %4230  ;;  %v3546_v37 = vsub.f32 %v11903_v28, %v11766_v14  ;;  %v3771_v32 = vand.u32 2147483647, %v3515_v40  ;;  %v11904_v35 = vld [vmem:[#allocation35_spill] sm:$0xff]  ;;  %v11906_v43 = vld [vmem:[#allocation52_spill] sm:$0xff] }
 0x6fc   : > { %v6006_v11 = vsel %vm5110_vm2, %v6005_v50, %v6001_v16  ;;  %v4135_v53 = vpop.xlane.xlu1 %4134  ;;  %v6010_v52 = vrot.slane %v4757_v25, %v8981_v0  ;;  %v4771_v47 = vmul.f32 0.0625, %v4515_v48  ;;  %v4531_v55 = vadd.f32 %v9860_v51, %v11904_v35  ;;  %v11907_v25 = vld [vmem:[#allocation163_spill] sm:$0xff] }
 0x6fd   : > { %v5773_v45 = vrot.slane %v4709_v61, %v8981_v0  ;;  %v4484_v38 = vadd.f32 %v4135_v53, %v11901_v22  ;;  %v4532_v50 = vadd.f32 %v4231_v23, %v11906_v43  ;;  %v3438_v61 = vsub.f32 %v11907_v25, %v11722_v33  ;;  %v11914_v25 = vld [vmem:[#allocation225_spill] sm:$0xff] }
 0x6fe   : > { %v9901_v18 = vsel %vm5117_vm3, %v6010_v52, %v6006_v11  ;;  %4246 = vadd.xlane.f32.xlu0 %v3772_v62  ;;  %v3470_v40 = vsub.f32 %v11908_v63, %v11733_v39  ;;  %v3695_v8 = vand.u32 2147483647, %v3439_v15  ;;  %v3802_v11 = vand.u32 2147483647, %v3546_v37  ;;  %v11909_v62 = vld [vmem:[#allocation50_spill] sm:$0xff]  ;;  %v11910_v52 = vld [vmem:[#allocation204_spill] sm:$0xff] }
 0x6ff   : > { %v9904_v12 = vsel %vm5117_vm3, %v5773_v45, %v5769_v41  ;;  %v4740_v31 = vmul.f32 0.0625, %v4484_v38  ;;  %4182 = vadd.xlane.f32.xlu1 %v3740_v44  ;;  %v9910_v27 = vpop.xlane.xlu0 %4260  ;;  %v6079_v53 = vrot.slane %v4771_v47, %v8951_v57  ;;  %v4787_v23 = vmul.f32 0.0625, %v4531_v55  ;;  %v11912_v47 = vld [vmem:[#allocation232_spill] sm:$0xff]  ;;  %v11913_v55 = vld [vmem:[#allocation402_spill] sm:$0xff]  ;;  %v11915_v63 = vld [vmem:[#allocation253_spill] sm:$0xff] }
 0x700   : > { %v4195_v7 = vpop.xlane.xlu1 %4194  ;;  %v4788_v48 = vmul.f32 0.0625, %v4532_v50  ;;  %v3469_v45 = vsub.f32 %v11910_v52, %v11733_v39  ;;  %v3726_v37 = vand.u32 2147483647, %v3470_v40  ;;  %v3532_v40 = vsub.f32 %v11915_v63, %v11766_v14 }
 0x701   : > { %v5926_v41 = vrot.slane %v4740_v31, %v8974_v1  ;;  %v4514_v59 = vadd.f32 %v4195_v7, %v11905_v20  ;;  %v11911_v31 = vld [vmem:[#allocation235_spill] sm:$0xff]  ;;  %v3694_v7 = vand.u32 2147483647, %v3438_v61  ;;  %v3500_v61 = vsub.f32 %v11914_v25, %v11748_v54 }
 0x702   : > { %4308 = vadd.xlane.f32.xlu0 %v3803_v3  ;;  %v3501_v9 = vsub.f32 %v11911_v31, %v11748_v54  ;;  %v6158_v3 = vrot.slane %v4787_v23, %v8951_v57  ;;  %v6163_v20 = vrot.slane %v4788_v48, %v8974_v1  ;;  %v11917_v48 = vld [vmem:[#allocation418_spill] sm:$0xff] }
 0x703   : > { %v9918_v44 = vsel %vm5110_vm2, %v5926_v41, %v5922_v17  ;;  %v4770_v16 = vmul.f32 0.0625, %v4514_v59  ;;  %4244 = vadd.xlane.f32.xlu1 %v3771_v32  ;;  %v9924_v24 = vpop.xlane.xlu0 %4292 }
 0x704   : > { %v4227_v51 = vpop.xlane.xlu1 %4226 }
 0x705   : > { %v6075_v17 = vrot.slane %v4770_v16, %v8955_v36  ;;  %v4530_v13 = vadd.f32 %v4227_v51, %v11909_v62  ;;  %v3725_v16 = vand.u32 2147483647, %v3469_v45  ;;  %v11916_v62 = vld [vmem:[#allocation443_spill] sm:$0xff]  ;;  %v11918_v45 = vld [vmem:[#allocation160_spill] sm:$0xff] }
 0x706   : > { %4092 = vadd.xlane.f32.xlu0 %v3695_v8 }
 0x707   : > { %v9932_v22 = vsel %vm5103_vm1, %v6079_v53, %v6075_v17  ;;  %v4786_v38 = vmul.f32 0.0625, %v4530_v13  ;;  %4306 = vadd.xlane.f32.xlu1 %v3802_v11  ;;  %v4109_v15 = vpop.xlane.xlu0 %4108  ;;  %v3757_v11 = vand.u32 2147483647, %v3501_v9 }
 0x708   : > { %v4075_v28 = vpop.xlane.xlu1 %4074  ;;  %v4471_v35 = vadd.f32 %v4109_v15, %v11912_v47 }
 0x709   : > { %v6154_v32 = vrot.slane %v4786_v38, %v8955_v36  ;;  %v4454_v41 = vadd.f32 %v4075_v28, %v11913_v55  ;;  %v3425_v38 = vsub.f32 %v11918_v45, %v11647_v49  ;;  %v3788_v55 = vand.u32 2147483647, %v3532_v40 }
 0x70a   : > { %v4727_v43 = vmul.f32 0.0625, %v4471_v35  ;;  %4154 = vadd.xlane.f32.xlu0 %v3726_v37  ;;  %v11919_v37 = vld [vmem:[#allocation259_spill] sm:$0xff] }
 0x70b   : > { %v6159_v59 = vsel %vm5103_vm1, %v6158_v3, %v6154_v32  ;;  %v4710_v50 = vmul.f32 0.0625, %v4454_v41  ;;  %4090 = vadd.xlane.f32.xlu1 %v3694_v7  ;;  %v4171_v51 = vpop.xlane.xlu0 %4170  ;;  %v3531_v7 = vsub.f32 %v11919_v37, %v11766_v14  ;;  %v11920_v3 = vld [vmem:[#allocation97_spill] sm:$0xff]  ;;  %v3756_v41 = vand.u32 2147483647, %v3500_v61 }
 0x70c   : > { %v4137_v8 = vpop.xlane.xlu1 %4136  ;;  %v6164_v53 = vsel %vm5110_vm2, %v6163_v20, %v6159_v59  ;;  %v5862_v23 = vrot.slane %v4727_v43, %v8993_v29  ;;  %v4502_v13 = vadd.f32 %v4171_v51, %v11916_v62  ;;  %v4547_v32 = vadd.f32 %v9910_v27, %v11920_v3  ;;  %v11922_v43 = vld [vmem:[#allocation100_spill] sm:$0xff]  ;;  %v11924_v51 = vld [vmem:[#allocation181_spill] sm:$0xff] }
 0x70d   : > { %v5778_v17 = vrot.slane %v4710_v50, %v8999_v26  ;;  %v4485_v52 = vadd.f32 %v4137_v8, %v11917_v48  ;;  %v3456_v8 = vsub.f32 %v11924_v51, %v11722_v33  ;;  %v3681_v62 = vand.u32 2147483647, %v3425_v38 }
 0x70e   : > { %v9955_v31 = vsel %vm5131_vm5, %v5862_v23, %v9887_v58  ;;  %v4758_v15 = vmul.f32 0.0625, %v4502_v13  ;;  %4216 = vadd.xlane.f32.xlu0 %v3757_v11  ;;  %v4803_v11 = vmul.f32 0.0625, %v4547_v32  ;;  %v11925_v13 = vld [vmem:[#allocation118_spill] sm:$0xff] }
 0x70f   : > { %v9959_v9 = vsel %vm5124_vm4, %v5778_v17, %v9904_v12  ;;  %v4741_v28 = vmul.f32 0.0625, %v4485_v52  ;;  %4152 = vadd.xlane.f32.xlu1 %v3725_v16  ;;  %v4233_v47 = vpop.xlane.xlu0 %4232  ;;  %v11921_v12 = vld [vmem:[#allocation37_spill] sm:$0xff]  ;;  %v11929_v32 = vld [vmem:[#allocation222_spill] sm:$0xff] }
 0x710   : > { %v4199_v35 = vpop.xlane.xlu1 %4198  ;;  %v6015_v58 = vrot.slane %v4758_v15, %v8999_v26  ;;  %v4533_v59 = vadd.f32 %v4233_v47, %v11921_v12  ;;  %v11923_v16 = vld [vmem:[#allocation149_spill] sm:$0xff]  ;;  %v3487_v47 = vsub.f32 %v11929_v32, %v11733_v39 }
 0x711   : > { %v5931_v20 = vrot.slane %v4741_v28, %v8981_v0  ;;  %v4516_v50 = vadd.f32 %v4199_v35, %v11922_v43  ;;  %v3424_v25 = vsub.f32 %v11923_v16, %v11647_v49  ;;  %v3787_v49 = vand.u32 2147483647, %v3531_v7  ;;  %v11926_v52 = vld [vmem:[#allocation45_spill] sm:$0xff] }
 0x712   : > { %v9973_v63 = vsel %vm5124_vm4, %v6015_v58, %v9901_v18  ;;  %v4789_v61 = vmul.f32 0.0625, %v4533_v59  ;;  %4278 = vadd.xlane.f32.xlu0 %v3788_v55  ;;  %v4563_v18 = vadd.f32 %v9924_v24, %v11925_v13  ;;  %v11927_v15 = vld [vmem:[#allocation109_spill] sm:$0xff]  ;;  %v11928_v24 = vld [vmem:[#allocation190_spill] sm:$0xff]  ;;  %v11933_v13 = vld [vmem:[#allocation215_spill] sm:$0xff] }
 0x713   : > { %v9977_v27 = vsel %vm5117_vm3, %v5931_v20, %v9918_v44  ;;  %v4772_v40 = vmul.f32 0.0625, %v4516_v50  ;;  %4214 = vadd.xlane.f32.xlu1 %v3756_v41  ;;  %v4295_v23 = vpop.xlane.xlu0 %4294  ;;  %v3455_v7 = vsub.f32 %v11928_v24, %v11722_v33  ;;  %v3712_v41 = vand.u32 2147483647, %v3456_v8 }
 0x714   : > { %v4259_v17 = vpop.xlane.xlu1 %4258  ;;  %v6168_v48 = vrot.slane %v4789_v61, %v8981_v0  ;;  %v4564_v28 = vadd.f32 %v4295_v23, %v11927_v15  ;;  %v3680_v58 = vand.u32 2147483647, %v3424_v25  ;;  %v4819_v20 = vmul.f32 0.0625, %v4563_v18  ;;  %v11931_v61 = vld [vmem:[#allocation211_spill] sm:$0xff] }
 0x715   : > { %v6084_v44 = vrot.slane %v4772_v40, %v8974_v1  ;;  %v4546_v45 = vadd.f32 %v4259_v17, %v11926_v52  ;;  %v3486_v40 = vsub.f32 %v11931_v61, %v11733_v39  ;;  %v3743_v25 = vand.u32 2147483647, %v3487_v47  ;;  %v11936_v47 = vld [vmem:[#allocation431_spill] sm:$0xff] }
 0x716   : > { %v9988_v37 = vsel %vm5117_vm3, %v6168_v48, %v6164_v53  ;;  %4064 = vadd.xlane.f32.xlu0 %v3681_v62  ;;  %v6237_v53 = vrot.slane %v4803_v11, %v8951_v57  ;;  %v4820_v43 = vmul.f32 0.0625, %v4564_v28  ;;  %v3711_v23 = vand.u32 2147483647, %v3455_v7  ;;  %v11932_v11 = vld [vmem:[#allocation241_spill] sm:$0xff] }
 0x717   : > { %v9992_v3 = vsel %vm5110_vm2, %v6084_v44, %v9932_v22  ;;  %v4802_v38 = vmul.f32 0.0625, %v4546_v45  ;;  %4276 = vadd.xlane.f32.xlu1 %v3787_v49  ;;  %v4111_v35 = vpop.xlane.xlu0 %4110  ;;  %v11930_v22 = vld [vmem:[#allocation22_spill] sm:$0xff]  ;;  %v3518_v17 = vsub.f32 %v11932_v11, %v11748_v54  ;;  %v6316_v62 = vrot.slane %v4819_v20, %v8951_v57  ;;  %v11934_v45 = vld [vmem:[#allocation247_spill] sm:$0xff] }
 0x718   : > { %v4291_v55 = vpop.xlane.xlu1 %4290  ;;  %v6321_v48 = vrot.slane %v4820_v43, %v8974_v1  ;;  %v3517_v15 = vsub.f32 %v11934_v45, %v11748_v54  ;;  %v3742_v24 = vand.u32 2147483647, %v3486_v40  ;;  %v11935_v57 = vld [vmem:[#allocation274_spill] sm:$0xff] }
 0x719   : > { %v6233_v12 = vrot.slane %v4802_v38, %v8955_v36  ;;  %v4562_v59 = vadd.f32 %v4291_v55, %v11930_v22  ;;  %v11938_v22 = vld [vmem:[#allocation192_spill] sm:$0xff]  ;;  %v11939_v43 = vld [vmem:[#allocation266_spill] sm:$0xff] }
 0x71a   : > { %4126 = vadd.xlane.f32.xlu0 %v3712_v41  ;;  %v3774_v41 = vand.u32 2147483647, %v3518_v17  ;;  %v11941_v11 = vld [vmem:[#allocation42_spill] sm:$0xff] }
 0x71b   : > { %v10002_v50 = vsel %vm5103_vm1, %v6237_v53, %v6233_v12  ;;  %v4818_v16 = vmul.f32 0.0625, %v4562_v59  ;;  %4062 = vadd.xlane.f32.xlu1 %v3680_v58  ;;  %v4173_v51 = vpop.xlane.xlu0 %4172  ;;  %v11937_v58 = vld [vmem:[#allocation417_spill] sm:$0xff]  ;;  %v3457_v59 = vsub.f32 %v11938_v22, %v11722_v33  ;;  %v11947_v22 = vld [vmem:[#allocation54_spill] sm:$0xff] }
 0x71c   : > { %v4077_v8 = vpop.xlane.xlu1 %4076  ;;  %v4472_v53 = vadd.f32 %v4111_v35, %v11937_v58 }
 0x71d   : > { %v6312_v49 = vrot.slane %v4818_v16, %v8955_v36  ;;  %v4455_v18 = vadd.f32 %v4077_v8, %v11933_v13  ;;  %v3549_v36 = vsub.f32 %v11935_v57, %v11766_v14  ;;  %v3548_v16 = vsub.f32 %v11939_v43, %v11766_v14 }
 0x71e   : > { %4188 = vadd.xlane.f32.xlu0 %v3743_v25  ;;  %v3773_v8 = vand.u32 2147483647, %v3517_v15  ;;  %v11944_v15 = vld [vmem:[#allocation213_spill] sm:$0xff] }
 0x71f   : > { %v6317_v44 = vsel %vm5103_vm1, %v6316_v62, %v6312_v49  ;;  %v4711_v52 = vmul.f32 0.0625, %v4455_v18  ;;  %4124 = vadd.xlane.f32.xlu1 %v3711_v23  ;;  %v4235_v28 = vpop.xlane.xlu0 %4234  ;;  %v11940_v23 = vld [vmem:[#allocation120_spill] sm:$0xff]  ;;  %v4728_v62 = vmul.f32 0.0625, %v4472_v53  ;;  %vm6394_vm1 = vcmask 1044484  }
 0x720   : > { %v4139_v38 = vpop.xlane.xlu1 %4138  ;;  %v6322_v7 = vsel %vm5110_vm2, %v6321_v48, %v6317_v44  ;;  %v11942_v49 = vld [vmem:[#allocation436_spill] sm:$0xff]  ;;  %v4534_v43 = vadd.f32 %v4235_v28, %v11947_v22  ;;  %v11949_v28 = vld [vmem:[#allocation249_spill] sm:$0xff] }
 0x721   : > { %v5783_v32 = vrot.slane %v4711_v52, %v8993_v29  ;;  %v4486_v55 = vadd.f32 %v4139_v38, %v11936_v47  ;;  %v4503_v13 = vadd.f32 %v4173_v51, %v11942_v49  ;;  %v11943_v52 = vld [vmem:[#allocation165_spill] sm:$0xff]  ;;  %v3488_v38 = vsub.f32 %v11944_v15, %v11733_v39 }
 0x722   : > { %4250 = vadd.xlane.f32.xlu0 %v3774_v41  ;;  %v3440_v45 = vsub.f32 %v11943_v52, %v11722_v33  ;;  %v11946_v41 = vld [vmem:[#allocation47_spill] sm:$0xff]  ;;  %v5867_v53 = vrot.slane %v4728_v62, %v9016_v6 }
 0x723   : > { %v10023_v20 = vsel %vm5131_vm5, %v5783_v32, %v9959_v9  ;;  %v4742_v12 = vmul.f32 0.0625, %v4486_v55  ;;  %4186 = vadd.xlane.f32.xlu1 %v3742_v24  ;;  %v4297_v61 = vpop.xlane.xlu0 %4296  ;;  %v3805_v9 = vand.u32 2147483647, %v3549_v36  ;;  %v3713_v36 = vand.u32 2147483647, %v3457_v59 }
 0x724   : > { %v4201_v40 = vpop.xlane.xlu1 %4200  ;;  %v4565_v35 = vadd.f32 %v4297_v61, %v11940_v23  ;;  %v3804_v32 = vand.u32 2147483647, %v3548_v16 }
 0x725   : > { %v5936_v25 = vrot.slane %v4742_v12, %v8999_v26  ;;  %v4517_v17 = vadd.f32 %v4201_v40, %v11941_v11  ;;  %v4759_v12 = vmul.f32 0.0625, %v4503_v13  ;;  %v3744_v11 = vand.u32 2147483647, %v3488_v38 }
 0x726   : > { %v4821_v48 = vmul.f32 0.0625, %v4565_v35  ;;  %4312 = vadd.xlane.f32.xlu0 %v3805_v9  ;;  %v3519_v9 = vsub.f32 %v11949_v28, %v11748_v54  ;;  %v5868_v13 = vsel %vm5138_vm6, %v5867_v53, %v9955_v31  ;;  %v11952_v31 = vld [vmem:[#allocation14_spill] sm:$0xff] }
 0x727   : > { %v10035_v18 = vsel %vm5124_vm4, %v5936_v25, %v9977_v27  ;;  %v4773_v44 = vmul.f32 0.0625, %v4517_v17  ;;  %4248 = vadd.xlane.f32.xlu1 %v3773_v8  ;;  %v4113_v24 = vpop.xlane.xlu0 %4112  ;;  %v11945_v27 = vld [vmem:[#allocation234_spill] sm:$0xff]  ;;  %v3696_v17 = vand.u32 2147483647, %v3440_v45 }
 0x728   : > { %v4263_v57 = vpop.xlane.xlu1 %4262  ;;  %v6326_v51 = vrot.slane %v4821_v48, %v8981_v0  ;;  %v4473_v55 = vadd.f32 %v4113_v24, %v11945_v27  ;;  %v11948_v8 = vld [vmem:[#allocation206_spill] sm:$0xff]  ;;  %v6020_v48 = vrot.slane %v4759_v12, %v8993_v29  ;;  %v11954_v12 = vld [vmem:[#allocation224_spill] sm:$0xff] }
 0x729   : > { %v6089_v47 = vrot.slane %v4773_v44, %v8981_v0  ;;  %v4548_v58 = vadd.f32 %v4263_v57, %v11946_v41  ;;  %v3471_v25 = vsub.f32 %v11948_v8, %v11733_v39  ;;  %v4790_v44 = vmul.f32 0.0625, %v4534_v43  ;;  %v11955_v8 = vld [vmem:[#allocation260_spill] sm:$0xff] }
 0x72a   : > { %v10048_v61 = vsel %vm5117_vm3, %v6326_v51, %v6322_v7  ;;  %v4729_v16 = vmul.f32 0.0625, %v4473_v55  ;;  %4128 = vadd.xlane.f32.xlu0 %v3713_v36  ;;  %v3775_v55 = vand.u32 2147483647, %v3519_v9  ;;  %v3489_v22 = vsub.f32 %v11954_v12, %v11733_v39  ;;  %v11957_v9 = vld [vmem:[#allocation404_spill] sm:$0xff]  ;;  %v11964_v12 = vld [vmem:[#allocation277_spill] sm:$0xff] }
 0x72b   : > { %v10052_v59 = vsel %vm5117_vm3, %v6089_v47, %v9992_v3  ;;  %v4804_v40 = vmul.f32 0.0625, %v4548_v58  ;;  %4310 = vadd.xlane.f32.xlu1 %v3804_v32  ;;  %v4175_v23 = vpop.xlane.xlu0 %4174  ;;  %v11950_v3 = vld [vmem:[#allocation444_spill] sm:$0xff]  ;;  %v3727_v36 = vand.u32 2147483647, %v3471_v25  ;;  %v3550_v32 = vsub.f32 %v11952_v31, %v11766_v14  ;;  %v11953_v47 = vld [vmem:[#allocation87_spill] sm:$0xff] }
 0x72c   : > { %v4079_v35 = vpop.xlane.xlu1 %4078  ;;  %v5872_v7 = vrot.slane %v4729_v16, %v9022_v21  ;;  %v4504_v49 = vadd.f32 %v4175_v23, %v11950_v3  ;;  %v6173_v41 = vrot.slane %v4790_v44, %v8999_v26  ;;  %v3533_v25 = vsub.f32 %v11955_v8, %v11766_v14 }
 0x72d   : > { %v6242_v62 = vrot.slane %v4804_v40, %v8974_v1  ;;  %v11951_v1 = vld [vmem:[#allocation227_spill] sm:$0xff] }
 0x72e   : > { %v10065_v52 = vsel %vm5145_vm7, %v5872_v7, %v5868_v13  ;;  %v4760_v15 = vmul.f32 0.0625, %v4504_v49  ;;  %4190 = vadd.xlane.f32.xlu0 %v3744_v11  ;;  %v3502_v38 = vsub.f32 %v11951_v1, %v11748_v54  ;;  %v6174_v28 = vsel %vm5124_vm4, %v6173_v41, %v9988_v37  ;;  %v11958_v49 = vld [vmem:[#allocation176_spill] sm:$0xff]  ;;  %v11960_v37 = vld [vmem:[#allocation419_spill] sm:$0xff]  ;;  %v11963_v41 = vld [vmem:[#allocation197_spill] sm:$0xff] }
 0x72f   : > { %v10069_v45 = vsel %vm5110_vm2, %v6242_v62, %v10002_v50  ;;  %4094 = vadd.xlane.f32.xlu1 %v3696_v17  ;;  %v4237_v24 = vpop.xlane.xlu0 %4236  ;;  %v6021_v50 = vsel %vm5131_vm5, %v6020_v48, %v9973_v63  ;;  %v11956_v63 = vld [vmem:[#allocation111_spill] sm:$0xff]  ;;  %v3806_v17 = vand.u32 2147483647, %v3550_v32  ;;  %v4456_v7 = vadd.f32 %v4079_v35, %v11957_v9 }
 0x730   : > { %v4141_v57 = vpop.xlane.xlu1 %4140  ;;  %v6025_v51 = vrot.slane %v4760_v15, %v9016_v6  ;;  %v4535_v27 = vadd.f32 %v4237_v24, %v11953_v47  ;;  %v3758_v40 = vand.u32 2147483647, %v3502_v38  ;;  %v3441_v13 = vsub.f32 %v11958_v49, %v11722_v33  ;;  %v11959_v48 = vld [vmem:[#allocation243_spill] sm:$0xff]  ;;  %v11962_v47 = vld [vmem:[#allocation420_spill] sm:$0xff] }
 0x731   : > { %v3520_v44 = vsub.f32 %v11959_v48, %v11748_v54  ;;  %v3745_v38 = vand.u32 2147483647, %v3489_v22  ;;  %v11961_v35 = vld [vmem:[#allocation99_spill] sm:$0xff]  ;;  %v3789_v32 = vand.u32 2147483647, %v3533_v25  ;;  %v3551_v22 = vsub.f32 %v11964_v12, %v11766_v14 }
 0x732   : > { %v10081_v58 = vsel %vm5138_vm6, %v6025_v51, %v6021_v50  ;;  %v4791_v53 = vmul.f32 0.0625, %v4535_v27  ;;  %4252 = vadd.xlane.f32.xlu0 %v3775_v55  ;;  %v4712_v51 = vmul.f32 0.0625, %v4456_v7  ;;  %v4487_v27 = vadd.f32 %v4141_v57, %v11962_v47  ;;  %v11967_v7 = vld [vmem:[#allocation102_spill] sm:$0xff] }
 0x733   : > { %4156 = vadd.xlane.f32.xlu1 %v3727_v36  ;;  %v4299_v43 = vpop.xlane.xlu0 %4298  ;;  %v3776_v8 = vand.u32 2147483647, %v3520_v44  ;;  %v3697_v25 = vand.u32 2147483647, %v3441_v13  ;;  %vm6396_vm2 = vcmask 1045509  }
 0x734   : > { %v4203_v16 = vpop.xlane.xlu1 %4202  ;;  %v6178_v23 = vrot.slane %v4791_v53, %v8993_v29  ;;  %v4566_v11 = vadd.f32 %v4299_v43, %v11956_v63  ;;  %v3472_v53 = vsub.f32 %v11963_v41, %v11733_v39  ;;  %v4743_v9 = vmul.f32 0.0625, %v4487_v27 }
 0x736   : > { %v10093_v62 = vsel %vm5131_vm5, %v6178_v23, %v6174_v28  ;;  %v4822_v3 = vmul.f32 0.0625, %v4566_v11  ;;  %4314 = vadd.xlane.f32.xlu0 %v3806_v17  ;;  %v11966_v11 = vld [vmem:[#allocation217_spill] sm:$0xff]  ;;  %v5788_v28 = vrot.slane %v4712_v51, %v9016_v6  ;;  %v5941_v27 = vrot.slane %v4743_v9, %v8993_v29 }
 0x737   : > { %4218 = vadd.xlane.f32.xlu1 %v3758_v40  ;;  %v4115_v15 = vpop.xlane.xlu0 %4114 }
 0x738   : > { %v4265_v1 = vpop.xlane.xlu1 %4264  ;;  %v6331_v24 = vrot.slane %v4822_v3, %v8999_v26  ;;  %v4474_v36 = vadd.f32 %v4115_v15, %v11960_v37  ;;  %v4518_v3 = vadd.f32 %v4203_v16, %v11967_v7  ;;  %v3807_v37 = vand.u32 2147483647, %v3551_v22  ;;  %v11972_v22 = vld [vmem:[#allocation255_spill] sm:$0xff] }
 0x739   : > { %v4549_v31 = vadd.f32 %v4265_v1, %v11961_v35  ;;  %v11969_v1 = vld [vmem:[#allocation251_spill] sm:$0xff]  ;;  %v5789_v47 = vsel %vm5138_vm6, %v5788_v28, %v10023_v20  ;;  %v5942_v9 = vsel %vm5131_vm5, %v5941_v27, %v10035_v18 }
 0x73a   : > { %v10105_v55 = vsel %vm5124_vm4, %v6331_v24, %v10048_v61  ;;  %v4730_v33 = vmul.f32 0.0625, %v4474_v36  ;;  %4192 = vadd.xlane.f32.xlu0 %v3745_v38  ;;  %v11965_v61 = vld [vmem:[#allocation438_spill] sm:$0xff]  ;;  %v3521_v38 = vsub.f32 %v11969_v1, %v11748_v54  ;;  %v3728_v36 = vand.u32 2147483647, %v3472_v53  ;;  %v11977_v18 = vld [vmem:[#allocation279_spill] sm:$0xff] }
 0x73b   : > { %v4805_v50 = vmul.f32 0.0625, %v4549_v31  ;;  %4280 = vadd.xlane.f32.xlu1 %v3789_v32  ;;  %v4177_v43 = vpop.xlane.xlu0 %4176  ;;  %v11971_v32 = vld [vmem:[#allocation433_spill] sm:$0xff] }
 0x73c   : > { %v4081_v40 = vpop.xlane.xlu1 %4080  ;;  %v5877_v57 = vrot.slane %v4730_v33, %v9038_v4  ;;  %v4505_v63 = vadd.f32 %v4177_v43, %v11965_v61  ;;  %v4774_v33 = vmul.f32 0.0625, %v4518_v3  ;;  %v3534_v43 = vsub.f32 %v11972_v22, %v11766_v14  ;;  %v11980_v22 = vld [vmem:[#allocation229_spill] sm:$0xff] }
 0x73d   : > { %v6247_v23 = vrot.slane %v4805_v50, %v8981_v0  ;;  %v4457_v17 = vadd.f32 %v4081_v40, %v11966_v11  ;;  %v11968_v0 = vld [vmem:[#allocation236_spill] sm:$0xff] }
 0x73e   : > { %v10119_v49 = vsel %vm5152_vm8, %v5877_v57, %v10065_v52  ;;  %v4761_v48 = vmul.f32 0.0625, %v4505_v63  ;;  %4254 = vadd.xlane.f32.xlu0 %v3776_v8  ;;  %v3503_v15 = vsub.f32 %v11968_v0, %v11748_v54  ;;  %v11973_v40 = vld [vmem:[#allocation268_spill] sm:$0xff]  ;;  %v3777_v57 = vand.u32 2147483647, %v3521_v38  ;;  %v11974_v63 = vld [vmem:[#allocation122_spill] sm:$0xff] }
 0x73f   : > { %v10123_v13 = vsel %vm5117_vm3, %v6247_v23, %v10069_v45  ;;  %v4713_v44 = vmul.f32 0.0625, %v4457_v17  ;;  %4096 = vadd.xlane.f32.xlu1 %v3697_v25  ;;  %v4239_v24 = vpop.xlane.xlu0 %4238  ;;  %v11970_v45 = vld [vmem:[#allocation56_spill] sm:$0xff]  ;;  %v3552_v8 = vsub.f32 %v11973_v40, %v11766_v14  ;;  %v11975_v17 = vld [vmem:[#allocation29_spill] sm:$0xff]  ;;  %v6094_v7 = vrot.slane %v4774_v33, %v8999_v26 }
 0x740   : > { %v4143_v16 = vpop.xlane.xlu1 %4142  ;;  %v6030_v52 = vrot.slane %v4761_v48, %v9022_v21  ;;  %v4536_v31 = vadd.f32 %v4239_v24, %v11970_v45  ;;  %v3759_v23 = vand.u32 2147483647, %v3503_v15  ;;  %v11976_v15 = vld [vmem:[#allocation208_spill] sm:$0xff]  ;;  %vm6398_vm3 = vcmask 1046534  }
 0x741   : > { %v5793_v35 = vrot.slane %v4713_v44, %v9022_v21  ;;  %v4488_v51 = vadd.f32 %v4143_v16, %v11971_v32  ;;  %v3473_v1 = vsub.f32 %v11976_v15, %v11733_v39  ;;  %v3808_v16 = vand.u32 2147483647, %v3552_v8  ;;  %v11979_v32 = vld [vmem:[#allocation395_spill] sm:$0xff]  ;;  %v11985_v15 = vld [vmem:[#allocation30_spill] sm:$0xff] }
 0x742   : > { %v10138_v50 = vsel %vm5145_vm7, %v6030_v52, %v10081_v58  ;;  %v4792_v53 = vmul.f32 0.0625, %v4536_v31  ;;  %4316 = vadd.xlane.f32.xlu0 %v3807_v37  ;;  %v3790_v37 = vand.u32 2147483647, %v3534_v43  ;;  %v6095_v31 = vsel %vm5124_vm4, %v6094_v7, %v10052_v59  ;;  %v11981_v59 = vld [vmem:[#allocation406_spill] sm:$0xff] }
 0x743   : > { %v5794_v41 = vsel %vm5145_vm7, %v5793_v35, %v5789_v47  ;;  %v4744_v12 = vmul.f32 0.0625, %v4488_v51  ;;  %4158 = vadd.xlane.f32.xlu1 %v3728_v36  ;;  %v4301_v20 = vpop.xlane.xlu0 %4300  ;;  %v3553_v36 = vsub.f32 %v11977_v18, %v11766_v14  ;;  %v11978_v35 = vld [vmem:[#allocation49_spill] sm:$0xff]  ;;  %v3504_v43 = vsub.f32 %v11980_v22, %v11748_v54  ;;  %v11986_v18 = vld [vmem:[#allocation238_spill] sm:$0xff] }
 0x744   : > { %v4205_v25 = vpop.xlane.xlu1 %4204  ;;  %v6183_v61 = vrot.slane %v4792_v53, %v9016_v6  ;;  %v4567_v11 = vadd.f32 %v4301_v20, %v11974_v63 }
 0x745   : > { %v5946_v58 = vrot.slane %v4744_v12, %v9016_v6  ;;  %v4519_v28 = vadd.f32 %v4205_v25, %v11975_v17  ;;  %v3729_v12 = vand.u32 2147483647, %v3473_v1  ;;  %v3809_v20 = vand.u32 2147483647, %v3553_v36 }
 0x746   : > { %v10154_v3 = vsel %vm5138_vm6, %v6183_v61, %v10093_v62  ;;  %v4823_v44 = vmul.f32 0.0625, %v4567_v11  ;;  %4256 = vadd.xlane.f32.xlu0 %v3777_v57  ;;  %v11982_v57 = vld [vmem:[#allocation435_spill] sm:$0xff]  ;;  %v11983_v11 = vld [vmem:[#allocation262_spill] sm:$0xff]  ;;  %v3760_v7 = vand.u32 2147483647, %v3504_v43  ;;  %v3505_v36 = vsub.f32 %v11986_v18, %v11748_v54  ;;  %v11989_v54 = vld [vmem:[#allocation257_spill] sm:$0xff] }
 0x747   : > { %v5947_v48 = vsel %vm5138_vm6, %v5946_v58, %v5942_v9  ;;  %v4775_v0 = vmul.f32 0.0625, %v4519_v28  ;;  %4220 = vadd.xlane.f32.xlu1 %v3759_v23  ;;  %v4085_v38 = vpop.xlane.xlu0 %4084  ;;  %v3535_v17 = vsub.f32 %v11983_v11, %v11766_v14  ;;  %v3536_v43 = vsub.f32 %v11989_v54, %v11766_v14 }
 0x748   : > { %v4267_v24 = vpop.xlane.xlu1 %4266  ;;  %v6336_v52 = vrot.slane %v4823_v44, %v8993_v29  ;;  %v4459_v51 = vadd.f32 %v4085_v38, %v11979_v32 }
 0x749   : > { %v6099_v62 = vrot.slane %v4775_v0, %v8993_v29  ;;  %v4550_v45 = vadd.f32 %v4267_v24, %v11978_v35 }
 0x74a   : > { %v10169_v39 = vsel %vm5131_vm5, %v6336_v52, %v10105_v55  ;;  %4318 = vadd.xlane.f32.xlu0 %v3808_v16  ;;  %v4715_v25 = vmul.f32 0.0625, %v4459_v51  ;;  %v11988_v51 = vld [vmem:[#allocation51_spill] sm:$0xff] }
 0x74b   : > { %v6100_v47 = vsel %vm5131_vm5, %v6099_v62, %v6095_v31  ;;  %v4806_v27 = vmul.f32 0.0625, %v4550_v45  ;;  %4282 = vadd.xlane.f32.xlu1 %v3790_v37  ;;  %v4147_v33 = vpop.xlane.xlu0 %4146  ;;  %v11987_v62 = vld [vmem:[#allocation104_spill] sm:$0xff]  ;;  %v3791_v45 = vand.u32 2147483647, %v3535_v17 }
 0x74c   : > { %v4083_v53 = vpop.xlane.xlu1 %4082  ;;  %v4490_v55 = vadd.f32 %v4147_v33, %v11982_v57  ;;  %v5803_v44 = vrot.slane %v4715_v25, %v9031_v5 }
 0x74d   : > { %v6252_v40 = vrot.slane %v4806_v27, %v8999_v26  ;;  %v4458_v8 = vadd.f32 %v4083_v53, %v11981_v59  ;;  %v11984_v26 = vld [vmem:[#allocation422_spill] sm:$0xff]  ;;  %v11990_v59 = vld [vmem:[#allocation101_spill] sm:$0xff] }
 0x74e   : > { %4320 = vadd.xlane.f32.xlu0 %v3809_v20  ;;  %v4746_v0 = vmul.f32 0.0625, %v4490_v55  ;;  %v3761_v20 = vand.u32 2147483647, %v3505_v36  ;;  %v11991_v55 = vld [vmem:[#allocation18_spill] sm:$0xff] }
 0x74f   : > { %v6253_v23 = vsel %vm5124_vm4, %v6252_v40, %v10123_v13  ;;  %v4714_v61 = vmul.f32 0.0625, %v4458_v8  ;;  %4160 = vadd.xlane.f32.xlu1 %v3729_v12  ;;  %v4209_v58 = vpop.xlane.xlu0 %4208  ;;  %vm6400_vm4 = vcmask 1047559  }
 0x750   : > { %v4145_v63 = vpop.xlane.xlu1 %4144  ;;  %v4521_v1 = vadd.f32 %v4209_v58, %v11985_v15  ;;  %v5956_v31 = vrot.slane %v4746_v0, %v9038_v4  ;;  %v3792_v0 = vand.u32 2147483647, %v3536_v43 }
 0x751   : > { %v5798_v28 = vrot.slane %v4714_v61, %v9038_v4  ;;  %v4489_v9 = vadd.f32 %v4145_v63, %v11984_v26 }
 0x752   : > { %v4777_v32 = vmul.f32 0.0625, %v4521_v1 }
 0x753   : > { %v5799_v13 = vsel %vm5152_vm8, %v5798_v28, %v5794_v41  ;;  %v4745_v38 = vmul.f32 0.0625, %v4489_v9  ;;  %4222 = vadd.xlane.f32.xlu1 %v3760_v7  ;;  %v4271_v24 = vpop.xlane.xlu0 %4270  ;;  %v11992_v28 = vld [vmem:[#allocation264_spill] sm:$0xff]  ;;  %v11993_v7 = vld [vmem:[#allocation393_spill] sm:$0xff] }
 0x754   : > { %v4207_v16 = vpop.xlane.xlu1 %4206  ;;  %v10187_v37 = vsel %vm5159_vm9, %v5803_v44, %v5799_v13  ;;  %v4552_v41 = vadd.f32 %v4271_v24, %v11988_v51  ;;  %v6109_v25 = vrot.slane %v4777_v32, %v9022_v21  ;;  %v3537_v26 = vsub.f32 %v11992_v28, %v11766_v14  ;;  %v11994_v13 = vld [vmem:[#allocation421_spill] sm:$0xff]  ;;  %v12000_v28 = vld [vmem:[#allocation124_spill] sm:$0xff] }
 0x755   : > { %v5951_v52 = vrot.slane %v4745_v38, %v9022_v21  ;;  %v4520_v35 = vadd.f32 %v4207_v16, %v11987_v62 }
 0x756   : > { %v4808_v57 = vmul.f32 0.0625, %v4552_v41  ;;  %v3793_v62 = vand.u32 2147483647, %v3537_v26 }
 0x757   : > { %v5952_v27 = vsel %vm5145_vm7, %v5951_v52, %v5947_v48  ;;  %v4776_v33 = vmul.f32 0.0625, %v4520_v35  ;;  %4284 = vadd.xlane.f32.xlu1 %v3791_v45  ;;  %v4057_v53 = vpop.xlane.xlu0 %4056 }
 0x758   : > { %v4269_v12 = vpop.xlane.xlu1 %4268  ;;  %v10197_v22 = vsel %vm5152_vm8, %v5956_v31, %v5952_v27  ;;  %v4445_v48 = vadd.f32 %v4057_v53, %v11991_v55  ;;  %v6262_v15 = vrot.slane %v4808_v57, %v9016_v6  ;;  %v11996_v31 = vld [vmem:[#allocation440_spill] sm:$0xff] }
 0x759   : > { %v6104_v40 = vrot.slane %v4776_v33, %v9016_v6  ;;  %v4551_v8 = vadd.f32 %v4269_v12, %v11990_v59  ;;  %v11997_v12 = vld [vmem:[#allocation445_spill] sm:$0xff]  ;;  %v11998_v59 = vld [vmem:[#allocation58_spill] sm:$0xff] }
 0x75a   : > { %v4701_v1 = vmul.f32 0.0625, %v4445_v48 }
 0x75b   : > { %v6105_v61 = vsel %vm5138_vm6, %v6104_v40, %v6100_v47  ;;  %v4807_v58 = vmul.f32 0.0625, %v4551_v8  ;;  %4224 = vadd.xlane.f32.xlu1 %v3761_v20  ;;  %v4119_v63 = vpop.xlane.xlu0 %4118 }
 0x75c   : > { %v4055_v11 = vpop.xlane.xlu1 %4054  ;;  %v10207_v17 = vsel %vm5145_vm7, %v6109_v25, %v6105_v61  ;;  %v4476_v47 = vadd.f32 %v4119_v63, %v11994_v13  ;;  %v5734_v35 = vrot.slane %v4701_v1, %v9062_v2  ;;  %v11999_v61 = vld [vmem:[#allocation89_spill] sm:$0xff]  ;;  %v12001_v1 = vld [vmem:[#allocation70_spill] sm:$0xff] }
 0x75d   : > { %v6257_v9 = vrot.slane %v4807_v58, %v8993_v29  ;;  %v4444_v44 = vadd.f32 %v4055_v11, %v11993_v7  ;;  %v11995_v29 = vld [vmem:[#allocation409_spill] sm:$0xff] }
 0x75e   : > { %v4732_v45 = vmul.f32 0.0625, %v4476_v47 }
 0x75f   : > { %v6258_v38 = vsel %vm5131_vm5, %v6257_v9, %v6253_v23  ;;  %v4700_v24 = vmul.f32 0.0625, %v4444_v44  ;;  %4286 = vadd.xlane.f32.xlu1 %v3792_v0  ;;  %v4181_v16 = vpop.xlane.xlu0 %4180 }
 0x760   : > { %v4117_v18 = vpop.xlane.xlu1 %4116  ;;  %v10217_v36 = vsel %vm5138_vm6, %v6262_v15, %v6258_v38  ;;  %v4507_v32 = vadd.f32 %v4181_v16, %v11996_v31  ;;  %v5887_v43 = vrot.slane %v4732_v45, %v9056_v56 }
 0x761   : > { %v5729_v14 = vrot.slane %v4700_v24, %v9056_v56  ;;  %v4475_v52 = vadd.f32 %v4117_v18, %v11995_v29  ;;  %v12002_v24 = vld [vmem:[#allocation397_spill] sm:$0xff] }
 0x762   : > { %v4763_v40 = vmul.f32 0.0625, %v4507_v32 }
 0x763   : > { %v5730_v23 = vsel %vm5166_vm10, %v5729_v14, %v9833_v60  ;;  %v4731_v51 = vmul.f32 0.0625, %v4475_v52  ;;  %4288 = vadd.xlane.f32.xlu1 %v3793_v62  ;;  %v4243_v41 = vpop.xlane.xlu0 %4242 }
 0x764   : > { %v4179_v27 = vpop.xlane.xlu1 %4178  ;;  %v10226_v33 = vsel %vm5173_vm11, %v5734_v35, %v5730_v23  ;;  %v4538_v8 = vadd.f32 %v4243_v41, %v11998_v59  ;;  %v6040_v63 = vrot.slane %v4763_v40, %v9031_v5  ;;  %v12003_v35 = vld [vmem:[#allocation407_spill] sm:$0xff]  ;;  %v12004_v23 = vld [vmem:[#allocation437_spill] sm:$0xff] }
 0x765   : > { %v5882_v53 = vrot.slane %v4731_v51, %v9031_v5  ;;  %v4506_v54 = vadd.f32 %v4179_v27, %v11997_v12 }
 0x766   : > { %v4794_v11 = vmul.f32 0.0625, %v4538_v8  ;;  %v12006_v8 = vld [vmem:[#allocation34_spill] sm:$0xff] }
 0x767   : > { %v5883_v20 = vsel %vm5159_vm9, %v5882_v53, %v10119_v49  ;;  %v4762_v60 = vmul.f32 0.0625, %v4506_v54  ;;  %v4305_v25 = vpop.xlane.xlu0 %4304 }
 0x768   : > { %v4241_v57 = vpop.xlane.xlu1 %4240  ;;  %v10235_v55 = vsel %vm5166_vm10, %v5887_v43, %v5883_v20  ;;  %v4569_v26 = vadd.f32 %v4305_v25, %v12000_v28  ;;  %v6193_v47 = vrot.slane %v4794_v11, %v9038_v4  ;;  %v12005_v43 = vld [vmem:[#allocation424_spill] sm:$0xff] }
 0x769   : > { %v6035_v48 = vrot.slane %v4762_v60, %v9038_v4  ;;  %v4537_v58 = vadd.f32 %v4241_v57, %v11999_v61 }
 0x76a   : > { %v4825_v38 = vmul.f32 0.0625, %v4569_v26  ;;  %v12008_v26 = vld [vmem:[#allocation53_spill] sm:$0xff] }
 0x76b   : > { %v6036_v9 = vsel %vm5152_vm8, %v6035_v48, %v10138_v50  ;;  %v4793_v7 = vmul.f32 0.0625, %v4537_v58  ;;  %v4089_v49 = vpop.xlane.xlu0 %4088  ;;  %v12007_v58 = vld [vmem:[#allocation106_spill] sm:$0xff] }
 0x76c   : > { %v4303_v44 = vpop.xlane.xlu1 %4302  ;;  %v10244_v0 = vsel %vm5159_vm9, %v6040_v63, %v6036_v9  ;;  %v4461_v16 = vadd.f32 %v4089_v49, %v12002_v24  ;;  %v6346_v31 = vrot.slane %v4825_v38, %v9022_v21 }
 0x76d   : > { %v6188_v15 = vrot.slane %v4793_v7, %v9022_v21  ;;  %v4568_v13 = vadd.f32 %v4303_v44, %v12001_v1 }
 0x76e   : > { %v4717_v32 = vmul.f32 0.0625, %v4461_v16  ;;  %v12010_v16 = vld [vmem:[#allocation385_spill] sm:$0xff] }
 0x76f   : > { %v6189_v18 = vsel %vm5145_vm7, %v6188_v15, %v10154_v3  ;;  %v4824_v14 = vmul.f32 0.0625, %v4568_v13  ;;  %v4151_v50 = vpop.xlane.xlu0 %4150  ;;  %v12009_v13 = vld [vmem:[#allocation60_spill] sm:$0xff] }
 0x770   : > { %v4087_v29 = vpop.xlane.xlu1 %4086  ;;  %v10253_v52 = vsel %vm5152_vm8, %v6193_v47, %v6189_v18  ;;  %v4492_v51 = vadd.f32 %v4151_v50, %v12004_v23  ;;  %v5813_v40 = vrot.slane %v4717_v32, %v9062_v2 }
 0x771   : > { %v6341_v62 = vrot.slane %v4824_v14, %v9016_v6  ;;  %v4460_v45 = vadd.f32 %v4087_v29, %v12003_v35 }
 0x772   : > { %v4748_v59 = vmul.f32 0.0625, %v4492_v51  ;;  %v12012_v51 = vld [vmem:[#allocation423_spill] sm:$0xff] }
 0x773   : > { %v6342_v41 = vsel %vm5138_vm6, %v6341_v62, %v10169_v39  ;;  %v4716_v27 = vmul.f32 0.0625, %v4460_v45  ;;  %v4213_v3 = vpop.xlane.xlu0 %4212  ;;  %v12011_v45 = vld [vmem:[#allocation394_spill] sm:$0xff] }
 0x774   : > { %v4149_v53 = vpop.xlane.xlu1 %4148  ;;  %v10262_v12 = vsel %vm5145_vm7, %v6346_v31, %v6342_v41  ;;  %v4523_v20 = vadd.f32 %v4213_v3, %v12006_v8  ;;  %v5966_v11 = vrot.slane %v4748_v59, %v9056_v56  ;;  %v12014_v8 = vld [vmem:[#allocation19_spill] sm:$0xff] }
 0x775   : > { %v5808_v54 = vrot.slane %v4716_v27, %v9056_v56  ;;  %v4491_v6 = vadd.f32 %v4149_v53, %v12005_v43 }
 0x776   : > { %v4779_v28 = vmul.f32 0.0625, %v4523_v20 }
 0x777   : > { %v5809_v60 = vsel %vm5166_vm10, %v5808_v54, %v10187_v37  ;;  %v4747_v25 = vmul.f32 0.0625, %v4491_v6  ;;  %v4275_v39 = vpop.xlane.xlu0 %4274  ;;  %v12013_v6 = vld [vmem:[#allocation20_spill] sm:$0xff] }
 0x778   : > { %v4211_v57 = vpop.xlane.xlu1 %4210  ;;  %v10271_v48 = vsel %vm5173_vm11, %v5813_v40, %v5809_v60  ;;  %v4554_v9 = vadd.f32 %v4275_v39, %v12008_v26  ;;  %v6119_v38 = vrot.slane %v4779_v28, %v9031_v5  ;;  %v12016_v26 = vld [vmem:[#allocation39_spill] sm:$0xff] }
 0x779   : > { %v5961_v61 = vrot.slane %v4747_v25, %v9031_v5  ;;  %v4522_v63 = vadd.f32 %v4211_v57, %v12007_v58  ;;  %v12015_v58 = vld [vmem:[#allocation44_spill] sm:$0xff] }
 0x77a   : > { %v4810_v24 = vmul.f32 0.0625, %v4554_v9 }
 0x77b   : > { %v5962_v7 = vsel %vm5159_vm9, %v5961_v61, %v10197_v22  ;;  %v4778_v49 = vmul.f32 0.0625, %v4522_v63  ;;  %v4061_v37 = vpop.xlane.xlu0 %4060 }
 0x77c   : > { %v4273_v44 = vpop.xlane.xlu1 %4272  ;;  %v10280_v15 = vsel %vm5166_vm10, %v5966_v11, %v5962_v7  ;;  %v4447_v18 = vadd.f32 %v4061_v37, %v12010_v16  ;;  %v6272_v32 = vrot.slane %v4810_v24, %v9038_v4  ;;  %v12018_v16 = vld [vmem:[#allocation126_spill] sm:$0xff] }
 0x77d   : > { %v6114_v1 = vrot.slane %v4778_v49, %v9038_v4  ;;  %v4553_v47 = vadd.f32 %v4273_v44, %v12009_v13  ;;  %v12017_v13 = vld [vmem:[#allocation91_spill] sm:$0xff] }
 0x77e   : > { %v4703_v23 = vmul.f32 0.0625, %v4447_v18 }
 0x77f   : > { %v6115_v14 = vsel %vm5152_vm8, %v6114_v1, %v10207_v17  ;;  %v4809_v50 = vmul.f32 0.0625, %v4553_v47  ;;  %v4123_v22 = vpop.xlane.xlu0 %4122 }
 0x780   : > { %v4059_v29 = vpop.xlane.xlu1 %4058  ;;  %v10289_v62 = vsel %vm5159_vm9, %v6119_v38, %v6115_v14  ;;  %v4478_v41 = vadd.f32 %v4123_v22, %v12012_v51  ;;  %v5744_v40 = vrot.slane %v4703_v23, %v9071_v46  ;;  %v12020_v51 = vld [vmem:[#allocation399_spill] sm:$0xff] }
 0x781   : > { %v6267_v35 = vrot.slane %v4809_v50, %v9022_v21  ;;  %v4446_v31 = vadd.f32 %v4059_v29, %v12011_v45  ;;  %v12019_v45 = vld [vmem:[#allocation113_spill] sm:$0xff] }
 0x782   : > { %v4734_v59 = vmul.f32 0.0625, %v4478_v41 }
 0x783   : > { %v6268_v27 = vsel %vm5145_vm7, %v6267_v35, %v10217_v36  ;;  %v4702_v3 = vmul.f32 0.0625, %v4446_v31  ;;  %v4185_v17 = vpop.xlane.xlu0 %4184 }
 0x784   : > { %v4121_v53 = vpop.xlane.xlu1 %4120  ;;  %v10298_v54 = vsel %vm5152_vm8, %v6272_v32, %v6268_v27  ;;  %v4509_v20 = vadd.f32 %v4185_v17, %v12014_v8  ;;  %v5897_v11 = vrot.slane %v4734_v59, %v9078_v19 }
 0x785   : > { %v5739_v43 = vrot.slane %v4702_v3, %v9078_v19  ;;  %v4477_v21 = vadd.f32 %v4121_v53, %v12013_v6  ;;  %v12021_v6 = vld [vmem:[#allocation408_spill] sm:$0xff] }
 0x786   : > { %v4765_v28 = vmul.f32 0.0625, %v4509_v20 }
 0x787   : > { %v5740_v60 = vsel %vm5180_vm12, %v5739_v43, %v10226_v33  ;;  %v4733_v25 = vmul.f32 0.0625, %v4477_v21  ;;  %v4247_v36 = vpop.xlane.xlu0 %4246 }
 0x788   : > { %v4183_v39 = vpop.xlane.xlu1 %4182  ;;  %v10307_v57 = vsel %vm5187_vm13, %v5744_v40, %v5740_v60  ;;  %v4540_v9 = vadd.f32 %v4247_v36, %v12016_v26  ;;  %v6050_v38 = vrot.slane %v4765_v28, %v9062_v2 }
 0x789   : > { %v5892_v61 = vrot.slane %v4733_v25, %v9062_v2  ;;  %v4508_v63 = vadd.f32 %v4183_v39, %v12015_v58  ;;  %v12022_v39 = vld [vmem:[#allocation426_spill] sm:$0xff] }
 0x78a   : > { %v4796_v24 = vmul.f32 0.0625, %v4540_v9  ;;  %v12023_v9 = vld [vmem:[#allocation108_spill] sm:$0xff] }
 0x78b   : > { %v5893_v7 = vsel %vm5173_vm11, %v5892_v61, %v10235_v55  ;;  %v4764_v49 = vmul.f32 0.0625, %v4508_v63  ;;  %v4309_v33 = vpop.xlane.xlu0 %4308 }
 0x78c   : > { %v4245_v37 = vpop.xlane.xlu1 %4244  ;;  %v10316_v44 = vsel %vm5180_vm12, %v5897_v11, %v5893_v7  ;;  %v4571_v18 = vadd.f32 %v4309_v33, %v12018_v16  ;;  %v6203_v32 = vrot.slane %v4796_v24, %v9056_v56 }
 0x78d   : > { %v6045_v1 = vrot.slane %v4764_v49, %v9056_v56  ;;  %v4539_v47 = vadd.f32 %v4245_v37, %v12017_v13  ;;  %v12024_v13 = vld [vmem:[#allocation62_spill] sm:$0xff] }
 0x78e   : > { %v4827_v23 = vmul.f32 0.0625, %v4571_v18 }
 0x78f   : > { %v6046_v14 = vsel %vm5166_vm10, %v6045_v1, %v10244_v0  ;;  %v4795_v50 = vmul.f32 0.0625, %v4539_v47  ;;  %v4093_v55 = vpop.xlane.xlu0 %4092 }
 0x790   : > { %v4307_v22 = vpop.xlane.xlu1 %4306  ;;  %v10325_v29 = vsel %vm5173_vm11, %v6050_v38, %v6046_v14  ;;  %v4463_v41 = vadd.f32 %v4093_v55, %v12020_v51  ;;  %v6356_v40 = vrot.slane %v4827_v23, %v9031_v5  ;;  %v12025_v38 = vld [vmem:[#allocation387_spill] sm:$0xff] }
 0x791   : > { %v6198_v35 = vrot.slane %v4795_v50, %v9031_v5  ;;  %v4570_v31 = vadd.f32 %v4307_v22, %v12019_v45 }
 0x792   : > { %v4719_v59 = vmul.f32 0.0625, %v4463_v41 }
 0x793   : > { %v6199_v27 = vsel %vm5159_vm9, %v6198_v35, %v10253_v52  ;;  %v4826_v3 = vmul.f32 0.0625, %v4570_v31  ;;  %v10333_v0 = vpop.xlane.xlu0 %4154 }
 0x794   : > { %v4091_v17 = vpop.xlane.xlu1 %4090  ;;  %v10336_v53 = vsel %vm5166_vm10, %v6203_v32, %v6199_v27  ;;  %v12027_v27 = vld [vmem:[#allocation412_spill] sm:$0xff] }
 0x795   : > { %v6351_v43 = vrot.slane %v4826_v3, %v9038_v4  ;;  %v4462_v21 = vadd.f32 %v4091_v17, %v12021_v6  ;;  %v5823_v4 = vrot.slane %v4719_v59, %v9071_v46 }
 0x797   : > { %v6352_v8 = vsel %vm5152_vm8, %v6351_v43, %v10262_v12  ;;  %v4718_v20 = vmul.f32 0.0625, %v4462_v21  ;;  %v10343_v60 = vpop.xlane.xlu0 %4216  ;;  %v12028_v21 = vld [vmem:[#allocation425_spill] sm:$0xff] }
 0x798   : > { %v4153_v52 = vpop.xlane.xlu1 %4152  ;;  %v10346_v25 = vsel %vm5159_vm9, %v6356_v40, %v6352_v8 }
 0x799   : > { %v5818_v36 = vrot.slane %v4718_v20, %v9078_v19  ;;  %v4493_v61 = vadd.f32 %v4153_v52, %v12022_v39  ;;  %v12029_v39 = vld [vmem:[#allocation414_spill] sm:$0xff] }
 0x79b   : > { %v5819_v58 = vsel %vm5180_vm12, %v5818_v36, %v10271_v48  ;;  %v4749_v63 = vmul.f32 0.0625, %v4493_v61  ;;  %v10353_v11 = vpop.xlane.xlu0 %4278 }
 0x79c   : > { %v4215_v12 = vpop.xlane.xlu1 %4214  ;;  %v10356_v28 = vsel %vm5187_vm13, %v5823_v4, %v5819_v58 }
 0x79d   : > { %v5971_v26 = vrot.slane %v4749_v63, %v9062_v2  ;;  %v4524_v7 = vadd.f32 %v4215_v12, %v12023_v9  ;;  %v12030_v9 = vld [vmem:[#allocation46_spill] sm:$0xff] }
 0x79f   : > { %v10362_v49 = vsel %vm5173_vm11, %v5971_v26, %v10280_v15  ;;  %v4780_v33 = vmul.f32 0.0625, %v4524_v7  ;;  %v4065_v37 = vpop.xlane.xlu0 %4064  ;;  %v12026_v15 = vld [vmem:[#allocation396_spill] sm:$0xff] }
 0x7a0   : > { %v4277_v1 = vpop.xlane.xlu1 %4276  ;;  %v4449_v24 = vadd.f32 %v4065_v37, %v12025_v38 }
 0x7a1   : > { %v6124_v48 = vrot.slane %v4780_v33, %v9056_v56  ;;  %v4555_v47 = vadd.f32 %v4277_v1, %v12024_v13 }
 0x7a2   : > { %v4705_v35 = vmul.f32 0.0625, %v4449_v24  ;;  %v12032_v24 = vld [vmem:[#allocation32_spill] sm:$0xff] }
 0x7a3   : > { %v10369_v16 = vsel %vm5166_vm10, %v6124_v48, %v10289_v62  ;;  %v4811_v18 = vmul.f32 0.0625, %v4555_v47  ;;  %v4127_v14 = vpop.xlane.xlu0 %4126 }
 0x7a4   : > { %v4063_v50 = vpop.xlane.xlu1 %4062  ;;  %v5754_v62 = vrot.slane %v4705_v35, %v9105_v34  ;;  %v4480_v40 = vadd.f32 %v4127_v14, %v12028_v21 }
 0x7a5   : > { %v6277_v55 = vrot.slane %v4811_v18, %v9031_v5  ;;  %v4448_v22 = vadd.f32 %v4063_v50, %v12026_v15 }
 0x7a6   : > { %v4736_v52 = vmul.f32 0.0625, %v4480_v40 }
 0x7a7   : > { %v10375_v45 = vsel %vm5159_vm9, %v6277_v55, %v10298_v54  ;;  %v4704_v31 = vmul.f32 0.0625, %v4448_v22  ;;  %v4189_v32 = vpop.xlane.xlu0 %4188  ;;  %v12033_v22 = vld [vmem:[#allocation410_spill] sm:$0xff] }
 0x7a8   : > { %v4125_v23 = vpop.xlane.xlu1 %4124  ;;  %v5907_v63 = vrot.slane %v4736_v52, %v9100_v30  ;;  %v4511_v18 = vadd.f32 %v4189_v32, %v12032_v24  ;;  %v12036_v52 = vld [vmem:[#allocation93_spill] sm:$0xff] }
 0x7a9   : > { %v5749_v51 = vrot.slane %v4704_v31, %v9100_v30  ;;  %v4479_v3 = vadd.f32 %v4125_v23, %v12027_v27  ;;  %v12034_v23 = vld [vmem:[#allocation21_spill] sm:$0xff]  ;;  %v12035_v27 = vld [vmem:[#allocation36_spill] sm:$0xff] }
 0x7aa   : > { %v4767_v31 = vmul.f32 0.0625, %v4511_v18 }
 0x7ab   : > { %v5750_v41 = vsel %vm5194_vm14, %v5749_v51, %v10307_v57  ;;  %v4251_v17 = vpop.xlane.xlu0 %4250  ;;  %v4735_v6 = vmul.f32 0.0625, %v4479_v3 }
 0x7ac   : > { %v5755_v5 = vsel %vm5201_vm15, %v5754_v62, %v5750_v41  ;;  %v4187_v43 = vpop.xlane.xlu1 %4186 }
 0x7ad   : > { %v6404_v54 = vsel %vm6392_vm0, %v5755_v5, %v9668_v42  ;;  %v5902_v20 = vrot.slane %v4735_v6, %v9071_v46  ;;  %v4510_v7 = vadd.f32 %v4187_v43, %v12030_v9 }
 0x7af   : > { %v10386_v59 = vpop.xlane.xlu0 %4312  ;;  %v5903_v4 = vsel %vm5187_vm13, %v5902_v20, %v10316_v44  ;;  %v4766_v47 = vmul.f32 0.0625, %v4510_v7  ;;  %v12031_v44 = vld [vmem:[#allocation48_spill] sm:$0xff] }
 0x7b0   : > { %v4249_v8 = vpop.xlane.xlu1 %4248  ;;  %v5908_v33 = vsel %vm5194_vm14, %v5907_v63, %v5903_v4 }
 0x7b1   : > { %v6055_v55 = vrot.slane %v4766_v47, %v9078_v19  ;;  %v4541_v51 = vadd.f32 %v4249_v8, %v12034_v23 }
 0x7b3   : > { %v4129_v36 = vpop.xlane.xlu0 %4128  ;;  %v6056_v5 = vsel %vm5180_vm12, %v6055_v55, %v10325_v29  ;;  %v4797_v21 = vmul.f32 0.0625, %v4541_v51  ;;  %v12043_v51 = vld [vmem:[#allocation428_spill] sm:$0xff] }
 0x7b4   : > { %v4311_v57 = vpop.xlane.xlu1 %4310  ;;  %v4481_v61 = vadd.f32 %v4129_v36, %v12029_v39 }
 0x7b6   : > { %v4737_v58 = vmul.f32 0.0625, %v4481_v61  ;;  %v12037_v61 = vld [vmem:[#allocation401_spill] sm:$0xff] }
 0x7b7   : > { %v4191_v42 = vpop.xlane.xlu0 %4190 }
 0x7b8   : > { %v4095_v12 = vpop.xlane.xlu1 %4094  ;;  %v5912_v26 = vrot.slane %v4737_v58, %v9105_v34  ;;  %v4512_v38 = vadd.f32 %v4191_v42, %v12031_v44  ;;  %v12038_v58 = vld [vmem:[#allocation41_spill] sm:$0xff] }
 0x7b9   : > { %v4464_v35 = vadd.f32 %v4095_v12, %v12033_v22  ;;  %v4542_v29 = vadd.f32 %v4251_v17, %v12038_v58  ;;  %v12039_v12 = vld [vmem:[#allocation43_spill] sm:$0xff] }
 0x7ba   : > { %v5913_v37 = vsel %vm5201_vm15, %v5912_v26, %v5908_v33  ;;  %v4768_v15 = vmul.f32 0.0625, %v4512_v38  ;;  %v12040_v33 = vld [vmem:[#allocation72_spill] sm:$0xff]  ;;  %v6208_v38 = vrot.slane %v4797_v21, %v9062_v2  ;;  %v12041_v22 = vld [vmem:[#allocation439_spill] sm:$0xff] }
 0x7bb   : > { %v6405_v1 = vsel %vm6394_vm1, %v5913_v37, %v6404_v54  ;;  %v4253_v48 = vpop.xlane.xlu0 %4252  ;;  %v4720_v43 = vmul.f32 0.0625, %v4464_v35  ;;  %v6060_v54 = vrot.slane %v4767_v31, %v9071_v46  ;;  %v4572_v37 = vadd.f32 %v4311_v57, %v12040_v33  ;;  %v12042_v31 = vld [vmem:[#allocation128_spill] sm:$0xff] }
 0x7bc   : > { %v4157_v13 = vpop.xlane.xlu1 %4156  ;;  %v6065_v32 = vrot.slane %v4768_v15, %v9100_v30  ;;  %v4543_v36 = vadd.f32 %v4253_v48, %v12036_v52  ;;  %v4798_v18 = vmul.f32 0.0625, %v4542_v29  ;;  %v4494_v35 = vadd.f32 %v10333_v0, %v12041_v22 }
 0x7bd   : > { %v6061_v8 = vsel %vm5187_vm13, %v6060_v54, %v6056_v5  ;;  %v5828_v42 = vrot.slane %v4720_v43, %v9100_v30  ;;  %v4573_v57 = vadd.f32 %v10386_v59, %v12042_v31  ;;  %v4828_v23 = vmul.f32 0.0625, %v4572_v37  ;;  %v12045_v54 = vld [vmem:[#allocation66_spill] sm:$0xff] }
 0x7be   : > { %v6066_v63 = vsel %vm5194_vm14, %v6065_v32, %v6061_v8  ;;  %v4799_v24 = vmul.f32 0.0625, %v4543_v36  ;;  %v6209_v43 = vsel %vm5173_vm11, %v6208_v38, %v10336_v53  ;;  %v4750_v8 = vmul.f32 0.0625, %v4494_v35  ;;  %v12049_v35 = vld [vmem:[#allocation68_spill] sm:$0xff] }
 0x7bf   : > { %v4315_v14 = vpop.xlane.xlu0 %4314  ;;  %v5829_v55 = vsel %vm5194_vm14, %v5828_v42, %v10356_v28  ;;  %v6361_v36 = vrot.slane %v4828_v23, %v9056_v56 }
 0x7c0   : > { %v10400_v50 = vpop.xlane.xlu1 %4218  ;;  %v6218_v0 = vrot.slane %v4799_v24, %v9071_v46  ;;  %v5976_v33 = vrot.slane %v4750_v8, %v9078_v19  ;;  %v12054_v8 = vld [vmem:[#allocation112_spill] sm:$0xff] }
 0x7c3   : > { %v4193_v62 = vpop.xlane.xlu0 %4192 }
 0x7c4   : > { %v10405_v41 = vpop.xlane.xlu1 %4280  ;;  %v4513_v3 = vadd.f32 %v4193_v62, %v12035_v27  ;;  %v4495_v62 = vadd.f32 %v4157_v13, %v12043_v51  ;;  %v12044_v27 = vld [vmem:[#allocation115_spill] sm:$0xff]  ;;  %v5977_v51 = vsel %vm5180_vm12, %v5976_v33, %v10362_v49 }
 0x7c6   : > { %v4769_v6 = vmul.f32 0.0625, %v4513_v3  ;;  %v4574_v3 = vadd.f32 %v4315_v14, %v12044_v27  ;;  %v12047_v14 = vld [vmem:[#allocation441_spill] sm:$0xff] }
 0x7c7   : > { %v4255_v40 = vpop.xlane.xlu0 %4254 }
 0x7c8   : > { %v4097_v20 = vpop.xlane.xlu1 %4096  ;;  %v6070_v39 = vrot.slane %v4769_v6, %v9105_v34  ;;  %v4544_v26 = vadd.f32 %v4255_v40, %v12039_v12  ;;  %v12046_v6 = vld [vmem:[#allocation95_spill] sm:$0xff]  ;;  %v6213_v40 = vrot.slane %v4798_v18, %v9078_v19  ;;  %v12048_v12 = vld [vmem:[#allocation74_spill] sm:$0xff] }
 0x7c9   : > { %v4465_v4 = vadd.f32 %v4097_v20, %v12037_v61  ;;  %v4830_v61 = vmul.f32 0.0625, %v4574_v3  ;;  %v12051_v3 = vld [vmem:[#allocation38_spill] sm:$0xff] }
 0x7ca   : > { %v6071_v9 = vsel %vm5201_vm15, %v6070_v39, %v6066_v63  ;;  %v4800_v15 = vmul.f32 0.0625, %v4544_v26  ;;  %v6214_v53 = vsel %vm5180_vm12, %v6213_v40, %v6209_v43  ;;  %v4751_v39 = vmul.f32 0.0625, %v4495_v62  ;;  %v12053_v40 = vld [vmem:[#allocation31_spill] sm:$0xff] }
 0x7cb   : > { %v4721_v7 = vmul.f32 0.0625, %v4465_v4  ;;  %v6406_v47 = vsel %vm6396_vm2, %v6071_v9, %v6405_v1  ;;  %v4317_v48 = vpop.xlane.xlu0 %4316  ;;  %v6219_v29 = vsel %vm5187_vm13, %v6218_v0, %v6214_v53  ;;  %v6371_v24 = vrot.slane %v4830_v61, %v9078_v19 }
 0x7cc   : > { %v4159_v44 = vpop.xlane.xlu1 %4158  ;;  %v4575_v59 = vadd.f32 %v4317_v48, %v12045_v54  ;;  %v6223_v13 = vrot.slane %v4800_v15, %v9100_v30  ;;  %v5981_v38 = vrot.slane %v4751_v39, %v9071_v46  ;;  %v12052_v54 = vld [vmem:[#allocation110_spill] sm:$0xff] }
 0x7cd   : > { %v5833_v17 = vrot.slane %v4721_v7, %v9105_v34  ;;  %v4496_v20 = vadd.f32 %v4159_v44, %v12047_v14  ;;  %v6362_v44 = vsel %vm5166_vm10, %v6361_v36, %v10346_v25 }
 0x7ce   : > { %v4831_v63 = vmul.f32 0.0625, %v4575_v59  ;;  %v6224_v9 = vsel %vm5194_vm14, %v6223_v13, %v6219_v29  ;;  %v5982_v43 = vsel %vm5187_vm13, %v5981_v38, %v5977_v51  ;;  %v4526_v59 = vadd.f32 %v10400_v50, %v12052_v54  ;;  %v12055_v50 = vld [vmem:[#allocation13_spill] sm:$0xff] }
 0x7cf   : > { %v5834_v1 = vsel %vm5201_vm15, %v5833_v17, %v5829_v55  ;;  %v4257_v32 = vpop.xlane.xlu0 %4256  ;;  %v4752_v7 = vmul.f32 0.0625, %v4496_v20  ;;  %v6432_v53 = vmul.f32 15.8125, %v12055_v50  ;;  %v4835_v39 = vmul.f32 15.9375, %v12055_v50 }
 0x7d0   : > { %v10436_v5 = vsel %vm6394_vm1, %v5834_v1, %v9776_v10  ;;  %v4221_v28 = vpop.xlane.xlu1 %4220  ;;  %v4545_v21 = vadd.f32 %v4257_v32, %v12046_v6  ;;  %v4829_v10 = vmul.f32 0.0625, %v4573_v57  ;;  %v6376_v22 = vrot.slane %v4831_v63, %v9071_v46  ;;  %v12050_v57 = vld [vmem:[#allocation430_spill] sm:$0xff] }
 0x7d1   : > { %v5986_v23 = vrot.slane %v4752_v7, %v9100_v30  ;;  %v4525_v32 = vadd.f32 %v10343_v60, %v12051_v3  ;;  %v4527_v13 = vadd.f32 %v4221_v28, %v12053_v40  ;;  %v4782_v61 = vmul.f32 0.0625, %v4526_v59 }
 0x7d2   : > { %v4801_v52 = vmul.f32 0.0625, %v4545_v21  ;;  %v6366_v15 = vrot.slane %v4829_v10, %v9062_v2  ;;  %v6454_v63 = vmul.f32 15.6875, %v12055_v50  ;;  %v12063_v50 = vld [vmem:[#allocation12_spill] sm:$0xff] }
 0x7d3   : > { %v4319_v4 = vpop.xlane.xlu0 %4318  ;;  %v5987_v20 = vsel %vm5194_vm14, %v5986_v23, %v5982_v43  ;;  %v6134_v38 = vrot.slane %v4782_v61, %v9078_v19 }
 0x7d4   : > { %v4283_v58 = vpop.xlane.xlu1 %4282  ;;  %v6228_v42 = vrot.slane %v4801_v52, %v9105_v34  ;;  %v4576_v26 = vadd.f32 %v4319_v4, %v12048_v12  ;;  %v4783_v12 = vmul.f32 0.0625, %v4527_v13 }
 0x7d6   : > { %v6229_v37 = vsel %vm5201_vm15, %v6228_v42, %v6224_v9  ;;  %v4832_v48 = vmul.f32 0.0625, %v4576_v26  ;;  %v4781_v42 = vmul.f32 0.0625, %v4525_v32  ;;  %v12061_v32 = vld [vmem:[#allocation107_spill] sm:$0xff] }
 0x7d7   : > { %v6407_v17 = vsel %vm6398_vm3, %v6229_v37, %v6406_v47  ;;  %v4321_v18 = vpop.xlane.xlu0 %4320  ;;  %v6367_v47 = vsel %vm5173_vm11, %v6366_v15, %v6362_v44  ;;  %v12056_v37 = vld [vmem:[#allocation64_spill] sm:$0xff]  ;;  %v12057_v44 = vld [vmem:[#allocation103_spill] sm:$0xff]  ;;  %v6139_v15 = vrot.slane %v4783_v12, %v9071_v46 }
 0x7d8   : > { %v4161_v55 = vpop.xlane.xlu1 %4160  ;;  %v4577_v31 = vadd.f32 %v4321_v18, %v12049_v35  ;;  %v6381_v25 = vrot.slane %v4832_v48, %v9100_v30  ;;  %v6372_v0 = vsel %vm5180_vm12, %v6371_v24, %v6367_v47  ;;  %v4557_v48 = vadd.f32 %v10405_v41, %v12056_v37  ;;  %v12058_v24 = vld [vmem:[#allocation105_spill] sm:$0xff] }
 0x7d9   : > { %v4497_v1 = vadd.f32 %v4161_v55, %v12050_v57  ;;  %v6377_v21 = vsel %vm5187_vm13, %v6376_v22, %v6372_v0  ;;  %v6129_v55 = vrot.slane %v4781_v42, %v9062_v2  ;;  %v12059_v22 = vld [vmem:[#allocation114_spill] sm:$0xff] }
 0x7da   : > { %v4833_v62 = vmul.f32 0.0625, %v4577_v31  ;;  %v6382_v60 = vsel %vm5194_vm14, %v6381_v25, %v6377_v21  ;;  %v12060_v31 = vld [vmem:[#allocation33_spill] sm:$0xff]  ;;  %v4813_v23 = vmul.f32 0.0625, %v4557_v48 }
 0x7db   : > { %v4753_v27 = vmul.f32 0.0625, %v4497_v1  ;;  %v6130_v41 = vsel %vm5173_vm11, %v6129_v55, %v10369_v16 }
 0x7dc   : > { %v4223_v6 = vpop.xlane.xlu1 %4222  ;;  %v6386_v49 = vrot.slane %v4833_v62, %v9105_v34  ;;  %v6135_v51 = vsel %vm5180_vm12, %v6134_v38, %v6130_v41  ;;  %v6287_v54 = vrot.slane %v4813_v23, %v9062_v2 }
 0x7dd   : > { %v5991_v14 = vrot.slane %v4753_v27, %v9105_v34  ;;  %v4528_v10 = vadd.f32 %v4223_v6, %v12054_v8  ;;  %v6140_v62 = vsel %vm5187_vm13, %v6139_v15, %v6135_v51 }
 0x7de   : > { %v6387_v52 = vsel %vm5201_vm15, %v6386_v49, %v6382_v60 }
 0x7df   : > { %v5992_v36 = vsel %vm5201_vm15, %v5991_v14, %v5987_v20  ;;  %v6408_v29 = vsel %vm6400_vm4, %v6387_v52, %v6407_v17  ;;  %v4784_v7 = vmul.f32 0.0625, %v4528_v10  ;;  %v4558_v17 = vadd.f32 %v4283_v58, %v12058_v24  ;;  %v12062_v14 = vld [vmem:[#allocation116_spill] sm:$0xff] }
 0x7e0   : > { %v6397_v28 = vsel %vm6396_vm2, %v5992_v36, %v10436_v5  ;;  %v4285_v4 = vpop.xlane.xlu1 %4284  ;;  %v10489_v26 = vsub.f32 %v6432_v53, %v6408_v29  ;;  %v10491_v9 = vsub.f32 %v4835_v39, %v6408_v29  ;;  %v10493_v33 = vsub.f32 %v6454_v63, %v6408_v29 }
 0x7e1   : > { %v4556_v5 = vadd.f32 %v10353_v11, %v12057_v44  ;;  %v4559_v35 = vadd.f32 %v4285_v4, %v12059_v22  ;;  %v6144_v1 = vrot.slane %v4784_v7, %v9100_v30  ;;  %v4814_v58 = vmul.f32 0.0625, %v4558_v17 }
 0x7e2   : > { %v6431_v53 = vmul.f32 15.8125, %v12063_v50  ;;  %v4834_v39 = vmul.f32 15.9375, %v12063_v50 }
 0x7e3   : > { %v4812_v25 = vmul.f32 0.0625, %v4556_v5  ;;  %v4815_v27 = vmul.f32 0.0625, %v4559_v35  ;;  %v6145_v0 = vsel %vm5194_vm14, %v6144_v1, %v6140_v62  ;;  %v6292_v21 = vrot.slane %v4814_v58, %v9078_v19 }
 0x7e4   : > { %v4225_v18 = vpop.xlane.xlu1 %4224 }
 0x7e5   : > { %v4529_v57 = vadd.f32 %v4225_v18, %v12060_v31  ;;  %v6282_v6 = vrot.slane %v4812_v25, %v9056_v56  ;;  %v6297_v49 = vrot.slane %v4815_v27, %v9071_v46 }
 0x7e7   : > { %v4785_v11 = vmul.f32 0.0625, %v4529_v57  ;;  %v6283_v60 = vsel %vm5166_vm10, %v6282_v6, %v10375_v45  ;;  %v6453_v45 = vmul.f32 15.6875, %v12063_v50 }
 0x7e8   : > { %v4287_v47 = vpop.xlane.xlu1 %4286  ;;  %v6288_v2 = vsel %vm5173_vm11, %v6287_v54, %v6283_v60 }
 0x7e9   : > { %v6149_v3 = vrot.slane %v4785_v11, %v9105_v34  ;;  %v4560_v43 = vadd.f32 %v4287_v47, %v12061_v32  ;;  %v6293_v52 = vsel %vm5180_vm12, %v6292_v21, %v6288_v2 }
 0x7ea   : > { %v6298_v56 = vsel %vm5187_vm13, %v6297_v49, %v6293_v52 }
 0x7eb   : > { %v6150_v16 = vsel %vm5201_vm15, %v6149_v3, %v6145_v0  ;;  %v4816_v59 = vmul.f32 0.0625, %v4560_v43 }
 0x7ec   : > { %v6399_v40 = vsel %vm6398_vm3, %v6150_v16, %v6397_v28  ;;  %v4289_v13 = vpop.xlane.xlu1 %4288 }
 0x7ed   : > { %v4561_v20 = vadd.f32 %v4289_v13, %v12062_v14  ;;  %v6302_v8 = vrot.slane %v4816_v59, %v9100_v30 }
 0x7ef   : > { %v4817_v10 = vmul.f32 0.0625, %v4561_v20  ;;  %v6303_v36 = vsel %vm5194_vm14, %v6302_v8, %v6298_v56 }
 0x7f1   : > { %v6307_v19 = vrot.slane %v4817_v10, %v9105_v34 }
 0x7f3   : > { %v6308_v46 = vsel %vm5201_vm15, %v6307_v19, %v6303_v36 }
 0x7f4   : > { %v6401_v30 = vsel %vm6400_vm4, %v6308_v46, %v6399_v40 }
 0x7f5   : > { %v6433_v61 = vsub.f32 %v6431_v53, %v6401_v30  ;;  %v6411_v28 = vsub.f32 %v4834_v39, %v6401_v30  ;;  %v6455_v4 = vsub.f32 %v6453_v45, %v6401_v30 }
 0x7f7   : > { %v6435_v29 = vmax.f32 %v6433_v61, %v10489_v26  ;;  %v6413_v63 = vmax.f32 %v6411_v28, %v10491_v9  ;;  %v6457_v34 = vmax.f32 %v6455_v4, %v10493_v33 }
 0x7f9   : > { %6436 = vmax.xlane.f32.xlu0 %v6435_v29  ;;  %6414 = vmax.xlane.f32.xlu1 %v6413_v63 }
 0x7fd   : > { %6458 = vmax.xlane.f32.xlu1 %v6457_v34 }
 0x882   : > { %v6437_v42 = vpop.xlane.xlu0 %6436  ;;  %v6415_v12 = vpop.xlane.xlu1 %6414 }
 0x883   : > { %v6438_v7 = vsub.f32 %v6433_v61, %v6437_v42  ;;  %v6439_v37 = vsub.f32 %v10489_v26, %v6437_v42  ;;  %v6416_v48 = vsub.f32 %v6411_v28, %v6415_v12  ;;  %v6417_v44 = vsub.f32 %v10491_v9, %v6415_v12 }
 0x885   : > { %v6440_v5 = vmul.f32 1.442695, %v6438_v7  ;;  %v6442_v38 = vmul.f32 1.442695, %v6439_v37  ;;  %v6418_v24 = vmul.f32 1.442695, %v6416_v48 }
 0x886   : > { %v6420_v17 = vmul.f32 1.442695, %v6417_v44  ;;  %v6459_v18 = vpop.xlane.xlu1 %6458 }
 0x887   : > { %6649 = vpow2.f32 %v6440_v5  ;;  %v6460_v55 = vsub.f32 %v6455_v4, %v6459_v18  ;;  %v6461_v15 = vsub.f32 %v10493_v33, %v6459_v18 }
 0x888   : > { %6651 = vpow2.f32 %v6442_v38 }
 0x889   : > { %6653 = vpow2.f32 %v6418_v24  ;;  %v6462_v22 = vmul.f32 1.442695, %v6460_v55  ;;  %v6464_v35 = vmul.f32 1.442695, %v6461_v15 }
 0x88a   : > { %6655 = vpow2.f32 %v6420_v17 }
 0x88b   : > { %6657 = vpow2.f32 %v6462_v22 }
 0x88c   : > { %6659 = vpow2.f32 %v6464_v35 }
 0x894   : > { %v6650_v26 = vpop.eup %6649 }
 0x895   : > { %v6652_v31 = vpop.eup %6651 }
 0x896   : > { %v6654_v57 = vpop.eup %6653  ;;  %v6444_v9 = vadd.f32 %v6652_v31, %v6650_v26 }
 0x897   : > { %v6656_v1 = vpop.eup %6655 }
 0x898   : > { %v6658_v41 = vpop.eup %6657  ;;  %6445 = vadd.xlane.f32.xlu1 %v6444_v9  ;;  %v6422_v23 = vadd.f32 %v6656_v1, %v6654_v57 }
 0x899   : > { %v6660_v11 = vpop.eup %6659 }
 0x89a   : > { %6423 = vadd.xlane.f32.xlu0 %v6422_v23  ;;  %v6466_v25 = vadd.f32 %v6660_v11, %v6658_v41 }
 0x89e   : > { %6467 = vadd.xlane.f32.xlu0 %v6466_v25 }
 0x921   : > { %v6446_v33 = vpop.xlane.xlu1 %6445 }
 0x922   : > { %6661 = vrcp.f32 %v6446_v33 }
 0x923   : > { %v6424_v51 = vpop.xlane.xlu0 %6423 }
 0x924   : > { %6663 = vrcp.f32 %v6424_v51 }
 0x927   : > { %v6468_v58 = vpop.xlane.xlu0 %6467 }
 0x928   : > { %6665 = vrcp.f32 %v6468_v58 }
 0x92f   : > { %v6662_v47 = vpop.eup %6661 }
 0x930   : > { %v6449_v32 = vmul.f32 %v6662_v47, %v6650_v26  ;;  %v6450_v43 = vmul.f32 %v6662_v47, %v6652_v31 }
 0x931   : > { %v6664_v62 = vpop.eup %6663 }
 0x932   : > { %v6427_v27 = vmul.f32 %v6664_v62, %v6654_v57  ;;  %v6428_v3 = vmul.f32 %v6664_v62, %v6656_v1 }
 0x934   : > { %v6451_v59 = vadd.f32 %v6449_v32, %v6427_v27  ;;  %v6452_v6 = vadd.f32 %v6450_v43, %v6428_v3 }
 0x935   : > { %v6666_v0 = vpop.eup %6665 }
 0x936   : > { %v6471_v54 = vmul.f32 %v6666_v0, %v6658_v41  ;;  %v6472_v16 = vmul.f32 %v6666_v0, %v6660_v11 }
 0x938   : > { %v6473_v21 = vadd.f32 %v6471_v54, %v6451_v59  ;;  %v6474_v40 = vadd.f32 %v6472_v16, %v6452_v6 }
 0x93a   : > { %6475 = vst [vmem:[%s173_s8] sm:$0xff] %v6473_v21  ;;  %6476 = vst [vmem:[%s173_s8 + $0x8] sm:$0xff] %v6474_v40 }
 0x93b   : > { %6734 = shalt.err (!%p6731_p0)
}
 0x93c   : > { %s6735_s28 = scalar_lea.hbm %s10544_s23, 256  ;;  %s6739_s5 = scalar_lea.hbm %s10583_s2, 512 }
 0x93d   : > { %p6736_p5 = scmp.ne.s32.totalorder %s10544_s23, %s6735_s28  ;;  %p6740_p1 = scmp.lt.s32.totalorder %s10544_s23, %s10583_s2 }
 0x93e   : > { %p6741_p4 = scmp.lt.s32.totalorder %s6739_s5, %s6735_s28 }
 0x93f   : > { %p6737_p9 = pnand %p6736_p5, %p12064_p3 }
 0x940   : > { %p6742_p6 = por %p6741_p4, %p6740_p1 }
 0x941   : > { %p6738_p12 = pneg %p6737_p9 }
 0x943   : > { %p6743_p8 = pnand %p6742_p6, %p6738_p12 }
 0x945   : > { %6746 = shalt.err (!%p6743_p8)
}
 0x946   : > { %6594 = dma.vmem_to_hbm [thread:$0]  (%p12064_p3), %s6493_s18, 256, %s10544_s23, %s6478_s24  }
 0x947 PF: > { %s6504_s14 = sand.u32 1, %s6777_s9   ;;  %p12065_p11 = scmp.ne.s32.totalorder %s10857_s16, 0 }
 0x948   : > { %p12066_p7 = scmp.ge.s32.totalorder %s6789_s12, 2  ;;  %s6505_s22 = scalar_lea.sflag [#allocation4], %s6504_s14 }
 0x94a   : > { %p6605_p10 = pnand %p12066_p7, %p12065_p11 }
 0x94c   : > { %p6606_p2 = pneg %p6605_p10 }
 0x94e   : > { %6772 = dma.done.wait (%p6606_p2), %s6505_s22, 256  }
 0x94f   : > { %6774 = vsyncadd (%p6606_p2), %s6505_s22, 4294967040  ;;  %p16_p13 = scmp.ge.s32.totalorder %s6867_s21, 4   ;;  %s12067_s9 = smov %s6781_s10 }
 0x950   : > { %s12068_s10 = smov %s6785_s11  ;;  %s12069_s11 = smov %s6884_s29 }
 0x951   : > { %s12070_s12 = smov %s6867_s21  ;;  %18 = sbr.rel (!%p16_p13) target bundleno = 6 (0x6), region = 77 }
 0x956   :  { %6510 = vsyncpa [#allocation3], 1 }
 0x957   :  { %6512 = vsyncpa [#allocation3 + $0x1], 1 }
 0x958   :  { %6513 = vsyncpa [#allocation6], 1 }
 0x959   :  { %6514 = vsyncpa [#allocation4], 1 }
 0x95a   :  { %6516 = vsyncpa [#allocation4 + $0x1], 1 }

</bundles_post_ra>
